<compile_context>
chip_gen: v7x
topology: tpu7x:2x2x1
jax: 0.10.0
libtpu: 0.0.40
codegen_flags: <defaults>
</compile_context>

<pallas_src>
import functools
import math

import jax
import jax.numpy as jnp
from jax.experimental import pallas as pl
from jax.experimental.pallas import tpu as pltpu

FEATURE_DIM = 32
NUM_HEADS = 4
HEAD_DIM = FEATURE_DIM // NUM_HEADS
NUM_LAYERS = 2
LN_EPS = 1e-5


# ---------------------------------------------------------------------------
# Fused Pallas kernel: whole 2-layer cross-modal transformer forward
# ---------------------------------------------------------------------------
def _fused_forward_kernel(text_ref, voice_ref,
                          wqkvo_ref, bqkvo_ref,
                          wffn1_ref, bffn1_ref,
                          wffn2_ref, bffn2_ref,
                          ln_ref,
                          text_out_ref, voice_out_ref,
                          ctx_ref,
                          *, batch, s_text, s_voice):
    D = FEATURE_DIM
    HD = HEAD_DIM
    scale = 1.0 / math.sqrt(HD)

    def layer_norm(x, gamma, beta):
        # PyTorch nn.LayerNorm: biased variance, eps inside the sqrt.
        mu = jnp.mean(x, axis=-1, keepdims=True)
        var = jnp.mean((x - mu) ** 2, axis=-1, keepdims=True)
        return (x - mu) * jax.lax.rsqrt(var + LN_EPS) * gamma + beta

    def ln_params(row):
        # (gamma, beta) rows from the packed LN table, kept as (1, D).
        return ln_ref[pl.ds(row, 1), :], ln_ref[pl.ds(row + 1, 1), :]

    def cross_attention(q_tokens, kv_tokens, sq, sk, idx):
        # q_tokens: (batch*sq, D) LayerNormed query-side tokens
        # kv_tokens: (batch*sk, D) LayerNormed key/value-side tokens
        w = wqkvo_ref[idx]                       # (D, 4D) = [Wq | Wk | Wv | Wo]
        b = bqkvo_ref[pl.ds(idx, 1), :]          # (1, 4D)

        q = jnp.dot(q_tokens, w[:, 0:D],
                    preferred_element_type=jnp.float32) + b[:, 0:D]
        kv = jnp.dot(kv_tokens, w[:, D:3 * D],
                     preferred_element_type=jnp.float32) + b[:, D:3 * D]
        k = kv[:, 0:D]
        v = kv[:, D:2 * D]

        # Per-(batch, head) attention; context written straight into a VMEM
        # scratch via static slices (no lane-axis concatenate).
        for bi in range(batch):
            qb = q[bi * sq:(bi + 1) * sq, :]
            kb = k[bi * sk:(bi + 1) * sk, :]
            vb = v[bi * sk:(bi + 1) * sk, :]
            for h in range(NUM_HEADS):
                qh = qb[:, h * HD:(h + 1) * HD]
                kh = kb[:, h * HD:(h + 1) * HD]
                vh = vb[:, h * HD:(h + 1) * HD]
                # q @ k^T without an explicit transpose op.
                s = jax.lax.dot_general(
                    qh, kh, (((1,), (1,)), ((), ())),
                    preferred_element_type=jnp.float32) * scale
                s = s - jnp.max(s, axis=-1, keepdims=True)
                p = jnp.exp(s)
                p = p * pl.reciprocal(jnp.sum(p, axis=-1, keepdims=True))
                ctx_ref[pl.ds(bi * sq, sq), pl.ds(h * HD, HD)] = jnp.dot(
                    p, vh, preferred_element_type=jnp.float32)

        ctx = ctx_ref[pl.ds(0, batch * sq), :]   # (batch*sq, D)
        return jnp.dot(ctx, w[:, 3 * D:4 * D],
                       preferred_element_type=jnp.float32) + b[:, 3 * D:4 * D]

    def ffn(x, idx):
        w1 = wffn1_ref[idx]                      # (D, 4D)  (lane-dense, 128)
        b1 = bffn1_ref[pl.ds(idx, 1), :]         # (1, 4D)
        w2 = wffn2_ref[idx]                      # (4D, D)
        b2 = bffn2_ref[pl.ds(idx, 1), :]         # (1, D)
        h = jnp.dot(x, w1, preferred_element_type=jnp.float32) + b1
        h = jnp.maximum(h, 0.0)                  # ReLU
        return jnp.dot(h, w2, preferred_element_type=jnp.float32) + b2

    text = text_ref[...]      # (batch*s_text, D)  residual stream (f32)
    voice = voice_ref[...]    # (batch*s_voice, D) residual stream (f32)

    for layer in range(NUM_LAYERS):
        base = layer * 8                          # LN table row base
        tn1_g, tn1_b = ln_params(base + 0)        # text_norm1
        tn2_g, tn2_b = ln_params(base + 2)        # text_norm2
        vn1_g, vn1_b = ln_params(base + 4)        # voice_norm1
        vn2_g, vn2_b = ln_params(base + 6)        # voice_norm2
        idx = 2 * layer

        # ---- text attends to voice + residual ----
        v_in = layer_norm(voice, vn1_g, vn1_b)
        t_in = layer_norm(text, tn1_g, tn1_b)
        text = text + cross_attention(t_in, v_in, s_text, s_voice, idx + 0)
        # ---- text FFN + residual ----
        text = text + ffn(layer_norm(text, tn2_g, tn2_b), idx + 0)
        # ---- voice attends to (updated) text + residual ----
        t_in = layer_norm(text, tn1_g, tn1_b)     # text changed: recompute
        # voice unchanged so far this layer -> reuse v_in (identical value)
        voice = voice + cross_attention(v_in, t_in, s_voice, s_text, idx + 1)
        # ---- voice FFN + residual ----
        voice = voice + ffn(layer_norm(voice, vn2_g, vn2_b), idx + 1)

    text_out_ref[...] = text
    voice_out_ref[...] = voice


# ---------------------------------------------------------------------------
# Host-side parameter packing (7 operands instead of 14 per sub-block)
# ---------------------------------------------------------------------------
def pack_params(params):
    wqkvo, bqkvo = [], []
    wffn1, bffn1, wffn2, bffn2 = [], [], [], []
    ln_rows = []
    for p in params:
        for attn in (p["t2v_attn"], p["v2t_attn"]):
            wqkvo.append(jnp.concatenate(
                [attn["wq"], attn["wk"], attn["wv"], attn["wo"]], axis=1))
            bqkvo.append(jnp.concatenate(
                [attn["bq"], attn["bk"], attn["bv"], attn["bo"]], axis=1)[0])
        for f in (p["text_ffn"], p["voice_ffn"]):
            wffn1.append(f["w1"]); bffn1.append(f["b1"][0])
            wffn2.append(f["w2"]); bffn2.append(f["b2"][0])
        for ln in (p["text_norm1"], p["text_norm2"],
                   p["voice_norm1"], p["voice_norm2"]):
            ln_rows.append(ln["gamma"][0]); ln_rows.append(ln["beta"][0])
    return (jnp.stack(wqkvo),   # (2L, D, 4D) = (4, 32, 128)
            jnp.stack(bqkvo),   # (2L, 4D)    = (4, 128)
            jnp.stack(wffn1),   # (2L, D, 4D) = (4, 32, 128)
            jnp.stack(bffn1),   # (2L, 4D)    = (4, 128)
            jnp.stack(wffn2),   # (2L, 4D, D) = (4, 128, 32)
            jnp.stack(bffn2),   # (2L, D)     = (4, 32)
            jnp.stack(ln_rows)) # (8L, D)     = (16, 32)


def cross_modal_transformer(text_features, voice_features, params):
    """Pallas implementation of CrossModalTransformer.forward (inference)."""
    if text_features.ndim == 2:
        text_features = text_features[:, None, :]
    if voice_features.ndim == 2:
        voice_features = voice_features[:, None, :]
    B, St, D = text_features.shape
    Sv = voice_features.shape[1]

    packed = pack_params(params)
    text2d = text_features.reshape(B * St, D).astype(jnp.float32)
    voice2d = voice_features.reshape(B * Sv, D).astype(jnp.float32)

    kernel = functools.partial(_fused_forward_kernel,
                               batch=B, s_text=St, s_voice=Sv)

    # Single pallas_call: no grid, every operand fully resident in VMEM
    # (total working set ~220 KB, far below any generation's VMEM limit).
    t_out, v_out = pl.pallas_call(
        kernel,
        out_shape=(jax.ShapeDtypeStruct((B * St, D), jnp.float32),
                   jax.ShapeDtypeStruct((B * Sv, D), jnp.float32)),
        scratch_shapes=[pltpu.VMEM((B * max(St, Sv), D), jnp.float32)],
    )(text2d, voice2d, *packed)

    return t_out.reshape(B, St, D), v_out.reshape(B, Sv, D)


# ---------------------------------------------------------------------------
# Deterministic parameter init
# ---------------------------------------------------------------------------
def init_params(key):
    def linear(k, din, dout, scale=0.05):
        kw, kb = jax.random.split(k)
        w = scale * jax.random.normal(kw, (din, dout), jnp.float32)
        b = scale * jax.random.normal(kb, (1, dout), jnp.float32)
        return w, b

    def attn_params(k):
        ks = jax.random.split(k, 4)
        wq, bq = linear(ks[0], FEATURE_DIM, FEATURE_DIM)
        wk, bk = linear(ks[1], FEATURE_DIM, FEATURE_DIM)
        wv, bv = linear(ks[2], FEATURE_DIM, FEATURE_DIM)
        wo, bo = linear(ks[3], FEATURE_DIM, FEATURE_DIM)
        return dict(wq=wq, bq=bq, wk=wk, bk=bk, wv=wv, bv=bv, wo=wo, bo=bo)

    def ln_params(k):
        kg, kb = jax.random.split(k)
        return dict(
            gamma=1.0 + 0.1 * jax.random.normal(kg, (1, FEATURE_DIM), jnp.float32),
            beta=0.1 * jax.random.normal(kb, (1, FEATURE_DIM), jnp.float32),
        )

    def ffn_params(k):
        k1, k2 = jax.random.split(k)
        w1, b1 = linear(k1, FEATURE_DIM, FEATURE_DIM * 4)
        w2, b2 = linear(k2, FEATURE_DIM * 4, FEATURE_DIM)
        return dict(w1=w1, b1=b1, w2=w2, b2=b2)

    params = []
    for _ in range(NUM_LAYERS):
        key, *ks = jax.random.split(key, 9)
        params.append(dict(
            t2v_attn=attn_params(ks[0]),
            v2t_attn=attn_params(ks[1]),
            text_ffn=ffn_params(ks[2]),
            voice_ffn=ffn_params(ks[3]),
            text_norm1=ln_params(ks[4]),
            text_norm2=ln_params(ks[5]),
            voice_norm1=ln_params(ks[6]),
            voice_norm2=ln_params(ks[7]),
        ))
    return params


# ---------------------------------------------------------------------------
# Pure-JAX reference (mirrors the PyTorch forward exactly) for validation
# ---------------------------------------------------------------------------
def _ref_ln(x, p):
    mu = jnp.mean(x, axis=-1, keepdims=True)
    var = jnp.mean((x - mu) ** 2, axis=-1, keepdims=True)
    return (x - mu) / jnp.sqrt(var + LN_EPS) * p["gamma"] + p["beta"]


def _ref_attn(q_in, kv_in, p):
    q = q_in @ p["wq"] + p["bq"]
    k = kv_in @ p["wk"] + p["bk"]
    v = kv_in @ p["wv"] + p["bv"]
    B, Sq, D = q.shape
    Sk = k.shape[1]
    qh = q.reshape(B, Sq, NUM_HEADS, HEAD_DIM).transpose(0, 2, 1, 3)
    kh = k.reshape(B, Sk, NUM_HEADS, HEAD_DIM).transpose(0, 2, 1, 3)
    vh = v.reshape(B, Sk, NUM_HEADS, HEAD_DIM).transpose(0, 2, 1, 3)
    s = jnp.einsum("bhqd,bhkd->bhqk", qh, kh) / math.sqrt(HEAD_DIM)
    w = jax.nn.softmax(s, axis=-1)
    ctx = jnp.einsum("bhqk,bhkd->bhqd", w, vh).transpose(0, 2, 1, 3).reshape(B, Sq, D)
    return ctx @ p["wo"] + p["bo"]


def _ref_ffn(x, p):
    return jnp.maximum(x @ p["w1"] + p["b1"], 0.0) @ p["w2"] + p["b2"]


def ref_forward(text, voice, params):
    if text.ndim == 2:
        text = text[:, None, :]
    if voice.ndim == 2:
        voice = voice[:, None, :]
    for i in range(NUM_LAYERS):
        p = params[i]
        t_in = _ref_ln(text, p["text_norm1"])
        v_in = _ref_ln(voice, p["voice_norm1"])
        text = text + _ref_attn(t_in, v_in, p["t2v_attn"])
        text = text + _ref_ffn(_ref_ln(text, p["text_norm2"]), p["text_ffn"])
        t_in = _ref_ln(text, p["text_norm1"])
        v_in = _ref_ln(voice, p["voice_norm1"])
        voice = voice + _ref_attn(v_in, t_in, p["v2t_attn"])
        voice = voice + _ref_ffn(_ref_ln(voice, p["voice_norm2"]), p["voice_ffn"])
    return text, voice


# ---------------------------------------------------------------------------
if __name__ == "__main__":
    key = jax.random.PRNGKey(0)
    k_params, k_text, k_voice = jax.random.split(key, 3)

    B, S_TEXT, S_VOICE = 2, 8, 16
    params = init_params(k_params)
    text = jax.random.normal(k_text, (B, S_TEXT, FEATURE_DIM), jnp.float32)
    voice = jax.random.normal(k_voice, (B, S_VOICE, FEATURE_DIM), jnp.float32)

    fused = jax.jit(cross_modal_transformer)
    text_out, voice_out = fused(text, voice, params)
    text_out = jax.block_until_ready(text_out)
    voice_out = jax.block_until_ready(voice_out)

    # Validate against the pure-JAX reference of the PyTorch forward.
    text_ref, voice_ref = ref_forward(text, voice, params)
    assert text_out.shape == (B, S_TEXT, FEATURE_DIM)
    assert voice_out.shape == (B, S_VOICE, FEATURE_DIM)
    assert jnp.allclose(text_out, text_ref, rtol=1e-4, atol=1e-4)
    assert jnp.allclose(voice_out, voice_ref, rtol=1e-4, atol=1e-4)

    print("KERNEL_OK")
</pallas_src>

<mosaic_0001>
module attributes {stable_mosaic.version = 11 : i64} {
  func.func @_fused_forward_kernel(%arg0: memref<16x32xf32, #tpu.memory_space<vmem>>, %arg1: memref<32x32xf32, #tpu.memory_space<vmem>>, %arg2: memref<4x32x128xf32, #tpu.memory_space<vmem>>, %arg3: memref<4x128xf32, #tpu.memory_space<vmem>>, %arg4: memref<4x32x128xf32, #tpu.memory_space<vmem>>, %arg5: memref<4x128xf32, #tpu.memory_space<vmem>>, %arg6: memref<4x128x32xf32, #tpu.memory_space<vmem>>, %arg7: memref<4x32xf32, #tpu.memory_space<vmem>>, %arg8: memref<16x32xf32, #tpu.memory_space<vmem>>, %arg9: memref<16x32xf32, #tpu.memory_space<vmem>>, %arg10: memref<32x32xf32, #tpu.memory_space<vmem>>, %arg11: memref<32x32xf32, #tpu.memory_space<vmem>>) attributes {dimension_semantics = [], scalar_prefetch = 0 : i64, scratch_operands = 1 : i64, tpu.core_type = #tpu.core_type<tc>} {
    %c0 = arith.constant 0 : index
    %c0_0 = arith.constant 0 : index
    %0 = vector.load %arg0[%c0, %c0_0] : memref<16x32xf32, #tpu.memory_space<vmem>>, vector<16x32xf32>
    %c0_1 = arith.constant 0 : index
    %c0_2 = arith.constant 0 : index
    %1 = vector.load %arg1[%c0_1, %c0_2] : memref<32x32xf32, #tpu.memory_space<vmem>>, vector<32x32xf32>
    %c0_3 = arith.constant 0 : index
    %c0_4 = arith.constant 0 : index
    %2 = vector.load %arg8[%c0_3, %c0_4] : memref<16x32xf32, #tpu.memory_space<vmem>>, vector<1x32xf32>
    %c1 = arith.constant 1 : index
    %c0_5 = arith.constant 0 : index
    %3 = vector.load %arg8[%c1, %c0_5] : memref<16x32xf32, #tpu.memory_space<vmem>>, vector<1x32xf32>
    %c2 = arith.constant 2 : index
    %c0_6 = arith.constant 0 : index
    %4 = vector.load %arg8[%c2, %c0_6] : memref<16x32xf32, #tpu.memory_space<vmem>>, vector<1x32xf32>
    %c3 = arith.constant 3 : index
    %c0_7 = arith.constant 0 : index
    %5 = vector.load %arg8[%c3, %c0_7] : memref<16x32xf32, #tpu.memory_space<vmem>>, vector<1x32xf32>
    %c4 = arith.constant 4 : index
    %c0_8 = arith.constant 0 : index
    %6 = vector.load %arg8[%c4, %c0_8] : memref<16x32xf32, #tpu.memory_space<vmem>>, vector<1x32xf32>
    %c5 = arith.constant 5 : index
    %c0_9 = arith.constant 0 : index
    %7 = vector.load %arg8[%c5, %c0_9] : memref<16x32xf32, #tpu.memory_space<vmem>>, vector<1x32xf32>
    %c6 = arith.constant 6 : index
    %c0_10 = arith.constant 0 : index
    %8 = vector.load %arg8[%c6, %c0_10] : memref<16x32xf32, #tpu.memory_space<vmem>>, vector<1x32xf32>
    %c7 = arith.constant 7 : index
    %c0_11 = arith.constant 0 : index
    %9 = vector.load %arg8[%c7, %c0_11] : memref<16x32xf32, #tpu.memory_space<vmem>>, vector<1x32xf32>
    %cst = arith.constant dense<0.000000e+00> : vector<32xf32>
    %10 = vector.multi_reduction <add>, %1, %cst [1] : vector<32x32xf32> to vector<32xf32>
    %11 = vector.shape_cast %10 : vector<32xf32> to vector<32x1xf32>
    %cst_12 = arith.constant 3.200000e+01 : f32
    %12 = vector.broadcast %cst_12 : f32 to vector<32x1xf32>
    %13 = arith.divf %11, %12 : vector<32x1xf32>
    %14 = vector.broadcast %13 : vector<32x1xf32> to vector<32x32xf32>
    %15 = arith.subf %1, %14 : vector<32x32xf32>
    %16 = arith.mulf %15, %15 : vector<32x32xf32>
    %cst_13 = arith.constant dense<0.000000e+00> : vector<32xf32>
    %17 = vector.multi_reduction <add>, %16, %cst_13 [1] : vector<32x32xf32> to vector<32xf32>
    %18 = vector.shape_cast %17 : vector<32xf32> to vector<32x1xf32>
    %cst_14 = arith.constant 3.200000e+01 : f32
    %19 = vector.broadcast %cst_14 : f32 to vector<32x1xf32>
    %20 = arith.divf %18, %19 : vector<32x1xf32>
    %21 = vector.broadcast %13 : vector<32x1xf32> to vector<32x32xf32>
    %22 = arith.subf %1, %21 : vector<32x32xf32>
    %cst_15 = arith.constant 9.99999974E-6 : f32
    %23 = vector.broadcast %cst_15 : f32 to vector<32x1xf32>
    %24 = arith.addf %20, %23 : vector<32x1xf32>
    %25 = math.rsqrt %24 : vector<32x1xf32>
    %26 = vector.broadcast %25 : vector<32x1xf32> to vector<32x32xf32>
    %27 = arith.mulf %22, %26 : vector<32x32xf32>
    %28 = vector.broadcast %6 : vector<1x32xf32> to vector<32x32xf32>
    %29 = arith.mulf %27, %28 : vector<32x32xf32>
    %30 = vector.broadcast %7 : vector<1x32xf32> to vector<32x32xf32>
    %31 = arith.addf %29, %30 : vector<32x32xf32>
    %cst_16 = arith.constant dense<0.000000e+00> : vector<16xf32>
    %32 = vector.multi_reduction <add>, %0, %cst_16 [1] : vector<16x32xf32> to vector<16xf32>
    %33 = vector.shape_cast %32 : vector<16xf32> to vector<16x1xf32>
    %cst_17 = arith.constant 3.200000e+01 : f32
    %34 = vector.broadcast %cst_17 : f32 to vector<16x1xf32>
    %35 = arith.divf %33, %34 : vector<16x1xf32>
    %36 = vector.broadcast %35 : vector<16x1xf32> to vector<16x32xf32>
    %37 = arith.subf %0, %36 : vector<16x32xf32>
    %38 = arith.mulf %37, %37 : vector<16x32xf32>
    %cst_18 = arith.constant dense<0.000000e+00> : vector<16xf32>
    %39 = vector.multi_reduction <add>, %38, %cst_18 [1] : vector<16x32xf32> to vector<16xf32>
    %40 = vector.shape_cast %39 : vector<16xf32> to vector<16x1xf32>
    %cst_19 = arith.constant 3.200000e+01 : f32
    %41 = vector.broadcast %cst_19 : f32 to vector<16x1xf32>
    %42 = arith.divf %40, %41 : vector<16x1xf32>
    %43 = vector.broadcast %35 : vector<16x1xf32> to vector<16x32xf32>
    %44 = arith.subf %0, %43 : vector<16x32xf32>
    %cst_20 = arith.constant 9.99999974E-6 : f32
    %45 = vector.broadcast %cst_20 : f32 to vector<16x1xf32>
    %46 = arith.addf %42, %45 : vector<16x1xf32>
    %47 = math.rsqrt %46 : vector<16x1xf32>
    %48 = vector.broadcast %47 : vector<16x1xf32> to vector<16x32xf32>
    %49 = arith.mulf %44, %48 : vector<16x32xf32>
    %50 = vector.broadcast %2 : vector<1x32xf32> to vector<16x32xf32>
    %51 = arith.mulf %49, %50 : vector<16x32xf32>
    %52 = vector.broadcast %3 : vector<1x32xf32> to vector<16x32xf32>
    %53 = arith.addf %51, %52 : vector<16x32xf32>
    %c0_21 = arith.constant 0 : index
    %c0_22 = arith.constant 0 : index
    %c0_23 = arith.constant 0 : index
    %54 = vector.load %arg2[%c0_21, %c0_22, %c0_23] : memref<4x32x128xf32, #tpu.memory_space<vmem>>, vector<1x32x128xf32>
    %55 = vector.shape_cast %54 : vector<1x32x128xf32> to vector<32x128xf32>
    %c0_24 = arith.constant 0 : index
    %c0_25 = arith.constant 0 : index
    %56 = vector.load %arg3[%c0_24, %c0_25] : memref<4x128xf32, #tpu.memory_space<vmem>>, vector<1x128xf32>
    %57 = vector.extract_strided_slice %55 {offsets = [0, 0], sizes = [32, 32], strides = [1, 1]} : vector<32x128xf32> to vector<32x32xf32>
    %cst_26 = arith.constant dense<0.000000e+00> : vector<16x32xf32>
    %58 = tpu.matmul %53, %57, %cst_26 {dimension_numbers = #tpu.dot_dimension_numbers<[1], [0], [0], [1], [0, 0, 1, 1], [], []>} : vector<16x32xf32>, vector<32x32xf32>, vector<16x32xf32> -> vector<16x32xf32>
    %59 = vector.extract_strided_slice %56 {offsets = [0, 0], sizes = [1, 32], strides = [1, 1]} : vector<1x128xf32> to vector<1x32xf32>
    %60 = vector.broadcast %59 : vector<1x32xf32> to vector<16x32xf32>
    %61 = arith.addf %58, %60 : vector<16x32xf32>
    %62 = vector.extract_strided_slice %55 {offsets = [0, 32], sizes = [32, 64], strides = [1, 1]} : vector<32x128xf32> to vector<32x64xf32>
    %cst_27 = arith.constant dense<0.000000e+00> : vector<32x64xf32>
    %63 = tpu.matmul %31, %62, %cst_27 {dimension_numbers = #tpu.dot_dimension_numbers<[1], [0], [0], [1], [0, 0, 1, 1], [], []>} : vector<32x32xf32>, vector<32x64xf32>, vector<32x64xf32> -> vector<32x64xf32>
    %64 = vector.extract_strided_slice %56 {offsets = [0, 32], sizes = [1, 64], strides = [1, 1]} : vector<1x128xf32> to vector<1x64xf32>
    %65 = vector.broadcast %64 : vector<1x64xf32> to vector<32x64xf32>
    %66 = arith.addf %63, %65 : vector<32x64xf32>
    %67 = vector.extract_strided_slice %66 {offsets = [0, 0], sizes = [32, 32], strides = [1, 1]} : vector<32x64xf32> to vector<32x32xf32>
    %68 = vector.extract_strided_slice %66 {offsets = [0, 32], sizes = [32, 32], strides = [1, 1]} : vector<32x64xf32> to vector<32x32xf32>
    %69 = vector.extract_strided_slice %61 {offsets = [0, 0], sizes = [8, 32], strides = [1, 1]} : vector<16x32xf32> to vector<8x32xf32>
    %70 = vector.extract_strided_slice %67 {offsets = [0, 0], sizes = [16, 32], strides = [1, 1]} : vector<32x32xf32> to vector<16x32xf32>
    %71 = vector.extract_strided_slice %68 {offsets = [0, 0], sizes = [16, 32], strides = [1, 1]} : vector<32x32xf32> to vector<16x32xf32>
    %72 = vector.extract_strided_slice %69 {offsets = [0, 0], sizes = [8, 8], strides = [1, 1]} : vector<8x32xf32> to vector<8x8xf32>
    %73 = vector.extract_strided_slice %70 {offsets = [0, 0], sizes = [16, 8], strides = [1, 1]} : vector<16x32xf32> to vector<16x8xf32>
    %74 = vector.extract_strided_slice %71 {offsets = [0, 0], sizes = [16, 8], strides = [1, 1]} : vector<16x32xf32> to vector<16x8xf32>
    %cst_28 = arith.constant dense<0.000000e+00> : vector<8x16xf32>
    %75 = tpu.matmul %72, %73, %cst_28 {dimension_numbers = #tpu.dot_dimension_numbers<[1], [1], [0], [0], [0, 0, 1, 0], [], []>} : vector<8x8xf32>, vector<16x8xf32>, vector<8x16xf32> -> vector<8x16xf32>
    %cst_29 = arith.constant 0.353553385 : f32
    %76 = vector.broadcast %cst_29 : f32 to vector<8x16xf32>
    %77 = arith.mulf %75, %76 : vector<8x16xf32>
    %cst_30 = arith.constant dense<0xFF800000> : vector<8xf32>
    %78 = vector.multi_reduction <maximumf>, %77, %cst_30 [1] : vector<8x16xf32> to vector<8xf32>
    %79 = vector.shape_cast %78 : vector<8xf32> to vector<8x1xf32>
    %80 = vector.broadcast %79 : vector<8x1xf32> to vector<8x16xf32>
    %81 = arith.subf %77, %80 : vector<8x16xf32>
    %82 = math.exp %81 : vector<8x16xf32>
    %cst_31 = arith.constant dense<0.000000e+00> : vector<8xf32>
    %83 = vector.multi_reduction <add>, %82, %cst_31 [1] : vector<8x16xf32> to vector<8xf32>
    %84 = vector.shape_cast %83 : vector<8xf32> to vector<8x1xf32>
    %85 = tpu.reciprocal %84 : vector<8x1xf32> -> vector<8x1xf32>
    %86 = vector.broadcast %85 : vector<8x1xf32> to vector<8x16xf32>
    %87 = arith.mulf %82, %86 : vector<8x16xf32>
    %cst_32 = arith.constant dense<0.000000e+00> : vector<8x8xf32>
    %88 = tpu.matmul %87, %74, %cst_32 {dimension_numbers = #tpu.dot_dimension_numbers<[1], [0], [0], [1], [0, 0, 1, 1], [], []>} : vector<8x16xf32>, vector<16x8xf32>, vector<8x8xf32> -> vector<8x8xf32>
    %c0_33 = arith.constant 0 : index
    %c0_34 = arith.constant 0 : index
    %89 = vector.load %arg11[%c0_33, %c0_34] : memref<32x32xf32, #tpu.memory_space<vmem>>, vector<8x8xf32>
    tpu.vector_store %arg11[%c0_33, %c0_34], %88 {strides = array<i32>} : memref<32x32xf32, #tpu.memory_space<vmem>>, vector<8x8xf32>,
    %90 = vector.extract_strided_slice %69 {offsets = [0, 8], sizes = [8, 8], strides = [1, 1]} : vector<8x32xf32> to vector<8x8xf32>
    %91 = vector.extract_strided_slice %70 {offsets = [0, 8], sizes = [16, 8], strides = [1, 1]} : vector<16x32xf32> to vector<16x8xf32>
    %92 = vector.extract_strided_slice %71 {offsets = [0, 8], sizes = [16, 8], strides = [1, 1]} : vector<16x32xf32> to vector<16x8xf32>
    %cst_35 = arith.constant dense<0.000000e+00> : vector<8x16xf32>
    %93 = tpu.matmul %90, %91, %cst_35 {dimension_numbers = #tpu.dot_dimension_numbers<[1], [1], [0], [0], [0, 0, 1, 0], [], []>} : vector<8x8xf32>, vector<16x8xf32>, vector<8x16xf32> -> vector<8x16xf32>
    %cst_36 = arith.constant 0.353553385 : f32
    %94 = vector.broadcast %cst_36 : f32 to vector<8x16xf32>
    %95 = arith.mulf %93, %94 : vector<8x16xf32>
    %cst_37 = arith.constant dense<0xFF800000> : vector<8xf32>
    %96 = vector.multi_reduction <maximumf>, %95, %cst_37 [1] : vector<8x16xf32> to vector<8xf32>
    %97 = vector.shape_cast %96 : vector<8xf32> to vector<8x1xf32>
    %98 = vector.broadcast %97 : vector<8x1xf32> to vector<8x16xf32>
    %99 = arith.subf %95, %98 : vector<8x16xf32>
    %100 = math.exp %99 : vector<8x16xf32>
    %cst_38 = arith.constant dense<0.000000e+00> : vector<8xf32>
    %101 = vector.multi_reduction <add>, %100, %cst_38 [1] : vector<8x16xf32> to vector<8xf32>
    %102 = vector.shape_cast %101 : vector<8xf32> to vector<8x1xf32>
    %103 = tpu.reciprocal %102 : vector<8x1xf32> -> vector<8x1xf32>
    %104 = vector.broadcast %103 : vector<8x1xf32> to vector<8x16xf32>
    %105 = arith.mulf %100, %104 : vector<8x16xf32>
    %cst_39 = arith.constant dense<0.000000e+00> : vector<8x8xf32>
    %106 = tpu.matmul %105, %92, %cst_39 {dimension_numbers = #tpu.dot_dimension_numbers<[1], [0], [0], [1], [0, 0, 1, 1], [], []>} : vector<8x16xf32>, vector<16x8xf32>, vector<8x8xf32> -> vector<8x8xf32>
    %c0_40 = arith.constant 0 : index
    %c8 = arith.constant 8 : index
    %107 = vector.load %arg11[%c0_40, %c8] : memref<32x32xf32, #tpu.memory_space<vmem>>, vector<8x8xf32>
    tpu.vector_store %arg11[%c0_40, %c8], %106 {strides = array<i32>} : memref<32x32xf32, #tpu.memory_space<vmem>>, vector<8x8xf32>,
    %108 = vector.extract_strided_slice %69 {offsets = [0, 16], sizes = [8, 8], strides = [1, 1]} : vector<8x32xf32> to vector<8x8xf32>
    %109 = vector.extract_strided_slice %70 {offsets = [0, 16], sizes = [16, 8], strides = [1, 1]} : vector<16x32xf32> to vector<16x8xf32>
    %110 = vector.extract_strided_slice %71 {offsets = [0, 16], sizes = [16, 8], strides = [1, 1]} : vector<16x32xf32> to vector<16x8xf32>
    %cst_41 = arith.constant dense<0.000000e+00> : vector<8x16xf32>
    %111 = tpu.matmul %108, %109, %cst_41 {dimension_numbers = #tpu.dot_dimension_numbers<[1], [1], [0], [0], [0, 0, 1, 0], [], []>} : vector<8x8xf32>, vector<16x8xf32>, vector<8x16xf32> -> vector<8x16xf32>
    %cst_42 = arith.constant 0.353553385 : f32
    %112 = vector.broadcast %cst_42 : f32 to vector<8x16xf32>
    %113 = arith.mulf %111, %112 : vector<8x16xf32>
    %cst_43 = arith.constant dense<0xFF800000> : vector<8xf32>
    %114 = vector.multi_reduction <maximumf>, %113, %cst_43 [1] : vector<8x16xf32> to vector<8xf32>
    %115 = vector.shape_cast %114 : vector<8xf32> to vector<8x1xf32>
    %116 = vector.broadcast %115 : vector<8x1xf32> to vector<8x16xf32>
    %117 = arith.subf %113, %116 : vector<8x16xf32>
    %118 = math.exp %117 : vector<8x16xf32>
    %cst_44 = arith.constant dense<0.000000e+00> : vector<8xf32>
    %119 = vector.multi_reduction <add>, %118, %cst_44 [1] : vector<8x16xf32> to vector<8xf32>
    %120 = vector.shape_cast %119 : vector<8xf32> to vector<8x1xf32>
    %121 = tpu.reciprocal %120 : vector<8x1xf32> -> vector<8x1xf32>
    %122 = vector.broadcast %121 : vector<8x1xf32> to vector<8x16xf32>
    %123 = arith.mulf %118, %122 : vector<8x16xf32>
    %cst_45 = arith.constant dense<0.000000e+00> : vector<8x8xf32>
    %124 = tpu.matmul %123, %110, %cst_45 {dimension_numbers = #tpu.dot_dimension_numbers<[1], [0], [0], [1], [0, 0, 1, 1], [], []>} : vector<8x16xf32>, vector<16x8xf32>, vector<8x8xf32> -> vector<8x8xf32>
    %c0_46 = arith.constant 0 : index
    %c16 = arith.constant 16 : index
    %125 = vector.load %arg11[%c0_46, %c16] : memref<32x32xf32, #tpu.memory_space<vmem>>, vector<8x8xf32>
    tpu.vector_store %arg11[%c0_46, %c16], %124 {strides = array<i32>} : memref<32x32xf32, #tpu.memory_space<vmem>>, vector<8x8xf32>,
    %126 = vector.extract_strided_slice %69 {offsets = [0, 24], sizes = [8, 8], strides = [1, 1]} : vector<8x32xf32> to vector<8x8xf32>
    %127 = vector.extract_strided_slice %70 {offsets = [0, 24], sizes = [16, 8], strides = [1, 1]} : vector<16x32xf32> to vector<16x8xf32>
    %128 = vector.extract_strided_slice %71 {offsets = [0, 24], sizes = [16, 8], strides = [1, 1]} : vector<16x32xf32> to vector<16x8xf32>
    %cst_47 = arith.constant dense<0.000000e+00> : vector<8x16xf32>
    %129 = tpu.matmul %126, %127, %cst_47 {dimension_numbers = #tpu.dot_dimension_numbers<[1], [1], [0], [0], [0, 0, 1, 0], [], []>} : vector<8x8xf32>, vector<16x8xf32>, vector<8x16xf32> -> vector<8x16xf32>
    %cst_48 = arith.constant 0.353553385 : f32
    %130 = vector.broadcast %cst_48 : f32 to vector<8x16xf32>
    %131 = arith.mulf %129, %130 : vector<8x16xf32>
    %cst_49 = arith.constant dense<0xFF800000> : vector<8xf32>
    %132 = vector.multi_reduction <maximumf>, %131, %cst_49 [1] : vector<8x16xf32> to vector<8xf32>
    %133 = vector.shape_cast %132 : vector<8xf32> to vector<8x1xf32>
    %134 = vector.broadcast %133 : vector<8x1xf32> to vector<8x16xf32>
    %135 = arith.subf %131, %134 : vector<8x16xf32>
    %136 = math.exp %135 : vector<8x16xf32>
    %cst_50 = arith.constant dense<0.000000e+00> : vector<8xf32>
    %137 = vector.multi_reduction <add>, %136, %cst_50 [1] : vector<8x16xf32> to vector<8xf32>
    %138 = vector.shape_cast %137 : vector<8xf32> to vector<8x1xf32>
    %139 = tpu.reciprocal %138 : vector<8x1xf32> -> vector<8x1xf32>
    %140 = vector.broadcast %139 : vector<8x1xf32> to vector<8x16xf32>
    %141 = arith.mulf %136, %140 : vector<8x16xf32>
    %cst_51 = arith.constant dense<0.000000e+00> : vector<8x8xf32>
    %142 = tpu.matmul %141, %128, %cst_51 {dimension_numbers = #tpu.dot_dimension_numbers<[1], [0], [0], [1], [0, 0, 1, 1], [], []>} : vector<8x16xf32>, vector<16x8xf32>, vector<8x8xf32> -> vector<8x8xf32>
    %c0_52 = arith.constant 0 : index
    %c24 = arith.constant 24 : index
    %143 = vector.load %arg11[%c0_52, %c24] : memref<32x32xf32, #tpu.memory_space<vmem>>, vector<8x8xf32>
    tpu.vector_store %arg11[%c0_52, %c24], %142 {strides = array<i32>} : memref<32x32xf32, #tpu.memory_space<vmem>>, vector<8x8xf32>,
    %144 = vector.extract_strided_slice %61 {offsets = [8, 0], sizes = [8, 32], strides = [1, 1]} : vector<16x32xf32> to vector<8x32xf32>
    %145 = vector.extract_strided_slice %67 {offsets = [16, 0], sizes = [16, 32], strides = [1, 1]} : vector<32x32xf32> to vector<16x32xf32>
    %146 = vector.extract_strided_slice %68 {offsets = [16, 0], sizes = [16, 32], strides = [1, 1]} : vector<32x32xf32> to vector<16x32xf32>
    %147 = vector.extract_strided_slice %144 {offsets = [0, 0], sizes = [8, 8], strides = [1, 1]} : vector<8x32xf32> to vector<8x8xf32>
    %148 = vector.extract_strided_slice %145 {offsets = [0, 0], sizes = [16, 8], strides = [1, 1]} : vector<16x32xf32> to vector<16x8xf32>
    %149 = vector.extract_strided_slice %146 {offsets = [0, 0], sizes = [16, 8], strides = [1, 1]} : vector<16x32xf32> to vector<16x8xf32>
    %cst_53 = arith.constant dense<0.000000e+00> : vector<8x16xf32>
    %150 = tpu.matmul %147, %148, %cst_53 {dimension_numbers = #tpu.dot_dimension_numbers<[1], [1], [0], [0], [0, 0, 1, 0], [], []>} : vector<8x8xf32>, vector<16x8xf32>, vector<8x16xf32> -> vector<8x16xf32>
    %cst_54 = arith.constant 0.353553385 : f32
    %151 = vector.broadcast %cst_54 : f32 to vector<8x16xf32>
    %152 = arith.mulf %150, %151 : vector<8x16xf32>
    %cst_55 = arith.constant dense<0xFF800000> : vector<8xf32>
    %153 = vector.multi_reduction <maximumf>, %152, %cst_55 [1] : vector<8x16xf32> to vector<8xf32>
    %154 = vector.shape_cast %153 : vector<8xf32> to vector<8x1xf32>
    %155 = vector.broadcast %154 : vector<8x1xf32> to vector<8x16xf32>
    %156 = arith.subf %152, %155 : vector<8x16xf32>
    %157 = math.exp %156 : vector<8x16xf32>
    %cst_56 = arith.constant dense<0.000000e+00> : vector<8xf32>
    %158 = vector.multi_reduction <add>, %157, %cst_56 [1] : vector<8x16xf32> to vector<8xf32>
    %159 = vector.shape_cast %158 : vector<8xf32> to vector<8x1xf32>
    %160 = tpu.reciprocal %159 : vector<8x1xf32> -> vector<8x1xf32>
    %161 = vector.broadcast %160 : vector<8x1xf32> to vector<8x16xf32>
    %162 = arith.mulf %157, %161 : vector<8x16xf32>
    %cst_57 = arith.constant dense<0.000000e+00> : vector<8x8xf32>
    %163 = tpu.matmul %162, %149, %cst_57 {dimension_numbers = #tpu.dot_dimension_numbers<[1], [0], [0], [1], [0, 0, 1, 1], [], []>} : vector<8x16xf32>, vector<16x8xf32>, vector<8x8xf32> -> vector<8x8xf32>
    %c8_58 = arith.constant 8 : index
    %c0_59 = arith.constant 0 : index
    %164 = vector.load %arg11[%c8_58, %c0_59] : memref<32x32xf32, #tpu.memory_space<vmem>>, vector<8x8xf32>
    tpu.vector_store %arg11[%c8_58, %c0_59], %163 {strides = array<i32>} : memref<32x32xf32, #tpu.memory_space<vmem>>, vector<8x8xf32>,
    %165 = vector.extract_strided_slice %144 {offsets = [0, 8], sizes = [8, 8], strides = [1, 1]} : vector<8x32xf32> to vector<8x8xf32>
    %166 = vector.extract_strided_slice %145 {offsets = [0, 8], sizes = [16, 8], strides = [1, 1]} : vector<16x32xf32> to vector<16x8xf32>
    %167 = vector.extract_strided_slice %146 {offsets = [0, 8], sizes = [16, 8], strides = [1, 1]} : vector<16x32xf32> to vector<16x8xf32>
    %cst_60 = arith.constant dense<0.000000e+00> : vector<8x16xf32>
    %168 = tpu.matmul %165, %166, %cst_60 {dimension_numbers = #tpu.dot_dimension_numbers<[1], [1], [0], [0], [0, 0, 1, 0], [], []>} : vector<8x8xf32>, vector<16x8xf32>, vector<8x16xf32> -> vector<8x16xf32>
    %cst_61 = arith.constant 0.353553385 : f32
    %169 = vector.broadcast %cst_61 : f32 to vector<8x16xf32>
    %170 = arith.mulf %168, %169 : vector<8x16xf32>
    %cst_62 = arith.constant dense<0xFF800000> : vector<8xf32>
    %171 = vector.multi_reduction <maximumf>, %170, %cst_62 [1] : vector<8x16xf32> to vector<8xf32>
    %172 = vector.shape_cast %171 : vector<8xf32> to vector<8x1xf32>
    %173 = vector.broadcast %172 : vector<8x1xf32> to vector<8x16xf32>
    %174 = arith.subf %170, %173 : vector<8x16xf32>
    %175 = math.exp %174 : vector<8x16xf32>
    %cst_63 = arith.constant dense<0.000000e+00> : vector<8xf32>
    %176 = vector.multi_reduction <add>, %175, %cst_63 [1] : vector<8x16xf32> to vector<8xf32>
    %177 = vector.shape_cast %176 : vector<8xf32> to vector<8x1xf32>
    %178 = tpu.reciprocal %177 : vector<8x1xf32> -> vector<8x1xf32>
    %179 = vector.broadcast %178 : vector<8x1xf32> to vector<8x16xf32>
    %180 = arith.mulf %175, %179 : vector<8x16xf32>
    %cst_64 = arith.constant dense<0.000000e+00> : vector<8x8xf32>
    %181 = tpu.matmul %180, %167, %cst_64 {dimension_numbers = #tpu.dot_dimension_numbers<[1], [0], [0], [1], [0, 0, 1, 1], [], []>} : vector<8x16xf32>, vector<16x8xf32>, vector<8x8xf32> -> vector<8x8xf32>
    %c8_65 = arith.constant 8 : index
    %c8_66 = arith.constant 8 : index
    %182 = vector.load %arg11[%c8_65, %c8_66] : memref<32x32xf32, #tpu.memory_space<vmem>>, vector<8x8xf32>
    tpu.vector_store %arg11[%c8_65, %c8_66], %181 {strides = array<i32>} : memref<32x32xf32, #tpu.memory_space<vmem>>, vector<8x8xf32>,
    %183 = vector.extract_strided_slice %144 {offsets = [0, 16], sizes = [8, 8], strides = [1, 1]} : vector<8x32xf32> to vector<8x8xf32>
    %184 = vector.extract_strided_slice %145 {offsets = [0, 16], sizes = [16, 8], strides = [1, 1]} : vector<16x32xf32> to vector<16x8xf32>
    %185 = vector.extract_strided_slice %146 {offsets = [0, 16], sizes = [16, 8], strides = [1, 1]} : vector<16x32xf32> to vector<16x8xf32>
    %cst_67 = arith.constant dense<0.000000e+00> : vector<8x16xf32>
    %186 = tpu.matmul %183, %184, %cst_67 {dimension_numbers = #tpu.dot_dimension_numbers<[1], [1], [0], [0], [0, 0, 1, 0], [], []>} : vector<8x8xf32>, vector<16x8xf32>, vector<8x16xf32> -> vector<8x16xf32>
    %cst_68 = arith.constant 0.353553385 : f32
    %187 = vector.broadcast %cst_68 : f32 to vector<8x16xf32>
    %188 = arith.mulf %186, %187 : vector<8x16xf32>
    %cst_69 = arith.constant dense<0xFF800000> : vector<8xf32>
    %189 = vector.multi_reduction <maximumf>, %188, %cst_69 [1] : vector<8x16xf32> to vector<8xf32>
    %190 = vector.shape_cast %189 : vector<8xf32> to vector<8x1xf32>
    %191 = vector.broadcast %190 : vector<8x1xf32> to vector<8x16xf32>
    %192 = arith.subf %188, %191 : vector<8x16xf32>
    %193 = math.exp %192 : vector<8x16xf32>
    %cst_70 = arith.constant dense<0.000000e+00> : vector<8xf32>
    %194 = vector.multi_reduction <add>, %193, %cst_70 [1] : vector<8x16xf32> to vector<8xf32>
    %195 = vector.shape_cast %194 : vector<8xf32> to vector<8x1xf32>
    %196 = tpu.reciprocal %195 : vector<8x1xf32> -> vector<8x1xf32>
    %197 = vector.broadcast %196 : vector<8x1xf32> to vector<8x16xf32>
    %198 = arith.mulf %193, %197 : vector<8x16xf32>
    %cst_71 = arith.constant dense<0.000000e+00> : vector<8x8xf32>
    %199 = tpu.matmul %198, %185, %cst_71 {dimension_numbers = #tpu.dot_dimension_numbers<[1], [0], [0], [1], [0, 0, 1, 1], [], []>} : vector<8x16xf32>, vector<16x8xf32>, vector<8x8xf32> -> vector<8x8xf32>
    %c8_72 = arith.constant 8 : index
    %c16_73 = arith.constant 16 : index
    %200 = vector.load %arg11[%c8_72, %c16_73] : memref<32x32xf32, #tpu.memory_space<vmem>>, vector<8x8xf32>
    tpu.vector_store %arg11[%c8_72, %c16_73], %199 {strides = array<i32>} : memref<32x32xf32, #tpu.memory_space<vmem>>, vector<8x8xf32>,
    %201 = vector.extract_strided_slice %144 {offsets = [0, 24], sizes = [8, 8], strides = [1, 1]} : vector<8x32xf32> to vector<8x8xf32>
    %202 = vector.extract_strided_slice %145 {offsets = [0, 24], sizes = [16, 8], strides = [1, 1]} : vector<16x32xf32> to vector<16x8xf32>
    %203 = vector.extract_strided_slice %146 {offsets = [0, 24], sizes = [16, 8], strides = [1, 1]} : vector<16x32xf32> to vector<16x8xf32>
    %cst_74 = arith.constant dense<0.000000e+00> : vector<8x16xf32>
    %204 = tpu.matmul %201, %202, %cst_74 {dimension_numbers = #tpu.dot_dimension_numbers<[1], [1], [0], [0], [0, 0, 1, 0], [], []>} : vector<8x8xf32>, vector<16x8xf32>, vector<8x16xf32> -> vector<8x16xf32>
    %cst_75 = arith.constant 0.353553385 : f32
    %205 = vector.broadcast %cst_75 : f32 to vector<8x16xf32>
    %206 = arith.mulf %204, %205 : vector<8x16xf32>
    %cst_76 = arith.constant dense<0xFF800000> : vector<8xf32>
    %207 = vector.multi_reduction <maximumf>, %206, %cst_76 [1] : vector<8x16xf32> to vector<8xf32>
    %208 = vector.shape_cast %207 : vector<8xf32> to vector<8x1xf32>
    %209 = vector.broadcast %208 : vector<8x1xf32> to vector<8x16xf32>
    %210 = arith.subf %206, %209 : vector<8x16xf32>
    %211 = math.exp %210 : vector<8x16xf32>
    %cst_77 = arith.constant dense<0.000000e+00> : vector<8xf32>
    %212 = vector.multi_reduction <add>, %211, %cst_77 [1] : vector<8x16xf32> to vector<8xf32>
    %213 = vector.shape_cast %212 : vector<8xf32> to vector<8x1xf32>
    %214 = tpu.reciprocal %213 : vector<8x1xf32> -> vector<8x1xf32>
    %215 = vector.broadcast %214 : vector<8x1xf32> to vector<8x16xf32>
    %216 = arith.mulf %211, %215 : vector<8x16xf32>
    %cst_78 = arith.constant dense<0.000000e+00> : vector<8x8xf32>
    %217 = tpu.matmul %216, %203, %cst_78 {dimension_numbers = #tpu.dot_dimension_numbers<[1], [0], [0], [1], [0, 0, 1, 1], [], []>} : vector<8x16xf32>, vector<16x8xf32>, vector<8x8xf32> -> vector<8x8xf32>
    %c8_79 = arith.constant 8 : index
    %c24_80 = arith.constant 24 : index
    %218 = vector.load %arg11[%c8_79, %c24_80] : memref<32x32xf32, #tpu.memory_space<vmem>>, vector<8x8xf32>
    tpu.vector_store %arg11[%c8_79, %c24_80], %217 {strides = array<i32>} : memref<32x32xf32, #tpu.memory_space<vmem>>, vector<8x8xf32>,
    %c0_81 = arith.constant 0 : index
    %c0_82 = arith.constant 0 : index
    %219 = vector.load %arg11[%c0_81, %c0_82] : memref<32x32xf32, #tpu.memory_space<vmem>>, vector<16x32xf32>
    %220 = vector.extract_strided_slice %55 {offsets = [0, 96], sizes = [32, 32], strides = [1, 1]} : vector<32x128xf32> to vector<32x32xf32>
    %cst_83 = arith.constant dense<0.000000e+00> : vector<16x32xf32>
    %221 = tpu.matmul %219, %220, %cst_83 {dimension_numbers = #tpu.dot_dimension_numbers<[1], [0], [0], [1], [0, 0, 1, 1], [], []>} : vector<16x32xf32>, vector<32x32xf32>, vector<16x32xf32> -> vector<16x32xf32>
    %222 = vector.extract_strided_slice %56 {offsets = [0, 96], sizes = [1, 32], strides = [1, 1]} : vector<1x128xf32> to vector<1x32xf32>
    %223 = vector.broadcast %222 : vector<1x32xf32> to vector<16x32xf32>
    %224 = arith.addf %221, %223 : vector<16x32xf32>
    %225 = arith.addf %0, %224 : vector<16x32xf32>
    %cst_84 = arith.constant dense<0.000000e+00> : vector<16xf32>
    %226 = vector.multi_reduction <add>, %225, %cst_84 [1] : vector<16x32xf32> to vector<16xf32>
    %227 = vector.shape_cast %226 : vector<16xf32> to vector<16x1xf32>
    %cst_85 = arith.constant 3.200000e+01 : f32
    %228 = vector.broadcast %cst_85 : f32 to vector<16x1xf32>
    %229 = arith.divf %227, %228 : vector<16x1xf32>
    %230 = vector.broadcast %229 : vector<16x1xf32> to vector<16x32xf32>
    %231 = arith.subf %225, %230 : vector<16x32xf32>
    %232 = arith.mulf %231, %231 : vector<16x32xf32>
    %cst_86 = arith.constant dense<0.000000e+00> : vector<16xf32>
    %233 = vector.multi_reduction <add>, %232, %cst_86 [1] : vector<16x32xf32> to vector<16xf32>
    %234 = vector.shape_cast %233 : vector<16xf32> to vector<16x1xf32>
    %cst_87 = arith.constant 3.200000e+01 : f32
    %235 = vector.broadcast %cst_87 : f32 to vector<16x1xf32>
    %236 = arith.divf %234, %235 : vector<16x1xf32>
    %237 = vector.broadcast %229 : vector<16x1xf32> to vector<16x32xf32>
    %238 = arith.subf %225, %237 : vector<16x32xf32>
    %cst_88 = arith.constant 9.99999974E-6 : f32
    %239 = vector.broadcast %cst_88 : f32 to vector<16x1xf32>
    %240 = arith.addf %236, %239 : vector<16x1xf32>
    %241 = math.rsqrt %240 : vector<16x1xf32>
    %242 = vector.broadcast %241 : vector<16x1xf32> to vector<16x32xf32>
    %243 = arith.mulf %238, %242 : vector<16x32xf32>
    %244 = vector.broadcast %4 : vector<1x32xf32> to vector<16x32xf32>
    %245 = arith.mulf %243, %244 : vector<16x32xf32>
    %246 = vector.broadcast %5 : vector<1x32xf32> to vector<16x32xf32>
    %247 = arith.addf %245, %246 : vector<16x32xf32>
    %c0_89 = arith.constant 0 : index
    %c0_90 = arith.constant 0 : index
    %c0_91 = arith.constant 0 : index
    %248 = vector.load %arg4[%c0_89, %c0_90, %c0_91] : memref<4x32x128xf32, #tpu.memory_space<vmem>>, vector<1x32x128xf32>
    %249 = vector.shape_cast %248 : vector<1x32x128xf32> to vector<32x128xf32>
    %c0_92 = arith.constant 0 : index
    %c0_93 = arith.constant 0 : index
    %250 = vector.load %arg5[%c0_92, %c0_93] : memref<4x128xf32, #tpu.memory_space<vmem>>, vector<1x128xf32>
    %c0_94 = arith.constant 0 : index
    %c0_95 = arith.constant 0 : index
    %c0_96 = arith.constant 0 : index
    %251 = vector.load %arg6[%c0_94, %c0_95, %c0_96] : memref<4x128x32xf32, #tpu.memory_space<vmem>>, vector<1x128x32xf32>
    %252 = vector.shape_cast %251 : vector<1x128x32xf32> to vector<128x32xf32>
    %c0_97 = arith.constant 0 : index
    %c0_98 = arith.constant 0 : index
    %253 = vector.load %arg7[%c0_97, %c0_98] : memref<4x32xf32, #tpu.memory_space<vmem>>, vector<1x32xf32>
    %cst_99 = arith.constant dense<0.000000e+00> : vector<16x128xf32>
    %254 = tpu.matmul %247, %249, %cst_99 {dimension_numbers = #tpu.dot_dimension_numbers<[1], [0], [0], [1], [0, 0, 1, 1], [], []>} : vector<16x32xf32>, vector<32x128xf32>, vector<16x128xf32> -> vector<16x128xf32>
    %255 = vector.broadcast %250 : vector<1x128xf32> to vector<16x128xf32>
    %256 = arith.addf %254, %255 : vector<16x128xf32>
    %cst_100 = arith.constant 0.000000e+00 : f32
    %257 = vector.broadcast %cst_100 : f32 to vector<16x128xf32>
    %258 = arith.maximumf %256, %257 : vector<16x128xf32>
    %cst_101 = arith.constant dense<0.000000e+00> : vector<16x32xf32>
    %259 = tpu.matmul %258, %252, %cst_101 {dimension_numbers = #tpu.dot_dimension_numbers<[1], [0], [0], [1], [0, 0, 1, 1], [], []>} : vector<16x128xf32>, vector<128x32xf32>, vector<16x32xf32> -> vector<16x32xf32>
    %260 = vector.broadcast %253 : vector<1x32xf32> to vector<16x32xf32>
    %261 = arith.addf %259, %260 : vector<16x32xf32>
    %262 = arith.addf %225, %261 : vector<16x32xf32>
    %cst_102 = arith.constant dense<0.000000e+00> : vector<16xf32>
    %263 = vector.multi_reduction <add>, %262, %cst_102 [1] : vector<16x32xf32> to vector<16xf32>
    %264 = vector.shape_cast %263 : vector<16xf32> to vector<16x1xf32>
    %cst_103 = arith.constant 3.200000e+01 : f32
    %265 = vector.broadcast %cst_103 : f32 to vector<16x1xf32>
    %266 = arith.divf %264, %265 : vector<16x1xf32>
    %267 = vector.broadcast %266 : vector<16x1xf32> to vector<16x32xf32>
    %268 = arith.subf %262, %267 : vector<16x32xf32>
    %269 = arith.mulf %268, %268 : vector<16x32xf32>
    %cst_104 = arith.constant dense<0.000000e+00> : vector<16xf32>
    %270 = vector.multi_reduction <add>, %269, %cst_104 [1] : vector<16x32xf32> to vector<16xf32>
    %271 = vector.shape_cast %270 : vector<16xf32> to vector<16x1xf32>
    %cst_105 = arith.constant 3.200000e+01 : f32
    %272 = vector.broadcast %cst_105 : f32 to vector<16x1xf32>
    %273 = arith.divf %271, %272 : vector<16x1xf32>
    %274 = vector.broadcast %266 : vector<16x1xf32> to vector<16x32xf32>
    %275 = arith.subf %262, %274 : vector<16x32xf32>
    %cst_106 = arith.constant 9.99999974E-6 : f32
    %276 = vector.broadcast %cst_106 : f32 to vector<16x1xf32>
    %277 = arith.addf %273, %276 : vector<16x1xf32>
    %278 = math.rsqrt %277 : vector<16x1xf32>
    %279 = vector.broadcast %278 : vector<16x1xf32> to vector<16x32xf32>
    %280 = arith.mulf %275, %279 : vector<16x32xf32>
    %281 = vector.broadcast %2 : vector<1x32xf32> to vector<16x32xf32>
    %282 = arith.mulf %280, %281 : vector<16x32xf32>
    %283 = vector.broadcast %3 : vector<1x32xf32> to vector<16x32xf32>
    %284 = arith.addf %282, %283 : vector<16x32xf32>
    %c1_107 = arith.constant 1 : index
    %c0_108 = arith.constant 0 : index
    %c0_109 = arith.constant 0 : index
    %285 = vector.load %arg2[%c1_107, %c0_108, %c0_109] : memref<4x32x128xf32, #tpu.memory_space<vmem>>, vector<1x32x128xf32>
    %286 = vector.shape_cast %285 : vector<1x32x128xf32> to vector<32x128xf32>
    %c1_110 = arith.constant 1 : index
    %c0_111 = arith.constant 0 : index
    %287 = vector.load %arg3[%c1_110, %c0_111] : memref<4x128xf32, #tpu.memory_space<vmem>>, vector<1x128xf32>
    %288 = vector.extract_strided_slice %286 {offsets = [0, 0], sizes = [32, 32], strides = [1, 1]} : vector<32x128xf32> to vector<32x32xf32>
    %cst_112 = arith.constant dense<0.000000e+00> : vector<32x32xf32>
    %289 = tpu.matmul %31, %288, %cst_112 {dimension_numbers = #tpu.dot_dimension_numbers<[1], [0], [0], [1], [0, 0, 1, 1], [], []>} : vector<32x32xf32>, vector<32x32xf32>, vector<32x32xf32> -> vector<32x32xf32>
    %290 = vector.extract_strided_slice %287 {offsets = [0, 0], sizes = [1, 32], strides = [1, 1]} : vector<1x128xf32> to vector<1x32xf32>
    %291 = vector.broadcast %290 : vector<1x32xf32> to vector<32x32xf32>
    %292 = arith.addf %289, %291 : vector<32x32xf32>
    %293 = vector.extract_strided_slice %286 {offsets = [0, 32], sizes = [32, 64], strides = [1, 1]} : vector<32x128xf32> to vector<32x64xf32>
    %cst_113 = arith.constant dense<0.000000e+00> : vector<16x64xf32>
    %294 = tpu.matmul %284, %293, %cst_113 {dimension_numbers = #tpu.dot_dimension_numbers<[1], [0], [0], [1], [0, 0, 1, 1], [], []>} : vector<16x32xf32>, vector<32x64xf32>, vector<16x64xf32> -> vector<16x64xf32>
    %295 = vector.extract_strided_slice %287 {offsets = [0, 32], sizes = [1, 64], strides = [1, 1]} : vector<1x128xf32> to vector<1x64xf32>
    %296 = vector.broadcast %295 : vector<1x64xf32> to vector<16x64xf32>
    %297 = arith.addf %294, %296 : vector<16x64xf32>
    %298 = vector.extract_strided_slice %297 {offsets = [0, 0], sizes = [16, 32], strides = [1, 1]} : vector<16x64xf32> to vector<16x32xf32>
    %299 = vector.extract_strided_slice %297 {offsets = [0, 32], sizes = [16, 32], strides = [1, 1]} : vector<16x64xf32> to vector<16x32xf32>
    %300 = vector.extract_strided_slice %292 {offsets = [0, 0], sizes = [16, 32], strides = [1, 1]} : vector<32x32xf32> to vector<16x32xf32>
    %301 = vector.extract_strided_slice %298 {offsets = [0, 0], sizes = [8, 32], strides = [1, 1]} : vector<16x32xf32> to vector<8x32xf32>
    %302 = vector.extract_strided_slice %299 {offsets = [0, 0], sizes = [8, 32], strides = [1, 1]} : vector<16x32xf32> to vector<8x32xf32>
    %303 = vector.extract_strided_slice %300 {offsets = [0, 0], sizes = [16, 8], strides = [1, 1]} : vector<16x32xf32> to vector<16x8xf32>
    %304 = vector.extract_strided_slice %301 {offsets = [0, 0], sizes = [8, 8], strides = [1, 1]} : vector<8x32xf32> to vector<8x8xf32>
    %305 = vector.extract_strided_slice %302 {offsets = [0, 0], sizes = [8, 8], strides = [1, 1]} : vector<8x32xf32> to vector<8x8xf32>
    %cst_114 = arith.constant dense<0.000000e+00> : vector<16x8xf32>
    %306 = tpu.matmul %303, %304, %cst_114 {dimension_numbers = #tpu.dot_dimension_numbers<[1], [1], [0], [0], [0, 0, 1, 0], [], []>} : vector<16x8xf32>, vector<8x8xf32>, vector<16x8xf32> -> vector<16x8xf32>
    %cst_115 = arith.constant 0.353553385 : f32
    %307 = vector.broadcast %cst_115 : f32 to vector<16x8xf32>
    %308 = arith.mulf %306, %307 : vector<16x8xf32>
    %cst_116 = arith.constant dense<0xFF800000> : vector<16xf32>
    %309 = vector.multi_reduction <maximumf>, %308, %cst_116 [1] : vector<16x8xf32> to vector<16xf32>
    %310 = vector.shape_cast %309 : vector<16xf32> to vector<16x1xf32>
    %311 = vector.broadcast %310 : vector<16x1xf32> to vector<16x8xf32>
    %312 = arith.subf %308, %311 : vector<16x8xf32>
    %313 = math.exp %312 : vector<16x8xf32>
    %cst_117 = arith.constant dense<0.000000e+00> : vector<16xf32>
    %314 = vector.multi_reduction <add>, %313, %cst_117 [1] : vector<16x8xf32> to vector<16xf32>
    %315 = vector.shape_cast %314 : vector<16xf32> to vector<16x1xf32>
    %316 = tpu.reciprocal %315 : vector<16x1xf32> -> vector<16x1xf32>
    %317 = vector.broadcast %316 : vector<16x1xf32> to vector<16x8xf32>
    %318 = arith.mulf %313, %317 : vector<16x8xf32>
    %cst_118 = arith.constant dense<0.000000e+00> : vector<16x8xf32>
    %319 = tpu.matmul %318, %305, %cst_118 {dimension_numbers = #tpu.dot_dimension_numbers<[1], [0], [0], [1], [0, 0, 1, 1], [], []>} : vector<16x8xf32>, vector<8x8xf32>, vector<16x8xf32> -> vector<16x8xf32>
    %c0_119 = arith.constant 0 : index
    %c0_120 = arith.constant 0 : index
    %320 = vector.load %arg11[%c0_119, %c0_120] : memref<32x32xf32, #tpu.memory_space<vmem>>, vector<16x8xf32>
    tpu.vector_store %arg11[%c0_119, %c0_120], %319 {strides = array<i32>} : memref<32x32xf32, #tpu.memory_space<vmem>>, vector<16x8xf32>,
    %321 = vector.extract_strided_slice %300 {offsets = [0, 8], sizes = [16, 8], strides = [1, 1]} : vector<16x32xf32> to vector<16x8xf32>
    %322 = vector.extract_strided_slice %301 {offsets = [0, 8], sizes = [8, 8], strides = [1, 1]} : vector<8x32xf32> to vector<8x8xf32>
    %323 = vector.extract_strided_slice %302 {offsets = [0, 8], sizes = [8, 8], strides = [1, 1]} : vector<8x32xf32> to vector<8x8xf32>
    %cst_121 = arith.constant dense<0.000000e+00> : vector<16x8xf32>
    %324 = tpu.matmul %321, %322, %cst_121 {dimension_numbers = #tpu.dot_dimension_numbers<[1], [1], [0], [0], [0, 0, 1, 0], [], []>} : vector<16x8xf32>, vector<8x8xf32>, vector<16x8xf32> -> vector<16x8xf32>
    %cst_122 = arith.constant 0.353553385 : f32
    %325 = vector.broadcast %cst_122 : f32 to vector<16x8xf32>
    %326 = arith.mulf %324, %325 : vector<16x8xf32>
    %cst_123 = arith.constant dense<0xFF800000> : vector<16xf32>
    %327 = vector.multi_reduction <maximumf>, %326, %cst_123 [1] : vector<16x8xf32> to vector<16xf32>
    %328 = vector.shape_cast %327 : vector<16xf32> to vector<16x1xf32>
    %329 = vector.broadcast %328 : vector<16x1xf32> to vector<16x8xf32>
    %330 = arith.subf %326, %329 : vector<16x8xf32>
    %331 = math.exp %330 : vector<16x8xf32>
    %cst_124 = arith.constant dense<0.000000e+00> : vector<16xf32>
    %332 = vector.multi_reduction <add>, %331, %cst_124 [1] : vector<16x8xf32> to vector<16xf32>
    %333 = vector.shape_cast %332 : vector<16xf32> to vector<16x1xf32>
    %334 = tpu.reciprocal %333 : vector<16x1xf32> -> vector<16x1xf32>
    %335 = vector.broadcast %334 : vector<16x1xf32> to vector<16x8xf32>
    %336 = arith.mulf %331, %335 : vector<16x8xf32>
    %cst_125 = arith.constant dense<0.000000e+00> : vector<16x8xf32>
    %337 = tpu.matmul %336, %323, %cst_125 {dimension_numbers = #tpu.dot_dimension_numbers<[1], [0], [0], [1], [0, 0, 1, 1], [], []>} : vector<16x8xf32>, vector<8x8xf32>, vector<16x8xf32> -> vector<16x8xf32>
    %c0_126 = arith.constant 0 : index
    %c8_127 = arith.constant 8 : index
    %338 = vector.load %arg11[%c0_126, %c8_127] : memref<32x32xf32, #tpu.memory_space<vmem>>, vector<16x8xf32>
    tpu.vector_store %arg11[%c0_126, %c8_127], %337 {strides = array<i32>} : memref<32x32xf32, #tpu.memory_space<vmem>>, vector<16x8xf32>,
    %339 = vector.extract_strided_slice %300 {offsets = [0, 16], sizes = [16, 8], strides = [1, 1]} : vector<16x32xf32> to vector<16x8xf32>
    %340 = vector.extract_strided_slice %301 {offsets = [0, 16], sizes = [8, 8], strides = [1, 1]} : vector<8x32xf32> to vector<8x8xf32>
    %341 = vector.extract_strided_slice %302 {offsets = [0, 16], sizes = [8, 8], strides = [1, 1]} : vector<8x32xf32> to vector<8x8xf32>
    %cst_128 = arith.constant dense<0.000000e+00> : vector<16x8xf32>
    %342 = tpu.matmul %339, %340, %cst_128 {dimension_numbers = #tpu.dot_dimension_numbers<[1], [1], [0], [0], [0, 0, 1, 0], [], []>} : vector<16x8xf32>, vector<8x8xf32>, vector<16x8xf32> -> vector<16x8xf32>
    %cst_129 = arith.constant 0.353553385 : f32
    %343 = vector.broadcast %cst_129 : f32 to vector<16x8xf32>
    %344 = arith.mulf %342, %343 : vector<16x8xf32>
    %cst_130 = arith.constant dense<0xFF800000> : vector<16xf32>
    %345 = vector.multi_reduction <maximumf>, %344, %cst_130 [1] : vector<16x8xf32> to vector<16xf32>
    %346 = vector.shape_cast %345 : vector<16xf32> to vector<16x1xf32>
    %347 = vector.broadcast %346 : vector<16x1xf32> to vector<16x8xf32>
    %348 = arith.subf %344, %347 : vector<16x8xf32>
    %349 = math.exp %348 : vector<16x8xf32>
    %cst_131 = arith.constant dense<0.000000e+00> : vector<16xf32>
    %350 = vector.multi_reduction <add>, %349, %cst_131 [1] : vector<16x8xf32> to vector<16xf32>
    %351 = vector.shape_cast %350 : vector<16xf32> to vector<16x1xf32>
    %352 = tpu.reciprocal %351 : vector<16x1xf32> -> vector<16x1xf32>
    %353 = vector.broadcast %352 : vector<16x1xf32> to vector<16x8xf32>
    %354 = arith.mulf %349, %353 : vector<16x8xf32>
    %cst_132 = arith.constant dense<0.000000e+00> : vector<16x8xf32>
    %355 = tpu.matmul %354, %341, %cst_132 {dimension_numbers = #tpu.dot_dimension_numbers<[1], [0], [0], [1], [0, 0, 1, 1], [], []>} : vector<16x8xf32>, vector<8x8xf32>, vector<16x8xf32> -> vector<16x8xf32>
    %c0_133 = arith.constant 0 : index
    %c16_134 = arith.constant 16 : index
    %356 = vector.load %arg11[%c0_133, %c16_134] : memref<32x32xf32, #tpu.memory_space<vmem>>, vector<16x8xf32>
    tpu.vector_store %arg11[%c0_133, %c16_134], %355 {strides = array<i32>} : memref<32x32xf32, #tpu.memory_space<vmem>>, vector<16x8xf32>,
    %357 = vector.extract_strided_slice %300 {offsets = [0, 24], sizes = [16, 8], strides = [1, 1]} : vector<16x32xf32> to vector<16x8xf32>
    %358 = vector.extract_strided_slice %301 {offsets = [0, 24], sizes = [8, 8], strides = [1, 1]} : vector<8x32xf32> to vector<8x8xf32>
    %359 = vector.extract_strided_slice %302 {offsets = [0, 24], sizes = [8, 8], strides = [1, 1]} : vector<8x32xf32> to vector<8x8xf32>
    %cst_135 = arith.constant dense<0.000000e+00> : vector<16x8xf32>
    %360 = tpu.matmul %357, %358, %cst_135 {dimension_numbers = #tpu.dot_dimension_numbers<[1], [1], [0], [0], [0, 0, 1, 0], [], []>} : vector<16x8xf32>, vector<8x8xf32>, vector<16x8xf32> -> vector<16x8xf32>
    %cst_136 = arith.constant 0.353553385 : f32
    %361 = vector.broadcast %cst_136 : f32 to vector<16x8xf32>
    %362 = arith.mulf %360, %361 : vector<16x8xf32>
    %cst_137 = arith.constant dense<0xFF800000> : vector<16xf32>
    %363 = vector.multi_reduction <maximumf>, %362, %cst_137 [1] : vector<16x8xf32> to vector<16xf32>
    %364 = vector.shape_cast %363 : vector<16xf32> to vector<16x1xf32>
    %365 = vector.broadcast %364 : vector<16x1xf32> to vector<16x8xf32>
    %366 = arith.subf %362, %365 : vector<16x8xf32>
    %367 = math.exp %366 : vector<16x8xf32>
    %cst_138 = arith.constant dense<0.000000e+00> : vector<16xf32>
    %368 = vector.multi_reduction <add>, %367, %cst_138 [1] : vector<16x8xf32> to vector<16xf32>
    %369 = vector.shape_cast %368 : vector<16xf32> to vector<16x1xf32>
    %370 = tpu.reciprocal %369 : vector<16x1xf32> -> vector<16x1xf32>
    %371 = vector.broadcast %370 : vector<16x1xf32> to vector<16x8xf32>
    %372 = arith.mulf %367, %371 : vector<16x8xf32>
    %cst_139 = arith.constant dense<0.000000e+00> : vector<16x8xf32>
    %373 = tpu.matmul %372, %359, %cst_139 {dimension_numbers = #tpu.dot_dimension_numbers<[1], [0], [0], [1], [0, 0, 1, 1], [], []>} : vector<16x8xf32>, vector<8x8xf32>, vector<16x8xf32> -> vector<16x8xf32>
    %c0_140 = arith.constant 0 : index
    %c24_141 = arith.constant 24 : index
    %374 = vector.load %arg11[%c0_140, %c24_141] : memref<32x32xf32, #tpu.memory_space<vmem>>, vector<16x8xf32>
    tpu.vector_store %arg11[%c0_140, %c24_141], %373 {strides = array<i32>} : memref<32x32xf32, #tpu.memory_space<vmem>>, vector<16x8xf32>,
    %375 = vector.extract_strided_slice %292 {offsets = [16, 0], sizes = [16, 32], strides = [1, 1]} : vector<32x32xf32> to vector<16x32xf32>
    %376 = vector.extract_strided_slice %298 {offsets = [8, 0], sizes = [8, 32], strides = [1, 1]} : vector<16x32xf32> to vector<8x32xf32>
    %377 = vector.extract_strided_slice %299 {offsets = [8, 0], sizes = [8, 32], strides = [1, 1]} : vector<16x32xf32> to vector<8x32xf32>
    %378 = vector.extract_strided_slice %375 {offsets = [0, 0], sizes = [16, 8], strides = [1, 1]} : vector<16x32xf32> to vector<16x8xf32>
    %379 = vector.extract_strided_slice %376 {offsets = [0, 0], sizes = [8, 8], strides = [1, 1]} : vector<8x32xf32> to vector<8x8xf32>
    %380 = vector.extract_strided_slice %377 {offsets = [0, 0], sizes = [8, 8], strides = [1, 1]} : vector<8x32xf32> to vector<8x8xf32>
    %cst_142 = arith.constant dense<0.000000e+00> : vector<16x8xf32>
    %381 = tpu.matmul %378, %379, %cst_142 {dimension_numbers = #tpu.dot_dimension_numbers<[1], [1], [0], [0], [0, 0, 1, 0], [], []>} : vector<16x8xf32>, vector<8x8xf32>, vector<16x8xf32> -> vector<16x8xf32>
    %cst_143 = arith.constant 0.353553385 : f32
    %382 = vector.broadcast %cst_143 : f32 to vector<16x8xf32>
    %383 = arith.mulf %381, %382 : vector<16x8xf32>
    %cst_144 = arith.constant dense<0xFF800000> : vector<16xf32>
    %384 = vector.multi_reduction <maximumf>, %383, %cst_144 [1] : vector<16x8xf32> to vector<16xf32>
    %385 = vector.shape_cast %384 : vector<16xf32> to vector<16x1xf32>
    %386 = vector.broadcast %385 : vector<16x1xf32> to vector<16x8xf32>
    %387 = arith.subf %383, %386 : vector<16x8xf32>
    %388 = math.exp %387 : vector<16x8xf32>
    %cst_145 = arith.constant dense<0.000000e+00> : vector<16xf32>
    %389 = vector.multi_reduction <add>, %388, %cst_145 [1] : vector<16x8xf32> to vector<16xf32>
    %390 = vector.shape_cast %389 : vector<16xf32> to vector<16x1xf32>
    %391 = tpu.reciprocal %390 : vector<16x1xf32> -> vector<16x1xf32>
    %392 = vector.broadcast %391 : vector<16x1xf32> to vector<16x8xf32>
    %393 = arith.mulf %388, %392 : vector<16x8xf32>
    %cst_146 = arith.constant dense<0.000000e+00> : vector<16x8xf32>
    %394 = tpu.matmul %393, %380, %cst_146 {dimension_numbers = #tpu.dot_dimension_numbers<[1], [0], [0], [1], [0, 0, 1, 1], [], []>} : vector<16x8xf32>, vector<8x8xf32>, vector<16x8xf32> -> vector<16x8xf32>
    %c16_147 = arith.constant 16 : index
    %c0_148 = arith.constant 0 : index
    %395 = vector.load %arg11[%c16_147, %c0_148] : memref<32x32xf32, #tpu.memory_space<vmem>>, vector<16x8xf32>
    tpu.vector_store %arg11[%c16_147, %c0_148], %394 {strides = array<i32>} : memref<32x32xf32, #tpu.memory_space<vmem>>, vector<16x8xf32>,
    %396 = vector.extract_strided_slice %375 {offsets = [0, 8], sizes = [16, 8], strides = [1, 1]} : vector<16x32xf32> to vector<16x8xf32>
    %397 = vector.extract_strided_slice %376 {offsets = [0, 8], sizes = [8, 8], strides = [1, 1]} : vector<8x32xf32> to vector<8x8xf32>
    %398 = vector.extract_strided_slice %377 {offsets = [0, 8], sizes = [8, 8], strides = [1, 1]} : vector<8x32xf32> to vector<8x8xf32>
    %cst_149 = arith.constant dense<0.000000e+00> : vector<16x8xf32>
    %399 = tpu.matmul %396, %397, %cst_149 {dimension_numbers = #tpu.dot_dimension_numbers<[1], [1], [0], [0], [0, 0, 1, 0], [], []>} : vector<16x8xf32>, vector<8x8xf32>, vector<16x8xf32> -> vector<16x8xf32>
    %cst_150 = arith.constant 0.353553385 : f32
    %400 = vector.broadcast %cst_150 : f32 to vector<16x8xf32>
    %401 = arith.mulf %399, %400 : vector<16x8xf32>
    %cst_151 = arith.constant dense<0xFF800000> : vector<16xf32>
    %402 = vector.multi_reduction <maximumf>, %401, %cst_151 [1] : vector<16x8xf32> to vector<16xf32>
    %403 = vector.shape_cast %402 : vector<16xf32> to vector<16x1xf32>
    %404 = vector.broadcast %403 : vector<16x1xf32> to vector<16x8xf32>
    %405 = arith.subf %401, %404 : vector<16x8xf32>
    %406 = math.exp %405 : vector<16x8xf32>
    %cst_152 = arith.constant dense<0.000000e+00> : vector<16xf32>
    %407 = vector.multi_reduction <add>, %406, %cst_152 [1] : vector<16x8xf32> to vector<16xf32>
    %408 = vector.shape_cast %407 : vector<16xf32> to vector<16x1xf32>
    %409 = tpu.reciprocal %408 : vector<16x1xf32> -> vector<16x1xf32>
    %410 = vector.broadcast %409 : vector<16x1xf32> to vector<16x8xf32>
    %411 = arith.mulf %406, %410 : vector<16x8xf32>
    %cst_153 = arith.constant dense<0.000000e+00> : vector<16x8xf32>
    %412 = tpu.matmul %411, %398, %cst_153 {dimension_numbers = #tpu.dot_dimension_numbers<[1], [0], [0], [1], [0, 0, 1, 1], [], []>} : vector<16x8xf32>, vector<8x8xf32>, vector<16x8xf32> -> vector<16x8xf32>
    %c16_154 = arith.constant 16 : index
    %c8_155 = arith.constant 8 : index
    %413 = vector.load %arg11[%c16_154, %c8_155] : memref<32x32xf32, #tpu.memory_space<vmem>>, vector<16x8xf32>
    tpu.vector_store %arg11[%c16_154, %c8_155], %412 {strides = array<i32>} : memref<32x32xf32, #tpu.memory_space<vmem>>, vector<16x8xf32>,
    %414 = vector.extract_strided_slice %375 {offsets = [0, 16], sizes = [16, 8], strides = [1, 1]} : vector<16x32xf32> to vector<16x8xf32>
    %415 = vector.extract_strided_slice %376 {offsets = [0, 16], sizes = [8, 8], strides = [1, 1]} : vector<8x32xf32> to vector<8x8xf32>
    %416 = vector.extract_strided_slice %377 {offsets = [0, 16], sizes = [8, 8], strides = [1, 1]} : vector<8x32xf32> to vector<8x8xf32>
    %cst_156 = arith.constant dense<0.000000e+00> : vector<16x8xf32>
    %417 = tpu.matmul %414, %415, %cst_156 {dimension_numbers = #tpu.dot_dimension_numbers<[1], [1], [0], [0], [0, 0, 1, 0], [], []>} : vector<16x8xf32>, vector<8x8xf32>, vector<16x8xf32> -> vector<16x8xf32>
    %cst_157 = arith.constant 0.353553385 : f32
    %418 = vector.broadcast %cst_157 : f32 to vector<16x8xf32>
    %419 = arith.mulf %417, %418 : vector<16x8xf32>
    %cst_158 = arith.constant dense<0xFF800000> : vector<16xf32>
    %420 = vector.multi_reduction <maximumf>, %419, %cst_158 [1] : vector<16x8xf32> to vector<16xf32>
    %421 = vector.shape_cast %420 : vector<16xf32> to vector<16x1xf32>
    %422 = vector.broadcast %421 : vector<16x1xf32> to vector<16x8xf32>
    %423 = arith.subf %419, %422 : vector<16x8xf32>
    %424 = math.exp %423 : vector<16x8xf32>
    %cst_159 = arith.constant dense<0.000000e+00> : vector<16xf32>
    %425 = vector.multi_reduction <add>, %424, %cst_159 [1] : vector<16x8xf32> to vector<16xf32>
    %426 = vector.shape_cast %425 : vector<16xf32> to vector<16x1xf32>
    %427 = tpu.reciprocal %426 : vector<16x1xf32> -> vector<16x1xf32>
    %428 = vector.broadcast %427 : vector<16x1xf32> to vector<16x8xf32>
    %429 = arith.mulf %424, %428 : vector<16x8xf32>
    %cst_160 = arith.constant dense<0.000000e+00> : vector<16x8xf32>
    %430 = tpu.matmul %429, %416, %cst_160 {dimension_numbers = #tpu.dot_dimension_numbers<[1], [0], [0], [1], [0, 0, 1, 1], [], []>} : vector<16x8xf32>, vector<8x8xf32>, vector<16x8xf32> -> vector<16x8xf32>
    %c16_161 = arith.constant 16 : index
    %c16_162 = arith.constant 16 : index
    %431 = vector.load %arg11[%c16_161, %c16_162] : memref<32x32xf32, #tpu.memory_space<vmem>>, vector<16x8xf32>
    tpu.vector_store %arg11[%c16_161, %c16_162], %430 {strides = array<i32>} : memref<32x32xf32, #tpu.memory_space<vmem>>, vector<16x8xf32>,
    %432 = vector.extract_strided_slice %375 {offsets = [0, 24], sizes = [16, 8], strides = [1, 1]} : vector<16x32xf32> to vector<16x8xf32>
    %433 = vector.extract_strided_slice %376 {offsets = [0, 24], sizes = [8, 8], strides = [1, 1]} : vector<8x32xf32> to vector<8x8xf32>
    %434 = vector.extract_strided_slice %377 {offsets = [0, 24], sizes = [8, 8], strides = [1, 1]} : vector<8x32xf32> to vector<8x8xf32>
    %cst_163 = arith.constant dense<0.000000e+00> : vector<16x8xf32>
    %435 = tpu.matmul %432, %433, %cst_163 {dimension_numbers = #tpu.dot_dimension_numbers<[1], [1], [0], [0], [0, 0, 1, 0], [], []>} : vector<16x8xf32>, vector<8x8xf32>, vector<16x8xf32> -> vector<16x8xf32>
    %cst_164 = arith.constant 0.353553385 : f32
    %436 = vector.broadcast %cst_164 : f32 to vector<16x8xf32>
    %437 = arith.mulf %435, %436 : vector<16x8xf32>
    %cst_165 = arith.constant dense<0xFF800000> : vector<16xf32>
    %438 = vector.multi_reduction <maximumf>, %437, %cst_165 [1] : vector<16x8xf32> to vector<16xf32>
    %439 = vector.shape_cast %438 : vector<16xf32> to vector<16x1xf32>
    %440 = vector.broadcast %439 : vector<16x1xf32> to vector<16x8xf32>
    %441 = arith.subf %437, %440 : vector<16x8xf32>
    %442 = math.exp %441 : vector<16x8xf32>
    %cst_166 = arith.constant dense<0.000000e+00> : vector<16xf32>
    %443 = vector.multi_reduction <add>, %442, %cst_166 [1] : vector<16x8xf32> to vector<16xf32>
    %444 = vector.shape_cast %443 : vector<16xf32> to vector<16x1xf32>
    %445 = tpu.reciprocal %444 : vector<16x1xf32> -> vector<16x1xf32>
    %446 = vector.broadcast %445 : vector<16x1xf32> to vector<16x8xf32>
    %447 = arith.mulf %442, %446 : vector<16x8xf32>
    %cst_167 = arith.constant dense<0.000000e+00> : vector<16x8xf32>
    %448 = tpu.matmul %447, %434, %cst_167 {dimension_numbers = #tpu.dot_dimension_numbers<[1], [0], [0], [1], [0, 0, 1, 1], [], []>} : vector<16x8xf32>, vector<8x8xf32>, vector<16x8xf32> -> vector<16x8xf32>
    %c16_168 = arith.constant 16 : index
    %c24_169 = arith.constant 24 : index
    %449 = vector.load %arg11[%c16_168, %c24_169] : memref<32x32xf32, #tpu.memory_space<vmem>>, vector<16x8xf32>
    tpu.vector_store %arg11[%c16_168, %c24_169], %448 {strides = array<i32>} : memref<32x32xf32, #tpu.memory_space<vmem>>, vector<16x8xf32>,
    %c0_170 = arith.constant 0 : index
    %c0_171 = arith.constant 0 : index
    %450 = vector.load %arg11[%c0_170, %c0_171] : memref<32x32xf32, #tpu.memory_space<vmem>>, vector<32x32xf32>
    %451 = vector.extract_strided_slice %286 {offsets = [0, 96], sizes = [32, 32], strides = [1, 1]} : vector<32x128xf32> to vector<32x32xf32>
    %cst_172 = arith.constant dense<0.000000e+00> : vector<32x32xf32>
    %452 = tpu.matmul %450, %451, %cst_172 {dimension_numbers = #tpu.dot_dimension_numbers<[1], [0], [0], [1], [0, 0, 1, 1], [], []>} : vector<32x32xf32>, vector<32x32xf32>, vector<32x32xf32> -> vector<32x32xf32>
    %453 = vector.extract_strided_slice %287 {offsets = [0, 96], sizes = [1, 32], strides = [1, 1]} : vector<1x128xf32> to vector<1x32xf32>
    %454 = vector.broadcast %453 : vector<1x32xf32> to vector<32x32xf32>
    %455 = arith.addf %452, %454 : vector<32x32xf32>
    %456 = arith.addf %1, %455 : vector<32x32xf32>
    %cst_173 = arith.constant dense<0.000000e+00> : vector<32xf32>
    %457 = vector.multi_reduction <add>, %456, %cst_173 [1] : vector<32x32xf32> to vector<32xf32>
    %458 = vector.shape_cast %457 : vector<32xf32> to vector<32x1xf32>
    %cst_174 = arith.constant 3.200000e+01 : f32
    %459 = vector.broadcast %cst_174 : f32 to vector<32x1xf32>
    %460 = arith.divf %458, %459 : vector<32x1xf32>
    %461 = vector.broadcast %460 : vector<32x1xf32> to vector<32x32xf32>
    %462 = arith.subf %456, %461 : vector<32x32xf32>
    %463 = arith.mulf %462, %462 : vector<32x32xf32>
    %cst_175 = arith.constant dense<0.000000e+00> : vector<32xf32>
    %464 = vector.multi_reduction <add>, %463, %cst_175 [1] : vector<32x32xf32> to vector<32xf32>
    %465 = vector.shape_cast %464 : vector<32xf32> to vector<32x1xf32>
    %cst_176 = arith.constant 3.200000e+01 : f32
    %466 = vector.broadcast %cst_176 : f32 to vector<32x1xf32>
    %467 = arith.divf %465, %466 : vector<32x1xf32>
    %468 = vector.broadcast %460 : vector<32x1xf32> to vector<32x32xf32>
    %469 = arith.subf %456, %468 : vector<32x32xf32>
    %cst_177 = arith.constant 9.99999974E-6 : f32
    %470 = vector.broadcast %cst_177 : f32 to vector<32x1xf32>
    %471 = arith.addf %467, %470 : vector<32x1xf32>
    %472 = math.rsqrt %471 : vector<32x1xf32>
    %473 = vector.broadcast %472 : vector<32x1xf32> to vector<32x32xf32>
    %474 = arith.mulf %469, %473 : vector<32x32xf32>
    %475 = vector.broadcast %8 : vector<1x32xf32> to vector<32x32xf32>
    %476 = arith.mulf %474, %475 : vector<32x32xf32>
    %477 = vector.broadcast %9 : vector<1x32xf32> to vector<32x32xf32>
    %478 = arith.addf %476, %477 : vector<32x32xf32>
    %c1_178 = arith.constant 1 : index
    %c0_179 = arith.constant 0 : index
    %c0_180 = arith.constant 0 : index
    %479 = vector.load %arg4[%c1_178, %c0_179, %c0_180] : memref<4x32x128xf32, #tpu.memory_space<vmem>>, vector<1x32x128xf32>
    %480 = vector.shape_cast %479 : vector<1x32x128xf32> to vector<32x128xf32>
    %c1_181 = arith.constant 1 : index
    %c0_182 = arith.constant 0 : index
    %481 = vector.load %arg5[%c1_181, %c0_182] : memref<4x128xf32, #tpu.memory_space<vmem>>, vector<1x128xf32>
    %c1_183 = arith.constant 1 : index
    %c0_184 = arith.constant 0 : index
    %c0_185 = arith.constant 0 : index
    %482 = vector.load %arg6[%c1_183, %c0_184, %c0_185] : memref<4x128x32xf32, #tpu.memory_space<vmem>>, vector<1x128x32xf32>
    %483 = vector.shape_cast %482 : vector<1x128x32xf32> to vector<128x32xf32>
    %c1_186 = arith.constant 1 : index
    %c0_187 = arith.constant 0 : index
    %484 = vector.load %arg7[%c1_186, %c0_187] : memref<4x32xf32, #tpu.memory_space<vmem>>, vector<1x32xf32>
    %cst_188 = arith.constant dense<0.000000e+00> : vector<32x128xf32>
    %485 = tpu.matmul %478, %480, %cst_188 {dimension_numbers = #tpu.dot_dimension_numbers<[1], [0], [0], [1], [0, 0, 1, 1], [], []>} : vector<32x32xf32>, vector<32x128xf32>, vector<32x128xf32> -> vector<32x128xf32>
    %486 = vector.broadcast %481 : vector<1x128xf32> to vector<32x128xf32>
    %487 = arith.addf %485, %486 : vector<32x128xf32>
    %cst_189 = arith.constant 0.000000e+00 : f32
    %488 = vector.broadcast %cst_189 : f32 to vector<32x128xf32>
    %489 = arith.maximumf %487, %488 : vector<32x128xf32>
    %cst_190 = arith.constant dense<0.000000e+00> : vector<32x32xf32>
    %490 = tpu.matmul %489, %483, %cst_190 {dimension_numbers = #tpu.dot_dimension_numbers<[1], [0], [0], [1], [0, 0, 1, 1], [], []>} : vector<32x128xf32>, vector<128x32xf32>, vector<32x32xf32> -> vector<32x32xf32>
    %491 = vector.broadcast %484 : vector<1x32xf32> to vector<32x32xf32>
    %492 = arith.addf %490, %491 : vector<32x32xf32>
    %493 = arith.addf %456, %492 : vector<32x32xf32>
    %c8_191 = arith.constant 8 : index
    %c0_192 = arith.constant 0 : index
    %494 = vector.load %arg8[%c8_191, %c0_192] : memref<16x32xf32, #tpu.memory_space<vmem>>, vector<1x32xf32>
    %c9 = arith.constant 9 : index
    %c0_193 = arith.constant 0 : index
    %495 = vector.load %arg8[%c9, %c0_193] : memref<16x32xf32, #tpu.memory_space<vmem>>, vector<1x32xf32>
    %c10 = arith.constant 10 : index
    %c0_194 = arith.constant 0 : index
    %496 = vector.load %arg8[%c10, %c0_194] : memref<16x32xf32, #tpu.memory_space<vmem>>, vector<1x32xf32>
    %c11 = arith.constant 11 : index
    %c0_195 = arith.constant 0 : index
    %497 = vector.load %arg8[%c11, %c0_195] : memref<16x32xf32, #tpu.memory_space<vmem>>, vector<1x32xf32>
    %c12 = arith.constant 12 : index
    %c0_196 = arith.constant 0 : index
    %498 = vector.load %arg8[%c12, %c0_196] : memref<16x32xf32, #tpu.memory_space<vmem>>, vector<1x32xf32>
    %c13 = arith.constant 13 : index
    %c0_197 = arith.constant 0 : index
    %499 = vector.load %arg8[%c13, %c0_197] : memref<16x32xf32, #tpu.memory_space<vmem>>, vector<1x32xf32>
    %c14 = arith.constant 14 : index
    %c0_198 = arith.constant 0 : index
    %500 = vector.load %arg8[%c14, %c0_198] : memref<16x32xf32, #tpu.memory_space<vmem>>, vector<1x32xf32>
    %c15 = arith.constant 15 : index
    %c0_199 = arith.constant 0 : index
    %501 = vector.load %arg8[%c15, %c0_199] : memref<16x32xf32, #tpu.memory_space<vmem>>, vector<1x32xf32>
    %cst_200 = arith.constant dense<0.000000e+00> : vector<32xf32>
    %502 = vector.multi_reduction <add>, %493, %cst_200 [1] : vector<32x32xf32> to vector<32xf32>
    %503 = vector.shape_cast %502 : vector<32xf32> to vector<32x1xf32>
    %cst_201 = arith.constant 3.200000e+01 : f32
    %504 = vector.broadcast %cst_201 : f32 to vector<32x1xf32>
    %505 = arith.divf %503, %504 : vector<32x1xf32>
    %506 = vector.broadcast %505 : vector<32x1xf32> to vector<32x32xf32>
    %507 = arith.subf %493, %506 : vector<32x32xf32>
    %508 = arith.mulf %507, %507 : vector<32x32xf32>
    %cst_202 = arith.constant dense<0.000000e+00> : vector<32xf32>
    %509 = vector.multi_reduction <add>, %508, %cst_202 [1] : vector<32x32xf32> to vector<32xf32>
    %510 = vector.shape_cast %509 : vector<32xf32> to vector<32x1xf32>
    %cst_203 = arith.constant 3.200000e+01 : f32
    %511 = vector.broadcast %cst_203 : f32 to vector<32x1xf32>
    %512 = arith.divf %510, %511 : vector<32x1xf32>
    %513 = vector.broadcast %505 : vector<32x1xf32> to vector<32x32xf32>
    %514 = arith.subf %493, %513 : vector<32x32xf32>
    %cst_204 = arith.constant 9.99999974E-6 : f32
    %515 = vector.broadcast %cst_204 : f32 to vector<32x1xf32>
    %516 = arith.addf %512, %515 : vector<32x1xf32>
    %517 = math.rsqrt %516 : vector<32x1xf32>
    %518 = vector.broadcast %517 : vector<32x1xf32> to vector<32x32xf32>
    %519 = arith.mulf %514, %518 : vector<32x32xf32>
    %520 = vector.broadcast %498 : vector<1x32xf32> to vector<32x32xf32>
    %521 = arith.mulf %519, %520 : vector<32x32xf32>
    %522 = vector.broadcast %499 : vector<1x32xf32> to vector<32x32xf32>
    %523 = arith.addf %521, %522 : vector<32x32xf32>
    %cst_205 = arith.constant dense<0.000000e+00> : vector<16xf32>
    %524 = vector.multi_reduction <add>, %262, %cst_205 [1] : vector<16x32xf32> to vector<16xf32>
    %525 = vector.shape_cast %524 : vector<16xf32> to vector<16x1xf32>
    %cst_206 = arith.constant 3.200000e+01 : f32
    %526 = vector.broadcast %cst_206 : f32 to vector<16x1xf32>
    %527 = arith.divf %525, %526 : vector<16x1xf32>
    %528 = vector.broadcast %527 : vector<16x1xf32> to vector<16x32xf32>
    %529 = arith.subf %262, %528 : vector<16x32xf32>
    %530 = arith.mulf %529, %529 : vector<16x32xf32>
    %cst_207 = arith.constant dense<0.000000e+00> : vector<16xf32>
    %531 = vector.multi_reduction <add>, %530, %cst_207 [1] : vector<16x32xf32> to vector<16xf32>
    %532 = vector.shape_cast %531 : vector<16xf32> to vector<16x1xf32>
    %cst_208 = arith.constant 3.200000e+01 : f32
    %533 = vector.broadcast %cst_208 : f32 to vector<16x1xf32>
    %534 = arith.divf %532, %533 : vector<16x1xf32>
    %535 = vector.broadcast %527 : vector<16x1xf32> to vector<16x32xf32>
    %536 = arith.subf %262, %535 : vector<16x32xf32>
    %cst_209 = arith.constant 9.99999974E-6 : f32
    %537 = vector.broadcast %cst_209 : f32 to vector<16x1xf32>
    %538 = arith.addf %534, %537 : vector<16x1xf32>
    %539 = math.rsqrt %538 : vector<16x1xf32>
    %540 = vector.broadcast %539 : vector<16x1xf32> to vector<16x32xf32>
    %541 = arith.mulf %536, %540 : vector<16x32xf32>
    %542 = vector.broadcast %494 : vector<1x32xf32> to vector<16x32xf32>
    %543 = arith.mulf %541, %542 : vector<16x32xf32>
    %544 = vector.broadcast %495 : vector<1x32xf32> to vector<16x32xf32>
    %545 = arith.addf %543, %544 : vector<16x32xf32>
    %c2_210 = arith.constant 2 : index
    %c0_211 = arith.constant 0 : index
    %c0_212 = arith.constant 0 : index
    %546 = vector.load %arg2[%c2_210, %c0_211, %c0_212] : memref<4x32x128xf32, #tpu.memory_space<vmem>>, vector<1x32x128xf32>
    %547 = vector.shape_cast %546 : vector<1x32x128xf32> to vector<32x128xf32>
    %c2_213 = arith.constant 2 : index
    %c0_214 = arith.constant 0 : index
    %548 = vector.load %arg3[%c2_213, %c0_214] : memref<4x128xf32, #tpu.memory_space<vmem>>, vector<1x128xf32>
    %549 = vector.extract_strided_slice %547 {offsets = [0, 0], sizes = [32, 32], strides = [1, 1]} : vector<32x128xf32> to vector<32x32xf32>
    %cst_215 = arith.constant dense<0.000000e+00> : vector<16x32xf32>
    %550 = tpu.matmul %545, %549, %cst_215 {dimension_numbers = #tpu.dot_dimension_numbers<[1], [0], [0], [1], [0, 0, 1, 1], [], []>} : vector<16x32xf32>, vector<32x32xf32>, vector<16x32xf32> -> vector<16x32xf32>
    %551 = vector.extract_strided_slice %548 {offsets = [0, 0], sizes = [1, 32], strides = [1, 1]} : vector<1x128xf32> to vector<1x32xf32>
    %552 = vector.broadcast %551 : vector<1x32xf32> to vector<16x32xf32>
    %553 = arith.addf %550, %552 : vector<16x32xf32>
    %554 = vector.extract_strided_slice %547 {offsets = [0, 32], sizes = [32, 64], strides = [1, 1]} : vector<32x128xf32> to vector<32x64xf32>
    %cst_216 = arith.constant dense<0.000000e+00> : vector<32x64xf32>
    %555 = tpu.matmul %523, %554, %cst_216 {dimension_numbers = #tpu.dot_dimension_numbers<[1], [0], [0], [1], [0, 0, 1, 1], [], []>} : vector<32x32xf32>, vector<32x64xf32>, vector<32x64xf32> -> vector<32x64xf32>
    %556 = vector.extract_strided_slice %548 {offsets = [0, 32], sizes = [1, 64], strides = [1, 1]} : vector<1x128xf32> to vector<1x64xf32>
    %557 = vector.broadcast %556 : vector<1x64xf32> to vector<32x64xf32>
    %558 = arith.addf %555, %557 : vector<32x64xf32>
    %559 = vector.extract_strided_slice %558 {offsets = [0, 0], sizes = [32, 32], strides = [1, 1]} : vector<32x64xf32> to vector<32x32xf32>
    %560 = vector.extract_strided_slice %558 {offsets = [0, 32], sizes = [32, 32], strides = [1, 1]} : vector<32x64xf32> to vector<32x32xf32>
    %561 = vector.extract_strided_slice %553 {offsets = [0, 0], sizes = [8, 32], strides = [1, 1]} : vector<16x32xf32> to vector<8x32xf32>
    %562 = vector.extract_strided_slice %559 {offsets = [0, 0], sizes = [16, 32], strides = [1, 1]} : vector<32x32xf32> to vector<16x32xf32>
    %563 = vector.extract_strided_slice %560 {offsets = [0, 0], sizes = [16, 32], strides = [1, 1]} : vector<32x32xf32> to vector<16x32xf32>
    %564 = vector.extract_strided_slice %561 {offsets = [0, 0], sizes = [8, 8], strides = [1, 1]} : vector<8x32xf32> to vector<8x8xf32>
    %565 = vector.extract_strided_slice %562 {offsets = [0, 0], sizes = [16, 8], strides = [1, 1]} : vector<16x32xf32> to vector<16x8xf32>
    %566 = vector.extract_strided_slice %563 {offsets = [0, 0], sizes = [16, 8], strides = [1, 1]} : vector<16x32xf32> to vector<16x8xf32>
    %cst_217 = arith.constant dense<0.000000e+00> : vector<8x16xf32>
    %567 = tpu.matmul %564, %565, %cst_217 {dimension_numbers = #tpu.dot_dimension_numbers<[1], [1], [0], [0], [0, 0, 1, 0], [], []>} : vector<8x8xf32>, vector<16x8xf32>, vector<8x16xf32> -> vector<8x16xf32>
    %cst_218 = arith.constant 0.353553385 : f32
    %568 = vector.broadcast %cst_218 : f32 to vector<8x16xf32>
    %569 = arith.mulf %567, %568 : vector<8x16xf32>
    %cst_219 = arith.constant dense<0xFF800000> : vector<8xf32>
    %570 = vector.multi_reduction <maximumf>, %569, %cst_219 [1] : vector<8x16xf32> to vector<8xf32>
    %571 = vector.shape_cast %570 : vector<8xf32> to vector<8x1xf32>
    %572 = vector.broadcast %571 : vector<8x1xf32> to vector<8x16xf32>
    %573 = arith.subf %569, %572 : vector<8x16xf32>
    %574 = math.exp %573 : vector<8x16xf32>
    %cst_220 = arith.constant dense<0.000000e+00> : vector<8xf32>
    %575 = vector.multi_reduction <add>, %574, %cst_220 [1] : vector<8x16xf32> to vector<8xf32>
    %576 = vector.shape_cast %575 : vector<8xf32> to vector<8x1xf32>
    %577 = tpu.reciprocal %576 : vector<8x1xf32> -> vector<8x1xf32>
    %578 = vector.broadcast %577 : vector<8x1xf32> to vector<8x16xf32>
    %579 = arith.mulf %574, %578 : vector<8x16xf32>
    %cst_221 = arith.constant dense<0.000000e+00> : vector<8x8xf32>
    %580 = tpu.matmul %579, %566, %cst_221 {dimension_numbers = #tpu.dot_dimension_numbers<[1], [0], [0], [1], [0, 0, 1, 1], [], []>} : vector<8x16xf32>, vector<16x8xf32>, vector<8x8xf32> -> vector<8x8xf32>
    %c0_222 = arith.constant 0 : index
    %c0_223 = arith.constant 0 : index
    %581 = vector.load %arg11[%c0_222, %c0_223] : memref<32x32xf32, #tpu.memory_space<vmem>>, vector<8x8xf32>
    tpu.vector_store %arg11[%c0_222, %c0_223], %580 {strides = array<i32>} : memref<32x32xf32, #tpu.memory_space<vmem>>, vector<8x8xf32>,
    %582 = vector.extract_strided_slice %561 {offsets = [0, 8], sizes = [8, 8], strides = [1, 1]} : vector<8x32xf32> to vector<8x8xf32>
    %583 = vector.extract_strided_slice %562 {offsets = [0, 8], sizes = [16, 8], strides = [1, 1]} : vector<16x32xf32> to vector<16x8xf32>
    %584 = vector.extract_strided_slice %563 {offsets = [0, 8], sizes = [16, 8], strides = [1, 1]} : vector<16x32xf32> to vector<16x8xf32>
    %cst_224 = arith.constant dense<0.000000e+00> : vector<8x16xf32>
    %585 = tpu.matmul %582, %583, %cst_224 {dimension_numbers = #tpu.dot_dimension_numbers<[1], [1], [0], [0], [0, 0, 1, 0], [], []>} : vector<8x8xf32>, vector<16x8xf32>, vector<8x16xf32> -> vector<8x16xf32>
    %cst_225 = arith.constant 0.353553385 : f32
    %586 = vector.broadcast %cst_225 : f32 to vector<8x16xf32>
    %587 = arith.mulf %585, %586 : vector<8x16xf32>
    %cst_226 = arith.constant dense<0xFF800000> : vector<8xf32>
    %588 = vector.multi_reduction <maximumf>, %587, %cst_226 [1] : vector<8x16xf32> to vector<8xf32>
    %589 = vector.shape_cast %588 : vector<8xf32> to vector<8x1xf32>
    %590 = vector.broadcast %589 : vector<8x1xf32> to vector<8x16xf32>
    %591 = arith.subf %587, %590 : vector<8x16xf32>
    %592 = math.exp %591 : vector<8x16xf32>
    %cst_227 = arith.constant dense<0.000000e+00> : vector<8xf32>
    %593 = vector.multi_reduction <add>, %592, %cst_227 [1] : vector<8x16xf32> to vector<8xf32>
    %594 = vector.shape_cast %593 : vector<8xf32> to vector<8x1xf32>
    %595 = tpu.reciprocal %594 : vector<8x1xf32> -> vector<8x1xf32>
    %596 = vector.broadcast %595 : vector<8x1xf32> to vector<8x16xf32>
    %597 = arith.mulf %592, %596 : vector<8x16xf32>
    %cst_228 = arith.constant dense<0.000000e+00> : vector<8x8xf32>
    %598 = tpu.matmul %597, %584, %cst_228 {dimension_numbers = #tpu.dot_dimension_numbers<[1], [0], [0], [1], [0, 0, 1, 1], [], []>} : vector<8x16xf32>, vector<16x8xf32>, vector<8x8xf32> -> vector<8x8xf32>
    %c0_229 = arith.constant 0 : index
    %c8_230 = arith.constant 8 : index
    %599 = vector.load %arg11[%c0_229, %c8_230] : memref<32x32xf32, #tpu.memory_space<vmem>>, vector<8x8xf32>
    tpu.vector_store %arg11[%c0_229, %c8_230], %598 {strides = array<i32>} : memref<32x32xf32, #tpu.memory_space<vmem>>, vector<8x8xf32>,
    %600 = vector.extract_strided_slice %561 {offsets = [0, 16], sizes = [8, 8], strides = [1, 1]} : vector<8x32xf32> to vector<8x8xf32>
    %601 = vector.extract_strided_slice %562 {offsets = [0, 16], sizes = [16, 8], strides = [1, 1]} : vector<16x32xf32> to vector<16x8xf32>
    %602 = vector.extract_strided_slice %563 {offsets = [0, 16], sizes = [16, 8], strides = [1, 1]} : vector<16x32xf32> to vector<16x8xf32>
    %cst_231 = arith.constant dense<0.000000e+00> : vector<8x16xf32>
    %603 = tpu.matmul %600, %601, %cst_231 {dimension_numbers = #tpu.dot_dimension_numbers<[1], [1], [0], [0], [0, 0, 1, 0], [], []>} : vector<8x8xf32>, vector<16x8xf32>, vector<8x16xf32> -> vector<8x16xf32>
    %cst_232 = arith.constant 0.353553385 : f32
    %604 = vector.broadcast %cst_232 : f32 to vector<8x16xf32>
    %605 = arith.mulf %603, %604 : vector<8x16xf32>
    %cst_233 = arith.constant dense<0xFF800000> : vector<8xf32>
    %606 = vector.multi_reduction <maximumf>, %605, %cst_233 [1] : vector<8x16xf32> to vector<8xf32>
    %607 = vector.shape_cast %606 : vector<8xf32> to vector<8x1xf32>
    %608 = vector.broadcast %607 : vector<8x1xf32> to vector<8x16xf32>
    %609 = arith.subf %605, %608 : vector<8x16xf32>
    %610 = math.exp %609 : vector<8x16xf32>
    %cst_234 = arith.constant dense<0.000000e+00> : vector<8xf32>
    %611 = vector.multi_reduction <add>, %610, %cst_234 [1] : vector<8x16xf32> to vector<8xf32>
    %612 = vector.shape_cast %611 : vector<8xf32> to vector<8x1xf32>
    %613 = tpu.reciprocal %612 : vector<8x1xf32> -> vector<8x1xf32>
    %614 = vector.broadcast %613 : vector<8x1xf32> to vector<8x16xf32>
    %615 = arith.mulf %610, %614 : vector<8x16xf32>
    %cst_235 = arith.constant dense<0.000000e+00> : vector<8x8xf32>
    %616 = tpu.matmul %615, %602, %cst_235 {dimension_numbers = #tpu.dot_dimension_numbers<[1], [0], [0], [1], [0, 0, 1, 1], [], []>} : vector<8x16xf32>, vector<16x8xf32>, vector<8x8xf32> -> vector<8x8xf32>
    %c0_236 = arith.constant 0 : index
    %c16_237 = arith.constant 16 : index
    %617 = vector.load %arg11[%c0_236, %c16_237] : memref<32x32xf32, #tpu.memory_space<vmem>>, vector<8x8xf32>
    tpu.vector_store %arg11[%c0_236, %c16_237], %616 {strides = array<i32>} : memref<32x32xf32, #tpu.memory_space<vmem>>, vector<8x8xf32>,
    %618 = vector.extract_strided_slice %561 {offsets = [0, 24], sizes = [8, 8], strides = [1, 1]} : vector<8x32xf32> to vector<8x8xf32>
    %619 = vector.extract_strided_slice %562 {offsets = [0, 24], sizes = [16, 8], strides = [1, 1]} : vector<16x32xf32> to vector<16x8xf32>
    %620 = vector.extract_strided_slice %563 {offsets = [0, 24], sizes = [16, 8], strides = [1, 1]} : vector<16x32xf32> to vector<16x8xf32>
    %cst_238 = arith.constant dense<0.000000e+00> : vector<8x16xf32>
    %621 = tpu.matmul %618, %619, %cst_238 {dimension_numbers = #tpu.dot_dimension_numbers<[1], [1], [0], [0], [0, 0, 1, 0], [], []>} : vector<8x8xf32>, vector<16x8xf32>, vector<8x16xf32> -> vector<8x16xf32>
    %cst_239 = arith.constant 0.353553385 : f32
    %622 = vector.broadcast %cst_239 : f32 to vector<8x16xf32>
    %623 = arith.mulf %621, %622 : vector<8x16xf32>
    %cst_240 = arith.constant dense<0xFF800000> : vector<8xf32>
    %624 = vector.multi_reduction <maximumf>, %623, %cst_240 [1] : vector<8x16xf32> to vector<8xf32>
    %625 = vector.shape_cast %624 : vector<8xf32> to vector<8x1xf32>
    %626 = vector.broadcast %625 : vector<8x1xf32> to vector<8x16xf32>
    %627 = arith.subf %623, %626 : vector<8x16xf32>
    %628 = math.exp %627 : vector<8x16xf32>
    %cst_241 = arith.constant dense<0.000000e+00> : vector<8xf32>
    %629 = vector.multi_reduction <add>, %628, %cst_241 [1] : vector<8x16xf32> to vector<8xf32>
    %630 = vector.shape_cast %629 : vector<8xf32> to vector<8x1xf32>
    %631 = tpu.reciprocal %630 : vector<8x1xf32> -> vector<8x1xf32>
    %632 = vector.broadcast %631 : vector<8x1xf32> to vector<8x16xf32>
    %633 = arith.mulf %628, %632 : vector<8x16xf32>
    %cst_242 = arith.constant dense<0.000000e+00> : vector<8x8xf32>
    %634 = tpu.matmul %633, %620, %cst_242 {dimension_numbers = #tpu.dot_dimension_numbers<[1], [0], [0], [1], [0, 0, 1, 1], [], []>} : vector<8x16xf32>, vector<16x8xf32>, vector<8x8xf32> -> vector<8x8xf32>
    %c0_243 = arith.constant 0 : index
    %c24_244 = arith.constant 24 : index
    %635 = vector.load %arg11[%c0_243, %c24_244] : memref<32x32xf32, #tpu.memory_space<vmem>>, vector<8x8xf32>
    tpu.vector_store %arg11[%c0_243, %c24_244], %634 {strides = array<i32>} : memref<32x32xf32, #tpu.memory_space<vmem>>, vector<8x8xf32>,
    %636 = vector.extract_strided_slice %553 {offsets = [8, 0], sizes = [8, 32], strides = [1, 1]} : vector<16x32xf32> to vector<8x32xf32>
    %637 = vector.extract_strided_slice %559 {offsets = [16, 0], sizes = [16, 32], strides = [1, 1]} : vector<32x32xf32> to vector<16x32xf32>
    %638 = vector.extract_strided_slice %560 {offsets = [16, 0], sizes = [16, 32], strides = [1, 1]} : vector<32x32xf32> to vector<16x32xf32>
    %639 = vector.extract_strided_slice %636 {offsets = [0, 0], sizes = [8, 8], strides = [1, 1]} : vector<8x32xf32> to vector<8x8xf32>
    %640 = vector.extract_strided_slice %637 {offsets = [0, 0], sizes = [16, 8], strides = [1, 1]} : vector<16x32xf32> to vector<16x8xf32>
    %641 = vector.extract_strided_slice %638 {offsets = [0, 0], sizes = [16, 8], strides = [1, 1]} : vector<16x32xf32> to vector<16x8xf32>
    %cst_245 = arith.constant dense<0.000000e+00> : vector<8x16xf32>
    %642 = tpu.matmul %639, %640, %cst_245 {dimension_numbers = #tpu.dot_dimension_numbers<[1], [1], [0], [0], [0, 0, 1, 0], [], []>} : vector<8x8xf32>, vector<16x8xf32>, vector<8x16xf32> -> vector<8x16xf32>
    %cst_246 = arith.constant 0.353553385 : f32
    %643 = vector.broadcast %cst_246 : f32 to vector<8x16xf32>
    %644 = arith.mulf %642, %643 : vector<8x16xf32>
    %cst_247 = arith.constant dense<0xFF800000> : vector<8xf32>
    %645 = vector.multi_reduction <maximumf>, %644, %cst_247 [1] : vector<8x16xf32> to vector<8xf32>
    %646 = vector.shape_cast %645 : vector<8xf32> to vector<8x1xf32>
    %647 = vector.broadcast %646 : vector<8x1xf32> to vector<8x16xf32>
    %648 = arith.subf %644, %647 : vector<8x16xf32>
    %649 = math.exp %648 : vector<8x16xf32>
    %cst_248 = arith.constant dense<0.000000e+00> : vector<8xf32>
    %650 = vector.multi_reduction <add>, %649, %cst_248 [1] : vector<8x16xf32> to vector<8xf32>
    %651 = vector.shape_cast %650 : vector<8xf32> to vector<8x1xf32>
    %652 = tpu.reciprocal %651 : vector<8x1xf32> -> vector<8x1xf32>
    %653 = vector.broadcast %652 : vector<8x1xf32> to vector<8x16xf32>
    %654 = arith.mulf %649, %653 : vector<8x16xf32>
    %cst_249 = arith.constant dense<0.000000e+00> : vector<8x8xf32>
    %655 = tpu.matmul %654, %641, %cst_249 {dimension_numbers = #tpu.dot_dimension_numbers<[1], [0], [0], [1], [0, 0, 1, 1], [], []>} : vector<8x16xf32>, vector<16x8xf32>, vector<8x8xf32> -> vector<8x8xf32>
    %c8_250 = arith.constant 8 : index
    %c0_251 = arith.constant 0 : index
    %656 = vector.load %arg11[%c8_250, %c0_251] : memref<32x32xf32, #tpu.memory_space<vmem>>, vector<8x8xf32>
    tpu.vector_store %arg11[%c8_250, %c0_251], %655 {strides = array<i32>} : memref<32x32xf32, #tpu.memory_space<vmem>>, vector<8x8xf32>,
    %657 = vector.extract_strided_slice %636 {offsets = [0, 8], sizes = [8, 8], strides = [1, 1]} : vector<8x32xf32> to vector<8x8xf32>
    %658 = vector.extract_strided_slice %637 {offsets = [0, 8], sizes = [16, 8], strides = [1, 1]} : vector<16x32xf32> to vector<16x8xf32>
    %659 = vector.extract_strided_slice %638 {offsets = [0, 8], sizes = [16, 8], strides = [1, 1]} : vector<16x32xf32> to vector<16x8xf32>
    %cst_252 = arith.constant dense<0.000000e+00> : vector<8x16xf32>
    %660 = tpu.matmul %657, %658, %cst_252 {dimension_numbers = #tpu.dot_dimension_numbers<[1], [1], [0], [0], [0, 0, 1, 0], [], []>} : vector<8x8xf32>, vector<16x8xf32>, vector<8x16xf32> -> vector<8x16xf32>
    %cst_253 = arith.constant 0.353553385 : f32
    %661 = vector.broadcast %cst_253 : f32 to vector<8x16xf32>
    %662 = arith.mulf %660, %661 : vector<8x16xf32>
    %cst_254 = arith.constant dense<0xFF800000> : vector<8xf32>
    %663 = vector.multi_reduction <maximumf>, %662, %cst_254 [1] : vector<8x16xf32> to vector<8xf32>
    %664 = vector.shape_cast %663 : vector<8xf32> to vector<8x1xf32>
    %665 = vector.broadcast %664 : vector<8x1xf32> to vector<8x16xf32>
    %666 = arith.subf %662, %665 : vector<8x16xf32>
    %667 = math.exp %666 : vector<8x16xf32>
    %cst_255 = arith.constant dense<0.000000e+00> : vector<8xf32>
    %668 = vector.multi_reduction <add>, %667, %cst_255 [1] : vector<8x16xf32> to vector<8xf32>
    %669 = vector.shape_cast %668 : vector<8xf32> to vector<8x1xf32>
    %670 = tpu.reciprocal %669 : vector<8x1xf32> -> vector<8x1xf32>
    %671 = vector.broadcast %670 : vector<8x1xf32> to vector<8x16xf32>
    %672 = arith.mulf %667, %671 : vector<8x16xf32>
    %cst_256 = arith.constant dense<0.000000e+00> : vector<8x8xf32>
    %673 = tpu.matmul %672, %659, %cst_256 {dimension_numbers = #tpu.dot_dimension_numbers<[1], [0], [0], [1], [0, 0, 1, 1], [], []>} : vector<8x16xf32>, vector<16x8xf32>, vector<8x8xf32> -> vector<8x8xf32>
    %c8_257 = arith.constant 8 : index
    %c8_258 = arith.constant 8 : index
    %674 = vector.load %arg11[%c8_257, %c8_258] : memref<32x32xf32, #tpu.memory_space<vmem>>, vector<8x8xf32>
    tpu.vector_store %arg11[%c8_257, %c8_258], %673 {strides = array<i32>} : memref<32x32xf32, #tpu.memory_space<vmem>>, vector<8x8xf32>,
    %675 = vector.extract_strided_slice %636 {offsets = [0, 16], sizes = [8, 8], strides = [1, 1]} : vector<8x32xf32> to vector<8x8xf32>
    %676 = vector.extract_strided_slice %637 {offsets = [0, 16], sizes = [16, 8], strides = [1, 1]} : vector<16x32xf32> to vector<16x8xf32>
    %677 = vector.extract_strided_slice %638 {offsets = [0, 16], sizes = [16, 8], strides = [1, 1]} : vector<16x32xf32> to vector<16x8xf32>
    %cst_259 = arith.constant dense<0.000000e+00> : vector<8x16xf32>
    %678 = tpu.matmul %675, %676, %cst_259 {dimension_numbers = #tpu.dot_dimension_numbers<[1], [1], [0], [0], [0, 0, 1, 0], [], []>} : vector<8x8xf32>, vector<16x8xf32>, vector<8x16xf32> -> vector<8x16xf32>
    %cst_260 = arith.constant 0.353553385 : f32
    %679 = vector.broadcast %cst_260 : f32 to vector<8x16xf32>
    %680 = arith.mulf %678, %679 : vector<8x16xf32>
    %cst_261 = arith.constant dense<0xFF800000> : vector<8xf32>
    %681 = vector.multi_reduction <maximumf>, %680, %cst_261 [1] : vector<8x16xf32> to vector<8xf32>
    %682 = vector.shape_cast %681 : vector<8xf32> to vector<8x1xf32>
    %683 = vector.broadcast %682 : vector<8x1xf32> to vector<8x16xf32>
    %684 = arith.subf %680, %683 : vector<8x16xf32>
    %685 = math.exp %684 : vector<8x16xf32>
    %cst_262 = arith.constant dense<0.000000e+00> : vector<8xf32>
    %686 = vector.multi_reduction <add>, %685, %cst_262 [1] : vector<8x16xf32> to vector<8xf32>
    %687 = vector.shape_cast %686 : vector<8xf32> to vector<8x1xf32>
    %688 = tpu.reciprocal %687 : vector<8x1xf32> -> vector<8x1xf32>
    %689 = vector.broadcast %688 : vector<8x1xf32> to vector<8x16xf32>
    %690 = arith.mulf %685, %689 : vector<8x16xf32>
    %cst_263 = arith.constant dense<0.000000e+00> : vector<8x8xf32>
    %691 = tpu.matmul %690, %677, %cst_263 {dimension_numbers = #tpu.dot_dimension_numbers<[1], [0], [0], [1], [0, 0, 1, 1], [], []>} : vector<8x16xf32>, vector<16x8xf32>, vector<8x8xf32> -> vector<8x8xf32>
    %c8_264 = arith.constant 8 : index
    %c16_265 = arith.constant 16 : index
    %692 = vector.load %arg11[%c8_264, %c16_265] : memref<32x32xf32, #tpu.memory_space<vmem>>, vector<8x8xf32>
    tpu.vector_store %arg11[%c8_264, %c16_265], %691 {strides = array<i32>} : memref<32x32xf32, #tpu.memory_space<vmem>>, vector<8x8xf32>,
    %693 = vector.extract_strided_slice %636 {offsets = [0, 24], sizes = [8, 8], strides = [1, 1]} : vector<8x32xf32> to vector<8x8xf32>
    %694 = vector.extract_strided_slice %637 {offsets = [0, 24], sizes = [16, 8], strides = [1, 1]} : vector<16x32xf32> to vector<16x8xf32>
    %695 = vector.extract_strided_slice %638 {offsets = [0, 24], sizes = [16, 8], strides = [1, 1]} : vector<16x32xf32> to vector<16x8xf32>
    %cst_266 = arith.constant dense<0.000000e+00> : vector<8x16xf32>
    %696 = tpu.matmul %693, %694, %cst_266 {dimension_numbers = #tpu.dot_dimension_numbers<[1], [1], [0], [0], [0, 0, 1, 0], [], []>} : vector<8x8xf32>, vector<16x8xf32>, vector<8x16xf32> -> vector<8x16xf32>
    %cst_267 = arith.constant 0.353553385 : f32
    %697 = vector.broadcast %cst_267 : f32 to vector<8x16xf32>
    %698 = arith.mulf %696, %697 : vector<8x16xf32>
    %cst_268 = arith.constant dense<0xFF800000> : vector<8xf32>
    %699 = vector.multi_reduction <maximumf>, %698, %cst_268 [1] : vector<8x16xf32> to vector<8xf32>
    %700 = vector.shape_cast %699 : vector<8xf32> to vector<8x1xf32>
    %701 = vector.broadcast %700 : vector<8x1xf32> to vector<8x16xf32>
    %702 = arith.subf %698, %701 : vector<8x16xf32>
    %703 = math.exp %702 : vector<8x16xf32>
    %cst_269 = arith.constant dense<0.000000e+00> : vector<8xf32>
    %704 = vector.multi_reduction <add>, %703, %cst_269 [1] : vector<8x16xf32> to vector<8xf32>
    %705 = vector.shape_cast %704 : vector<8xf32> to vector<8x1xf32>
    %706 = tpu.reciprocal %705 : vector<8x1xf32> -> vector<8x1xf32>
    %707 = vector.broadcast %706 : vector<8x1xf32> to vector<8x16xf32>
    %708 = arith.mulf %703, %707 : vector<8x16xf32>
    %cst_270 = arith.constant dense<0.000000e+00> : vector<8x8xf32>
    %709 = tpu.matmul %708, %695, %cst_270 {dimension_numbers = #tpu.dot_dimension_numbers<[1], [0], [0], [1], [0, 0, 1, 1], [], []>} : vector<8x16xf32>, vector<16x8xf32>, vector<8x8xf32> -> vector<8x8xf32>
    %c8_271 = arith.constant 8 : index
    %c24_272 = arith.constant 24 : index
    %710 = vector.load %arg11[%c8_271, %c24_272] : memref<32x32xf32, #tpu.memory_space<vmem>>, vector<8x8xf32>
    tpu.vector_store %arg11[%c8_271, %c24_272], %709 {strides = array<i32>} : memref<32x32xf32, #tpu.memory_space<vmem>>, vector<8x8xf32>,
    %c0_273 = arith.constant 0 : index
    %c0_274 = arith.constant 0 : index
    %711 = vector.load %arg11[%c0_273, %c0_274] : memref<32x32xf32, #tpu.memory_space<vmem>>, vector<16x32xf32>
    %712 = vector.extract_strided_slice %547 {offsets = [0, 96], sizes = [32, 32], strides = [1, 1]} : vector<32x128xf32> to vector<32x32xf32>
    %cst_275 = arith.constant dense<0.000000e+00> : vector<16x32xf32>
    %713 = tpu.matmul %711, %712, %cst_275 {dimension_numbers = #tpu.dot_dimension_numbers<[1], [0], [0], [1], [0, 0, 1, 1], [], []>} : vector<16x32xf32>, vector<32x32xf32>, vector<16x32xf32> -> vector<16x32xf32>
    %714 = vector.extract_strided_slice %548 {offsets = [0, 96], sizes = [1, 32], strides = [1, 1]} : vector<1x128xf32> to vector<1x32xf32>
    %715 = vector.broadcast %714 : vector<1x32xf32> to vector<16x32xf32>
    %716 = arith.addf %713, %715 : vector<16x32xf32>
    %717 = arith.addf %262, %716 : vector<16x32xf32>
    %cst_276 = arith.constant dense<0.000000e+00> : vector<16xf32>
    %718 = vector.multi_reduction <add>, %717, %cst_276 [1] : vector<16x32xf32> to vector<16xf32>
    %719 = vector.shape_cast %718 : vector<16xf32> to vector<16x1xf32>
    %cst_277 = arith.constant 3.200000e+01 : f32
    %720 = vector.broadcast %cst_277 : f32 to vector<16x1xf32>
    %721 = arith.divf %719, %720 : vector<16x1xf32>
    %722 = vector.broadcast %721 : vector<16x1xf32> to vector<16x32xf32>
    %723 = arith.subf %717, %722 : vector<16x32xf32>
    %724 = arith.mulf %723, %723 : vector<16x32xf32>
    %cst_278 = arith.constant dense<0.000000e+00> : vector<16xf32>
    %725 = vector.multi_reduction <add>, %724, %cst_278 [1] : vector<16x32xf32> to vector<16xf32>
    %726 = vector.shape_cast %725 : vector<16xf32> to vector<16x1xf32>
    %cst_279 = arith.constant 3.200000e+01 : f32
    %727 = vector.broadcast %cst_279 : f32 to vector<16x1xf32>
    %728 = arith.divf %726, %727 : vector<16x1xf32>
    %729 = vector.broadcast %721 : vector<16x1xf32> to vector<16x32xf32>
    %730 = arith.subf %717, %729 : vector<16x32xf32>
    %cst_280 = arith.constant 9.99999974E-6 : f32
    %731 = vector.broadcast %cst_280 : f32 to vector<16x1xf32>
    %732 = arith.addf %728, %731 : vector<16x1xf32>
    %733 = math.rsqrt %732 : vector<16x1xf32>
    %734 = vector.broadcast %733 : vector<16x1xf32> to vector<16x32xf32>
    %735 = arith.mulf %730, %734 : vector<16x32xf32>
    %736 = vector.broadcast %496 : vector<1x32xf32> to vector<16x32xf32>
    %737 = arith.mulf %735, %736 : vector<16x32xf32>
    %738 = vector.broadcast %497 : vector<1x32xf32> to vector<16x32xf32>
    %739 = arith.addf %737, %738 : vector<16x32xf32>
    %c2_281 = arith.constant 2 : index
    %c0_282 = arith.constant 0 : index
    %c0_283 = arith.constant 0 : index
    %740 = vector.load %arg4[%c2_281, %c0_282, %c0_283] : memref<4x32x128xf32, #tpu.memory_space<vmem>>, vector<1x32x128xf32>
    %741 = vector.shape_cast %740 : vector<1x32x128xf32> to vector<32x128xf32>
    %c2_284 = arith.constant 2 : index
    %c0_285 = arith.constant 0 : index
    %742 = vector.load %arg5[%c2_284, %c0_285] : memref<4x128xf32, #tpu.memory_space<vmem>>, vector<1x128xf32>
    %c2_286 = arith.constant 2 : index
    %c0_287 = arith.constant 0 : index
    %c0_288 = arith.constant 0 : index
    %743 = vector.load %arg6[%c2_286, %c0_287, %c0_288] : memref<4x128x32xf32, #tpu.memory_space<vmem>>, vector<1x128x32xf32>
    %744 = vector.shape_cast %743 : vector<1x128x32xf32> to vector<128x32xf32>
    %c2_289 = arith.constant 2 : index
    %c0_290 = arith.constant 0 : index
    %745 = vector.load %arg7[%c2_289, %c0_290] : memref<4x32xf32, #tpu.memory_space<vmem>>, vector<1x32xf32>
    %cst_291 = arith.constant dense<0.000000e+00> : vector<16x128xf32>
    %746 = tpu.matmul %739, %741, %cst_291 {dimension_numbers = #tpu.dot_dimension_numbers<[1], [0], [0], [1], [0, 0, 1, 1], [], []>} : vector<16x32xf32>, vector<32x128xf32>, vector<16x128xf32> -> vector<16x128xf32>
    %747 = vector.broadcast %742 : vector<1x128xf32> to vector<16x128xf32>
    %748 = arith.addf %746, %747 : vector<16x128xf32>
    %cst_292 = arith.constant 0.000000e+00 : f32
    %749 = vector.broadcast %cst_292 : f32 to vector<16x128xf32>
    %750 = arith.maximumf %748, %749 : vector<16x128xf32>
    %cst_293 = arith.constant dense<0.000000e+00> : vector<16x32xf32>
    %751 = tpu.matmul %750, %744, %cst_293 {dimension_numbers = #tpu.dot_dimension_numbers<[1], [0], [0], [1], [0, 0, 1, 1], [], []>} : vector<16x128xf32>, vector<128x32xf32>, vector<16x32xf32> -> vector<16x32xf32>
    %752 = vector.broadcast %745 : vector<1x32xf32> to vector<16x32xf32>
    %753 = arith.addf %751, %752 : vector<16x32xf32>
    %754 = arith.addf %717, %753 : vector<16x32xf32>
    %cst_294 = arith.constant dense<0.000000e+00> : vector<16xf32>
    %755 = vector.multi_reduction <add>, %754, %cst_294 [1] : vector<16x32xf32> to vector<16xf32>
    %756 = vector.shape_cast %755 : vector<16xf32> to vector<16x1xf32>
    %cst_295 = arith.constant 3.200000e+01 : f32
    %757 = vector.broadcast %cst_295 : f32 to vector<16x1xf32>
    %758 = arith.divf %756, %757 : vector<16x1xf32>
    %759 = vector.broadcast %758 : vector<16x1xf32> to vector<16x32xf32>
    %760 = arith.subf %754, %759 : vector<16x32xf32>
    %761 = arith.mulf %760, %760 : vector<16x32xf32>
    %cst_296 = arith.constant dense<0.000000e+00> : vector<16xf32>
    %762 = vector.multi_reduction <add>, %761, %cst_296 [1] : vector<16x32xf32> to vector<16xf32>
    %763 = vector.shape_cast %762 : vector<16xf32> to vector<16x1xf32>
    %cst_297 = arith.constant 3.200000e+01 : f32
    %764 = vector.broadcast %cst_297 : f32 to vector<16x1xf32>
    %765 = arith.divf %763, %764 : vector<16x1xf32>
    %766 = vector.broadcast %758 : vector<16x1xf32> to vector<16x32xf32>
    %767 = arith.subf %754, %766 : vector<16x32xf32>
    %cst_298 = arith.constant 9.99999974E-6 : f32
    %768 = vector.broadcast %cst_298 : f32 to vector<16x1xf32>
    %769 = arith.addf %765, %768 : vector<16x1xf32>
    %770 = math.rsqrt %769 : vector<16x1xf32>
    %771 = vector.broadcast %770 : vector<16x1xf32> to vector<16x32xf32>
    %772 = arith.mulf %767, %771 : vector<16x32xf32>
    %773 = vector.broadcast %494 : vector<1x32xf32> to vector<16x32xf32>
    %774 = arith.mulf %772, %773 : vector<16x32xf32>
    %775 = vector.broadcast %495 : vector<1x32xf32> to vector<16x32xf32>
    %776 = arith.addf %774, %775 : vector<16x32xf32>
    %c3_299 = arith.constant 3 : index
    %c0_300 = arith.constant 0 : index
    %c0_301 = arith.constant 0 : index
    %777 = vector.load %arg2[%c3_299, %c0_300, %c0_301] : memref<4x32x128xf32, #tpu.memory_space<vmem>>, vector<1x32x128xf32>
    %778 = vector.shape_cast %777 : vector<1x32x128xf32> to vector<32x128xf32>
    %c3_302 = arith.constant 3 : index
    %c0_303 = arith.constant 0 : index
    %779 = vector.load %arg3[%c3_302, %c0_303] : memref<4x128xf32, #tpu.memory_space<vmem>>, vector<1x128xf32>
    %780 = vector.extract_strided_slice %778 {offsets = [0, 0], sizes = [32, 32], strides = [1, 1]} : vector<32x128xf32> to vector<32x32xf32>
    %cst_304 = arith.constant dense<0.000000e+00> : vector<32x32xf32>
    %781 = tpu.matmul %523, %780, %cst_304 {dimension_numbers = #tpu.dot_dimension_numbers<[1], [0], [0], [1], [0, 0, 1, 1], [], []>} : vector<32x32xf32>, vector<32x32xf32>, vector<32x32xf32> -> vector<32x32xf32>
    %782 = vector.extract_strided_slice %779 {offsets = [0, 0], sizes = [1, 32], strides = [1, 1]} : vector<1x128xf32> to vector<1x32xf32>
    %783 = vector.broadcast %782 : vector<1x32xf32> to vector<32x32xf32>
    %784 = arith.addf %781, %783 : vector<32x32xf32>
    %785 = vector.extract_strided_slice %778 {offsets = [0, 32], sizes = [32, 64], strides = [1, 1]} : vector<32x128xf32> to vector<32x64xf32>
    %cst_305 = arith.constant dense<0.000000e+00> : vector<16x64xf32>
    %786 = tpu.matmul %776, %785, %cst_305 {dimension_numbers = #tpu.dot_dimension_numbers<[1], [0], [0], [1], [0, 0, 1, 1], [], []>} : vector<16x32xf32>, vector<32x64xf32>, vector<16x64xf32> -> vector<16x64xf32>
    %787 = vector.extract_strided_slice %779 {offsets = [0, 32], sizes = [1, 64], strides = [1, 1]} : vector<1x128xf32> to vector<1x64xf32>
    %788 = vector.broadcast %787 : vector<1x64xf32> to vector<16x64xf32>
    %789 = arith.addf %786, %788 : vector<16x64xf32>
    %790 = vector.extract_strided_slice %789 {offsets = [0, 0], sizes = [16, 32], strides = [1, 1]} : vector<16x64xf32> to vector<16x32xf32>
    %791 = vector.extract_strided_slice %789 {offsets = [0, 32], sizes = [16, 32], strides = [1, 1]} : vector<16x64xf32> to vector<16x32xf32>
    %792 = vector.extract_strided_slice %784 {offsets = [0, 0], sizes = [16, 32], strides = [1, 1]} : vector<32x32xf32> to vector<16x32xf32>
    %793 = vector.extract_strided_slice %790 {offsets = [0, 0], sizes = [8, 32], strides = [1, 1]} : vector<16x32xf32> to vector<8x32xf32>
    %794 = vector.extract_strided_slice %791 {offsets = [0, 0], sizes = [8, 32], strides = [1, 1]} : vector<16x32xf32> to vector<8x32xf32>
    %795 = vector.extract_strided_slice %792 {offsets = [0, 0], sizes = [16, 8], strides = [1, 1]} : vector<16x32xf32> to vector<16x8xf32>
    %796 = vector.extract_strided_slice %793 {offsets = [0, 0], sizes = [8, 8], strides = [1, 1]} : vector<8x32xf32> to vector<8x8xf32>
    %797 = vector.extract_strided_slice %794 {offsets = [0, 0], sizes = [8, 8], strides = [1, 1]} : vector<8x32xf32> to vector<8x8xf32>
    %cst_306 = arith.constant dense<0.000000e+00> : vector<16x8xf32>
    %798 = tpu.matmul %795, %796, %cst_306 {dimension_numbers = #tpu.dot_dimension_numbers<[1], [1], [0], [0], [0, 0, 1, 0], [], []>} : vector<16x8xf32>, vector<8x8xf32>, vector<16x8xf32> -> vector<16x8xf32>
    %cst_307 = arith.constant 0.353553385 : f32
    %799 = vector.broadcast %cst_307 : f32 to vector<16x8xf32>
    %800 = arith.mulf %798, %799 : vector<16x8xf32>
    %cst_308 = arith.constant dense<0xFF800000> : vector<16xf32>
    %801 = vector.multi_reduction <maximumf>, %800, %cst_308 [1] : vector<16x8xf32> to vector<16xf32>
    %802 = vector.shape_cast %801 : vector<16xf32> to vector<16x1xf32>
    %803 = vector.broadcast %802 : vector<16x1xf32> to vector<16x8xf32>
    %804 = arith.subf %800, %803 : vector<16x8xf32>
    %805 = math.exp %804 : vector<16x8xf32>
    %cst_309 = arith.constant dense<0.000000e+00> : vector<16xf32>
    %806 = vector.multi_reduction <add>, %805, %cst_309 [1] : vector<16x8xf32> to vector<16xf32>
    %807 = vector.shape_cast %806 : vector<16xf32> to vector<16x1xf32>
    %808 = tpu.reciprocal %807 : vector<16x1xf32> -> vector<16x1xf32>
    %809 = vector.broadcast %808 : vector<16x1xf32> to vector<16x8xf32>
    %810 = arith.mulf %805, %809 : vector<16x8xf32>
    %cst_310 = arith.constant dense<0.000000e+00> : vector<16x8xf32>
    %811 = tpu.matmul %810, %797, %cst_310 {dimension_numbers = #tpu.dot_dimension_numbers<[1], [0], [0], [1], [0, 0, 1, 1], [], []>} : vector<16x8xf32>, vector<8x8xf32>, vector<16x8xf32> -> vector<16x8xf32>
    %c0_311 = arith.constant 0 : index
    %c0_312 = arith.constant 0 : index
    %812 = vector.load %arg11[%c0_311, %c0_312] : memref<32x32xf32, #tpu.memory_space<vmem>>, vector<16x8xf32>
    tpu.vector_store %arg11[%c0_311, %c0_312], %811 {strides = array<i32>} : memref<32x32xf32, #tpu.memory_space<vmem>>, vector<16x8xf32>,
    %813 = vector.extract_strided_slice %792 {offsets = [0, 8], sizes = [16, 8], strides = [1, 1]} : vector<16x32xf32> to vector<16x8xf32>
    %814 = vector.extract_strided_slice %793 {offsets = [0, 8], sizes = [8, 8], strides = [1, 1]} : vector<8x32xf32> to vector<8x8xf32>
    %815 = vector.extract_strided_slice %794 {offsets = [0, 8], sizes = [8, 8], strides = [1, 1]} : vector<8x32xf32> to vector<8x8xf32>
    %cst_313 = arith.constant dense<0.000000e+00> : vector<16x8xf32>
    %816 = tpu.matmul %813, %814, %cst_313 {dimension_numbers = #tpu.dot_dimension_numbers<[1], [1], [0], [0], [0, 0, 1, 0], [], []>} : vector<16x8xf32>, vector<8x8xf32>, vector<16x8xf32> -> vector<16x8xf32>
    %cst_314 = arith.constant 0.353553385 : f32
    %817 = vector.broadcast %cst_314 : f32 to vector<16x8xf32>
    %818 = arith.mulf %816, %817 : vector<16x8xf32>
    %cst_315 = arith.constant dense<0xFF800000> : vector<16xf32>
    %819 = vector.multi_reduction <maximumf>, %818, %cst_315 [1] : vector<16x8xf32> to vector<16xf32>
    %820 = vector.shape_cast %819 : vector<16xf32> to vector<16x1xf32>
    %821 = vector.broadcast %820 : vector<16x1xf32> to vector<16x8xf32>
    %822 = arith.subf %818, %821 : vector<16x8xf32>
    %823 = math.exp %822 : vector<16x8xf32>
    %cst_316 = arith.constant dense<0.000000e+00> : vector<16xf32>
    %824 = vector.multi_reduction <add>, %823, %cst_316 [1] : vector<16x8xf32> to vector<16xf32>
    %825 = vector.shape_cast %824 : vector<16xf32> to vector<16x1xf32>
    %826 = tpu.reciprocal %825 : vector<16x1xf32> -> vector<16x1xf32>
    %827 = vector.broadcast %826 : vector<16x1xf32> to vector<16x8xf32>
    %828 = arith.mulf %823, %827 : vector<16x8xf32>
    %cst_317 = arith.constant dense<0.000000e+00> : vector<16x8xf32>
    %829 = tpu.matmul %828, %815, %cst_317 {dimension_numbers = #tpu.dot_dimension_numbers<[1], [0], [0], [1], [0, 0, 1, 1], [], []>} : vector<16x8xf32>, vector<8x8xf32>, vector<16x8xf32> -> vector<16x8xf32>
    %c0_318 = arith.constant 0 : index
    %c8_319 = arith.constant 8 : index
    %830 = vector.load %arg11[%c0_318, %c8_319] : memref<32x32xf32, #tpu.memory_space<vmem>>, vector<16x8xf32>
    tpu.vector_store %arg11[%c0_318, %c8_319], %829 {strides = array<i32>} : memref<32x32xf32, #tpu.memory_space<vmem>>, vector<16x8xf32>,
    %831 = vector.extract_strided_slice %792 {offsets = [0, 16], sizes = [16, 8], strides = [1, 1]} : vector<16x32xf32> to vector<16x8xf32>
    %832 = vector.extract_strided_slice %793 {offsets = [0, 16], sizes = [8, 8], strides = [1, 1]} : vector<8x32xf32> to vector<8x8xf32>
    %833 = vector.extract_strided_slice %794 {offsets = [0, 16], sizes = [8, 8], strides = [1, 1]} : vector<8x32xf32> to vector<8x8xf32>
    %cst_320 = arith.constant dense<0.000000e+00> : vector<16x8xf32>
    %834 = tpu.matmul %831, %832, %cst_320 {dimension_numbers = #tpu.dot_dimension_numbers<[1], [1], [0], [0], [0, 0, 1, 0], [], []>} : vector<16x8xf32>, vector<8x8xf32>, vector<16x8xf32> -> vector<16x8xf32>
    %cst_321 = arith.constant 0.353553385 : f32
    %835 = vector.broadcast %cst_321 : f32 to vector<16x8xf32>
    %836 = arith.mulf %834, %835 : vector<16x8xf32>
    %cst_322 = arith.constant dense<0xFF800000> : vector<16xf32>
    %837 = vector.multi_reduction <maximumf>, %836, %cst_322 [1] : vector<16x8xf32> to vector<16xf32>
    %838 = vector.shape_cast %837 : vector<16xf32> to vector<16x1xf32>
    %839 = vector.broadcast %838 : vector<16x1xf32> to vector<16x8xf32>
    %840 = arith.subf %836, %839 : vector<16x8xf32>
    %841 = math.exp %840 : vector<16x8xf32>
    %cst_323 = arith.constant dense<0.000000e+00> : vector<16xf32>
    %842 = vector.multi_reduction <add>, %841, %cst_323 [1] : vector<16x8xf32> to vector<16xf32>
    %843 = vector.shape_cast %842 : vector<16xf32> to vector<16x1xf32>
    %844 = tpu.reciprocal %843 : vector<16x1xf32> -> vector<16x1xf32>
    %845 = vector.broadcast %844 : vector<16x1xf32> to vector<16x8xf32>
    %846 = arith.mulf %841, %845 : vector<16x8xf32>
    %cst_324 = arith.constant dense<0.000000e+00> : vector<16x8xf32>
    %847 = tpu.matmul %846, %833, %cst_324 {dimension_numbers = #tpu.dot_dimension_numbers<[1], [0], [0], [1], [0, 0, 1, 1], [], []>} : vector<16x8xf32>, vector<8x8xf32>, vector<16x8xf32> -> vector<16x8xf32>
    %c0_325 = arith.constant 0 : index
    %c16_326 = arith.constant 16 : index
    %848 = vector.load %arg11[%c0_325, %c16_326] : memref<32x32xf32, #tpu.memory_space<vmem>>, vector<16x8xf32>
    tpu.vector_store %arg11[%c0_325, %c16_326], %847 {strides = array<i32>} : memref<32x32xf32, #tpu.memory_space<vmem>>, vector<16x8xf32>,
    %849 = vector.extract_strided_slice %792 {offsets = [0, 24], sizes = [16, 8], strides = [1, 1]} : vector<16x32xf32> to vector<16x8xf32>
    %850 = vector.extract_strided_slice %793 {offsets = [0, 24], sizes = [8, 8], strides = [1, 1]} : vector<8x32xf32> to vector<8x8xf32>
    %851 = vector.extract_strided_slice %794 {offsets = [0, 24], sizes = [8, 8], strides = [1, 1]} : vector<8x32xf32> to vector<8x8xf32>
    %cst_327 = arith.constant dense<0.000000e+00> : vector<16x8xf32>
    %852 = tpu.matmul %849, %850, %cst_327 {dimension_numbers = #tpu.dot_dimension_numbers<[1], [1], [0], [0], [0, 0, 1, 0], [], []>} : vector<16x8xf32>, vector<8x8xf32>, vector<16x8xf32> -> vector<16x8xf32>
    %cst_328 = arith.constant 0.353553385 : f32
    %853 = vector.broadcast %cst_328 : f32 to vector<16x8xf32>
    %854 = arith.mulf %852, %853 : vector<16x8xf32>
    %cst_329 = arith.constant dense<0xFF800000> : vector<16xf32>
    %855 = vector.multi_reduction <maximumf>, %854, %cst_329 [1] : vector<16x8xf32> to vector<16xf32>
    %856 = vector.shape_cast %855 : vector<16xf32> to vector<16x1xf32>
    %857 = vector.broadcast %856 : vector<16x1xf32> to vector<16x8xf32>
    %858 = arith.subf %854, %857 : vector<16x8xf32>
    %859 = math.exp %858 : vector<16x8xf32>
    %cst_330 = arith.constant dense<0.000000e+00> : vector<16xf32>
    %860 = vector.multi_reduction <add>, %859, %cst_330 [1] : vector<16x8xf32> to vector<16xf32>
    %861 = vector.shape_cast %860 : vector<16xf32> to vector<16x1xf32>
    %862 = tpu.reciprocal %861 : vector<16x1xf32> -> vector<16x1xf32>
    %863 = vector.broadcast %862 : vector<16x1xf32> to vector<16x8xf32>
    %864 = arith.mulf %859, %863 : vector<16x8xf32>
    %cst_331 = arith.constant dense<0.000000e+00> : vector<16x8xf32>
    %865 = tpu.matmul %864, %851, %cst_331 {dimension_numbers = #tpu.dot_dimension_numbers<[1], [0], [0], [1], [0, 0, 1, 1], [], []>} : vector<16x8xf32>, vector<8x8xf32>, vector<16x8xf32> -> vector<16x8xf32>
    %c0_332 = arith.constant 0 : index
    %c24_333 = arith.constant 24 : index
    %866 = vector.load %arg11[%c0_332, %c24_333] : memref<32x32xf32, #tpu.memory_space<vmem>>, vector<16x8xf32>
    tpu.vector_store %arg11[%c0_332, %c24_333], %865 {strides = array<i32>} : memref<32x32xf32, #tpu.memory_space<vmem>>, vector<16x8xf32>,
    %867 = vector.extract_strided_slice %784 {offsets = [16, 0], sizes = [16, 32], strides = [1, 1]} : vector<32x32xf32> to vector<16x32xf32>
    %868 = vector.extract_strided_slice %790 {offsets = [8, 0], sizes = [8, 32], strides = [1, 1]} : vector<16x32xf32> to vector<8x32xf32>
    %869 = vector.extract_strided_slice %791 {offsets = [8, 0], sizes = [8, 32], strides = [1, 1]} : vector<16x32xf32> to vector<8x32xf32>
    %870 = vector.extract_strided_slice %867 {offsets = [0, 0], sizes = [16, 8], strides = [1, 1]} : vector<16x32xf32> to vector<16x8xf32>
    %871 = vector.extract_strided_slice %868 {offsets = [0, 0], sizes = [8, 8], strides = [1, 1]} : vector<8x32xf32> to vector<8x8xf32>
    %872 = vector.extract_strided_slice %869 {offsets = [0, 0], sizes = [8, 8], strides = [1, 1]} : vector<8x32xf32> to vector<8x8xf32>
    %cst_334 = arith.constant dense<0.000000e+00> : vector<16x8xf32>
    %873 = tpu.matmul %870, %871, %cst_334 {dimension_numbers = #tpu.dot_dimension_numbers<[1], [1], [0], [0], [0, 0, 1, 0], [], []>} : vector<16x8xf32>, vector<8x8xf32>, vector<16x8xf32> -> vector<16x8xf32>
    %cst_335 = arith.constant 0.353553385 : f32
    %874 = vector.broadcast %cst_335 : f32 to vector<16x8xf32>
    %875 = arith.mulf %873, %874 : vector<16x8xf32>
    %cst_336 = arith.constant dense<0xFF800000> : vector<16xf32>
    %876 = vector.multi_reduction <maximumf>, %875, %cst_336 [1] : vector<16x8xf32> to vector<16xf32>
    %877 = vector.shape_cast %876 : vector<16xf32> to vector<16x1xf32>
    %878 = vector.broadcast %877 : vector<16x1xf32> to vector<16x8xf32>
    %879 = arith.subf %875, %878 : vector<16x8xf32>
    %880 = math.exp %879 : vector<16x8xf32>
    %cst_337 = arith.constant dense<0.000000e+00> : vector<16xf32>
    %881 = vector.multi_reduction <add>, %880, %cst_337 [1] : vector<16x8xf32> to vector<16xf32>
    %882 = vector.shape_cast %881 : vector<16xf32> to vector<16x1xf32>
    %883 = tpu.reciprocal %882 : vector<16x1xf32> -> vector<16x1xf32>
    %884 = vector.broadcast %883 : vector<16x1xf32> to vector<16x8xf32>
    %885 = arith.mulf %880, %884 : vector<16x8xf32>
    %cst_338 = arith.constant dense<0.000000e+00> : vector<16x8xf32>
    %886 = tpu.matmul %885, %872, %cst_338 {dimension_numbers = #tpu.dot_dimension_numbers<[1], [0], [0], [1], [0, 0, 1, 1], [], []>} : vector<16x8xf32>, vector<8x8xf32>, vector<16x8xf32> -> vector<16x8xf32>
    %c16_339 = arith.constant 16 : index
    %c0_340 = arith.constant 0 : index
    %887 = vector.load %arg11[%c16_339, %c0_340] : memref<32x32xf32, #tpu.memory_space<vmem>>, vector<16x8xf32>
    tpu.vector_store %arg11[%c16_339, %c0_340], %886 {strides = array<i32>} : memref<32x32xf32, #tpu.memory_space<vmem>>, vector<16x8xf32>,
    %888 = vector.extract_strided_slice %867 {offsets = [0, 8], sizes = [16, 8], strides = [1, 1]} : vector<16x32xf32> to vector<16x8xf32>
    %889 = vector.extract_strided_slice %868 {offsets = [0, 8], sizes = [8, 8], strides = [1, 1]} : vector<8x32xf32> to vector<8x8xf32>
    %890 = vector.extract_strided_slice %869 {offsets = [0, 8], sizes = [8, 8], strides = [1, 1]} : vector<8x32xf32> to vector<8x8xf32>
    %cst_341 = arith.constant dense<0.000000e+00> : vector<16x8xf32>
    %891 = tpu.matmul %888, %889, %cst_341 {dimension_numbers = #tpu.dot_dimension_numbers<[1], [1], [0], [0], [0, 0, 1, 0], [], []>} : vector<16x8xf32>, vector<8x8xf32>, vector<16x8xf32> -> vector<16x8xf32>
    %cst_342 = arith.constant 0.353553385 : f32
    %892 = vector.broadcast %cst_342 : f32 to vector<16x8xf32>
    %893 = arith.mulf %891, %892 : vector<16x8xf32>
    %cst_343 = arith.constant dense<0xFF800000> : vector<16xf32>
    %894 = vector.multi_reduction <maximumf>, %893, %cst_343 [1] : vector<16x8xf32> to vector<16xf32>
    %895 = vector.shape_cast %894 : vector<16xf32> to vector<16x1xf32>
    %896 = vector.broadcast %895 : vector<16x1xf32> to vector<16x8xf32>
    %897 = arith.subf %893, %896 : vector<16x8xf32>
    %898 = math.exp %897 : vector<16x8xf32>
    %cst_344 = arith.constant dense<0.000000e+00> : vector<16xf32>
    %899 = vector.multi_reduction <add>, %898, %cst_344 [1] : vector<16x8xf32> to vector<16xf32>
    %900 = vector.shape_cast %899 : vector<16xf32> to vector<16x1xf32>
    %901 = tpu.reciprocal %900 : vector<16x1xf32> -> vector<16x1xf32>
    %902 = vector.broadcast %901 : vector<16x1xf32> to vector<16x8xf32>
    %903 = arith.mulf %898, %902 : vector<16x8xf32>
    %cst_345 = arith.constant dense<0.000000e+00> : vector<16x8xf32>
    %904 = tpu.matmul %903, %890, %cst_345 {dimension_numbers = #tpu.dot_dimension_numbers<[1], [0], [0], [1], [0, 0, 1, 1], [], []>} : vector<16x8xf32>, vector<8x8xf32>, vector<16x8xf32> -> vector<16x8xf32>
    %c16_346 = arith.constant 16 : index
    %c8_347 = arith.constant 8 : index
    %905 = vector.load %arg11[%c16_346, %c8_347] : memref<32x32xf32, #tpu.memory_space<vmem>>, vector<16x8xf32>
    tpu.vector_store %arg11[%c16_346, %c8_347], %904 {strides = array<i32>} : memref<32x32xf32, #tpu.memory_space<vmem>>, vector<16x8xf32>,
    %906 = vector.extract_strided_slice %867 {offsets = [0, 16], sizes = [16, 8], strides = [1, 1]} : vector<16x32xf32> to vector<16x8xf32>
    %907 = vector.extract_strided_slice %868 {offsets = [0, 16], sizes = [8, 8], strides = [1, 1]} : vector<8x32xf32> to vector<8x8xf32>
    %908 = vector.extract_strided_slice %869 {offsets = [0, 16], sizes = [8, 8], strides = [1, 1]} : vector<8x32xf32> to vector<8x8xf32>
    %cst_348 = arith.constant dense<0.000000e+00> : vector<16x8xf32>
    %909 = tpu.matmul %906, %907, %cst_348 {dimension_numbers = #tpu.dot_dimension_numbers<[1], [1], [0], [0], [0, 0, 1, 0], [], []>} : vector<16x8xf32>, vector<8x8xf32>, vector<16x8xf32> -> vector<16x8xf32>
    %cst_349 = arith.constant 0.353553385 : f32
    %910 = vector.broadcast %cst_349 : f32 to vector<16x8xf32>
    %911 = arith.mulf %909, %910 : vector<16x8xf32>
    %cst_350 = arith.constant dense<0xFF800000> : vector<16xf32>
    %912 = vector.multi_reduction <maximumf>, %911, %cst_350 [1] : vector<16x8xf32> to vector<16xf32>
    %913 = vector.shape_cast %912 : vector<16xf32> to vector<16x1xf32>
    %914 = vector.broadcast %913 : vector<16x1xf32> to vector<16x8xf32>
    %915 = arith.subf %911, %914 : vector<16x8xf32>
    %916 = math.exp %915 : vector<16x8xf32>
    %cst_351 = arith.constant dense<0.000000e+00> : vector<16xf32>
    %917 = vector.multi_reduction <add>, %916, %cst_351 [1] : vector<16x8xf32> to vector<16xf32>
    %918 = vector.shape_cast %917 : vector<16xf32> to vector<16x1xf32>
    %919 = tpu.reciprocal %918 : vector<16x1xf32> -> vector<16x1xf32>
    %920 = vector.broadcast %919 : vector<16x1xf32> to vector<16x8xf32>
    %921 = arith.mulf %916, %920 : vector<16x8xf32>
    %cst_352 = arith.constant dense<0.000000e+00> : vector<16x8xf32>
    %922 = tpu.matmul %921, %908, %cst_352 {dimension_numbers = #tpu.dot_dimension_numbers<[1], [0], [0], [1], [0, 0, 1, 1], [], []>} : vector<16x8xf32>, vector<8x8xf32>, vector<16x8xf32> -> vector<16x8xf32>
    %c16_353 = arith.constant 16 : index
    %c16_354 = arith.constant 16 : index
    %923 = vector.load %arg11[%c16_353, %c16_354] : memref<32x32xf32, #tpu.memory_space<vmem>>, vector<16x8xf32>
    tpu.vector_store %arg11[%c16_353, %c16_354], %922 {strides = array<i32>} : memref<32x32xf32, #tpu.memory_space<vmem>>, vector<16x8xf32>,
    %924 = vector.extract_strided_slice %867 {offsets = [0, 24], sizes = [16, 8], strides = [1, 1]} : vector<16x32xf32> to vector<16x8xf32>
    %925 = vector.extract_strided_slice %868 {offsets = [0, 24], sizes = [8, 8], strides = [1, 1]} : vector<8x32xf32> to vector<8x8xf32>
    %926 = vector.extract_strided_slice %869 {offsets = [0, 24], sizes = [8, 8], strides = [1, 1]} : vector<8x32xf32> to vector<8x8xf32>
    %cst_355 = arith.constant dense<0.000000e+00> : vector<16x8xf32>
    %927 = tpu.matmul %924, %925, %cst_355 {dimension_numbers = #tpu.dot_dimension_numbers<[1], [1], [0], [0], [0, 0, 1, 0], [], []>} : vector<16x8xf32>, vector<8x8xf32>, vector<16x8xf32> -> vector<16x8xf32>
    %cst_356 = arith.constant 0.353553385 : f32
    %928 = vector.broadcast %cst_356 : f32 to vector<16x8xf32>
    %929 = arith.mulf %927, %928 : vector<16x8xf32>
    %cst_357 = arith.constant dense<0xFF800000> : vector<16xf32>
    %930 = vector.multi_reduction <maximumf>, %929, %cst_357 [1] : vector<16x8xf32> to vector<16xf32>
    %931 = vector.shape_cast %930 : vector<16xf32> to vector<16x1xf32>
    %932 = vector.broadcast %931 : vector<16x1xf32> to vector<16x8xf32>
    %933 = arith.subf %929, %932 : vector<16x8xf32>
    %934 = math.exp %933 : vector<16x8xf32>
    %cst_358 = arith.constant dense<0.000000e+00> : vector<16xf32>
    %935 = vector.multi_reduction <add>, %934, %cst_358 [1] : vector<16x8xf32> to vector<16xf32>
    %936 = vector.shape_cast %935 : vector<16xf32> to vector<16x1xf32>
    %937 = tpu.reciprocal %936 : vector<16x1xf32> -> vector<16x1xf32>
    %938 = vector.broadcast %937 : vector<16x1xf32> to vector<16x8xf32>
    %939 = arith.mulf %934, %938 : vector<16x8xf32>
    %cst_359 = arith.constant dense<0.000000e+00> : vector<16x8xf32>
    %940 = tpu.matmul %939, %926, %cst_359 {dimension_numbers = #tpu.dot_dimension_numbers<[1], [0], [0], [1], [0, 0, 1, 1], [], []>} : vector<16x8xf32>, vector<8x8xf32>, vector<16x8xf32> -> vector<16x8xf32>
    %c16_360 = arith.constant 16 : index
    %c24_361 = arith.constant 24 : index
    %941 = vector.load %arg11[%c16_360, %c24_361] : memref<32x32xf32, #tpu.memory_space<vmem>>, vector<16x8xf32>
    tpu.vector_store %arg11[%c16_360, %c24_361], %940 {strides = array<i32>} : memref<32x32xf32, #tpu.memory_space<vmem>>, vector<16x8xf32>,
    %c0_362 = arith.constant 0 : index
    %c0_363 = arith.constant 0 : index
    %942 = vector.load %arg11[%c0_362, %c0_363] : memref<32x32xf32, #tpu.memory_space<vmem>>, vector<32x32xf32>
    %943 = vector.extract_strided_slice %778 {offsets = [0, 96], sizes = [32, 32], strides = [1, 1]} : vector<32x128xf32> to vector<32x32xf32>
    %cst_364 = arith.constant dense<0.000000e+00> : vector<32x32xf32>
    %944 = tpu.matmul %942, %943, %cst_364 {dimension_numbers = #tpu.dot_dimension_numbers<[1], [0], [0], [1], [0, 0, 1, 1], [], []>} : vector<32x32xf32>, vector<32x32xf32>, vector<32x32xf32> -> vector<32x32xf32>
    %945 = vector.extract_strided_slice %779 {offsets = [0, 96], sizes = [1, 32], strides = [1, 1]} : vector<1x128xf32> to vector<1x32xf32>
    %946 = vector.broadcast %945 : vector<1x32xf32> to vector<32x32xf32>
    %947 = arith.addf %944, %946 : vector<32x32xf32>
    %948 = arith.addf %493, %947 : vector<32x32xf32>
    %cst_365 = arith.constant dense<0.000000e+00> : vector<32xf32>
    %949 = vector.multi_reduction <add>, %948, %cst_365 [1] : vector<32x32xf32> to vector<32xf32>
    %950 = vector.shape_cast %949 : vector<32xf32> to vector<32x1xf32>
    %cst_366 = arith.constant 3.200000e+01 : f32
    %951 = vector.broadcast %cst_366 : f32 to vector<32x1xf32>
    %952 = arith.divf %950, %951 : vector<32x1xf32>
    %953 = vector.broadcast %952 : vector<32x1xf32> to vector<32x32xf32>
    %954 = arith.subf %948, %953 : vector<32x32xf32>
    %955 = arith.mulf %954, %954 : vector<32x32xf32>
    %cst_367 = arith.constant dense<0.000000e+00> : vector<32xf32>
    %956 = vector.multi_reduction <add>, %955, %cst_367 [1] : vector<32x32xf32> to vector<32xf32>
    %957 = vector.shape_cast %956 : vector<32xf32> to vector<32x1xf32>
    %cst_368 = arith.constant 3.200000e+01 : f32
    %958 = vector.broadcast %cst_368 : f32 to vector<32x1xf32>
    %959 = arith.divf %957, %958 : vector<32x1xf32>
    %960 = vector.broadcast %952 : vector<32x1xf32> to vector<32x32xf32>
    %961 = arith.subf %948, %960 : vector<32x32xf32>
    %cst_369 = arith.constant 9.99999974E-6 : f32
    %962 = vector.broadcast %cst_369 : f32 to vector<32x1xf32>
    %963 = arith.addf %959, %962 : vector<32x1xf32>
    %964 = math.rsqrt %963 : vector<32x1xf32>
    %965 = vector.broadcast %964 : vector<32x1xf32> to vector<32x32xf32>
    %966 = arith.mulf %961, %965 : vector<32x32xf32>
    %967 = vector.broadcast %500 : vector<1x32xf32> to vector<32x32xf32>
    %968 = arith.mulf %966, %967 : vector<32x32xf32>
    %969 = vector.broadcast %501 : vector<1x32xf32> to vector<32x32xf32>
    %970 = arith.addf %968, %969 : vector<32x32xf32>
    %c3_370 = arith.constant 3 : index
    %c0_371 = arith.constant 0 : index
    %c0_372 = arith.constant 0 : index
    %971 = vector.load %arg4[%c3_370, %c0_371, %c0_372] : memref<4x32x128xf32, #tpu.memory_space<vmem>>, vector<1x32x128xf32>
    %972 = vector.shape_cast %971 : vector<1x32x128xf32> to vector<32x128xf32>
    %c3_373 = arith.constant 3 : index
    %c0_374 = arith.constant 0 : index
    %973 = vector.load %arg5[%c3_373, %c0_374] : memref<4x128xf32, #tpu.memory_space<vmem>>, vector<1x128xf32>
    %c3_375 = arith.constant 3 : index
    %c0_376 = arith.constant 0 : index
    %c0_377 = arith.constant 0 : index
    %974 = vector.load %arg6[%c3_375, %c0_376, %c0_377] : memref<4x128x32xf32, #tpu.memory_space<vmem>>, vector<1x128x32xf32>
    %975 = vector.shape_cast %974 : vector<1x128x32xf32> to vector<128x32xf32>
    %c3_378 = arith.constant 3 : index
    %c0_379 = arith.constant 0 : index
    %976 = vector.load %arg7[%c3_378, %c0_379] : memref<4x32xf32, #tpu.memory_space<vmem>>, vector<1x32xf32>
    %cst_380 = arith.constant dense<0.000000e+00> : vector<32x128xf32>
    %977 = tpu.matmul %970, %972, %cst_380 {dimension_numbers = #tpu.dot_dimension_numbers<[1], [0], [0], [1], [0, 0, 1, 1], [], []>} : vector<32x32xf32>, vector<32x128xf32>, vector<32x128xf32> -> vector<32x128xf32>
    %978 = vector.broadcast %973 : vector<1x128xf32> to vector<32x128xf32>
    %979 = arith.addf %977, %978 : vector<32x128xf32>
    %cst_381 = arith.constant 0.000000e+00 : f32
    %980 = vector.broadcast %cst_381 : f32 to vector<32x128xf32>
    %981 = arith.maximumf %979, %980 : vector<32x128xf32>
    %cst_382 = arith.constant dense<0.000000e+00> : vector<32x32xf32>
    %982 = tpu.matmul %981, %975, %cst_382 {dimension_numbers = #tpu.dot_dimension_numbers<[1], [0], [0], [1], [0, 0, 1, 1], [], []>} : vector<32x128xf32>, vector<128x32xf32>, vector<32x32xf32> -> vector<32x32xf32>
    %983 = vector.broadcast %976 : vector<1x32xf32> to vector<32x32xf32>
    %984 = arith.addf %982, %983 : vector<32x32xf32>
    %985 = arith.addf %948, %984 : vector<32x32xf32>
    %c0_383 = arith.constant 0 : index
    %c0_384 = arith.constant 0 : index
    %986 = vector.load %arg9[%c0_383, %c0_384] : memref<16x32xf32, #tpu.memory_space<vmem>>, vector<16x32xf32>
    tpu.vector_store %arg9[%c0_383, %c0_384], %754 {strides = array<i32>} : memref<16x32xf32, #tpu.memory_space<vmem>>, vector<16x32xf32>,
    %c0_385 = arith.constant 0 : index
    %c0_386 = arith.constant 0 : index
    %987 = vector.load %arg10[%c0_385, %c0_386] : memref<32x32xf32, #tpu.memory_space<vmem>>, vector<32x32xf32>
    tpu.vector_store %arg10[%c0_385, %c0_386], %985 {strides = array<i32>} : memref<32x32xf32, #tpu.memory_space<vmem>>, vector<32x32xf32>,
    return
  }
}

</mosaic_0001>

<bundles_post_ra>
// kernel: cross_modal_transformer.1
= control target key start
LH: loop header
LB: loop body
LE: loop exit
PB: predicated region body
PF: predicated region fallthrough
CT: control target
= control target key end

     0   :  { %16 = vsyncpa [#allocation4], 0  ;;  %vm50_vm0 = vcmask 261120   ;;  %s12828_s0 = inlined_call_operand.vmem [shape: f32[16,32], index: 0, kind: input, shape index: {}]   ;;  %s12829_s1 = inlined_call_operand.vmem [shape: f32[32,32], index: 1, kind: input, shape index: {}]   ;;  %s12830_s2 = inlined_call_operand.vmem [shape: f32[4,32,128], index: 2, kind: input, shape index: {}]   ;;  %s12831_s3 = inlined_call_operand.vmem [shape: f32[4,128], index: 3, kind: input, shape index: {}]   ;;  %s12832_s4 = inlined_call_operand.vmem [shape: f32[4,32,128], index: 4, kind: input, shape index: {}]   ;;  %s12833_s5 = inlined_call_operand.vmem [shape: f32[4,128], index: 5, kind: input, shape index: {}]   ;;  %s12834_s6 = inlined_call_operand.vmem [shape: f32[4,128,32], index: 6, kind: input, shape index: {}]   ;;  %s12835_s7 = inlined_call_operand.vmem [shape: f32[4,32], index: 7, kind: input, shape index: {}]   ;;  %s12836_s8 = inlined_call_operand.vmem [shape: f32[16,32], index: 8, kind: input, shape index: {}]   ;;  %s12837_s9 = inlined_call_operand.hbm [shape: f32[16,32], index: 9, kind: output, shape index: {0}]   ;;  %s12838_s10 = inlined_call_operand.hbm [shape: f32[32,32], index: 10, kind: output, shape index: {1}]  }
   0x1   :  { %v36_v0 = vld [vmem:[%s12828_s0] sm:$0xff]  ;;  %v37_v2 = vld [vmem:[%s12828_s0 + $0x8] sm:$0xff] }
   0x2   :  { %v38_v1 = vld [vmem:[%s12829_s1] sm:$0xff]  ;;  %v120_v3 = vsel %vm50_vm0, %v36_v0, 0.0  ;;  %v39_v5 = vld [vmem:[%s12829_s1 + $0x8] sm:$0xff] }
   0x3   :  { %v51_v4 = vsel %vm50_vm0, %v38_v1, 0.0 }
   0x4   :  { %17 = vsyncpa [#allocation6], 0  ;;  %121 = vadd.xlane.f32.xlu0 %v120_v3  ;;  %52 = vadd.xlane.f32.xlu1 %v51_v4  ;;  %v123_v6 = vsel %vm50_vm0, %v37_v2, 0.0  ;;  %v54_v7 = vsel %vm50_vm0, %v39_v5, 0.0  ;;  %v160_v28 = vld [vmem:[%s12830_s2 + $0x10] sm:$0xff]  ;;  %v161_v29 = vld [vmem:[%s12830_s2 + $0x18] sm:$0xff] }
   0x5   :  { %v158_v30 = vld [vmem:[%s12830_s2] sm:$0xff]  ;;  %v159_v31 = vld [vmem:[%s12830_s2 + $0x8] sm:$0xff]  ;;  %v11119_v32 = vpack.i.bf16 %v161_v29, %v160_v28  ;;  %s10999_s29 = smov 96   ;;  %v10096_v35 = vpack.c.bf16 %v161_v29, %v160_v28  ;;  %v11130_v36 = vld [vmem:[%s12829_s1 + $0x18] sm:$0xff]  ;;  %vm11001_vm1 = vmmov 0   ;;  %v11002_v28 = vmov 0.0  }
   0x6   :  { %v11121_v33 = vpack.i.bf16 %v159_v31, %v158_v30  ;;  %v10092_v34 = vpack.c.bf16 %v159_v31, %v158_v30  ;;  %v60_v37 = vsel %vm50_vm0, %v11130_v36, 0.0  ;;  %v11137_v38 = vld [vmem:[%s12829_s1 + $0x10] sm:$0xff]  ;;  %v11144_v40 = vld [vmem:[%s12831_s3] ss:$0 sm:$0xff]  ;;  %v8693_v60 = vld [vmem:[%s12836_s8 + $0x1] ss:$0 sm:$0xff]  ;;  %9405 = vmatprep.mubr.msk.f32.mxu0 %vm11001_vm1, %v11002_v28 }
   0x7   :  { %v57_v39 = vsel %vm50_vm0, %v11137_v38, 0.0  ;;  %v8692_v58 = vld [vmem:[%s12836_s8] ss:$0 sm:$0xff]  ;;  %s11003_s24 = smov 120   ;;  %vm365_vm2 = vcmask 64512   ;;  %vm446_vm4 = vcmask 130048  }
   0x8   :  { %124 = vadd.xlane.f32.xlu0 %v123_v6  ;;  %55 = vadd.xlane.f32.xlu1 %v54_v7  ;;  %vm11201_vm3 = vmpackc.low %vm365_vm2, %vm365_vm2  ;;  %s11004_s25 = smov 112   ;;  %s11005_s26 = smov 88   ;;  %vm715_vm5 = vcmask 130112   ;;  %vm894_vm6 = vcmask 195712   ;;  %vm1073_vm7 = vcmask 261312  }
   0x9   :  { %10093 = vmatprep.subr.bf16.mxu1 %v10092_v34  ;;  %s11006_s27 = smov 104   ;;  %s11007_s28 = smov 80  }
   0xa   :  { %10095 = vmatpush3.bf16.msra.mxu1 %v10092_v34  ;;  %s11008_s30 = smov 72   ;;  %s11009_s11 = smov 16  }
   0xb   :  { %10097 = vmatprep.subr.bf16.mxu1 %v10096_v35  ;;  %s11010_s12 = smov 32   ;;  %s11011_s13 = smov 8  }
   0xc   :  { %s11012_s14 = smov 24  }
   0xe   :  { %10099 = vmatpush3.bf16.msra.mxu1 %v10096_v35 }
  0x91   :  { %v122_v8 = vpop.xlane.xlu0 %121  ;;  %v53_v9 = vpop.xlane.xlu1 %52 }
  0x92   :  { %v126_v10 = vmul.f32 0.03125, %v122_v8  ;;  %v64_v11 = vmul.f32 0.03125, %v53_v9  ;;  %v8691_v8 = vld [vmem:[%s12836_s8 + $0x5] ss:$0 sm:$0xff] }
  0x94   :  { %v11087_v12 = vsub.f32 %v36_v0, %v126_v10  ;;  %v11089_v13 = vsub.f32 %v38_v1, %v64_v11 }
  0x95   :  { %v125_v14 = vpop.xlane.xlu0 %124  ;;  %v56_v15 = vpop.xlane.xlu1 %55 }
  0x96   :  { %v127_v16 = vmul.f32 0.03125, %v125_v14  ;;  %v65_v17 = vmul.f32 0.03125, %v56_v15  ;;  %v130_v18 = vmul.f32 %v11087_v12, %v11087_v12  ;;  %v72_v19 = vmul.f32 %v11089_v13, %v11089_v13 }
  0x98   :  { %v11095_v20 = vsub.f32 %v37_v2, %v127_v16  ;;  %v11097_v21 = vsub.f32 %v39_v5, %v65_v17  ;;  %v132_v22 = vsel %vm50_vm0, %v130_v18, 0.0  ;;  %v76_v23 = vsel %vm50_vm0, %v72_v19, 0.0  ;;  %v8690_v5 = vld [vmem:[%s12836_s8 + $0x4] ss:$0 sm:$0xff] }
  0x99   :  { %133 = vadd.xlane.f32.xlu0 %v132_v22 }
  0x9a   :  { %v131_v24 = vmul.f32 %v11095_v20, %v11095_v20  ;;  %v73_v25 = vmul.f32 %v11097_v21, %v11097_v21 }
  0x9c   :  { %v135_v26 = vsel %vm50_vm0, %v131_v24, 0.0  ;;  %v79_v27 = vsel %vm50_vm0, %v73_v25, 0.0 }
  0x9d   :  { %77 = vadd.xlane.f32.xlu0 %v76_v23  ;;  %136 = vadd.xlane.f32.xlu1 %v135_v26 }
  0xa1   :  { %80 = vadd.xlane.f32.xlu1 %v79_v27  ;;  %v11000_v27 = vmov 0.0|0.0  }
  0xa2   :  { %10115 = vmatprep.subr.bf16.mxu0 %v11000_v27 }
  0xb2   :  { %10483 = vrot.lane.b32.xlu1 %v11119_v32, %s10999_s29 }
  0xb3   :  { %10478 = vrot.lane.b32.xlu0 %v11121_v33, %s10999_s29 }
  0xd2   :  { %61 = vadd.xlane.f32.xlu0 %v60_v37 }
  0xd6   :  { %58 = vadd.xlane.f32.xlu1 %v57_v39 }
  0xe8   :  { %265 = vrot.lane.b32.xlu0 %v11144_v40, %s10999_s29 }
 0x126   :  { %v134_v41 = vpop.xlane.xlu0 %133 }
 0x127   :  { %v138_v42 = vmul.f32 0.03125, %v134_v41 }
 0x129   :  { %v140_v43 = vadd.f32 1e-05, %v138_v42 }
 0x12a   :  { %v137_v44 = vpop.xlane.xlu1 %136  ;;  %v78_v45 = vpop.xlane.xlu0 %77 }
 0x12b   :  { %10697 = vrsqrt.f32 %v140_v43  ;;  %v139_v46 = vmul.f32 0.03125, %v137_v44  ;;  %v88_v47 = vmul.f32 0.03125, %v78_v45 }
 0x12d   :  { %v141_v48 = vadd.f32 1e-05, %v139_v46  ;;  %v92_v49 = vadd.f32 1e-05, %v88_v47 }
 0x12e   :  { %v81_v50 = vpop.xlane.xlu1 %80  ;;  %v10479_v51 = vpop.permute.xlu0 %10478 }
 0x12f   :  { %10699 = vrsqrt.f32 %v141_v48  ;;  %v89_v52 = vmul.f32 0.03125, %v81_v50  ;;  %v10481_v53 = vunpack.i.h.bf16 %v10479_v51  ;;  %v10480_v54 = vunpack.i.l.bf16 %v10479_v51 }
 0x130   :  { %10701 = vrsqrt.f32 %v92_v49 }
 0x131   :  { %v93_v55 = vadd.f32 1e-05, %v89_v52  ;;  %v10100_v56 = vpack.c.bf16 %v10481_v53, %v10480_v54 }
 0x132   :  { %v10484_v61 = vpop.permute.xlu1 %10483 }
 0x133   :  { %10703 = vrsqrt.f32 %v93_v55  ;;  %10101 = vmatprep.subr.bf16.mxu1 %v10100_v56  ;;  %v10486_v2 = vunpack.i.h.bf16 %v10484_v61  ;;  %v10485_v3 = vunpack.i.l.bf16 %v10484_v61 }
 0x135   :  { %v10698_v57 = vpop.eup %10697  ;;  %v10104_v14 = vpack.c.bf16 %v10486_v2, %v10485_v3 }
 0x136   :  { %v144_v59 = vmul.f32 %v10698_v57, %v11087_v12 }
 0x138   :  { %v150_v62 = vmul.f32 %v8692_v58, %v144_v59 }
 0x139   :  { %v10700_v63 = vpop.eup %10699 }
 0x13a   :  { %v10702_v0 = vpop.eup %10701  ;;  %v156_v1 = vadd.f32 %v8693_v60, %v150_v62  ;;  %v145_v4 = vmul.f32 %v10700_v63, %v11095_v20 }
 0x13b   :  { %v100_v6 = vmul.f32 %v10702_v0, %v11089_v13 }
 0x13c   :  { %9370 = vmatprep.mubr.msk.f32.mxu1 %vm50_vm0, %v156_v1  ;;  %v151_v7 = vmul.f32 %v8692_v58, %v145_v4 }
 0x13d   :  { %v10704_v9 = vpop.eup %10703  ;;  %v108_v10 = vmul.f32 %v8690_v5, %v100_v6 }
 0x13e   :  { %v101_v11 = vmul.f32 %v10704_v9, %v11097_v21  ;;  %v157_v12 = vadd.f32 %v8693_v60, %v151_v7 }
 0x13f   :  { %v11165_v15 = vadd.f32 %v8691_v8, %v108_v10 }
 0x140   :  { %9371 = vmatmul.mubr.msk.f32.vlgmr.msra.gmra.mrb[0].mxu1 %vm50_vm0, %v157_v12  ;;  %v109_v13 = vmul.f32 %v8690_v5, %v101_v11 }
 0x141   :  { %10103 = vmatpush3.bf16.msra.mxu1 %v10100_v56  ;;  %9381 = vmatprep.mubr.msk.f32.mxu1 %vm50_vm0, %v11165_v15 }
 0x142   :  { %10105 = vmatprep.subr.bf16.mxu1 %v10104_v14  ;;  %v11170_v16 = vadd.f32 %v8691_v8, %v109_v13 }
 0x145   :  { %10107 = vmatpush3.bf16.msra.mxu1 %v10104_v14 }
 0x146   :  { %10108 = vmatprep.subr.bf16.mxu1 %v11000_v27 }
 0x148   :  { %9382 = vmatmul.mubr.msk.f32.vlgmr.msra.gmra.mrb[2].mxu1 %vm50_vm0, %v11170_v16 }
 0x15f   :  { %v62_v17 = vpop.xlane.xlu0 %61 }
 0x160   :  { %v67_v18 = vmul.f32 0.03125, %v62_v17 }
 0x162   :  { %v71_v21 = vsub.f32 %v11130_v36, %v67_v18 }
 0x163   :  { %v59_v19 = vpop.xlane.xlu1 %58  ;;  %v266_v49 = vpop.permute.xlu0 %265 }
 0x164   :  { %v66_v20 = vmul.f32 0.03125, %v59_v19  ;;  %v75_v24 = vmul.f32 %v71_v21, %v71_v21 }
 0x166   :  { %v70_v22 = vsub.f32 %v11137_v38, %v66_v20  ;;  %v85_v26 = vsel %vm50_vm0, %v75_v24, 0.0 }
 0x168   :  { %v74_v23 = vmul.f32 %v70_v22, %v70_v22 }
 0x16a   :  { %v82_v25 = vsel %vm50_vm0, %v74_v23, 0.0 }
 0x16b   :  { %83 = vadd.xlane.f32.xlu1 %v82_v25 }
 0x16f   :  { %86 = vadd.xlane.f32.xlu1 %v85_v26 }
 0x1f8   :  { %v84_v29 = vpop.xlane.xlu1 %83 }
 0x1f9   :  { %v90_v30 = vmul.f32 0.03125, %v84_v29 }
 0x1fb   :  { %v94_v31 = vadd.f32 1e-05, %v90_v30 }
 0x1fc   :  { %v87_v34 = vpop.xlane.xlu1 %86 }
 0x1fd   :  { %10705 = vrsqrt.f32 %v94_v31  ;;  %v91_v35 = vmul.f32 0.03125, %v87_v34 }
 0x1ff   :  { %v95_v36 = vadd.f32 1e-05, %v91_v35 }
 0x201   :  { %10707 = vrsqrt.f32 %v95_v36 }
 0x207   :  { %v10706_v37 = vpop.eup %10705 }
 0x208   :  { %v102_v38 = vmul.f32 %v10706_v37, %v70_v22 }
 0x20a   :  { %v110_v39 = vmul.f32 %v8690_v5, %v102_v38 }
 0x20b   :  { %v10708_v41 = vpop.eup %10707 }
 0x20c   :  { %v11182_v42 = vadd.f32 %v8691_v8, %v110_v39  ;;  %v103_v43 = vmul.f32 %v10708_v41, %v71_v21 }
 0x20e   :  { %9384 = vmatprep.mubr.msk.f32.mxu1 %vm50_vm0, %v11182_v42  ;;  %v111_v44 = vmul.f32 %v8690_v5, %v103_v43 }
 0x210   :  { %v11186_v45 = vadd.f32 %v8691_v8, %v111_v44 }
 0x212   :  { %9385 = vmatmul.mubr.msk.f32.gmra.mrb[4].mxu1 %vm50_vm0, %v11186_v45 }
 0x213   :  { %v11190_v46 = vpop.f32.mrb[0].mxu1  ;;  %9391 = vmatprep.mubr.msk.f32.mxu1 %vm11001_vm1, %v11002_v28 }
 0x214   :  { %v239_v47 = vpop.f32.mrb[1].mxu1 }
 0x215   :  { %v11195_v48 = vadd.f32 %v11144_v40, %v239_v47 }
 0x217   :  { %538 = vrot.lane.b32.xlu0 %v11195_v48, %s11003_s24 }
 0x21b   :  { %v9383_v50 = vpop.f32.mrb[2].mxu1 }
 0x21c   :  { %v352_v51 = vadd.f32 %v9383_v50, %v266_v49  ;;  %v346_v52 = vpop.f32.mrb[3].mxu1 }
 0x21d   :  { %v347_v53 = vadd.f32 %v346_v52, %v266_v49 }
 0x21f   :  { %v11205_v55 = vpack.i.bf16 %v352_v51, %v347_v53  ;;  %v10109_v56 = vpack.c.bf16 %v352_v51, %v347_v53 }
 0x221   :  { %10488 = vrot.lane.b32.xlu1 %v11205_v55, %s11003_s24  ;;  %10111 = vmatpush3.bf16.xpose.msk.msra.mxu1 %vm11201_vm3, %v10109_v56 }
 0x222   :  { %10112 = vmatprep.subr.bf16.mxu1 %v11000_v27 }
 0x228   :  { %9392 = vmatmul.mubr.msk.f32.vlgmr.msra.gmra.mrb[6].mxu1 %vm365_vm2, %v11195_v48 }
 0x229   :  { %9398 = vmatprep.mubr.msk.f32.mxu1 %vm11001_vm1, %v11002_v28 }
 0x289   :  { %v539_v61 = vpop.permute.xlu0 %538 }
 0x293   :  { %v10489_v57 = vpop.permute.xlu1 %10488 }
 0x294   :  { %v10491_v58 = vunpack.i.h.bf16 %v10489_v57  ;;  %v10490_v59 = vunpack.i.l.bf16 %v10489_v57 }
 0x296   :  { %v10116_v60 = vpack.c.bf16 %v10491_v58, %v10490_v59 }
 0x298   :  { %10118 = vmatpush3.bf16.xpose.msk.msra.mxu0 %vm11201_vm3, %v10116_v60 }
 0x299   :  { %10126 = vmatprep.subr.bf16.mxu0 %v11000_v27 }
 0x29f   :  { %9406 = vmatmul.mubr.msk.f32.vlgmr.msra.gmra.mrb[0].mxu0 %vm365_vm2, %v539_v61 }
 0x2a0   :  { %9426 = vmatprep.mubr.msk.f32.mxu0 %vm11001_vm1, %v11002_v28 }
 0x2e5   :  { %v9386_v62 = vpop.f32.mrb[4].mxu1 }
 0x2e6   :  { %v11222_v63 = vadd.f32 %v9386_v62, %v266_v49  ;;  %v356_v0 = vpop.f32.mrb[5].mxu1 }
 0x2e7   :  { %v11224_v1 = vadd.f32 %v356_v0, %v266_v49 }
 0x2e9   :  { %v11228_v2 = vpack.i.bf16 %v11222_v63, %v11224_v1  ;;  %v10137_v3 = vpack.c.bf16 %v11222_v63, %v11224_v1 }
 0x2fb   :  { %v441_v4 = vpop.f32.mrb[6].mxu1 }
 0x2fc   :  { %v445_v5 = vmul.f32 0.35355338, %v441_v4  ;;  %v9393_v6 = vpop.f32.mrb[7].mxu1 }
 0x2fe   :  { %v447_v7 = vsel %vm446_vm4, %v445_v5, -inf }
 0x2ff   :  { %448 = vmax.xlane.f32.xlu1 %v447_v7 }
 0x310   :  { %10493 = vrot.lane.b32.xlu1 %v11205_v55, %s10999_s29 }
 0x314   :  { %10503 = vrot.lane.b32.xlu1 %v11205_v55, %s11004_s25 }
 0x318   :  { %717 = vrot.lane.b32.xlu1 %v11195_v48, %s11004_s25 }
 0x372   :  { %v616_v8 = vpop.f32.mrb[0].mxu0 }
 0x373   :  { %v620_v9 = vmul.f32 0.35355338, %v616_v8  ;;  %v9407_v10 = vpop.f32.mrb[1].mxu0 }
 0x375   :  { %v621_v11 = vsel %vm446_vm4, %v620_v9, -inf }
 0x376   :  { %622 = vmax.xlane.f32.xlu0 %v621_v11 }
 0x38c   :  { %v449_v12 = vpop.xlane.xlu1 %448 }
 0x38d   :  { %v450_v14 = vsub.f32 %v445_v5, %v449_v12 }
 0x38f   :  { %v451_v13 = vmul.f32 1.442695, %v450_v14 }
 0x390   :  { %v10494_v17 = vpop.permute.xlu1 %10493 }
 0x391   :  { %10709 = vpow2.f32 %v451_v13  ;;  %v10496_v18 = vunpack.i.h.bf16 %v10494_v17  ;;  %v10495_v19 = vunpack.i.l.bf16 %v10494_v17 }
 0x393   :  { %v10113_v20 = vpack.c.bf16 %v10496_v18, %v10495_v19 }
 0x394   :  { %v10504_v41 = vpop.permute.xlu1 %10503 }
 0x395   :  { %10114 = vmatpush3.bf16.msra.mxu1 %v10113_v20  ;;  %v10506_v44 = vunpack.i.h.bf16 %v10504_v41  ;;  %v10505_v47 = vunpack.i.l.bf16 %v10504_v41 }
 0x396   :  { %10119 = vmatprep.subr.bf16.mxu1 %v11000_v27 }
 0x397   :  { %v10123_v50 = vpack.c.bf16 %v10506_v44, %v10505_v47 }
 0x398   :  { %v718_v51 = vpop.permute.xlu1 %717 }
 0x39b   :  { %v10710_v21 = vpop.eup %10709 }
 0x39c   :  { %v453_v22 = vsel %vm446_vm4, %v10710_v21, 0.0 }
 0x39d   :  { %454 = vadd.xlane.f32.xlu0 %v453_v22 }
 0x403   :  { %v623_v23 = vpop.xlane.xlu0 %622 }
 0x404   :  { %v624_v24 = vsub.f32 %v620_v9, %v623_v23 }
 0x406   :  { %v625_v25 = vmul.f32 1.442695, %v624_v24 }
 0x408   :  { %10711 = vpow2.f32 %v625_v25 }
 0x412   :  { %v10712_v26 = vpop.eup %10711 }
 0x413   :  { %v627_v29 = vsel %vm446_vm4, %v10712_v26, 0.0 }
 0x414   :  { %628 = vadd.xlane.f32.xlu0 %v627_v29 }
 0x42a   :  { %10498 = vrot.lane.b32.xlu0 %v11205_v55, %s11005_s26  ;;  %v455_v30 = vpop.xlane.xlu0 %454 }
 0x42b   :  { %10713 = vrcp.f32 %v455_v30 }
 0x435   :  { %v10714_v31 = vpop.eup %10713 }
 0x436   :  { %v457_v34 = vmul.f32 %v10714_v31, %v10710_v21 }
 0x438   :  { %9399 = vmatmul.mubr.msk.f32.vlgmr.msra.gmra.mrb[8].mxu1 %vm446_vm4, %v457_v34 }
 0x439   :  { %9412 = vmatprep.mubr.msk.f32.mxu1 %vm11001_vm1, %v11002_v28 }
 0x4a1   :  { %v629_v35 = vpop.xlane.xlu0 %628 }
 0x4a2   :  { %10715 = vrcp.f32 %v629_v35 }
 0x4a5   :  { %v10499_v36 = vpop.permute.xlu0 %10498 }
 0x4a6   :  { %v10501_v37 = vunpack.i.h.bf16 %v10499_v36  ;;  %v10500_v38 = vunpack.i.l.bf16 %v10499_v36 }
 0x4a8   :  { %v10120_v39 = vpack.c.bf16 %v10501_v37, %v10500_v38 }
 0x4aa   :  { %10121 = vmatpush3.bf16.msra.mxu1 %v10120_v39 }
 0x4ab   :  { %10122 = vmatprep.subr.bf16.mxu1 %v11000_v27 }
 0x4ac   :  { %v10716_v43 = vpop.eup %10715 }
 0x4ad   :  { %v631_v49 = vmul.f32 %v10716_v43, %v10712_v26  ;;  %v11288_v26 = vadd.f32 %v11190_v46, %v11144_v40 }
 0x4af   :  { %9413 = vmatmul.mubr.msk.f32.vlgmr.msra.gmra.mrb[10].mxu1 %vm446_vm4, %v631_v49 }
 0x4b0   :  { %9419 = vmatprep.mubr.msk.f32.mxu1 %vm11001_vm1, %v11002_v28 }
 0x4b3   :  { %10125 = vmatpush3.bf16.xpose.msk.msra.mxu1 %vm11201_vm3, %v10123_v50 }
 0x4b4   :  { %10133 = vmatprep.subr.bf16.mxu1 %v11000_v27 }
 0x4ba   :  { %9420 = vmatmul.mubr.msk.f32.vlgmr.msra.gmra.mrb[12].mxu1 %vm365_vm2, %v718_v51 }
 0x4bb   :  { %9440 = vmatprep.mubr.msk.f32.mxu1 %vm11001_vm1, %v11002_v28 }
 0x50b   :  { %v533_v52 = vpop.f32.mrb[8].mxu1 }
 0x50c   :  { %537 = vst.msk [vmem:[#allocation2] sm:$0xff] %vm365_vm2, %v533_v52  ;;  %v9400_v53 = vpop.f32.mrb[9].mxu1 }
 0x582   :  { %v11259_v56 = vpop.f32.mrb[10].mxu1 }
 0x583   :  { %v9414_v57 = vpop.f32.mrb[11].mxu1 }
 0x58d   :  { %v795_v58 = vpop.f32.mrb[12].mxu1 }
 0x58e   :  { %v799_v59 = vmul.f32 0.35355338, %v795_v58  ;;  %v9421_v60 = vpop.f32.mrb[13].mxu1 }
 0x590   :  { %v800_v61 = vsel %vm446_vm4, %v799_v59, -inf }
 0x591   :  { %801 = vmax.xlane.f32.xlu1 %v800_v61 }
 0x5a2   :  { %10513 = vrot.lane.b32.xlu1 %v11205_v55, %s11006_s27 }
 0x5a6   :  { %896 = vrot.lane.b32.xlu1 %v11195_v48, %s11006_s27 }
 0x61e   :  { %v802_v62 = vpop.xlane.xlu1 %801 }
 0x61f   :  { %v803_v0 = vsub.f32 %v799_v59, %v802_v62 }
 0x621   :  { %v804_v4 = vmul.f32 1.442695, %v803_v0 }
 0x622   :  { %v10514_v12 = vpop.permute.xlu1 %10513 }
 0x623   :  { %10717 = vpow2.f32 %v804_v4  ;;  %v10516_v14 = vunpack.i.h.bf16 %v10514_v12  ;;  %v10515_v13 = vunpack.i.l.bf16 %v10514_v12 }
 0x625   :  { %v10130_v18 = vpack.c.bf16 %v10516_v14, %v10515_v13 }
 0x626   :  { %v897_v19 = vpop.permute.xlu1 %896 }
 0x62d   :  { %v10718_v5 = vpop.eup %10717 }
 0x62e   :  { %v806_v6 = vsel %vm446_vm4, %v10718_v5, 0.0 }
 0x62f   :  { %807 = vadd.xlane.f32.xlu0 %v806_v6 }
 0x645   :  { %10508 = vrot.lane.b32.xlu0 %v11205_v55, %s11007_s28 }
 0x6bc   :  { %v808_v7 = vpop.xlane.xlu0 %807 }
 0x6bd   :  { %10719 = vrcp.f32 %v808_v7 }
 0x6c0   :  { %v10509_v8 = vpop.permute.xlu0 %10508 }
 0x6c1   :  { %v10511_v9 = vunpack.i.h.bf16 %v10509_v8  ;;  %v10510_v10 = vunpack.i.l.bf16 %v10509_v8 }
 0x6c3   :  { %v10127_v11 = vpack.c.bf16 %v10511_v9, %v10510_v10 }
 0x6c5   :  { %10128 = vmatpush3.bf16.msra.mxu0 %v10127_v11 }
 0x6c6   :  { %10129 = vmatprep.subr.bf16.mxu0 %v11000_v27 }
 0x6c7   :  { %v10720_v48 = vpop.eup %10719 }
 0x6c8   :  { %v810_v17 = vmul.f32 %v10720_v48, %v10718_v5 }
 0x6ca   :  { %9427 = vmatmul.mubr.msk.f32.vlgmr.msra.gmra.mrb[2].mxu0 %vm446_vm4, %v810_v17 }
 0x6cb   :  { %9433 = vmatprep.mubr.msk.f32.mxu0 %vm11001_vm1, %v11002_v28 }
 0x6ce   :  { %10132 = vmatpush3.bf16.xpose.msk.msra.mxu0 %vm11201_vm3, %v10130_v18 }
 0x6cf   :  { %10140 = vmatprep.subr.bf16.mxu0 %v11000_v27 }
 0x6d5   :  { %9434 = vmatmul.mubr.msk.f32.vlgmr.msra.gmra.mrb[4].mxu0 %vm365_vm2, %v897_v19 }
 0x6d6   :  { %9454 = vmatprep.mubr.msk.f32.mxu0 %vm11001_vm1, %v11002_v28 }
 0x79d   :  { %v11279_v20 = vpop.f32.mrb[2].mxu0 }
 0x79e   :  { %v9428_v21 = vpop.f32.mrb[3].mxu0 }
 0x7a8   :  { %v974_v22 = vpop.f32.mrb[4].mxu0 }
 0x7a9   :  { %v978_v23 = vmul.f32 0.35355338, %v974_v22  ;;  %v9435_v24 = vpop.f32.mrb[5].mxu0 }
 0x7ab   :  { %v979_v25 = vsel %vm446_vm4, %v978_v23, -inf }
 0x7ac   :  { %980 = vmax.xlane.f32.xlu0 %v979_v25 }
 0x7c2   :  { %10518 = vrot.lane.b32.xlu0 %v11205_v55, %s11008_s30 }
 0x7c6   :  { %10528 = vrot.lane.b32.xlu0 %v11228_v2, %s11003_s24 }
 0x7ca   :  { %1246 = vrot.lane.b32.xlu0 %v11288_v26, %s11003_s24 }
 0x839   :  { %v981_v29 = vpop.xlane.xlu0 %980 }
 0x83a   :  { %v982_v30 = vsub.f32 %v978_v23, %v981_v29 }
 0x83c   :  { %v983_v31 = vmul.f32 1.442695, %v982_v30 }
 0x83d   :  { %v10519_v34 = vpop.permute.xlu0 %10518 }
 0x83e   :  { %10721 = vpow2.f32 %v983_v31  ;;  %v10521_v35 = vunpack.i.h.bf16 %v10519_v34  ;;  %v10520_v36 = vunpack.i.l.bf16 %v10519_v34 }
 0x840   :  { %v10134_v37 = vpack.c.bf16 %v10521_v35, %v10520_v36 }
 0x841   :  { %v10529_v62 = vpop.permute.xlu0 %10528 }
 0x842   :  { %10135 = vmatpush3.bf16.msra.mxu1 %v10134_v37  ;;  %v10531_v4 = vunpack.i.h.bf16 %v10529_v62  ;;  %v10530_v5 = vunpack.i.l.bf16 %v10529_v62 }
 0x843   :  { %10136 = vmatprep.subr.bf16.mxu1 %v11000_v27 }
 0x844   :  { %v10144_v7 = vpack.c.bf16 %v10531_v4, %v10530_v5 }
 0x845   :  { %v1247_v8 = vpop.permute.xlu0 %1246 }
 0x848   :  { %v10722_v55 = vpop.eup %10721 }
 0x849   :  { %v985_v38 = vsel %vm446_vm4, %v10722_v55, 0.0 }
 0x84a   :  { %986 = vadd.xlane.f32.xlu1 %v985_v38 }
 0x8d7   :  { %v987_v46 = vpop.xlane.xlu1 %986 }
 0x8d8   :  { %10723 = vrcp.f32 %v987_v46 }
 0x8e2   :  { %v10724_v39 = vpop.eup %10723 }
 0x8e3   :  { %v989_v41 = vmul.f32 %v10724_v39, %v10722_v55 }
 0x8e5   :  { %9441 = vmatmul.mubr.msk.f32.vlgmr.msra.gmra.mrb[14].mxu1 %vm446_vm4, %v989_v41 }
 0x8e6   :  { %10139 = vmatpush3.bf16.xpose.msk.msra.mxu1 %vm11201_vm3, %v10137_v3  ;;  %9447 = vmatprep.mubr.msk.f32.mxu1 %vm11001_vm1, %v11002_v28 }
 0x8e7   :  { %10147 = vmatprep.subr.bf16.mxu1 %v11000_v27 }
 0x8ed   :  { %9448 = vmatmul.mubr.msk.f32.vlgmr.msra.gmra.mrb[16].mxu1 %vm365_vm2, %v11288_v26 }
 0x8ee   :  { %9468 = vmatprep.mubr.msk.f32.mxu1 %vm11001_vm1, %v11002_v28 }
 0x9b8   :  { %v11307_v43 = vpop.f32.mrb[14].mxu1 }
 0x9b9   :  { %v9442_v44 = vpop.f32.mrb[15].mxu1 }
 0x9c0   :  { %v1150_v47 = vpop.f32.mrb[16].mxu1 }
 0x9c1   :  { %v1154_v49 = vmul.f32 0.35355338, %v1150_v47  ;;  %v9449_v63 = vpop.f32.mrb[17].mxu1 }
 0x9c3   :  { %v1155_v1 = vsel %vm446_vm4, %v1154_v49, -inf }
 0x9c4   :  { %1156 = vmax.xlane.f32.xlu1 %v1155_v1 }
 0xa51   :  { %v1157_v3 = vpop.xlane.xlu1 %1156 }
 0xa52   :  { %v1158_v50 = vsub.f32 %v1154_v49, %v1157_v3 }
 0xa54   :  { %v1159_v51 = vmul.f32 1.442695, %v1158_v50 }
 0xa56   :  { %10725 = vpow2.f32 %v1159_v51 }
 0xa60   :  { %v10726_v52 = vpop.eup %10725 }
 0xa61   :  { %v1161_v53 = vsel %vm446_vm4, %v10726_v52, 0.0 }
 0xa62   :  { %1162 = vadd.xlane.f32.xlu1 %v1161_v53 }
 0xa73   :  { %10523 = vrot.lane.b32.xlu1 %v11228_v2, %s10999_s29 }
 0xaef   :  { %v1163_v57 = vpop.xlane.xlu1 %1162 }
 0xaf0   :  { %10727 = vrcp.f32 %v1163_v57 }
 0xaf3   :  { %v10524_v58 = vpop.permute.xlu1 %10523 }
 0xaf4   :  { %v10526_v59 = vunpack.i.h.bf16 %v10524_v58  ;;  %v10525_v60 = vunpack.i.l.bf16 %v10524_v58 }
 0xaf6   :  { %v10141_v61 = vpack.c.bf16 %v10526_v59, %v10525_v60 }
 0xaf8   :  { %10142 = vmatpush3.bf16.msra.mxu0 %v10141_v61 }
 0xaf9   :  { %10143 = vmatprep.subr.bf16.mxu0 %v11000_v27 }
 0xafa   :  { %v10728_v0 = vpop.eup %10727 }
 0xafb   :  { %v1165_v6 = vmul.f32 %v10728_v0, %v10726_v52 }
 0xafd   :  { %9455 = vmatmul.mubr.msk.f32.vlgmr.msra.gmra.mrb[6].mxu0 %vm446_vm4, %v1165_v6 }
 0xafe   :  { %9461 = vmatprep.mubr.msk.f32.mxu0 %vm11001_vm1, %v11002_v28 }
 0xb01   :  { %10146 = vmatpush3.bf16.xpose.msk.msra.mxu0 %vm11201_vm3, %v10144_v7 }
 0xb02   :  { %10154 = vmatprep.subr.bf16.mxu0 %v11000_v27 }
 0xb08   :  { %9462 = vmatmul.mubr.msk.f32.vlgmr.msra.gmra.mrb[8].mxu0 %vm365_vm2, %v1247_v8 }
 0xb09   :  { %9482 = vmatprep.mubr.msk.f32.mxu0 %vm11001_vm1, %v11002_v28 }
 0xbd0   :  { %v1241_v9 = vpop.f32.mrb[6].mxu0 }
 0xbd1   :  { %1245 = vst.msk [vmem:[#allocation2 + $0x8] sm:$0xff] %vm365_vm2, %v1241_v9  ;;  %v9456_v10 = vpop.f32.mrb[7].mxu0 }
 0xbdb   :  { %v1324_v11 = vpop.f32.mrb[8].mxu0 }
 0xbdc   :  { %v1328_v12 = vmul.f32 0.35355338, %v1324_v11  ;;  %v9463_v48 = vpop.f32.mrb[9].mxu0 }
 0xbde   :  { %v1329_v14 = vsel %vm446_vm4, %v1328_v12, -inf }
 0xbdf   :  { %1330 = vmax.xlane.f32.xlu0 %v1329_v14 }
 0xbf5   :  { %10533 = vrot.lane.b32.xlu0 %v11228_v2, %s11005_s26 }
 0xbf9   :  { %1424 = vrot.lane.b32.xlu0 %v11288_v26, %s11004_s25 }
 0xc6c   :  { %v1331_v13 = vpop.xlane.xlu0 %1330 }
 0xc6d   :  { %v1332_v17 = vsub.f32 %v1328_v12, %v1331_v13 }
 0xc6f   :  { %v1333_v18 = vmul.f32 1.442695, %v1332_v17 }
 0xc70   :  { %v10534_v19 = vpop.permute.xlu0 %10533 }
 0xc71   :  { %10729 = vpow2.f32 %v1333_v18  ;;  %v10536_v21 = vunpack.i.h.bf16 %v10534_v19  ;;  %v10535_v22 = vunpack.i.l.bf16 %v10534_v19 }
 0xc73   :  { %v10148_v23 = vpack.c.bf16 %v10536_v21, %v10535_v22 }
 0xc74   :  { %v1425_v55 = vpop.permute.xlu0 %1424 }
 0xc75   :  { %10149 = vmatpush3.bf16.msra.mxu1 %v10148_v23 }
 0xc76   :  { %10150 = vmatprep.subr.bf16.mxu1 %v11000_v27 }
 0xc7b   :  { %v10730_v24 = vpop.eup %10729 }
 0xc7c   :  { %v1335_v25 = vsel %vm446_vm4, %v10730_v24, 0.0 }
 0xc7d   :  { %1336 = vadd.xlane.f32.xlu1 %v1335_v25 }
 0xc8e   :  { %10538 = vrot.lane.b32.xlu1 %v11228_v2, %s11004_s25 }
 0xd0a   :  { %v1337_v29 = vpop.xlane.xlu1 %1336 }
 0xd0b   :  { %10731 = vrcp.f32 %v1337_v29 }
 0xd0e   :  { %v10539_v30 = vpop.permute.xlu1 %10538 }
 0xd0f   :  { %v10541_v31 = vunpack.i.h.bf16 %v10539_v30  ;;  %v10540_v34 = vunpack.i.l.bf16 %v10539_v30 }
 0xd11   :  { %v10151_v37 = vpack.c.bf16 %v10541_v31, %v10540_v34 }
 0xd15   :  { %v10732_v35 = vpop.eup %10731 }
 0xd16   :  { %v1339_v36 = vmul.f32 %v10732_v35, %v10730_v24 }
 0xd18   :  { %9469 = vmatmul.mubr.msk.f32.vlgmr.msra.gmra.mrb[18].mxu1 %vm446_vm4, %v1339_v36 }
 0xd19   :  { %10153 = vmatpush3.bf16.xpose.msk.msra.mxu1 %vm11201_vm3, %v10151_v37  ;;  %9475 = vmatprep.mubr.msk.f32.mxu1 %vm11001_vm1, %v11002_v28 }
 0xd1a   :  { %10161 = vmatprep.subr.bf16.mxu1 %v11000_v27 }
 0xd20   :  { %9476 = vmatmul.mubr.msk.f32.vlgmr.msra.gmra.mrb[20].mxu1 %vm365_vm2, %v1425_v55 }
 0xd21   :  { %9496 = vmatprep.mubr.msk.f32.mxu1 %vm11001_vm1, %v11002_v28 }
 0xdeb   :  { %v1415_v38 = vpop.f32.mrb[18].mxu1 }
 0xdec   :  { %v9470_v46 = vpop.f32.mrb[19].mxu1 }
 0xdf3   :  { %v1502_v39 = vpop.f32.mrb[20].mxu1 }
 0xdf4   :  { %v1506_v41 = vmul.f32 0.35355338, %v1502_v39  ;;  %v9477_v44 = vpop.f32.mrb[21].mxu1 }
 0xdf6   :  { %v1507_v47 = vsel %vm446_vm4, %v1506_v41, -inf }
 0xdf7   :  { %1508 = vmax.xlane.f32.xlu1 %v1507_v47 }
 0xe08   :  { %10548 = vrot.lane.b32.xlu1 %v11228_v2, %s11006_s27 }
 0xe0c   :  { %1602 = vrot.lane.b32.xlu1 %v11288_v26, %s11006_s27 }
 0xe84   :  { %v1509_v49 = vpop.xlane.xlu1 %1508 }
 0xe85   :  { %v1510_v63 = vsub.f32 %v1506_v41, %v1509_v49 }
 0xe87   :  { %v1511_v1 = vmul.f32 1.442695, %v1510_v63 }
 0xe88   :  { %v10549_v59 = vpop.permute.xlu1 %10548 }
 0xe89   :  { %10733 = vpow2.f32 %v1511_v1  ;;  %v10551_v60 = vunpack.i.h.bf16 %v10549_v59  ;;  %v10550_v61 = vunpack.i.l.bf16 %v10549_v59  ;;  %v10941_v1 = vld [vmem:[%s12828_s0 + $0x8] sm:$0xff] }
 0xe8b   :  { %v10158_v0 = vpack.c.bf16 %v10551_v60, %v10550_v61 }
 0xe8c   :  { %v1603_v4 = vpop.permute.xlu1 %1602 }
 0xe93   :  { %v10734_v3 = vpop.eup %10733 }
 0xe94   :  { %v1513_v50 = vsel %vm446_vm4, %v10734_v3, 0.0 }
 0xe95   :  { %1514 = vadd.xlane.f32.xlu0 %v1513_v50 }
 0xeab   :  { %10543 = vrot.lane.b32.xlu0 %v11228_v2, %s11007_s28 }
 0xf22   :  { %v1515_v51 = vpop.xlane.xlu0 %1514 }
 0xf23   :  { %10735 = vrcp.f32 %v1515_v51 }
 0xf26   :  { %v10544_v52 = vpop.permute.xlu0 %10543 }
 0xf27   :  { %v10546_v53 = vunpack.i.h.bf16 %v10544_v52  ;;  %v10545_v57 = vunpack.i.l.bf16 %v10544_v52 }
 0xf29   :  { %v10155_v58 = vpack.c.bf16 %v10546_v53, %v10545_v57 }
 0xf2b   :  { %10156 = vmatpush3.bf16.msra.mxu0 %v10155_v58 }
 0xf2c   :  { %10157 = vmatprep.subr.bf16.mxu0 %v11000_v27 }
 0xf2d   :  { %v10736_v26 = vpop.eup %10735 }
 0xf2e   :  { %v1517_v62 = vmul.f32 %v10736_v26, %v10734_v3 }
 0xf30   :  { %9483 = vmatmul.mubr.msk.f32.vlgmr.msra.gmra.mrb[10].mxu0 %vm446_vm4, %v1517_v62 }
 0xf31   :  { %9489 = vmatprep.mubr.msk.f32.mxu0 %vm11001_vm1, %v11002_v28 }
 0xf34   :  { %10160 = vmatpush3.bf16.xpose.msk.msra.mxu0 %vm11201_vm3, %v10158_v0 }
 0xf3b   :  { %9490 = vmatmul.mubr.msk.f32.vlgmr.msra.gmra.mrb[12].mxu0 %vm365_vm2, %v1603_v4 }
0x1003   :  { %v1593_v5 = vpop.f32.mrb[10].mxu0 }
0x1004   :  { %v9484_v6 = vpop.f32.mrb[11].mxu0 }
0x1005   :  { %v1919_v6 = vld [vmem:[%s12832_s4 + $0x8] sm:$0xff] }
0x100e   :  { %v1680_v7 = vpop.f32.mrb[12].mxu0 }
0x100f   :  { %v1684_v8 = vmul.f32 0.35355338, %v1680_v7  ;;  %v9491_v9 = vpop.f32.mrb[13].mxu0  ;;  %v1920_v7 = vld [vmem:[%s12832_s4 + $0x10] sm:$0xff] }
0x1010   :  { %v1921_v9 = vld [vmem:[%s12832_s4 + $0x18] sm:$0xff] }
0x1011   :  { %v1685_v10 = vsel %vm446_vm4, %v1684_v8, -inf }
0x1012   :  { %1686 = vmax.xlane.f32.xlu0 %v1685_v10  ;;  %v10176_v10 = vpack.c.bf16 %v1921_v9, %v1920_v7  ;;  %v8740_v9 = vld [vmem:[%s12835_s7] ss:$0 sm:$0xff] }
0x1028   :  { %10553 = vrot.lane.b32.xlu0 %v11228_v2, %s11008_s30 }
0x102c   :  { %891 = vrot.lane.b32.xlu0 %v11279_v20, %s11009_s11 }
0x1030   :  { %10558 = vrot.lane.b32.xlu0 %v11121_v33, %s11010_s12 }
0x1034   :  { %1598 = vrot.lane.b32.xlu0 %v1593_v5, %s11009_s11  ;;  %v1918_v5 = vld [vmem:[%s12832_s4] sm:$0xff] }
0x1038   :  { %10563 = vrot.lane.b32.xlu0 %v11119_v32, %s11010_s12 }
0x109f   :  { %v1687_v11 = vpop.xlane.xlu0 %1686 }
0x10a0   :  { %v1688_v12 = vsub.f32 %v1684_v8, %v1687_v11  ;;  %v10172_v8 = vpack.c.bf16 %v1919_v6, %v1918_v5  ;;  %v11426_v11 = vld [vmem:[%s12830_s2 + $0x20] sm:$0xff] }
0x10a2   :  { %v1689_v48 = vmul.f32 1.442695, %v1688_v12  ;;  %10173 = vmatprep.subr.bf16.mxu0 %v10172_v8  ;;  %v11431_v12 = vld [vmem:[%s12830_s2 + $0x28] sm:$0xff] }
0x10a3   :  { %v10554_v14 = vpop.permute.xlu0 %10553  ;;  %10175 = vmatpush3.bf16.msra.mxu0 %v10172_v8 }
0x10a4   :  { %10737 = vpow2.f32 %v1689_v48  ;;  %v10556_v13 = vunpack.i.h.bf16 %v10554_v14  ;;  %v10555_v17 = vunpack.i.l.bf16 %v10554_v14  ;;  %10177 = vmatprep.subr.bf16.mxu0 %v10176_v10  ;;  %v10212_v48 = vpack.c.bf16 %v11431_v12, %v11426_v11  ;;  %v1923_v14 = vld [vmem:[%s12834_s6] sm:$0xff] }
0x10a6   :  { %v10162_v18 = vpack.c.bf16 %v10556_v13, %v10555_v17  ;;  %v1924_v13 = vld [vmem:[%s12834_s6 + $0x8] sm:$0xff]  ;;  %v1925_v17 = vld [vmem:[%s12834_s6 + $0x10] sm:$0xff] }
0x10a7   :  { %v892_v33 = vpop.permute.xlu0 %891  ;;  %10179 = vmatpush3.bf16.msra.mxu0 %v10176_v10 }
0x10a8   :  { %10163 = vmatpush3.bf16.msra.mxu1 %v10162_v18  ;;  %10213 = vmatprep.subr.bf16.mxu0 %v10212_v48  ;;  %v10180_v18 = vpack.c.bf16 %v1924_v13, %v1923_v14 }
0x10ab   :  { %v10559_v21 = vpop.permute.xlu0 %10558 }
0x10ac   :  { %v10561_v29 = vunpack.i.h.bf16 %v10559_v21  ;;  %v10560_v30 = vunpack.i.l.bf16 %v10559_v21 }
0x10ae   :  { %v10738_v2 = vpop.eup %10737  ;;  %v10164_v31 = vpack.c.bf16 %v10561_v29, %v10560_v30  ;;  %v1934_v29 = vld [vmem:[%s12834_s6 + $0x58] sm:$0xff] }
0x10af   :  { %v1691_v19 = vsel %vm446_vm4, %v10738_v2, 0.0  ;;  %v1599_v23 = vpop.permute.xlu0 %1598 }
0x10b0   :  { %1692 = vadd.xlane.f32.xlu1 %v1691_v19  ;;  %10165 = vmatprep.subr.bf16.mxu1 %v10164_v31 }
0x10b3   :  { %v10564_v34 = vpop.permute.xlu0 %10563 }
0x10b4   :  { %v10566_v35 = vunpack.i.h.bf16 %v10564_v34  ;;  %v10565_v36 = vunpack.i.l.bf16 %v10564_v34  ;;  %v1936_v34 = vld [vmem:[%s12834_s6 + $0x68] sm:$0xff] }
0x10b6   :  { %v10168_v37 = vpack.c.bf16 %v10566_v35, %v10565_v36 }
0x10c1   :  { %712 = vrot.lane.b32.xlu1 %v11259_v56, %s11011_s13 }
0x10c5   :  { %1420 = vrot.lane.b32.xlu1 %v1415_v38, %s11011_s13 }
0x10c9   :  { %1070 = vrot.lane.b32.xlu1 %v11307_v43, %s11012_s14 }
0x113d   :  { %v1693_v20 = vpop.xlane.xlu1 %1692 }
0x113e   :  { %10739 = vrcp.f32 %v1693_v20  ;;  %v1928_v20 = vld [vmem:[%s12834_s6 + $0x28] sm:$0xff] }
0x1141   :  { %v713_v22 = vpop.permute.xlu1 %712 }
0x1142   :  { %716 = vst.msk [vmem:[#allocation2] sm:$0xff] %vm715_vm5, %v713_v22  ;;  %v1929_v22 = vld [vmem:[%s12834_s6 + $0x30] sm:$0xff] }
0x1143   :  { %895 = vst.msk [vmem:[#allocation2] sm:$0xff] %vm894_vm6, %v892_v33  ;;  %v1927_v33 = vld [vmem:[%s12834_s6 + $0x20] sm:$0xff] }
0x1144   :  { %v10188_v21 = vpack.c.bf16 %v1928_v20, %v1927_v33 }
0x1145   :  { %v1421_v56 = vpop.permute.xlu1 %1420 }
0x1146   :  { %1423 = vst.msk [vmem:[#allocation2 + $0x8] sm:$0xff] %vm715_vm5, %v1421_v56  ;;  %v1930_v56 = vld [vmem:[%s12834_s6 + $0x38] sm:$0xff] }
0x1147   :  { %1601 = vst.msk [vmem:[#allocation2 + $0x8] sm:$0xff] %vm894_vm6, %v1599_v23  ;;  %v10192_v23 = vpack.c.bf16 %v1930_v56, %v1929_v22 }
0x1148   :  { %v10740_v43 = vpop.eup %10739 }
0x1149   :  { %v1071_v32 = vpop.permute.xlu1 %1070  ;;  %v1695_v24 = vmul.f32 %v10740_v43, %v10738_v2  ;;  %v1926_v2 = vld [vmem:[%s12834_s6 + $0x18] sm:$0xff]  ;;  %v1931_v43 = vld [vmem:[%s12834_s6 + $0x40] sm:$0xff] }
0x114a   :  { %1074 = vst.msk [vmem:[#allocation2] sm:$0xff] %vm1073_vm7, %v1071_v32  ;;  %v10184_v19 = vpack.c.bf16 %v1926_v2, %v1925_v17  ;;  %v1932_v32 = vld [vmem:[%s12834_s6 + $0x48] sm:$0xff] }
0x114b   :  { %9497 = vmatmul.mubr.msk.f32.vlgmr.msra.gmra.mrb[22].mxu1 %vm446_vm4, %v1695_v24  ;;  %v10196_v24 = vpack.c.bf16 %v1932_v32, %v1931_v43 }
0x114c   :  { %10167 = vmatpush3.bf16.msra.mxu1 %v10164_v31  ;;  %v1935_v31 = vld [vmem:[%s12834_s6 + $0x60] sm:$0xff] }
0x114d   :  { %10169 = vmatprep.subr.bf16.mxu1 %v10168_v37  ;;  %v10204_v35 = vpack.c.bf16 %v1936_v34, %v1935_v31 }
0x1150   :  { %10171 = vmatpush3.bf16.msra.mxu1 %v10168_v37 }
0x1151   :  { %v1780_v25 = vld [vmem:[#allocation2] sm:$0xff]  ;;  %10181 = vmatprep.subr.bf16.mxu1 %v10180_v18 }
0x1152   :  { %9507 = vmatprep.mubr.msk.f32.mxu1 %vm50_vm0, %v1780_v25  ;;  %v1933_v25 = vld [vmem:[%s12834_s6 + $0x50] sm:$0xff] }
0x1153   :  { %v10200_v30 = vpack.c.bf16 %v1934_v29, %v1933_v25  ;;  %v11539_v25 = vpack.i.bf16 %v11431_v12, %v11426_v11  ;;  %v11544_v29 = vld [vmem:[%s12831_s3 + $0x1] ss:$0 sm:$0xff] }
0x121e   :  { %v1771_v55 = vpop.f32.mrb[22].mxu1 }
0x121f   :  { %1776 = vrot.lane.b32.xlu1 %v1771_v55, %s11012_s14  ;;  %v9498_v38 = vpop.f32.mrb[23].mxu1 }
0x1223   :  { %1794 = vrot.lane.b32.xlu1 %v11144_v40, %s11010_s12  ;;  %v10942_v40 = vld [vmem:[%s12828_s0] sm:$0xff] }
0x1291   :  { %v1777_v46 = vpop.permute.xlu1 %1776 }
0x1292   :  { %1779 = vst.msk [vmem:[#allocation2 + $0x8] sm:$0xff] %vm1073_vm7, %v1777_v46 }
0x1295   :  { %v1795_v41 = vpop.permute.xlu1 %1794 }
0x1299   :  { %v1781_v39 = vld [vmem:[#allocation2 + $0x8] sm:$0xff] }
0x129a   :  { %9508 = vmatmul.mubr.msk.f32.vlgmr.msra.gmra.mrb[24].mxu1 %vm50_vm0, %v1781_v39 }
0x129b   :  { %10183 = vmatpush3.bf16.msra.mxu1 %v10180_v18 }
0x129c   :  { %10185 = vmatprep.subr.bf16.mxu1 %v10184_v19 }
0x129f   :  { %10187 = vmatpush3.bf16.msra.mxu1 %v10184_v19 }
0x12a0   :  { %10189 = vmatprep.subr.bf16.mxu1 %v10188_v21 }
0x12a3   :  { %10191 = vmatpush3.bf16.msra.mxu1 %v10188_v21 }
0x12a4   :  { %10193 = vmatprep.subr.bf16.mxu1 %v10192_v23 }
0x12a7   :  { %10195 = vmatpush3.bf16.msra.mxu1 %v10192_v23 }
0x12a8   :  { %10197 = vmatprep.subr.bf16.mxu1 %v10196_v24 }
0x12ab   :  { %10199 = vmatpush3.bf16.msra.mxu1 %v10196_v24 }
0x12ac   :  { %10201 = vmatprep.subr.bf16.mxu1 %v10200_v30 }
0x12af   :  { %10203 = vmatpush3.bf16.msra.mxu1 %v10200_v30 }
0x12b0   :  { %10205 = vmatprep.subr.bf16.mxu1 %v10204_v35 }
0x12b3   :  { %10207 = vmatpush3.bf16.msra.mxu1 %v10204_v35 }
0x136d   :  { %v9509_v44 = vpop.f32.mrb[24].mxu1 }
0x136e   :  { %v1875_v47 = vadd.f32 %v9509_v44, %v1795_v41  ;;  %v1869_v49 = vpop.f32.mrb[25].mxu1  ;;  %v8735_v44 = vld [vmem:[%s12836_s8 + $0x2] ss:$0 sm:$0xff] }
0x136f   :  { %v1870_v63 = vadd.f32 %v1869_v49, %v1795_v41  ;;  %v8736_v49 = vld [vmem:[%s12836_s8 + $0x3] ss:$0 sm:$0xff] }
0x1370   :  { %v11388_v3 = vadd.f32 %v10941_v1, %v1875_v47 }
0x1371   :  { %v11393_v50 = vadd.f32 %v10942_v40, %v1870_v63 }
0x1372   :  { %v1883_v51 = vsel %vm50_vm0, %v11388_v3, 0.0 }
0x1373   :  { %1884 = vadd.xlane.f32.xlu1 %v1883_v51  ;;  %v1880_v52 = vsel %vm50_vm0, %v11393_v50, 0.0 }
0x1374   :  { %1881 = vadd.xlane.f32.xlu0 %v1880_v52  ;;  %v8743_v52 = vld [vmem:[%s12830_s2 + $0x30] sm:$0xff] }
0x1400   :  { %v1885_v53 = vpop.xlane.xlu1 %1884 }
0x1401   :  { %v1887_v57 = vmul.f32 0.03125, %v1885_v53  ;;  %v1882_v58 = vpop.xlane.xlu0 %1881  ;;  %v8744_v53 = vld [vmem:[%s12830_s2 + $0x38] sm:$0xff] }
0x1402   :  { %v1886_v59 = vmul.f32 0.03125, %v1882_v58  ;;  %v11533_v24 = vpack.i.bf16 %v8744_v53, %v8743_v52 }
0x1403   :  { %v11400_v26 = vsub.f32 %v11388_v3, %v1887_v57 }
0x1404   :  { %v11403_v60 = vsub.f32 %v11393_v50, %v1886_v59  ;;  %v10216_v59 = vpack.c.bf16 %v8744_v53, %v8743_v52  ;;  %v10944_v53 = vld [vmem:[%s12836_s8 + $0x1] ss:$0 sm:$0xff] }
0x1405   :  { %v1891_v0 = vmul.f32 %v11400_v26, %v11400_v26 }
0x1406   :  { %v1890_v61 = vmul.f32 %v11403_v60, %v11403_v60 }
0x1407   :  { %v1895_v4 = vsel %vm50_vm0, %v1891_v0, 0.0 }
0x1408   :  { %v1892_v62 = vsel %vm50_vm0, %v1890_v61, 0.0 }
0x1409   :  { %1893 = vadd.xlane.f32.xlu0 %v1892_v62 }
0x140d   :  { %1896 = vadd.xlane.f32.xlu0 %v1895_v4 }
0x1496   :  { %v1894_v36 = vpop.xlane.xlu0 %1893 }
0x1497   :  { %v1898_v37 = vmul.f32 0.03125, %v1894_v36 }
0x1499   :  { %v1900_v55 = vadd.f32 1e-05, %v1898_v37 }
0x149a   :  { %v1897_v38 = vpop.xlane.xlu0 %1896 }
0x149b   :  { %10741 = vrsqrt.f32 %v1900_v55  ;;  %v1899_v46 = vmul.f32 0.03125, %v1897_v38 }
0x149d   :  { %v1901_v39 = vadd.f32 1e-05, %v1899_v46 }
0x149f   :  { %10743 = vrsqrt.f32 %v1901_v39 }
0x14a5   :  { %v10742_v41 = vpop.eup %10741 }
0x14a6   :  { %v1904_v47 = vmul.f32 %v10742_v41, %v11403_v60  ;;  %v1938_v60 = vld [vmem:[%s12834_s6 + $0x78] sm:$0xff] }
0x14a8   :  { %v1910_v63 = vmul.f32 %v8735_v44, %v1904_v47 }
0x14a9   :  { %v10744_v1 = vpop.eup %10743 }
0x14aa   :  { %v1905_v40 = vmul.f32 %v10744_v1, %v11400_v26  ;;  %v1916_v51 = vadd.f32 %v8736_v49, %v1910_v63  ;;  %v1937_v26 = vld [vmem:[%s12834_s6 + $0x70] sm:$0xff] }
0x14ac   :  { %v1911_v57 = vmul.f32 %v8735_v44, %v1905_v40  ;;  %9518 = vmatprep.mubr.msk.f32.mxu0 %vm50_vm0, %v1916_v51  ;;  %v10943_v40 = vld [vmem:[%s12836_s8] ss:$0 sm:$0xff] }
0x14ae   :  { %v1917_v58 = vadd.f32 %v8736_v49, %v1911_v57 }
0x14b0   :  { %9519 = vmatmul.mubr.msk.f32.vlgmr.msra.gmra.mrb[14].mxu0 %vm50_vm0, %v1917_v58 }
0x14b1   :  { %10215 = vmatpush3.bf16.msra.mxu0 %v10212_v48  ;;  %9564 = vmatprep.mubr.msk.f32.mxu0 %vm50_vm0, %v11165_v15  ;;  %v10208_v15 = vpack.c.bf16 %v1938_v60, %v1937_v26 }
0x14b2   :  { %10217 = vmatprep.subr.bf16.mxu0 %v10216_v59 }
0x14b3   :  { %10209 = vmatprep.subr.bf16.mxu1 %v10208_v15 }
0x14b4   :  { %10211 = vmatpush3.bf16.msra.mxu1 %v10208_v15 }
0x14b5   :  { %10219 = vmatpush3.bf16.msra.mxu0 %v10216_v59 }
0x14b8   :  { %9565 = vmatmul.mubr.msk.f32.vlgmr.msra.gmra.mrb[16].mxu0 %vm50_vm0, %v11170_v16  ;;  %v8737_v16 = vld [vmem:[%s12833_s5] ss:$0 sm:$0xff] }
0x14b9   :  { %9567 = vmatprep.mubr.msk.f32.mxu0 %vm50_vm0, %v11182_v42 }
0x14bc   :  { %9568 = vmatmul.mubr.msk.f32.gmra.mrb[18].mxu0 %vm50_vm0, %v11186_v45 }
0x1583   :  { %v9520_v61 = vpop.f32.mrb[14].mxu0 }
0x1584   :  { %v2022_v42 = vadd.f32 %v9520_v61, %v8737_v16  ;;  %v2016_v62 = vpop.f32.mrb[15].mxu0 }
0x1585   :  { %v2017_v0 = vadd.f32 %v8737_v16, %v2016_v62 }
0x1586   :  { %v2026_v4 = vmax.f32 %v2022_v42, 0.0 }
0x1587   :  { %v2025_v45 = vmax.f32 %v2017_v0, 0.0 }
0x1589   :  { %9553 = vmatprep.mubr.f32.mxu1 %v2025_v45 }
0x158a   :  { %9554 = vmatmul.mubr.f32.vlgmr.msra.gmra.mrb[26].mxu1 %v2026_v4 }
0x158b   :  { %v11510_v5 = vpop.f32.mrb[16].mxu0 }
0x158c   :  { %v2214_v6 = vpop.f32.mrb[17].mxu0  ;;  %v2220_v61 = vadd.f32 %v11510_v5, %v11544_v29 }
0x158d   :  { %v2215_v59 = vadd.f32 %v11544_v29, %v2214_v6 }
0x158f   :  { %v11512_v7 = vpop.f32.mrb[18].mxu0 }
0x1590   :  { %v11514_v8 = vpop.f32.mrb[19].mxu0 }
0x165d   :  { %v9555_v10 = vpop.f32.mrb[26].mxu1 }
0x165e   :  { %v2103_v48 = vadd.f32 %v9555_v10, %v8740_v9  ;;  %v2097_v14 = vpop.f32.mrb[27].mxu1  ;;  %v11597_v10 = vadd.f32 %v11544_v29, %v11514_v8 }
0x165f   :  { %v2098_v13 = vadd.f32 %v8740_v9, %v2097_v14  ;;  %v11591_v9 = vadd.f32 %v11512_v7, %v11544_v29 }
0x1660   :  { %v11520_v17 = vadd.f32 %v2103_v48, %v11388_v3 }
0x1661   :  { %v11523_v18 = vadd.f32 %v2098_v13, %v11393_v50 }
0x1662   :  { %v2111_v2 = vsel %vm50_vm0, %v11520_v17, 0.0 }
0x1663   :  { %2112 = vadd.xlane.f32.xlu1 %v2111_v2  ;;  %v2108_v19 = vsel %vm50_vm0, %v11523_v18, 0.0 }
0x1664   :  { %2109 = vadd.xlane.f32.xlu0 %v2108_v19 }
0x16f0   :  { %v2113_v33 = vpop.xlane.xlu1 %2112 }
0x16f1   :  { %v2115_v20 = vmul.f32 0.03125, %v2113_v33  ;;  %v2110_v21 = vpop.xlane.xlu0 %2109 }
0x16f2   :  { %v2114_v22 = vmul.f32 0.03125, %v2110_v21 }
0x16f3   :  { %v2117_v56 = vsub.f32 %v11520_v17, %v2115_v20 }
0x16f4   :  { %v2116_v3 = vsub.f32 %v11523_v18, %v2114_v22 }
0x16f5   :  { %v2119_v23 = vmul.f32 %v2117_v56, %v2117_v56 }
0x16f6   :  { %v2118_v43 = vmul.f32 %v2116_v3, %v2116_v3 }
0x16f7   :  { %v2123_v50 = vsel %vm50_vm0, %v2119_v23, 0.0 }
0x16f8   :  { %2124 = vadd.xlane.f32.xlu1 %v2123_v50  ;;  %v2120_v32 = vsel %vm50_vm0, %v2118_v43, 0.0 }
0x16f9   :  { %2121 = vadd.xlane.f32.xlu0 %v2120_v32 }
0x1709   :  { %10573 = vrot.lane.b32.xlu1 %v11533_v24, %s10999_s29 }
0x170d   :  { %2250 = vrot.lane.b32.xlu1 %v11544_v29, %s10999_s29 }
0x170f   :  { %10568 = vrot.lane.b32.xlu0 %v11539_v25, %s10999_s29 }
0x1785   :  { %v2125_v30 = vpop.xlane.xlu1 %2124 }
0x1786   :  { %v2127_v31 = vmul.f32 0.03125, %v2125_v30  ;;  %v2122_v34 = vpop.xlane.xlu0 %2121 }
0x1787   :  { %v2126_v35 = vmul.f32 0.03125, %v2122_v34 }
0x1788   :  { %v2129_v36 = vadd.f32 1e-05, %v2127_v31 }
0x1789   :  { %v2128_v37 = vadd.f32 1e-05, %v2126_v35  ;;  %v10574_v55 = vpop.permute.xlu1 %10573 }
0x178a   :  { %10745 = vrsqrt.f32 %v2129_v36  ;;  %v10569_v11 = vpop.permute.xlu0 %10568  ;;  %v10576_v12 = vunpack.i.h.bf16 %v10574_v55  ;;  %v10575_v38 = vunpack.i.l.bf16 %v10574_v55 }
0x178b   :  { %10747 = vrsqrt.f32 %v2128_v37  ;;  %v10571_v46 = vunpack.i.h.bf16 %v10569_v11  ;;  %v10570_v39 = vunpack.i.l.bf16 %v10569_v11 }
0x178c   :  { %v10224_v44 = vpack.c.bf16 %v10576_v12, %v10575_v38 }
0x178d   :  { %v10220_v41 = vpack.c.bf16 %v10571_v46, %v10570_v39  ;;  %v2251_v26 = vpop.permute.xlu1 %2250 }
0x178f   :  { %10221 = vmatprep.subr.bf16.mxu0 %v10220_v41 }
0x1790   :  { %10223 = vmatpush3.bf16.msra.mxu0 %v10220_v41 }
0x1791   :  { %10225 = vmatprep.subr.bf16.mxu0 %v10224_v44 }
0x1794   :  { %v10746_v47 = vpop.eup %10745  ;;  %10227 = vmatpush3.bf16.msra.mxu0 %v10224_v44 }
0x1795   :  { %v10748_v49 = vpop.eup %10747  ;;  %v11550_v63 = vmul.f32 %v10746_v47, %v2117_v56 }
0x1796   :  { %v11552_v1 = vmul.f32 %v10748_v49, %v2116_v3 }
0x1797   :  { %v2135_v51 = vmul.f32 %v10943_v40, %v11550_v63 }
0x1798   :  { %v2134_v52 = vmul.f32 %v10943_v40, %v11552_v1 }
0x1799   :  { %v2137_v58 = vadd.f32 %v10944_v53, %v2135_v51 }
0x179a   :  { %v2136_v57 = vadd.f32 %v10944_v53, %v2134_v52 }
0x179c   :  { %9578 = vmatprep.mubr.msk.f32.mxu0 %vm50_vm0, %v2136_v57 }
0x179d   :  { %9579 = vmatmul.mubr.msk.f32.vlgmr.msra.gmra.mrb[20].mxu0 %vm50_vm0, %v2137_v58 }
0x179e   :  { %9583 = vmatprep.mubr.msk.f32.mxu0 %vm365_vm2, %v2215_v59 }
0x1870   :  { %v9580_v60 = vpop.f32.mrb[20].mxu0 }
0x1871   :  { %v2325_v15 = vpop.f32.mrb[21].mxu0  ;;  %v11585_v5 = vadd.f32 %v9580_v60, %v2251_v26 }
0x1872   :  { %v11566_v16 = vadd.f32 %v2325_v15, %v2251_v26 }
0x1874   :  { %9581 = vmatprep.subr.msk.mxu0 %vm365_vm2, %v11566_v16 }
0x1875   :  { %9582 = vmatpush3.xpose.msk.msra.mxu0 %vm365_vm2, %v11566_v16 }
0x1878   :  { %9584 = vmatmul.mubr.msk.f32.vlgmr.msra.gmra.mrb[22].mxu0 %vm365_vm2, %v2220_v61 }
0x194b   :  { %v9585_v42 = vpop.f32.mrb[22].mxu0 }
0x194c   :  { %v2419_v62 = vmul.f32 0.35355338, %v9585_v42  ;;  %v2409_v0 = vpop.f32.mrb[23].mxu0 }
0x194d   :  { %v2418_v45 = vmul.f32 0.35355338, %v2409_v0 }
0x194e   :  { %v2423_v4 = vsel %vm365_vm2, %v2419_v62, -inf }
0x194f   :  { %2424 = vmax.xlane.f32.xlu0 %v2423_v4  ;;  %v2420_v6 = vsel %vm365_vm2, %v2418_v45, -inf }
0x1950   :  { %2421 = vmax.xlane.f32.xlu1 %v2420_v6 }
0x1961   :  { %2442 = vrot.lane.b32.xlu1 %v11566_v16, %s10999_s29 }
0x1965   :  { %2528 = vrot.lane.b32.xlu1 %v2215_v59, %s11003_s24 }
0x1969   :  { %2530 = vrot.lane.b32.xlu1 %v2220_v61, %s11003_s24 }
0x196d   :  { %2737 = vrot.lane.b32.xlu1 %v11566_v16, %s11004_s25 }
0x1971   :  { %2735 = vrot.lane.b32.xlu1 %v2220_v61, %s11004_s25 }
0x1975   :  { %2938 = vrot.lane.b32.xlu1 %v2215_v59, %s11006_s27 }
0x1979   :  { %3341 = vrot.lane.b32.xlu1 %v11585_v5, %s11003_s24 }
0x197d   :  { %3339 = vrot.lane.b32.xlu1 %v11591_v9, %s11003_s24 }
0x1981   :  { %3542 = vrot.lane.b32.xlu1 %v11597_v10, %s11004_s25 }
0x1985   :  { %3751 = vrot.lane.b32.xlu1 %v11585_v5, %s11006_s27 }
0x1989   :  { %3749 = vrot.lane.b32.xlu1 %v11591_v9, %s11006_s27 }
0x19dc   :  { %v2425_v48 = vpop.xlane.xlu0 %2424 }
0x19dd   :  { %v2427_v14 = vsub.f32 %v2419_v62, %v2425_v48  ;;  %v2422_v7 = vpop.xlane.xlu1 %2421 }
0x19de   :  { %v2426_v13 = vsub.f32 %v2418_v45, %v2422_v7 }
0x19df   :  { %v2430_v2 = vmul.f32 1.442695, %v2427_v14 }
0x19e0   :  { %v2428_v19 = vmul.f32 1.442695, %v2426_v13 }
0x19e1   :  { %10749 = vpow2.f32 %v2430_v2  ;;  %v2443_v33 = vpop.permute.xlu1 %2442 }
0x19e2   :  { %9586 = vmatprep.subr.mxu0 %v2443_v33  ;;  %10751 = vpow2.f32 %v2428_v19 }
0x19e3   :  { %9587 = vmatpush3.msra.mxu0 %v2443_v33 }
0x19e5   :  { %v2529_v8 = vpop.permute.xlu1 %2528 }
0x19e9   :  { %v2531_v20 = vpop.permute.xlu1 %2530 }
0x19eb   :  { %v10750_v21 = vpop.eup %10749 }
0x19ec   :  { %v2435_v22 = vsel %vm365_vm2, %v10750_v21, 0.0  ;;  %v10752_v56 = vpop.eup %10751 }
0x19ed   :  { %2436 = vadd.xlane.f32.xlu0 %v2435_v22  ;;  %v2738_v3 = vpop.permute.xlu1 %2737  ;;  %v2432_v23 = vsel %vm365_vm2, %v10752_v56, 0.0 }
0x19ee   :  { %9601 = vmatprep.subr.msk.mxu1 %vm365_vm2, %v2738_v3 }
0x19ef   :  { %9602 = vmatpush3.xpose.msk.msra.mxu1 %vm365_vm2, %v2738_v3 }
0x19f1   :  { %2433 = vadd.xlane.f32.xlu0 %v2432_v23  ;;  %v2736_v43 = vpop.permute.xlu1 %2735 }
0x19f5   :  { %v2939_v30 = vpop.permute.xlu1 %2938 }
0x19f9   :  { %v3342_v34 = vpop.permute.xlu1 %3341 }
0x19fd   :  { %v3340_v38 = vpop.permute.xlu1 %3339 }
0x1a01   :  { %v3543_v39 = vpop.permute.xlu1 %3542 }
0x1a05   :  { %v3752_v47 = vpop.permute.xlu1 %3751 }
0x1a07   :  { %2532 = vrot.lane.b32.xlu0 %v11566_v16, %s11003_s24 }
0x1a09   :  { %v3750_v51 = vpop.permute.xlu1 %3749 }
0x1a0b   :  { %2733 = vrot.lane.b32.xlu0 %v2215_v59, %s11004_s25 }
0x1a0f   :  { %2942 = vrot.lane.b32.xlu0 %v11566_v16, %s11006_s27 }
0x1a13   :  { %2940 = vrot.lane.b32.xlu0 %v2220_v61, %s11006_s27 }
0x1a17   :  { %3337 = vrot.lane.b32.xlu0 %v11597_v10, %s11003_s24 }
0x1a1b   :  { %3546 = vrot.lane.b32.xlu0 %v11585_v5, %s11004_s25 }
0x1a1f   :  { %3544 = vrot.lane.b32.xlu0 %v11591_v9, %s11004_s25 }
0x1a23   :  { %3747 = vrot.lane.b32.xlu0 %v11597_v10, %s11006_s27 }
0x1a7a   :  { %v2437_v50 = vpop.xlane.xlu0 %2436 }
0x1a7b   :  { %10753 = vrcp.f32 %v2437_v50 }
0x1a7e   :  { %v2434_v32 = vpop.xlane.xlu0 %2433 }
0x1a7f   :  { %10755 = vrcp.f32 %v2434_v32 }
0x1a82   :  { %v2533_v31 = vpop.permute.xlu0 %2532 }
0x1a83   :  { %9591 = vmatprep.subr.msk.mxu0 %vm365_vm2, %v2533_v31 }
0x1a85   :  { %v10754_v36 = vpop.eup %10753 }
0x1a86   :  { %v2734_v35 = vpop.permute.xlu0 %2733  ;;  %v2441_v12 = vmul.f32 %v10754_v36, %v10750_v21 }
0x1a87   :  { %9603 = vmatprep.mubr.msk.f32.mxu1 %vm365_vm2, %v2734_v35 }
0x1a88   :  { %9604 = vmatmul.mubr.msk.f32.vlgmr.msra.gmra.mrb[28].mxu1 %vm365_vm2, %v2736_v43 }
0x1a89   :  { %v10756_v37 = vpop.eup %10755  ;;  %9613 = vmatprep.mubr.msk.f32.mxu1 %vm365_vm2, %v2939_v30 }
0x1a8a   :  { %v2943_v55 = vpop.permute.xlu0 %2942  ;;  %v2440_v11 = vmul.f32 %v10756_v37, %v10752_v56 }
0x1a8b   :  { %9611 = vmatprep.subr.msk.mxu1 %vm365_vm2, %v2943_v55 }
0x1a8c   :  { %9588 = vmatprep.mubr.msk.f32.mxu0 %vm365_vm2, %v2440_v11  ;;  %9612 = vmatpush3.xpose.msk.msra.mxu1 %vm365_vm2, %v2943_v55 }
0x1a8d   :  { %9589 = vmatmul.mubr.msk.f32.vlgmr.msra.gmra.mrb[24].mxu0 %vm365_vm2, %v2441_v12  ;;  %9621 = vmatprep.subr.msk.mxu1 %vm365_vm2, %v11585_v5 }
0x1a8e   :  { %9592 = vmatpush3.xpose.msk.msra.mxu0 %vm365_vm2, %v2533_v31  ;;  %v2941_v46 = vpop.permute.xlu0 %2940  ;;  %9593 = vmatprep.mubr.msk.f32.mxu0 %vm365_vm2, %v2529_v8 }
0x1a8f   :  { %9614 = vmatmul.mubr.msk.f32.vlgmr.msra.gmra.mrb[30].mxu1 %vm365_vm2, %v2941_v46 }
0x1a90   :  { %9622 = vmatpush3.xpose.msk.msra.mxu1 %vm365_vm2, %v11585_v5  ;;  %9623 = vmatprep.mubr.msk.f32.mxu1 %vm365_vm2, %v11597_v10 }
0x1a91   :  { %9594 = vmatmul.mubr.msk.f32.vlgmr.msra.gmra.mrb[26].mxu0 %vm365_vm2, %v2531_v20  ;;  %9631 = vmatprep.subr.msk.mxu1 %vm365_vm2, %v3342_v34 }
0x1a92   :  { %v3338_v41 = vpop.permute.xlu0 %3337 }
0x1a93   :  { %9624 = vmatmul.mubr.msk.f32.vlgmr.msra.gmra.mrb[32].mxu1 %vm365_vm2, %v11591_v9 }
0x1a94   :  { %9632 = vmatpush3.xpose.msk.msra.mxu1 %vm365_vm2, %v3342_v34  ;;  %9633 = vmatprep.mubr.msk.f32.mxu1 %vm365_vm2, %v3338_v41 }
0x1a96   :  { %v3547_v44 = vpop.permute.xlu0 %3546 }
0x1a97   :  { %9634 = vmatmul.mubr.msk.f32.vlgmr.msra.gmra.mrb[34].mxu1 %vm365_vm2, %v3340_v38  ;;  %9641 = vmatprep.subr.msk.mxu1 %vm365_vm2, %v3547_v44 }
0x1a98   :  { %9642 = vmatpush3.xpose.msk.msra.mxu1 %vm365_vm2, %v3547_v44  ;;  %9643 = vmatprep.mubr.msk.f32.mxu1 %vm365_vm2, %v3543_v39 }
0x1a99   :  { %9651 = vmatprep.subr.msk.mxu1 %vm365_vm2, %v3752_v47 }
0x1a9a   :  { %v3545_v49 = vpop.permute.xlu0 %3544 }
0x1a9b   :  { %9644 = vmatmul.mubr.msk.f32.vlgmr.msra.gmra.mrb[36].mxu1 %vm365_vm2, %v3545_v49 }
0x1a9c   :  { %9652 = vmatpush3.xpose.msk.msra.mxu1 %vm365_vm2, %v3752_v47 }
0x1a9e   :  { %v3748_v40 = vpop.permute.xlu0 %3747 }
0x1a9f   :  { %9653 = vmatprep.mubr.msk.f32.mxu1 %vm365_vm2, %v3748_v40 }
0x1aa0   :  { %9654 = vmatmul.mubr.msk.f32.vlgmr.msra.gmra.mrb[38].mxu1 %vm365_vm2, %v3750_v51 }
0x1b5b   :  { %v9605_v52 = vpop.f32.mrb[28].mxu1 }
0x1b5c   :  { %v2811_v53 = vpop.f32.mrb[29].mxu1  ;;  %v2821_v10 = vmul.f32 0.35355338, %v9605_v52 }
0x1b5d   :  { %v2820_v57 = vmul.f32 0.35355338, %v2811_v53 }
0x1b5e   :  { %v2825_v19 = vsel %vm365_vm2, %v2821_v10, -inf }
0x1b5f   :  { %v2822_v58 = vsel %vm365_vm2, %v2820_v57, -inf }
0x1b60   :  { %v9590_v59 = vpop.f32.mrb[24].mxu0  ;;  %2823 = vmax.xlane.f32.xlu0 %v2822_v58 }
0x1b61   :  { %2527 = vst.msk [vmem:[#allocation2 + $0x8] sm:$0xff] %vm365_vm2, %v9590_v59  ;;  %v2517_v26 = vpop.f32.mrb[25].mxu0 }
0x1b62   :  { %2526 = vst.msk [vmem:[#allocation2] sm:$0xff] %vm365_vm2, %v2517_v26  ;;  %v9615_v60 = vpop.f32.mrb[30].mxu1 }
0x1b63   :  { %v3016_v15 = vpop.f32.mrb[31].mxu1  ;;  %v3026_v4 = vmul.f32 0.35355338, %v9615_v60 }
0x1b64   :  { %v9595_v61 = vpop.f32.mrb[26].mxu0  ;;  %v3025_v2 = vmul.f32 0.35355338, %v3016_v15 }
0x1b65   :  { %v2616_v42 = vmul.f32 0.35355338, %v9595_v61  ;;  %v2606_v62 = vpop.f32.mrb[27].mxu0  ;;  %v3030_v13 = vsel %vm365_vm2, %v3026_v4, -inf }
0x1b66   :  { %v2615_v0 = vmul.f32 0.35355338, %v2606_v62  ;;  %v11658_v45 = vpop.f32.mrb[32].mxu1  ;;  %v3027_v20 = vsel %vm365_vm2, %v3025_v2, -inf }
0x1b67   :  { %v11660_v6 = vpop.f32.mrb[33].mxu1  ;;  %v2620_v9 = vsel %vm365_vm2, %v2616_v42, -inf  ;;  %v11694_v60 = vmul.f32 0.35355338, %v11658_v45 }
0x1b68   :  { %2621 = vmax.xlane.f32.xlu1 %v2620_v9  ;;  %v2617_v48 = vsel %vm365_vm2, %v2615_v0, -inf  ;;  %v11697_v15 = vmul.f32 0.35355338, %v11660_v6 }
0x1b69   :  { %2618 = vmax.xlane.f32.xlu0 %v2617_v48 }
0x1b6a   :  { %v9635_v14 = vpop.f32.mrb[34].mxu1 }
0x1b6b   :  { %v3415_v7 = vpop.f32.mrb[35].mxu1  ;;  %v11703_v62 = vmul.f32 0.35355338, %v9635_v14 }
0x1b6c   :  { %3031 = vmax.xlane.f32.xlu1 %v3030_v13  ;;  %v11699_v61 = vmul.f32 0.35355338, %v3415_v7 }
0x1b6d   :  { %2826 = vmax.xlane.f32.xlu0 %v2825_v19  ;;  %v3429_v9 = vsel %vm365_vm2, %v11703_v62, -inf }
0x1b6e   :  { %v9645_v33 = vpop.f32.mrb[36].mxu1 }
0x1b6f   :  { %v3620_v8 = vpop.f32.mrb[37].mxu1  ;;  %v11711_v45 = vmul.f32 0.35355338, %v9645_v33 }
0x1b71   :  { %3028 = vmax.xlane.f32.xlu0 %v3027_v20  ;;  %v3634_v14 = vsel %vm365_vm2, %v11711_v45, -inf }
0x1b73   :  { %v11667_v21 = vpop.f32.mrb[38].mxu1 }
0x1b74   :  { %v3825_v22 = vpop.f32.mrb[39].mxu1  ;;  %v11720_v48 = vmul.f32 0.35355338, %v11667_v21 }
0x1b75   :  { %v11713_v6 = vmul.f32 0.35355338, %v3825_v22 }
0x1b76   :  { %v3839_v13 = vsel %vm365_vm2, %v11720_v48, -inf }
0x1b77   :  { %v3836_v7 = vsel %vm365_vm2, %v11713_v6, -inf }
0x1bed   :  { %v2824_v56 = vpop.xlane.xlu0 %2823 }
0x1bee   :  { %v2828_v3 = vsub.f32 %v2820_v57, %v2824_v56 }
0x1bf0   :  { %v2830_v23 = vmul.f32 1.442695, %v2828_v3 }
0x1bf2   :  { %10757 = vpow2.f32 %v2830_v23 }
0x1bf5   :  { %v2622_v43 = vpop.xlane.xlu1 %2621 }
0x1bf6   :  { %v2619_v50 = vpop.xlane.xlu0 %2618  ;;  %v2624_v36 = vsub.f32 %v2616_v42, %v2622_v43  ;;  %v3232_v42 = vsel %vm365_vm2, %v11694_v60, -inf }
0x1bf7   :  { %v2623_v37 = vsub.f32 %v2615_v0, %v2619_v50  ;;  %v11705_v0 = vmul.f32 0.35355338, %v3620_v8 }
0x1bf8   :  { %v2627_v39 = vmul.f32 1.442695, %v2624_v36 }
0x1bf9   :  { %v3032_v32 = vpop.xlane.xlu1 %3031  ;;  %v2625_v41 = vmul.f32 1.442695, %v2623_v37 }
0x1bfa   :  { %v3034_v30 = vsub.f32 %v3026_v4, %v3032_v32  ;;  %v2827_v31 = vpop.xlane.xlu0 %2826  ;;  %v3426_v4 = vsel %vm365_vm2, %v11699_v61, -inf }
0x1bfb   :  { %v2829_v34 = vsub.f32 %v2821_v10, %v2827_v31  ;;  %v3631_v10 = vsel %vm365_vm2, %v11705_v0, -inf }
0x1bfc   :  { %v11669_v35 = vpop.eup %10757  ;;  %v3037_v55 = vmul.f32 1.442695, %v3034_v30 }
0x1bfd   :  { %v2832_v11 = vmul.f32 1.442695, %v2829_v34  ;;  %v2834_v12 = vsel %vm365_vm2, %v11669_v35, 0.0 }
0x1bfe   :  { %2835 = vadd.xlane.f32.xlu0 %v2834_v12  ;;  %v3029_v38 = vpop.xlane.xlu0 %3028 }
0x1bff   :  { %10759 = vpow2.f32 %v2832_v11  ;;  %v3033_v46 = vsub.f32 %v3025_v2, %v3029_v38 }
0x1c00   :  { %10761 = vpow2.f32 %v3037_v55 }
0x1c01   :  { %v3035_v44 = vmul.f32 1.442695, %v3033_v46 }
0x1c03   :  { %10763 = vpow2.f32 %v3035_v44 }
0x1c04   :  { %10765 = vpow2.f32 %v2627_v39 }
0x1c05   :  { %10767 = vpow2.f32 %v2625_v41 }
0x1c09   :  { %v11673_v47 = vpop.eup %10759 }
0x1c0a   :  { %v2837_v49 = vsel %vm365_vm2, %v11673_v47, 0.0  ;;  %v11677_v40 = vpop.eup %10761 }
0x1c0b   :  { %2838 = vadd.xlane.f32.xlu1 %v2837_v49  ;;  %v3042_v57 = vsel %vm365_vm2, %v11677_v40, 0.0 }
0x1c0d   :  { %v11679_v51 = vpop.eup %10763 }
0x1c0e   :  { %v10766_v52 = vpop.eup %10765  ;;  %v3039_v53 = vsel %vm365_vm2, %v11679_v51, 0.0 }
0x1c0f   :  { %v10768_v58 = vpop.eup %10767  ;;  %3040 = vadd.xlane.f32.xlu0 %v3039_v53  ;;  %3043 = vadd.xlane.f32.xlu1 %v3042_v57  ;;  %v2632_v26 = vsel %vm365_vm2, %v10766_v52, 0.0 }
0x1c10   :  { %v2629_v59 = vsel %vm365_vm2, %v10768_v58, 0.0 }
0x1c13   :  { %2630 = vadd.xlane.f32.xlu0 %v2629_v59  ;;  %2633 = vadd.xlane.f32.xlu1 %v2632_v26 }
0x1c24   :  { %2844 = vrot.lane.b32.xlu1 %v11566_v16, %s11007_s28 }
0x1c28   :  { %3049 = vrot.lane.b32.xlu1 %v11566_v16, %s11008_s30 }
0x1c29   :  { %2639 = vrot.lane.b32.xlu0 %v11566_v16, %s11005_s26  ;;  %v3229_v16 = vsel %vm365_vm2, %v11697_v15, -inf }
0x1c48   :  { %3233 = vmax.xlane.f32.xlu0 %v3232_v42 }
0x1c4c   :  { %3427 = vmax.xlane.f32.xlu0 %v3426_v4  ;;  %3230 = vmax.xlane.f32.xlu1 %v3229_v16 }
0x1c50   :  { %3430 = vmax.xlane.f32.xlu0 %v3429_v9  ;;  %3632 = vmax.xlane.f32.xlu1 %v3631_v10 }
0x1c54   :  { %3635 = vmax.xlane.f32.xlu0 %v3634_v14  ;;  %3837 = vmax.xlane.f32.xlu1 %v3836_v7 }
0x1c58   :  { %3840 = vmax.xlane.f32.xlu0 %v3839_v13 }
0x1c8b   :  { %v2836_v2 = vpop.xlane.xlu0 %2835 }
0x1c8c   :  { %10769 = vrcp.f32 %v2836_v2 }
0x1c96   :  { %v10770_v3 = vpop.eup %10769 }
0x1c97   :  { %v2842_v31 = vmul.f32 %v10770_v3, %v11669_v35 }
0x1c98   :  { %v2839_v19 = vpop.xlane.xlu1 %2838 }
0x1c9c   :  { %v3041_v33 = vpop.xlane.xlu0 %3040  ;;  %v3044_v8 = vpop.xlane.xlu1 %3043 }
0x1ca0   :  { %v2631_v20 = vpop.xlane.xlu0 %2630  ;;  %v2634_v21 = vpop.xlane.xlu1 %2633 }
0x1ca1   :  { %10771 = vrcp.f32 %v2631_v20 }
0x1ca2   :  { %10773 = vrcp.f32 %v2634_v21 }
0x1ca3   :  { %10775 = vrcp.f32 %v2839_v19 }
0x1ca4   :  { %v2640_v22 = vpop.permute.xlu0 %2639  ;;  %10777 = vrcp.f32 %v3041_v33  ;;  %v2845_v56 = vpop.permute.xlu1 %2844 }
0x1ca5   :  { %9596 = vmatprep.subr.mxu0 %v2640_v22  ;;  %10779 = vrcp.f32 %v3044_v8 }
0x1ca6   :  { %9597 = vmatpush3.msra.mxu0 %v2640_v22 }
0x1ca7   :  { %9606 = vmatprep.subr.mxu0 %v2845_v56 }
0x1ca8   :  { %v3050_v36 = vpop.permute.xlu1 %3049 }
0x1cab   :  { %v10772_v23 = vpop.eup %10771 }
0x1cac   :  { %v10774_v43 = vpop.eup %10773  ;;  %v2637_v50 = vmul.f32 %v10772_v23, %v10768_v58 }
0x1cad   :  { %v2638_v32 = vmul.f32 %v10774_v43, %v10766_v52  ;;  %v10776_v30 = vpop.eup %10775 }
0x1cae   :  { %9598 = vmatprep.mubr.msk.f32.mxu0 %vm365_vm2, %v2637_v50  ;;  %v10778_v34 = vpop.eup %10777  ;;  %v2843_v37 = vmul.f32 %v10776_v30, %v11673_v47 }
0x1caf   :  { %9599 = vmatmul.mubr.msk.f32.vlgmr.msra.gmra.mrb[28].mxu0 %vm365_vm2, %v2638_v32  ;;  %v10780_v55 = vpop.eup %10779  ;;  %v3047_v11 = vmul.f32 %v10778_v34, %v11679_v51 }
0x1cb0   :  { %9607 = vmatpush3.msra.mxu0 %v2845_v56  ;;  %9608 = vmatprep.mubr.msk.f32.mxu0 %vm365_vm2, %v2842_v31  ;;  %v3048_v35 = vmul.f32 %v10780_v55, %v11677_v40 }
0x1cb1   :  { %9616 = vmatprep.subr.mxu0 %v3050_v36 }
0x1cb3   :  { %9609 = vmatmul.mubr.msk.f32.vlgmr.msra.gmra.mrb[30].mxu0 %vm365_vm2, %v2843_v37 }
0x1cb4   :  { %9617 = vmatpush3.msra.mxu0 %v3050_v36  ;;  %9618 = vmatprep.mubr.msk.f32.mxu0 %vm365_vm2, %v3047_v11 }
0x1cb7   :  { %9619 = vmatmul.mubr.msk.f32.vlgmr.msra.gmra.mrb[32].mxu0 %vm365_vm2, %v3048_v35 }
0x1cd5   :  { %v3234_v12 = vpop.xlane.xlu0 %3233 }
0x1cd6   :  { %v3236_v38 = vsub.f32 %v11694_v60, %v3234_v12 }
0x1cd8   :  { %v3239_v46 = vmul.f32 1.442695, %v3236_v38 }
0x1cd9   :  { %v3428_v39 = vpop.xlane.xlu0 %3427  ;;  %v3231_v41 = vpop.xlane.xlu1 %3230 }
0x1cda   :  { %10781 = vpow2.f32 %v3239_v46  ;;  %v3432_v44 = vsub.f32 %v11699_v61, %v3428_v39  ;;  %v3235_v47 = vsub.f32 %v11697_v15, %v3231_v41 }
0x1cdc   :  { %v3237_v49 = vmul.f32 1.442695, %v3235_v47  ;;  %v3434_v51 = vmul.f32 1.442695, %v3432_v44 }
0x1cdd   :  { %v3431_v52 = vpop.xlane.xlu0 %3430  ;;  %v3633_v53 = vpop.xlane.xlu1 %3632 }
0x1cde   :  { %v3433_v57 = vsub.f32 %v11703_v62, %v3431_v52  ;;  %v3637_v40 = vsub.f32 %v11705_v0, %v3633_v53  ;;  %10783 = vpow2.f32 %v3237_v49 }
0x1cdf   :  { %10785 = vpow2.f32 %v3434_v51 }
0x1ce0   :  { %v3436_v58 = vmul.f32 1.442695, %v3433_v57  ;;  %v3639_v59 = vmul.f32 1.442695, %v3637_v40 }
0x1ce1   :  { %v3636_v26 = vpop.xlane.xlu0 %3635  ;;  %v3838_v60 = vpop.xlane.xlu1 %3837 }
0x1ce2   :  { %10787 = vpow2.f32 %v3436_v58  ;;  %v3638_v42 = vsub.f32 %v11711_v45, %v3636_v26  ;;  %v3842_v61 = vsub.f32 %v11713_v6, %v3838_v60 }
0x1ce3   :  { %10789 = vpow2.f32 %v3639_v59 }
0x1ce4   :  { %v11745_v15 = vpop.eup %10781  ;;  %v3641_v4 = vmul.f32 1.442695, %v3638_v42  ;;  %v3844_v16 = vmul.f32 1.442695, %v3842_v61 }
0x1ce5   :  { %v3841_v9 = vpop.xlane.xlu0 %3840  ;;  %v3244_v62 = vsel %vm365_vm2, %v11745_v15, 0.0 }
0x1ce6   :  { %10791 = vpow2.f32 %v3641_v4  ;;  %v3843_v0 = vsub.f32 %v11720_v48, %v3841_v9  ;;  %3245 = vadd.xlane.f32.xlu0 %v3244_v62 }
0x1ce7   :  { %10793 = vpow2.f32 %v3844_v16 }
0x1ce8   :  { %v3846_v10 = vmul.f32 1.442695, %v3843_v0  ;;  %v10784_v14 = vpop.eup %10783 }
0x1ce9   :  { %v3241_v45 = vsel %vm365_vm2, %v10784_v14, 0.0  ;;  %v10786_v6 = vpop.eup %10785 }
0x1cea   :  { %10795 = vpow2.f32 %v3846_v10  ;;  %3242 = vadd.xlane.f32.xlu1 %v3241_v45  ;;  %v3438_v2 = vsel %vm365_vm2, %v10786_v6, 0.0 }
0x1cec   :  { %v11751_v7 = vpop.eup %10787 }
0x1ced   :  { %v3441_v13 = vsel %vm365_vm2, %v11751_v7, 0.0  ;;  %v11756_v19 = vpop.eup %10789 }
0x1cee   :  { %3442 = vadd.xlane.f32.xlu0 %v3441_v13  ;;  %3439 = vadd.xlane.f32.xlu1 %v3438_v2  ;;  %v3643_v8 = vsel %vm365_vm2, %v11756_v19, 0.0 }
0x1cf0   :  { %v11758_v48 = vpop.eup %10791 }
0x1cf1   :  { %v3646_v33 = vsel %vm365_vm2, %v11758_v48, 0.0  ;;  %v11764_v20 = vpop.eup %10793 }
0x1cf2   :  { %3647 = vadd.xlane.f32.xlu0 %v3646_v33  ;;  %3644 = vadd.xlane.f32.xlu1 %v3643_v8  ;;  %v3848_v56 = vsel %vm365_vm2, %v11764_v20, 0.0 }
0x1cf4   :  { %v11766_v21 = vpop.eup %10795 }
0x1cf5   :  { %v3851_v22 = vsel %vm365_vm2, %v11766_v21, 0.0 }
0x1cf6   :  { %3852 = vadd.xlane.f32.xlu0 %v3851_v22  ;;  %3849 = vadd.xlane.f32.xlu1 %v3848_v56 }
0x1d07   :  { %3251 = vrot.lane.b32.xlu1 %v11585_v5, %s10999_s29 }
0x1d0b   :  { %3653 = vrot.lane.b32.xlu1 %v11585_v5, %s11007_s28 }
0x1d0c   :  { %3448 = vrot.lane.b32.xlu0 %v11585_v5, %s11005_s26 }
0x1d0f   :  { %3858 = vrot.lane.b32.xlu1 %v11585_v5, %s11008_s30 }
0x1d10   :  { %10578 = vrot.lane.b32.xlu0 %v11539_v25, %s11010_s12 }
0x1d73   :  { %v3246_v3 = vpop.xlane.xlu0 %3245 }
0x1d77   :  { %v3243_v23 = vpop.xlane.xlu1 %3242 }
0x1d78   :  { %10797 = vrcp.f32 %v3243_v23 }
0x1d79   :  { %10799 = vrcp.f32 %v3246_v3 }
0x1d7b   :  { %v3443_v43 = vpop.xlane.xlu0 %3442  ;;  %v3440_v50 = vpop.xlane.xlu1 %3439 }
0x1d7c   :  { %10801 = vrcp.f32 %v3440_v50 }
0x1d7d   :  { %10803 = vrcp.f32 %v3443_v43 }
0x1d7f   :  { %v3648_v32 = vpop.xlane.xlu0 %3647  ;;  %v3645_v30 = vpop.xlane.xlu1 %3644 }
0x1d80   :  { %10805 = vrcp.f32 %v3645_v30 }
0x1d81   :  { %10807 = vrcp.f32 %v3648_v32 }
0x1d82   :  { %v9600_v31 = vpop.f32.mrb[28].mxu0  ;;  %v10798_v34 = vpop.eup %10797 }
0x1d83   :  { %v3853_v36 = vpop.xlane.xlu0 %3852  ;;  %2727 = vrot.lane.b32.xlu0 %v9600_v31, %s11011_s13  ;;  %v2714_v5 = vpop.f32.mrb[29].mxu0  ;;  %v3249_v25 = vmul.f32 %v10798_v34, %v10784_v14 }
0x1d84   :  { %v3850_v37 = vpop.xlane.xlu1 %3849  ;;  %2725 = vrot.lane.b32.xlu1 %v2714_v5, %s11011_s13  ;;  %v10800_v55 = vpop.eup %10799 }
0x1d85   :  { %10809 = vrcp.f32 %v3850_v37  ;;  %9628 = vmatprep.mubr.msk.f32.mxu0 %vm365_vm2, %v3249_v25  ;;  %v3250_v39 = vmul.f32 %v10800_v55, %v11745_v15  ;;  %v10945_v55 = vld [vmem:[%s12829_s1 + $0x8] sm:$0xff] }
0x1d86   :  { %v9610_v11 = vpop.f32.mrb[30].mxu0  ;;  %v10802_v35 = vpop.eup %10801  ;;  %10811 = vrcp.f32 %v3853_v36 }
0x1d87   :  { %v3449_v12 = vpop.permute.xlu0 %3448  ;;  %v2919_v38 = vpop.f32.mrb[31].mxu0  ;;  %v3446_v47 = vmul.f32 %v10802_v35, %v10786_v6  ;;  %v10946_v35 = vld [vmem:[%s12829_s1] sm:$0xff] }
0x1d88   :  { %v3252_v46 = vpop.permute.xlu1 %3251  ;;  %2932 = vrot.lane.b32.xlu1 %v9610_v11, %s11009_s11  ;;  %v10804_v41 = vpop.eup %10803 }
0x1d89   :  { %9626 = vmatprep.subr.mxu0 %v3252_v46  ;;  %v3447_v58 = vmul.f32 %v10804_v41, %v11751_v7 }
0x1d8a   :  { %9627 = vmatpush3.msra.mxu0 %v3252_v46  ;;  %v9620_v44 = vpop.f32.mrb[32].mxu0  ;;  %v10806_v49 = vpop.eup %10805 }
0x1d8b   :  { %9629 = vmatmul.mubr.msk.f32.vlgmr.msra.gmra.mrb[34].mxu0 %vm365_vm2, %v3250_v39  ;;  %9636 = vmatprep.subr.mxu0 %v3449_v12  ;;  %v3124_v51 = vpop.f32.mrb[33].mxu0  ;;  %v10579_v52 = vpop.permute.xlu0 %10578  ;;  %v3651_v26 = vmul.f32 %v10806_v49, %v11756_v19 }
0x1d8c   :  { %9637 = vmatpush3.msra.mxu0 %v3449_v12  ;;  %9638 = vmatprep.mubr.msk.f32.mxu0 %vm365_vm2, %v3446_v47  ;;  %v3654_v53 = vpop.permute.xlu1 %3653  ;;  %v10581_v57 = vunpack.i.h.bf16 %v10579_v52  ;;  %v10580_v40 = vunpack.i.l.bf16 %v10579_v52  ;;  %v10808_v59 = vpop.eup %10807 }
0x1d8d   :  { %3135 = vrot.lane.b32.xlu0 %v3124_v51, %s11012_s14  ;;  %2930 = vrot.lane.b32.xlu1 %v2919_v38, %s11009_s11  ;;  %v3652_v15 = vmul.f32 %v10808_v59, %v11758_v48 }
0x1d8e   :  { %9646 = vmatprep.subr.mxu0 %v3654_v53  ;;  %v10228_v60 = vpack.c.bf16 %v10581_v57, %v10580_v40 }
0x1d8f   :  { %v10810_v42 = vpop.eup %10809  ;;  %9639 = vmatmul.mubr.msk.f32.vlgmr.msra.gmra.mrb[36].mxu0 %vm365_vm2, %v3447_v58 }
0x1d90   :  { %9647 = vmatpush3.msra.mxu0 %v3654_v53  ;;  %9648 = vmatprep.mubr.msk.f32.mxu0 %vm365_vm2, %v3651_v26  ;;  %v3859_v61 = vpop.permute.xlu1 %3858  ;;  %v10812_v4 = vpop.eup %10811  ;;  %v3856_v16 = vmul.f32 %v10810_v42, %v11764_v20  ;;  %v8798_v26 = vld [vmem:[%s12832_s4 + $0x20] sm:$0xff] }
0x1d91   :  { %10583 = vrot.lane.b32.xlu0 %v11533_v24, %s11010_s12  ;;  %3137 = vrot.lane.b32.xlu1 %v9620_v44, %s11012_s14  ;;  %v3857_v9 = vmul.f32 %v10812_v4, %v11766_v21 }
0x1d92   :  { %9656 = vmatprep.subr.mxu0 %v3859_v61  ;;  %10229 = vmatprep.subr.bf16.mxu1 %v10228_v60 }
0x1d93   :  { %9649 = vmatmul.mubr.msk.f32.vlgmr.msra.gmra.mrb[38].mxu0 %vm365_vm2, %v3652_v15  ;;  %10231 = vmatpush3.bf16.msra.mxu1 %v10228_v60  ;;  %v8799_v60 = vld [vmem:[%s12832_s4 + $0x28] sm:$0xff]  ;;  %v8801_v15 = vld [vmem:[%s12832_s4 + $0x38] sm:$0xff] }
0x1d94   :  { %9657 = vmatpush3.msra.mxu0 %v3859_v61  ;;  %9658 = vmatprep.mubr.msk.f32.mxu0 %vm365_vm2, %v3856_v16  ;;  %v10236_v42 = vpack.c.bf16 %v8799_v60, %v8798_v26  ;;  %v8800_v61 = vld [vmem:[%s12832_s4 + $0x30] sm:$0xff]  ;;  %v8811_v26 = vld [vmem:[%s12834_s6 + $0xc8] sm:$0xff] }
0x1d95   :  { %v10240_v4 = vpack.c.bf16 %v8801_v15, %v8800_v61  ;;  %v8813_v61 = vld [vmem:[%s12834_s6 + $0xd8] sm:$0xff] }
0x1d96   :  { %10237 = vmatprep.subr.bf16.mxu0 %v10236_v42 }
0x1d97   :  { %9659 = vmatmul.mubr.msk.f32.vlgmr.msra.gmra.mrb[40].mxu0 %vm365_vm2, %v3857_v9 }
0x1d98   :  { %10239 = vmatpush3.bf16.msra.mxu0 %v10236_v42  ;;  %v8812_v42 = vld [vmem:[%s12834_s6 + $0xd0] sm:$0xff] }
0x1d99   :  { %10241 = vmatprep.subr.bf16.mxu0 %v10240_v4  ;;  %v10264_v15 = vpack.c.bf16 %v8813_v61, %v8812_v42 }
0x1d9c   :  { %10243 = vmatpush3.bf16.msra.mxu0 %v10240_v4  ;;  %v8814_v4 = vld [vmem:[%s12834_s6 + $0xe0] sm:$0xff] }
0x1df5   :  { %v2728_v24 = vpop.permute.xlu0 %2727 }
0x1df6   :  { %2732 = vst.msk [vmem:[#allocation2 + $0x8] sm:$0xff] %vm715_vm5, %v2728_v24  ;;  %v2726_v62 = vpop.permute.xlu1 %2725 }
0x1df7   :  { %2731 = vst.msk [vmem:[#allocation2] sm:$0xff] %vm715_vm5, %v2726_v62 }
0x1dfa   :  { %v2933_v0 = vpop.permute.xlu1 %2932 }
0x1dfb   :  { %2937 = vst.msk [vmem:[#allocation2 + $0x8] sm:$0xff] %vm894_vm6, %v2933_v0  ;;  %v10947_v0 = vld [vmem:[%s12829_s1 + $0x18] sm:$0xff] }
0x1dff   :  { %v3136_v10 = vpop.permute.xlu0 %3135  ;;  %v2931_v14 = vpop.permute.xlu1 %2930 }
0x1e00   :  { %2936 = vst.msk [vmem:[#allocation2] sm:$0xff] %vm894_vm6, %v2931_v14  ;;  %v10948_v14 = vld [vmem:[%s12829_s1 + $0x10] sm:$0xff] }
0x1e01   :  { %3141 = vst.msk [vmem:[#allocation2] sm:$0xff] %vm1073_vm7, %v3136_v10 }
0x1e03   :  { %v10584_v45 = vpop.permute.xlu0 %10583  ;;  %v3138_v6 = vpop.permute.xlu1 %3137 }
0x1e04   :  { %v10586_v7 = vunpack.i.h.bf16 %v10584_v45  ;;  %v10585_v13 = vunpack.i.l.bf16 %v10584_v45  ;;  %3142 = vst.msk [vmem:[#allocation2 + $0x8] sm:$0xff] %vm1073_vm7, %v3138_v6 }
0x1e06   :  { %v10232_v2 = vpack.c.bf16 %v10586_v7, %v10585_v13  ;;  %v8802_v13 = vld [vmem:[%s12834_s6 + $0x80] sm:$0xff] }
0x1e08   :  { %10233 = vmatprep.subr.bf16.mxu1 %v10232_v2  ;;  %v3952_v19 = vld [vmem:[#allocation2] sm:$0xff] }
0x1e09   :  { %10235 = vmatpush3.bf16.msra.mxu1 %v10232_v2  ;;  %9669 = vmatprep.mubr.msk.f32.mxu1 %vm50_vm0, %v3952_v19  ;;  %v8803_v2 = vld [vmem:[%s12834_s6 + $0x88] sm:$0xff]  ;;  %v8804_v19 = vld [vmem:[%s12834_s6 + $0x90] sm:$0xff] }
0x1e0b   :  { %v3953_v48 = vld [vmem:[#allocation2 + $0x8] sm:$0xff] }
0x1e0c   :  { %9670 = vmatmul.mubr.msk.f32.vlgmr.msra.gmra.mrb[40].mxu1 %vm50_vm0, %v3953_v48  ;;  %v10244_v48 = vpack.c.bf16 %v8803_v2, %v8802_v13  ;;  %v11957_v13 = vld [vmem:[%s12830_s2 + $0x50] sm:$0xff]  ;;  %v11962_v2 = vld [vmem:[%s12830_s2 + $0x58] sm:$0xff] }
0x1e0e   :  { %10245 = vmatprep.subr.bf16.mxu1 %v10244_v48 }
0x1e0f   :  { %10247 = vmatpush3.bf16.msra.mxu1 %v10244_v48 }
0x1e5e   :  { %v9630_v33 = vpop.f32.mrb[34].mxu0 }
0x1e5f   :  { %3336 = vst.msk [vmem:[#allocation2 + $0x18] sm:$0xff] %vm365_vm2, %v9630_v33  ;;  %v3326_v8 = vpop.f32.mrb[35].mxu0  ;;  %v8805_v33 = vld [vmem:[%s12834_s6 + $0x98] sm:$0xff] }
0x1e60   :  { %3335 = vst.msk [vmem:[#allocation2 + $0x10] sm:$0xff] %vm365_vm2, %v3326_v8  ;;  %v10248_v8 = vpack.c.bf16 %v8805_v33, %v8804_v19  ;;  %v10280_v19 = vpack.c.bf16 %v11962_v2, %v11957_v13 }
0x1e62   :  { %v9640_v20 = vpop.f32.mrb[36].mxu0  ;;  %10249 = vmatprep.subr.bf16.mxu1 %v10248_v8 }
0x1e63   :  { %3536 = vrot.lane.b32.xlu0 %v9640_v20, %s11011_s13  ;;  %v3523_v21 = vpop.f32.mrb[37].mxu0  ;;  %10251 = vmatpush3.bf16.msra.mxu1 %v10248_v8 }
0x1e64   :  { %3534 = vrot.lane.b32.xlu1 %v3523_v21, %s11011_s13 }
0x1e66   :  { %v9650_v22 = vpop.f32.mrb[38].mxu0 }
0x1e67   :  { %3741 = vrot.lane.b32.xlu0 %v9650_v22, %s11009_s11  ;;  %v3728_v56 = vpop.f32.mrb[39].mxu0 }
0x1e68   :  { %3739 = vrot.lane.b32.xlu1 %v3728_v56, %s11009_s11 }
0x1e6a   :  { %v9660_v3 = vpop.f32.mrb[40].mxu0 }
0x1e6b   :  { %3946 = vrot.lane.b32.xlu0 %v9660_v3, %s11012_s14  ;;  %v3933_v23 = vpop.f32.mrb[41].mxu0 }
0x1e6c   :  { %3944 = vrot.lane.b32.xlu1 %v3933_v23, %s11012_s14 }
0x1e70   :  { %3968 = vrot.lane.b32.xlu1 %v11544_v29, %s11010_s12 }
0x1ed5   :  { %v3537_v43 = vpop.permute.xlu0 %3536 }
0x1ed6   :  { %3541 = vst.msk [vmem:[#allocation2 + $0x18] sm:$0xff] %vm715_vm5, %v3537_v43  ;;  %v3535_v50 = vpop.permute.xlu1 %3534 }
0x1ed7   :  { %3540 = vst.msk [vmem:[#allocation2 + $0x10] sm:$0xff] %vm715_vm5, %v3535_v50  ;;  %v11889_v50 = vld [vmem:[%s12836_s8 + $0x6] ss:$0 sm:$0xff] }
0x1ed9   :  { %v3742_v32 = vpop.permute.xlu0 %3741 }
0x1eda   :  { %3746 = vst.msk [vmem:[#allocation2 + $0x18] sm:$0xff] %vm894_vm6, %v3742_v32  ;;  %v3740_v30 = vpop.permute.xlu1 %3739 }
0x1edb   :  { %3745 = vst.msk [vmem:[#allocation2 + $0x10] sm:$0xff] %vm894_vm6, %v3740_v30  ;;  %v11894_v30 = vld [vmem:[%s12836_s8 + $0x7] ss:$0 sm:$0xff] }
0x1edd   :  { %v3947_v31 = vpop.permute.xlu0 %3946 }
0x1ede   :  { %3951 = vst.msk [vmem:[#allocation2 + $0x18] sm:$0xff] %vm1073_vm7, %v3947_v31  ;;  %v3945_v34 = vpop.permute.xlu1 %3944 }
0x1edf   :  { %3950 = vst.msk [vmem:[#allocation2 + $0x10] sm:$0xff] %vm1073_vm7, %v3945_v34  ;;  %v9671_v36 = vpop.f32.mrb[40].mxu1 }
0x1ee0   :  { %v4049_v29 = vpop.f32.mrb[41].mxu1 }
0x1ee2   :  { %v3969_v5 = vpop.permute.xlu1 %3968 }
0x1ee3   :  { %v4055_v37 = vadd.f32 %v9671_v36, %v3969_v5  ;;  %v4050_v25 = vadd.f32 %v4049_v29, %v3969_v5 }
0x1ee5   :  { %v11831_v11 = vadd.f32 %v10945_v55, %v4055_v37  ;;  %v11836_v12 = vadd.f32 %v10946_v35, %v4050_v25  ;;  %v3955_v46 = vld [vmem:[#allocation2 + $0x18] sm:$0xff] }
0x1ee6   :  { %v3954_v38 = vld [vmem:[#allocation2 + $0x10] sm:$0xff] }
0x1ee7   :  { %9672 = vmatprep.mubr.msk.f32.mxu1 %vm50_vm0, %v3954_v38  ;;  %v4075_v39 = vsel %vm50_vm0, %v11831_v11, 0.0  ;;  %v4072_v41 = vsel %vm50_vm0, %v11836_v12, 0.0 }
0x1ee8   :  { %9673 = vmatmul.mubr.msk.f32.gmra.mrb[42].mxu1 %vm50_vm0, %v3955_v46  ;;  %4076 = vadd.xlane.f32.xlu1 %v4075_v39 }
0x1ee9   :  { %4073 = vadd.xlane.f32.xlu0 %v4072_v41 }
0x1f75   :  { %v4077_v44 = vpop.xlane.xlu1 %4076 }
0x1f76   :  { %v4085_v47 = vmul.f32 0.03125, %v4077_v44  ;;  %v4074_v49 = vpop.xlane.xlu0 %4073 }
0x1f77   :  { %v4084_v51 = vmul.f32 0.03125, %v4074_v49 }
0x1f78   :  { %v4089_v52 = vsub.f32 %v11831_v11, %v4085_v47 }
0x1f79   :  { %v4088_v53 = vsub.f32 %v11836_v12, %v4084_v51  ;;  %v8806_v51 = vld [vmem:[%s12834_s6 + $0xa0] sm:$0xff] }
0x1f7a   :  { %v4093_v58 = vmul.f32 %v4089_v52, %v4089_v52 }
0x1f7b   :  { %v4092_v57 = vmul.f32 %v4088_v53, %v4088_v53 }
0x1f7c   :  { %v4099_v59 = vsel %vm50_vm0, %v4093_v58, 0.0 }
0x1f7d   :  { %v4096_v40 = vsel %vm50_vm0, %v4092_v57, 0.0  ;;  %v8808_v57 = vld [vmem:[%s12834_s6 + $0xb0] sm:$0xff] }
0x1f7e   :  { %4097 = vadd.xlane.f32.xlu0 %v4096_v40  ;;  %v8809_v40 = vld [vmem:[%s12834_s6 + $0xb8] sm:$0xff] }
0x1f7f   :  { %v10256_v58 = vpack.c.bf16 %v8809_v40, %v8808_v57 }
0x1f82   :  { %4100 = vadd.xlane.f32.xlu0 %v4099_v59  ;;  %v8810_v59 = vld [vmem:[%s12834_s6 + $0xc0] sm:$0xff] }
0x1f83   :  { %v10260_v60 = vpack.c.bf16 %v8811_v26, %v8810_v59 }
0x1fbb   :  { %v9674_v16 = vpop.f32.mrb[42].mxu1 }
0x1fbc   :  { %v4065_v9 = vadd.f32 %v9674_v16, %v3969_v5  ;;  %v4059_v24 = vpop.f32.mrb[43].mxu1  ;;  %v8815_v16 = vld [vmem:[%s12834_s6 + $0xe8] sm:$0xff] }
0x1fbd   :  { %v4060_v62 = vadd.f32 %v4059_v24, %v3969_v5  ;;  %v11939_v24 = vld [vmem:[%s12830_s2 + $0x40] sm:$0xff] }
0x1fbe   :  { %v11863_v10 = vadd.f32 %v10947_v0, %v4065_v9  ;;  %v10268_v9 = vpack.c.bf16 %v8815_v16, %v8814_v4 }
0x1fbf   :  { %v11868_v45 = vadd.f32 %v10948_v14, %v4060_v62  ;;  %v11944_v62 = vld [vmem:[%s12830_s2 + $0x48] sm:$0xff]  ;;  %v8816_v14 = vld [vmem:[%s12834_s6 + $0xf0] sm:$0xff] }
0x1fc0   :  { %v4081_v6 = vsel %vm50_vm0, %v11863_v10, 0.0  ;;  %v10276_v0 = vpack.c.bf16 %v11944_v62, %v11939_v24 }
0x1fc1   :  { %4082 = vadd.xlane.f32.xlu1 %v4081_v6  ;;  %v4078_v7 = vsel %vm50_vm0, %v11868_v45, 0.0  ;;  %v8817_v6 = vld [vmem:[%s12834_s6 + $0xf8] sm:$0xff] }
0x1fc2   :  { %4079 = vadd.xlane.f32.xlu0 %v4078_v7  ;;  %10277 = vmatprep.subr.bf16.mxu0 %v10276_v0  ;;  %v10272_v7 = vpack.c.bf16 %v8817_v6, %v8816_v14 }
0x200b   :  { %v4098_v20 = vpop.xlane.xlu0 %4097 }
0x200c   :  { %v4108_v21 = vmul.f32 0.03125, %v4098_v20 }
0x200e   :  { %v4112_v22 = vadd.f32 1e-05, %v4108_v21 }
0x200f   :  { %v4101_v56 = vpop.xlane.xlu0 %4100 }
0x2010   :  { %10813 = vrsqrt.f32 %v4112_v22  ;;  %v4109_v3 = vmul.f32 0.03125, %v4101_v56 }
0x2012   :  { %v4113_v23 = vadd.f32 1e-05, %v4109_v3 }
0x2014   :  { %10815 = vrsqrt.f32 %v4113_v23 }
0x201a   :  { %v10814_v43 = vpop.eup %10813 }
0x201b   :  { %v4120_v32 = vmul.f32 %v10814_v43, %v4088_v53  ;;  %v8826_v43 = vld [vmem:[%s12836_s8 + $0x8] ss:$0 sm:$0xff] }
0x201d   :  { %v4128_v31 = vmul.f32 %v11889_v50, %v4120_v32 }
0x201e   :  { %v10816_v34 = vpop.eup %10815 }
0x201f   :  { %v4121_v36 = vmul.f32 %v10816_v34, %v4089_v52  ;;  %v4136_v29 = vadd.f32 %v11894_v30, %v4128_v31  ;;  %v8807_v52 = vld [vmem:[%s12834_s6 + $0xa8] sm:$0xff]  ;;  %v8818_v34 = vld [vmem:[%s12833_s5 + $0x1] ss:$0 sm:$0xff] }
0x2020   :  { %v10252_v53 = vpack.c.bf16 %v8807_v52, %v8806_v51 }
0x2021   :  { %9683 = vmatprep.mubr.msk.f32.mxu0 %vm50_vm0, %v4136_v29  ;;  %v4129_v5 = vmul.f32 %v11889_v50, %v4121_v36  ;;  %v4442_v29 = vmul.f32 %v8826_v43, %v11552_v1 }
0x2022   :  { %10253 = vmatprep.subr.bf16.mxu1 %v10252_v53 }
0x2023   :  { %v4137_v37 = vadd.f32 %v11894_v30, %v4129_v5  ;;  %10255 = vmatpush3.bf16.msra.mxu1 %v10252_v53  ;;  %v8827_v5 = vld [vmem:[%s12836_s8 + $0x9] ss:$0 sm:$0xff] }
0x2024   :  { %10257 = vmatprep.subr.bf16.mxu1 %v10256_v58 }
0x2025   :  { %9684 = vmatmul.mubr.msk.f32.vlgmr.msra.gmra.mrb[42].mxu0 %vm50_vm0, %v4137_v37 }
0x2026   :  { %10279 = vmatpush3.bf16.msra.mxu0 %v10276_v0 }
0x2027   :  { %10259 = vmatpush3.bf16.msra.mxu1 %v10256_v58  ;;  %10281 = vmatprep.subr.bf16.mxu0 %v10280_v19 }
0x2028   :  { %10261 = vmatprep.subr.bf16.mxu1 %v10260_v60 }
0x202a   :  { %10283 = vmatpush3.bf16.msra.mxu0 %v10280_v19 }
0x202b   :  { %10263 = vmatpush3.bf16.msra.mxu1 %v10260_v60 }
0x202c   :  { %10265 = vmatprep.subr.bf16.mxu1 %v10264_v15 }
0x202f   :  { %10267 = vmatpush3.bf16.msra.mxu1 %v10264_v15 }
0x2030   :  { %10269 = vmatprep.subr.bf16.mxu1 %v10268_v9 }
0x2033   :  { %10271 = vmatpush3.bf16.msra.mxu1 %v10268_v9 }
0x2034   :  { %10273 = vmatprep.subr.bf16.mxu1 %v10272_v7 }
0x2037   :  { %10275 = vmatpush3.bf16.msra.mxu1 %v10272_v7 }
0x2038   :  { %10303 = vmatprep.subr.bf16.mxu1 %v11000_v27 }
0x204e   :  { %v4083_v25 = vpop.xlane.xlu1 %4082 }
0x204f   :  { %v4087_v55 = vmul.f32 0.03125, %v4083_v25  ;;  %v4080_v35 = vpop.xlane.xlu0 %4079 }
0x2050   :  { %v4086_v38 = vmul.f32 0.03125, %v4080_v35 }
0x2051   :  { %v4091_v46 = vsub.f32 %v11863_v10, %v4087_v55 }
0x2052   :  { %v4090_v39 = vsub.f32 %v11868_v45, %v4086_v38 }
0x2053   :  { %v4095_v41 = vmul.f32 %v4091_v46, %v4091_v46 }
0x2054   :  { %v4094_v44 = vmul.f32 %v4090_v39, %v4090_v39 }
0x2055   :  { %v4105_v47 = vsel %vm50_vm0, %v4095_v41, 0.0  ;;  %v4448_v41 = vadd.f32 %v8827_v5, %v4442_v29 }
0x2056   :  { %4106 = vadd.xlane.f32.xlu1 %v4105_v47  ;;  %v4102_v49 = vsel %vm50_vm0, %v4094_v44, 0.0 }
0x2057   :  { %4103 = vadd.xlane.f32.xlu0 %v4102_v49 }
0x20e3   :  { %v4107_v48 = vpop.xlane.xlu1 %4106 }
0x20e4   :  { %v4111_v33 = vmul.f32 0.03125, %v4107_v48  ;;  %v4104_v8 = vpop.xlane.xlu0 %4103 }
0x20e5   :  { %v4110_v20 = vmul.f32 0.03125, %v4104_v8  ;;  %v12017_v8 = vpack.i.bf16 %v11944_v62, %v11939_v24 }
0x20e6   :  { %v4115_v21 = vadd.f32 1e-05, %v4111_v33  ;;  %v12011_v33 = vpack.i.bf16 %v11962_v2, %v11957_v13 }
0x20e7   :  { %v4114_v22 = vadd.f32 1e-05, %v4110_v20 }
0x20e8   :  { %10817 = vrsqrt.f32 %v4115_v21 }
0x20e9   :  { %10819 = vrsqrt.f32 %v4114_v22 }
0x20f2   :  { %v10818_v56 = vpop.eup %10817 }
0x20f3   :  { %v10820_v3 = vpop.eup %10819  ;;  %v4123_v23 = vmul.f32 %v10818_v56, %v4091_v46  ;;  %v4443_v46 = vmul.f32 %v8826_v43, %v11550_v63  ;;  %v8823_v63 = vld [vmem:[%s12835_s7 + $0x1] ss:$0 sm:$0xff] }
0x20f4   :  { %v4122_v32 = vmul.f32 %v10820_v3, %v4090_v39 }
0x20f5   :  { %v4131_v31 = vmul.f32 %v11889_v50, %v4123_v23  ;;  %v4449_v44 = vadd.f32 %v8827_v5, %v4443_v46 }
0x20f6   :  { %v4130_v36 = vmul.f32 %v11889_v50, %v4122_v32 }
0x20f7   :  { %v4139_v38 = vadd.f32 %v11894_v30, %v4131_v31 }
0x20f8   :  { %v9685_v37 = vpop.f32.mrb[42].mxu0  ;;  %v4138_v25 = vadd.f32 %v11894_v30, %v4130_v36 }
0x20f9   :  { %v4252_v55 = vadd.f32 %v9685_v37, %v8818_v34  ;;  %v4246_v35 = vpop.f32.mrb[43].mxu0 }
0x20fa   :  { %v4247_v39 = vadd.f32 %v8818_v34, %v4246_v35  ;;  %9686 = vmatprep.mubr.msk.f32.mxu0 %vm50_vm0, %v4138_v25 }
0x20fb   :  { %9687 = vmatmul.mubr.msk.f32.gmra.mrb[44].mxu0 %vm50_vm0, %v4139_v38  ;;  %v4266_v50 = vmax.f32 %v4252_v55, 0.0  ;;  %v8824_v38 = vld [vmem:[%s12836_s8 + $0xc] ss:$0 sm:$0xff] }
0x20fc   :  { %v4265_v1 = vmax.f32 %v4247_v39, 0.0  ;;  %9735 = vmatprep.mubr.msk.f32.mxu0 %vm50_vm0, %v4448_v41 }
0x20fe   :  { %9721 = vmatprep.mubr.f32.mxu1 %v4265_v1  ;;  %v8825_v1 = vld [vmem:[%s12836_s8 + $0xd] ss:$0 sm:$0xff] }
0x20ff   :  { %9722 = vmatmul.mubr.f32.vlgmr.msra.gmra.mrb[44].mxu1 %v4266_v50  ;;  %9736 = vmatmul.mubr.msk.f32.vlgmr.msra.gmra.mrb[46].mxu0 %vm50_vm0, %v4449_v44 }
0x21ce   :  { %v9688_v47 = vpop.f32.mrb[44].mxu0 }
0x21cf   :  { %v4262_v49 = vadd.f32 %v9688_v47, %v8818_v34  ;;  %v4256_v30 = vpop.f32.mrb[45].mxu0 }
0x21d0   :  { %v4257_v51 = vadd.f32 %v8818_v34, %v4256_v30 }
0x21d1   :  { %v4268_v40 = vmax.f32 %v4262_v49, 0.0 }
0x21d2   :  { %v4267_v52 = vmax.f32 %v4257_v51, 0.0  ;;  %v9723_v53 = vpop.f32.mrb[44].mxu1  ;;  %v11989_v57 = vpop.f32.mrb[46].mxu0 }
0x21d3   :  { %v4345_v58 = vadd.f32 %v9723_v53, %v8823_v63  ;;  %v4339_v59 = vpop.f32.mrb[45].mxu1  ;;  %v11991_v26 = vpop.f32.mrb[47].mxu0 }
0x21d4   :  { %v4340_v60 = vadd.f32 %v8823_v63, %v4339_v59  ;;  %9724 = vmatprep.mubr.f32.mxu1 %v4267_v52 }
0x21d5   :  { %v11994_v42 = vadd.f32 %v4345_v58, %v11831_v11  ;;  %9725 = vmatmul.mubr.f32.gmra.mrb[46].mxu1 %v4268_v40 }
0x21d6   :  { %v11997_v61 = vadd.f32 %v4340_v60, %v11836_v12  ;;  %9777 = vmatprep.mubr.msk.f32.mxu1 %vm11001_vm1, %v11002_v28 }
0x21d7   :  { %v4373_v15 = vsel %vm50_vm0, %v11994_v42, 0.0 }
0x21d8   :  { %4374 = vadd.xlane.f32.xlu1 %v4373_v15  ;;  %v4370_v4 = vsel %vm50_vm0, %v11997_v61, 0.0 }
0x21d9   :  { %4371 = vadd.xlane.f32.xlu0 %v4370_v4  ;;  %v12053_v4 = vld [vmem:[%s12831_s3 + $0x2] ss:$0 sm:$0xff] }
0x2265   :  { %v4375_v16 = vpop.xlane.xlu1 %4374 }
0x2266   :  { %v4383_v9 = vmul.f32 0.03125, %v4375_v16  ;;  %v4372_v0 = vpop.xlane.xlu0 %4371 }
0x2267   :  { %v4382_v11 = vmul.f32 0.03125, %v4372_v0 }
0x2268   :  { %v4387_v14 = vsub.f32 %v11994_v42, %v4383_v9 }
0x2269   :  { %v4386_v12 = vsub.f32 %v11997_v61, %v4382_v11 }
0x226a   :  { %v4391_v6 = vmul.f32 %v4387_v14, %v4387_v14 }
0x226b   :  { %v4390_v7 = vmul.f32 %v4386_v12, %v4386_v12 }
0x226c   :  { %v4397_v19 = vsel %vm50_vm0, %v4391_v6, 0.0 }
0x226d   :  { %4398 = vadd.xlane.f32.xlu1 %v4397_v19  ;;  %v4394_v48 = vsel %vm50_vm0, %v4390_v7, 0.0 }
0x226e   :  { %4395 = vadd.xlane.f32.xlu0 %v4394_v48 }
0x227e   :  { %10593 = vrot.lane.b32.xlu1 %v12011_v33, %s10999_s29 }
0x2284   :  { %10588 = vrot.lane.b32.xlu0 %v12017_v8, %s10999_s29 }
0x22a8   :  { %v9726_v20 = vpop.f32.mrb[46].mxu1 }
0x22a9   :  { %v4355_v21 = vadd.f32 %v9726_v20, %v8823_v63  ;;  %v4349_v22 = vpop.f32.mrb[47].mxu1 }
0x22aa   :  { %v4350_v56 = vadd.f32 %v8823_v63, %v4349_v22 }
0x22ab   :  { %v12022_v3 = vadd.f32 %v4355_v21, %v11863_v10 }
0x22ac   :  { %v12025_v13 = vadd.f32 %v4350_v56, %v11868_v45 }
0x22ad   :  { %v4379_v2 = vsel %vm50_vm0, %v12022_v3, 0.0 }
0x22ae   :  { %4380 = vadd.xlane.f32.xlu0 %v4379_v2  ;;  %v4376_v24 = vsel %vm50_vm0, %v12025_v13, 0.0 }
0x22af   :  { %4377 = vadd.xlane.f32.xlu1 %v4376_v24 }
0x22fa   :  { %v4399_v62 = vpop.xlane.xlu1 %4398 }
0x22fb   :  { %v4407_v23 = vmul.f32 0.03125, %v4399_v62  ;;  %v4396_v43 = vpop.xlane.xlu0 %4395 }
0x22fc   :  { %v4406_v32 = vmul.f32 0.03125, %v4396_v43 }
0x22fd   :  { %v4411_v31 = vadd.f32 1e-05, %v4407_v23 }
0x22fe   :  { %v4410_v34 = vadd.f32 1e-05, %v4406_v32  ;;  %v10594_v36 = vpop.permute.xlu1 %10593 }
0x22ff   :  { %10821 = vrsqrt.f32 %v4411_v31  ;;  %v10589_v10 = vpop.permute.xlu0 %10588  ;;  %v10596_v29 = vunpack.i.h.bf16 %v10594_v36  ;;  %v10595_v45 = vunpack.i.l.bf16 %v10594_v36 }
0x2300   :  { %10823 = vrsqrt.f32 %v4410_v34  ;;  %v10591_v5 = vunpack.i.h.bf16 %v10589_v10  ;;  %v10590_v37 = vunpack.i.l.bf16 %v10589_v10  ;;  %v12078_v34 = vadd.f32 %v12053_v4, %v11991_v26 }
0x2301   :  { %v10288_v55 = vpack.c.bf16 %v10596_v29, %v10595_v45 }
0x2302   :  { %v10284_v25 = vpack.c.bf16 %v10591_v5, %v10590_v37 }
0x2304   :  { %10285 = vmatprep.subr.bf16.mxu0 %v10284_v25 }
0x2305   :  { %10287 = vmatpush3.bf16.msra.mxu0 %v10284_v25 }
0x2306   :  { %10289 = vmatprep.subr.bf16.mxu0 %v10288_v55 }
0x2309   :  { %v10822_v35 = vpop.eup %10821  ;;  %10291 = vmatpush3.bf16.msra.mxu0 %v10288_v55 }
0x230a   :  { %v10824_v46 = vpop.eup %10823  ;;  %v4419_v39 = vmul.f32 %v10822_v35, %v4387_v14  ;;  %10292 = vmatprep.subr.bf16.mxu0 %v11000_v27 }
0x230b   :  { %v4418_v41 = vmul.f32 %v10824_v46, %v4386_v12 }
0x230c   :  { %v4427_v50 = vmul.f32 %v8824_v38, %v4419_v39 }
0x230d   :  { %v4426_v44 = vmul.f32 %v8824_v38, %v4418_v41 }
0x230e   :  { %v12040_v49 = vadd.f32 %v8825_v1, %v4427_v50 }
0x230f   :  { %v12038_v47 = vadd.f32 %v8825_v1, %v4426_v44 }
0x2311   :  { %9746 = vmatprep.mubr.msk.f32.mxu0 %vm50_vm0, %v12038_v47 }
0x2312   :  { %9747 = vmatmul.mubr.msk.f32.vlgmr.msra.gmra.mrb[48].mxu0 %vm50_vm0, %v12040_v49 }
0x233b   :  { %v4381_v30 = vpop.xlane.xlu0 %4380 }
0x233c   :  { %v4385_v51 = vmul.f32 0.03125, %v4381_v30  ;;  %v4378_v63 = vpop.xlane.xlu1 %4377 }
0x233d   :  { %v4384_v52 = vmul.f32 0.03125, %v4378_v63 }
0x233e   :  { %v4389_v53 = vsub.f32 %v12022_v3, %v4385_v51 }
0x233f   :  { %v4388_v40 = vsub.f32 %v12025_v13, %v4384_v52 }
0x2340   :  { %v4393_v58 = vmul.f32 %v4389_v53, %v4389_v53 }
0x2341   :  { %v4392_v59 = vmul.f32 %v4388_v40, %v4388_v40 }
0x2342   :  { %v4403_v60 = vsel %vm50_vm0, %v4393_v58, 0.0 }
0x2343   :  { %4404 = vadd.xlane.f32.xlu1 %v4403_v60  ;;  %v4400_v15 = vsel %vm50_vm0, %v4392_v59, 0.0 }
0x2344   :  { %4401 = vadd.xlane.f32.xlu0 %v4400_v15 }
0x235a   :  { %4558 = vrot.lane.b32.xlu0 %v12053_v4, %s10999_s29 }
0x23d0   :  { %v4405_v16 = vpop.xlane.xlu1 %4404 }
0x23d1   :  { %v4409_v9 = vmul.f32 0.03125, %v4405_v16  ;;  %v4402_v0 = vpop.xlane.xlu0 %4401 }
0x23d2   :  { %v4408_v11 = vmul.f32 0.03125, %v4402_v0 }
0x23d3   :  { %v4413_v14 = vadd.f32 1e-05, %v4409_v9 }
0x23d4   :  { %v4412_v12 = vadd.f32 1e-05, %v4408_v11 }
0x23d5   :  { %10825 = vrsqrt.f32 %v4413_v14  ;;  %v4559_v21 = vpop.permute.xlu0 %4558 }
0x23d6   :  { %10827 = vrsqrt.f32 %v4412_v12 }
0x23df   :  { %v10826_v6 = vpop.eup %10825 }
0x23e0   :  { %v10828_v7 = vpop.eup %10827  ;;  %v4421_v19 = vmul.f32 %v10826_v6, %v4389_v53 }
0x23e1   :  { %v4420_v48 = vmul.f32 %v10828_v7, %v4388_v40 }
0x23e2   :  { %v4429_v20 = vmul.f32 %v8824_v38, %v4421_v19 }
0x23e3   :  { %v4428_v22 = vmul.f32 %v8824_v38, %v4420_v48 }
0x23e4   :  { %v12059_v23 = vadd.f32 %v8825_v1, %v4429_v20 }
0x23e5   :  { %v9748_v56 = vpop.f32.mrb[48].mxu0  ;;  %v12057_v2 = vadd.f32 %v8825_v1, %v4428_v22 }
0x23e6   :  { %v4645_v24 = vadd.f32 %v9748_v56, %v4559_v21  ;;  %v4639_v62 = vpop.f32.mrb[49].mxu0 }
0x23e7   :  { %v4640_v43 = vadd.f32 %v4639_v62, %v4559_v21  ;;  %9749 = vmatprep.mubr.msk.f32.mxu0 %vm50_vm0, %v12057_v2 }
0x23e8   :  { %9750 = vmatmul.mubr.msk.f32.gmra.mrb[50].mxu0 %vm50_vm0, %v12059_v23 }
0x23e9   :  { %v12065_v32 = vpack.i.bf16 %v4645_v24, %v4640_v43  ;;  %v10293_v31 = vpack.c.bf16 %v4645_v24, %v4640_v43  ;;  %9756 = vmatprep.mubr.msk.f32.mxu0 %vm11001_vm1, %v11002_v28 }
0x23eb   :  { %10603 = vrot.lane.b32.xlu0 %v12065_v32, %s11003_s24  ;;  %10295 = vmatpush3.bf16.xpose.msk.msra.mxu0 %vm11201_vm3, %v10293_v31 }
0x23ec   :  { %10296 = vmatprep.subr.bf16.mxu0 %v11000_v27 }
0x23ef   :  { %10608 = vrot.lane.b32.xlu0 %v12065_v32, %s11004_s25 }
0x23f2   :  { %9757 = vmatmul.mubr.msk.f32.vlgmr.msra.gmra.mrb[52].mxu0 %vm365_vm2, %v12078_v34 }
0x23f3   :  { %9763 = vmatprep.mubr.msk.f32.mxu0 %vm11001_vm1, %v11002_v28 }
0x245d   :  { %v10604_v52 = vpop.permute.xlu0 %10603 }
0x245e   :  { %v10606_v53 = vunpack.i.h.bf16 %v10604_v52  ;;  %v10605_v40 = vunpack.i.l.bf16 %v10604_v52 }
0x2460   :  { %v10300_v60 = vpack.c.bf16 %v10606_v53, %v10605_v40 }
0x2461   :  { %v10609_v15 = vpop.permute.xlu0 %10608 }
0x2462   :  { %v10611_v16 = vunpack.i.h.bf16 %v10609_v15  ;;  %v10610_v9 = vunpack.i.l.bf16 %v10609_v15 }
0x2464   :  { %v10307_v0 = vpack.c.bf16 %v10611_v16, %v10610_v9 }
0x24bb   :  { %v9751_v36 = vpop.f32.mrb[50].mxu0 }
0x24bc   :  { %v12084_v10 = vadd.f32 %v9751_v36, %v4559_v21  ;;  %v4649_v29 = vpop.f32.mrb[51].mxu0 }
0x24bd   :  { %v12086_v45 = vadd.f32 %v4649_v29, %v4559_v21 }
0x24bf   :  { %v12090_v5 = vpack.i.bf16 %v12084_v10, %v12086_v45  ;;  %v10321_v26 = vpack.c.bf16 %v12084_v10, %v12086_v45 }
0x24c5   :  { %v4733_v37 = vpop.f32.mrb[52].mxu0 }
0x24c6   :  { %v4737_v25 = vmul.f32 0.35355338, %v4733_v37  ;;  %v9758_v55 = vpop.f32.mrb[53].mxu0 }
0x24c8   :  { %v4738_v35 = vsel %vm446_vm4, %v4737_v25, -inf }
0x24c9   :  { %4739 = vmax.xlane.f32.xlu1 %v4738_v35 }
0x24da   :  { %10598 = vrot.lane.b32.xlu1 %v12065_v32, %s10999_s29 }
0x2556   :  { %v4740_v38 = vpop.xlane.xlu1 %4739 }
0x2557   :  { %v4741_v46 = vsub.f32 %v4737_v25, %v4740_v38 }
0x2559   :  { %v4742_v39 = vmul.f32 1.442695, %v4741_v46 }
0x255a   :  { %v10599_v41 = vpop.permute.xlu1 %10598 }
0x255b   :  { %10829 = vpow2.f32 %v4742_v39  ;;  %v10601_v1 = vunpack.i.h.bf16 %v10599_v41  ;;  %v10600_v50 = vunpack.i.l.bf16 %v10599_v41 }
0x255d   :  { %v10297_v44 = vpack.c.bf16 %v10601_v1, %v10600_v50 }
0x255f   :  { %10298 = vmatpush3.bf16.msra.mxu0 %v10297_v44 }
0x2560   :  { %10299 = vmatprep.subr.bf16.mxu0 %v11000_v27 }
0x2565   :  { %v10830_v30 = vpop.eup %10829 }
0x2566   :  { %v4744_v51 = vsel %vm446_vm4, %v10830_v30, 0.0 }
0x2567   :  { %4745 = vadd.xlane.f32.xlu1 %v4744_v51 }
0x2578   :  { %4829 = vrot.lane.b32.xlu1 %v12078_v34, %s11003_s24 }
0x257c   :  { %5007 = vrot.lane.b32.xlu1 %v12078_v34, %s11004_s25 }
0x25f4   :  { %v4746_v63 = vpop.xlane.xlu1 %4745 }
0x25f5   :  { %10831 = vrcp.f32 %v4746_v63 }
0x25f8   :  { %v4830_v11 = vpop.permute.xlu1 %4829 }
0x25fc   :  { %v5008_v14 = vpop.permute.xlu1 %5007 }
0x25ff   :  { %v10832_v58 = vpop.eup %10831 }
0x2600   :  { %v4748_v59 = vmul.f32 %v10832_v58, %v10830_v30 }
0x2602   :  { %9764 = vmatmul.mubr.msk.f32.vlgmr.msra.gmra.mrb[54].mxu0 %vm446_vm4, %v4748_v59 }
0x2603   :  { %10302 = vmatpush3.bf16.xpose.msk.msra.mxu0 %vm11201_vm3, %v10300_v60  ;;  %9770 = vmatprep.mubr.msk.f32.mxu0 %vm11001_vm1, %v11002_v28 }
0x2604   :  { %10306 = vmatprep.subr.bf16.mxu0 %v11000_v27 }
0x260a   :  { %9771 = vmatmul.mubr.msk.f32.vlgmr.msra.gmra.mrb[56].mxu0 %vm365_vm2, %v4830_v11 }
0x260b   :  { %10309 = vmatpush3.bf16.xpose.msk.msra.mxu0 %vm11201_vm3, %v10307_v0  ;;  %9784 = vmatprep.mubr.msk.f32.mxu0 %vm11001_vm1, %v11002_v28 }
0x260c   :  { %10317 = vmatprep.subr.bf16.mxu0 %v11000_v27 }
0x2612   :  { %9785 = vmatmul.mubr.msk.f32.vlgmr.msra.gmra.mrb[58].mxu0 %vm365_vm2, %v5008_v14 }
0x2613   :  { %9805 = vmatprep.mubr.msk.f32.mxu0 %vm11001_vm1, %v11002_v28 }
0x26d5   :  { %v4824_v12 = vpop.f32.mrb[54].mxu0 }
0x26d6   :  { %4828 = vst.msk [vmem:[#allocation2] sm:$0xff] %vm365_vm2, %v4824_v12  ;;  %v9765_v6 = vpop.f32.mrb[55].mxu0 }
0x26dd   :  { %v4907_v7 = vpop.f32.mrb[56].mxu0 }
0x26de   :  { %v4911_v19 = vmul.f32 0.35355338, %v4907_v7  ;;  %v9772_v48 = vpop.f32.mrb[57].mxu0 }
0x26e0   :  { %v4912_v20 = vsel %vm446_vm4, %v4911_v19, -inf }
0x26e1   :  { %4913 = vmax.xlane.f32.xlu0 %v4912_v20  ;;  %v12156_v20 = vadd.f32 %v11989_v57, %v12053_v4 }
0x26e5   :  { %v5085_v21 = vpop.f32.mrb[58].mxu0 }
0x26e6   :  { %v5089_v22 = vmul.f32 0.35355338, %v5085_v21  ;;  %v9786_v56 = vpop.f32.mrb[59].mxu0 }
0x26e8   :  { %v5090_v24 = vsel %vm446_vm4, %v5089_v22, -inf }
0x26e9   :  { %5091 = vmax.xlane.f32.xlu1 %v5090_v24 }
0x26fa   :  { %10618 = vrot.lane.b32.xlu1 %v12065_v32, %s11007_s28 }
0x26fe   :  { %10623 = vrot.lane.b32.xlu1 %v12065_v32, %s11006_s27 }
0x2702   :  { %5185 = vrot.lane.b32.xlu1 %v12078_v34, %s11006_s27 }
0x276e   :  { %v4914_v62 = vpop.xlane.xlu0 %4913 }
0x276f   :  { %v4915_v43 = vsub.f32 %v4911_v19, %v4914_v62 }
0x2771   :  { %v4916_v31 = vmul.f32 1.442695, %v4915_v43 }
0x2773   :  { %10833 = vpow2.f32 %v4916_v31 }
0x2776   :  { %v5092_v36 = vpop.xlane.xlu1 %5091 }
0x2777   :  { %v5093_v29 = vsub.f32 %v5089_v22, %v5092_v36 }
0x2779   :  { %v5094_v37 = vmul.f32 1.442695, %v5093_v29 }
0x277a   :  { %v10619_v39 = vpop.permute.xlu1 %10618 }
0x277b   :  { %10835 = vpow2.f32 %v5094_v37  ;;  %v10621_v30 = vunpack.i.h.bf16 %v10619_v39  ;;  %v10620_v51 = vunpack.i.l.bf16 %v10619_v39 }
0x277d   :  { %v10834_v25 = vpop.eup %10833  ;;  %v10311_v40 = vpack.c.bf16 %v10621_v30, %v10620_v51 }
0x277e   :  { %v4918_v55 = vsel %vm446_vm4, %v10834_v25, 0.0  ;;  %v10624_v58 = vpop.permute.xlu1 %10623 }
0x277f   :  { %4919 = vadd.xlane.f32.xlu0 %v4918_v55  ;;  %v10626_v60 = vunpack.i.h.bf16 %v10624_v58  ;;  %v10625_v15 = vunpack.i.l.bf16 %v10624_v58 }
0x2781   :  { %v10314_v16 = vpack.c.bf16 %v10626_v60, %v10625_v15 }
0x2782   :  { %v5186_v9 = vpop.permute.xlu1 %5185 }
0x2785   :  { %v10836_v35 = vpop.eup %10835 }
0x2786   :  { %v5096_v38 = vsel %vm446_vm4, %v10836_v35, 0.0 }
0x2787   :  { %5097 = vadd.xlane.f32.xlu0 %v5096_v38 }
0x279d   :  { %10613 = vrot.lane.b32.xlu0 %v12065_v32, %s11005_s26 }
0x280c   :  { %v4920_v34 = vpop.xlane.xlu0 %4919 }
0x280d   :  { %10837 = vrcp.f32 %v4920_v34 }
0x2814   :  { %v5098_v46 = vpop.xlane.xlu0 %5097 }
0x2815   :  { %10839 = vrcp.f32 %v5098_v46 }
0x2817   :  { %v10838_v44 = vpop.eup %10837 }
0x2818   :  { %v10614_v41 = vpop.permute.xlu0 %10613  ;;  %v4922_v52 = vmul.f32 %v10838_v44, %v10834_v25 }
0x2819   :  { %v10616_v1 = vunpack.i.h.bf16 %v10614_v41  ;;  %v10615_v50 = vunpack.i.l.bf16 %v10614_v41 }
0x281b   :  { %v10304_v63 = vpack.c.bf16 %v10616_v1, %v10615_v50 }
0x281d   :  { %10305 = vmatpush3.bf16.msra.mxu1 %v10304_v63 }
0x281e   :  { %10310 = vmatprep.subr.bf16.mxu1 %v11000_v27 }
0x281f   :  { %v10840_v53 = vpop.eup %10839 }
0x2820   :  { %9778 = vmatmul.mubr.msk.f32.vlgmr.msra.gmra.mrb[48].mxu1 %vm446_vm4, %v4922_v52  ;;  %v5100_v59 = vmul.f32 %v10840_v53, %v10836_v35 }
0x2821   :  { %10312 = vmatpush3.bf16.msra.mxu1 %v10311_v40  ;;  %9791 = vmatprep.mubr.msk.f32.mxu1 %vm11001_vm1, %v11002_v28 }
0x2822   :  { %10313 = vmatprep.subr.bf16.mxu1 %v11000_v27 }
0x2824   :  { %9792 = vmatmul.mubr.msk.f32.vlgmr.msra.gmra.mrb[50].mxu1 %vm446_vm4, %v5100_v59 }
0x2825   :  { %9798 = vmatprep.mubr.msk.f32.mxu1 %vm11001_vm1, %v11002_v28 }
0x282a   :  { %10316 = vmatpush3.bf16.xpose.msk.msra.mxu1 %vm11201_vm3, %v10314_v16 }
0x282b   :  { %10324 = vmatprep.subr.bf16.mxu1 %v11000_v27 }
0x2831   :  { %9799 = vmatmul.mubr.msk.f32.vlgmr.msra.gmra.mrb[52].mxu1 %vm365_vm2, %v5186_v9 }
0x2832   :  { %9819 = vmatprep.mubr.msk.f32.mxu1 %vm11001_vm1, %v11002_v28 }
0x28f3   :  { %v12145_v0 = vpop.f32.mrb[48].mxu1 }
0x28f4   :  { %v9779_v11 = vpop.f32.mrb[49].mxu1 }
0x28f7   :  { %v12147_v14 = vpop.f32.mrb[50].mxu1 }
0x28f8   :  { %v9793_v12 = vpop.f32.mrb[51].mxu1 }
0x2904   :  { %v5263_v6 = vpop.f32.mrb[52].mxu1 }
0x2905   :  { %v5267_v7 = vmul.f32 0.35355338, %v5263_v6  ;;  %v9800_v19 = vpop.f32.mrb[53].mxu1 }
0x2907   :  { %v5268_v48 = vsel %vm446_vm4, %v5267_v7, -inf }
0x2908   :  { %5269 = vmax.xlane.f32.xlu0 %v5268_v48 }
0x291e   :  { %10628 = vrot.lane.b32.xlu0 %v12065_v32, %s11008_s30 }
0x2922   :  { %10638 = vrot.lane.b32.xlu0 %v12090_v5, %s11003_s24 }
0x2926   :  { %5534 = vrot.lane.b32.xlu0 %v12156_v20, %s11003_s24 }
0x2995   :  { %v5270_v21 = vpop.xlane.xlu0 %5269 }
0x2996   :  { %v5271_v22 = vsub.f32 %v5267_v7, %v5270_v21 }
0x2998   :  { %v5272_v56 = vmul.f32 1.442695, %v5271_v22 }
0x2999   :  { %v10629_v24 = vpop.permute.xlu0 %10628 }
0x299a   :  { %10841 = vpow2.f32 %v5272_v56  ;;  %v10631_v62 = vunpack.i.h.bf16 %v10629_v24  ;;  %v10630_v43 = vunpack.i.l.bf16 %v10629_v24 }
0x299c   :  { %v10318_v31 = vpack.c.bf16 %v10631_v62, %v10630_v43 }
0x299d   :  { %v10639_v63 = vpop.permute.xlu0 %10638 }
0x299e   :  { %10319 = vmatpush3.bf16.msra.mxu0 %v10318_v31  ;;  %v10641_v53 = vunpack.i.h.bf16 %v10639_v63  ;;  %v10640_v40 = vunpack.i.l.bf16 %v10639_v63 }
0x299f   :  { %10320 = vmatprep.subr.bf16.mxu0 %v11000_v27 }
0x29a0   :  { %v10328_v59 = vpack.c.bf16 %v10641_v53, %v10640_v40 }
0x29a1   :  { %v5535_v60 = vpop.permute.xlu0 %5534 }
0x29a4   :  { %v10842_v32 = vpop.eup %10841 }
0x29a5   :  { %v5274_v36 = vsel %vm446_vm4, %v10842_v32, 0.0 }
0x29a6   :  { %5275 = vadd.xlane.f32.xlu1 %v5274_v36 }
0x2a33   :  { %v5276_v57 = vpop.xlane.xlu1 %5275 }
0x2a34   :  { %10843 = vrcp.f32 %v5276_v57 }
0x2a3e   :  { %v10844_v29 = vpop.eup %10843 }
0x2a3f   :  { %v5278_v37 = vmul.f32 %v10844_v29, %v10842_v32 }
0x2a41   :  { %9806 = vmatmul.mubr.msk.f32.vlgmr.msra.gmra.mrb[60].mxu0 %vm446_vm4, %v5278_v37 }
0x2a42   :  { %10323 = vmatpush3.bf16.xpose.msk.msra.mxu0 %vm11201_vm3, %v10321_v26  ;;  %9812 = vmatprep.mubr.msk.f32.mxu0 %vm11001_vm1, %v11002_v28 }
0x2a43   :  { %10331 = vmatprep.subr.bf16.mxu0 %v11000_v27 }
0x2a49   :  { %9813 = vmatmul.mubr.msk.f32.vlgmr.msra.gmra.mrb[62].mxu0 %vm365_vm2, %v12156_v20 }
0x2a4a   :  { %9833 = vmatprep.mubr.msk.f32.mxu0 %vm11001_vm1, %v11002_v28 }
0x2b14   :  { %v12175_v25 = vpop.f32.mrb[60].mxu0 }
0x2b15   :  { %v9807_v55 = vpop.f32.mrb[61].mxu0 }
0x2b1c   :  { %v5438_v35 = vpop.f32.mrb[62].mxu0 }
0x2b1d   :  { %v5442_v38 = vmul.f32 0.35355338, %v5438_v35  ;;  %v9814_v10 = vpop.f32.mrb[63].mxu0 }
0x2b1f   :  { %v5443_v45 = vsel %vm446_vm4, %v5442_v38, -inf }
0x2b20   :  { %5444 = vmax.xlane.f32.xlu1 %v5443_v45 }
0x2bad   :  { %v5445_v26 = vpop.xlane.xlu1 %5444 }
0x2bae   :  { %v5446_v34 = vsub.f32 %v5442_v38, %v5445_v26 }
0x2bb0   :  { %v5447_v46 = vmul.f32 1.442695, %v5446_v34 }
0x2bb2   :  { %10845 = vpow2.f32 %v5447_v46 }
0x2bbc   :  { %v10846_v39 = vpop.eup %10845 }
0x2bbd   :  { %v5449_v41 = vsel %vm446_vm4, %v10846_v39, 0.0 }
0x2bbe   :  { %5450 = vadd.xlane.f32.xlu1 %v5449_v41 }
0x2bcf   :  { %10633 = vrot.lane.b32.xlu1 %v12090_v5, %s10999_s29 }
0x2c4b   :  { %v5451_v1 = vpop.xlane.xlu1 %5450 }
0x2c4c   :  { %10847 = vrcp.f32 %v5451_v1 }
0x2c4f   :  { %v10634_v50 = vpop.permute.xlu1 %10633 }
0x2c50   :  { %v10636_v44 = vunpack.i.h.bf16 %v10634_v50  ;;  %v10635_v30 = vunpack.i.l.bf16 %v10634_v50 }
0x2c52   :  { %v10325_v51 = vpack.c.bf16 %v10636_v44, %v10635_v30 }
0x2c54   :  { %10326 = vmatpush3.bf16.msra.mxu1 %v10325_v51 }
0x2c55   :  { %10327 = vmatprep.subr.bf16.mxu1 %v11000_v27 }
0x2c56   :  { %v10848_v52 = vpop.eup %10847 }
0x2c57   :  { %v5453_v58 = vmul.f32 %v10848_v52, %v10846_v39 }
0x2c59   :  { %9820 = vmatmul.mubr.msk.f32.vlgmr.msra.gmra.mrb[54].mxu1 %vm446_vm4, %v5453_v58 }
0x2c5a   :  { %9826 = vmatprep.mubr.msk.f32.mxu1 %vm11001_vm1, %v11002_v28 }
0x2c5d   :  { %10330 = vmatpush3.bf16.xpose.msk.msra.mxu1 %vm11201_vm3, %v10328_v59 }
0x2c5e   :  { %10338 = vmatprep.subr.bf16.mxu1 %v11000_v27 }
0x2c64   :  { %9827 = vmatmul.mubr.msk.f32.vlgmr.msra.gmra.mrb[56].mxu1 %vm365_vm2, %v5535_v60 }
0x2c65   :  { %9847 = vmatprep.mubr.msk.f32.mxu1 %vm11001_vm1, %v11002_v28 }
0x2d2c   :  { %v5529_v15 = vpop.f32.mrb[54].mxu1 }
0x2d2d   :  { %5533 = vst.msk [vmem:[#allocation2 + $0x8] sm:$0xff] %vm365_vm2, %v5529_v15  ;;  %v9821_v16 = vpop.f32.mrb[55].mxu1 }
0x2d37   :  { %v5612_v9 = vpop.f32.mrb[56].mxu1 }
0x2d38   :  { %v5616_v11 = vmul.f32 0.35355338, %v5612_v9  ;;  %v9828_v12 = vpop.f32.mrb[57].mxu1 }
0x2d3a   :  { %v5617_v6 = vsel %vm446_vm4, %v5616_v11, -inf }
0x2d3b   :  { %5618 = vmax.xlane.f32.xlu0 %v5617_v6 }
0x2d51   :  { %10643 = vrot.lane.b32.xlu0 %v12090_v5, %s11005_s26 }
0x2d55   :  { %5712 = vrot.lane.b32.xlu0 %v12156_v20, %s11004_s25 }
0x2dc8   :  { %v5619_v7 = vpop.xlane.xlu0 %5618 }
0x2dc9   :  { %v5620_v19 = vsub.f32 %v5616_v11, %v5619_v7 }
0x2dcb   :  { %v5621_v48 = vmul.f32 1.442695, %v5620_v19 }
0x2dcc   :  { %v10644_v21 = vpop.permute.xlu0 %10643 }
0x2dcd   :  { %10849 = vpow2.f32 %v5621_v48  ;;  %v10646_v22 = vunpack.i.h.bf16 %v10644_v21  ;;  %v10645_v56 = vunpack.i.l.bf16 %v10644_v21 }
0x2dcf   :  { %v10332_v24 = vpack.c.bf16 %v10646_v22, %v10645_v56 }
0x2dd0   :  { %v5713_v35 = vpop.permute.xlu0 %5712 }
0x2dd1   :  { %10333 = vmatpush3.bf16.msra.mxu0 %v10332_v24 }
0x2dd2   :  { %10334 = vmatprep.subr.bf16.mxu0 %v11000_v27 }
0x2dd7   :  { %v10850_v62 = vpop.eup %10849 }
0x2dd8   :  { %v5623_v43 = vsel %vm446_vm4, %v10850_v62, 0.0 }
0x2dd9   :  { %5624 = vadd.xlane.f32.xlu1 %v5623_v43 }
0x2dea   :  { %10648 = vrot.lane.b32.xlu1 %v12090_v5, %s11004_s25 }
0x2e66   :  { %v5625_v31 = vpop.xlane.xlu1 %5624 }
0x2e67   :  { %10851 = vrcp.f32 %v5625_v31 }
0x2e6a   :  { %v10649_v32 = vpop.permute.xlu1 %10648 }
0x2e6b   :  { %v10651_v36 = vunpack.i.h.bf16 %v10649_v32  ;;  %v10650_v57 = vunpack.i.l.bf16 %v10649_v32 }
0x2e6d   :  { %v10335_v55 = vpack.c.bf16 %v10651_v36, %v10650_v57 }
0x2e71   :  { %v10852_v29 = vpop.eup %10851 }
0x2e72   :  { %v5627_v37 = vmul.f32 %v10852_v29, %v10850_v62 }
0x2e74   :  { %9834 = vmatmul.mubr.msk.f32.vlgmr.msra.gmra.mrb[64].mxu0 %vm446_vm4, %v5627_v37 }
0x2e75   :  { %10337 = vmatpush3.bf16.xpose.msk.msra.mxu0 %vm11201_vm3, %v10335_v55  ;;  %9840 = vmatprep.mubr.msk.f32.mxu0 %vm11001_vm1, %v11002_v28 }
0x2e76   :  { %10345 = vmatprep.subr.bf16.mxu0 %v11000_v27 }
0x2e7c   :  { %9841 = vmatmul.mubr.msk.f32.vlgmr.msra.gmra.mrb[66].mxu0 %vm365_vm2, %v5713_v35 }
0x2e7d   :  { %9861 = vmatprep.mubr.msk.f32.mxu0 %vm11001_vm1, %v11002_v28 }
0x2f47   :  { %v5703_v38 = vpop.f32.mrb[64].mxu0 }
0x2f48   :  { %v9835_v10 = vpop.f32.mrb[65].mxu0 }
0x2f4f   :  { %v5790_v45 = vpop.f32.mrb[66].mxu0 }
0x2f50   :  { %v5794_v26 = vmul.f32 0.35355338, %v5790_v45  ;;  %v9842_v34 = vpop.f32.mrb[67].mxu0 }
0x2f52   :  { %v5795_v46 = vsel %vm446_vm4, %v5794_v26, -inf }
0x2f53   :  { %5796 = vmax.xlane.f32.xlu1 %v5795_v46 }
0x2f64   :  { %10658 = vrot.lane.b32.xlu1 %v12090_v5, %s11006_s27 }
0x2f68   :  { %5890 = vrot.lane.b32.xlu1 %v12156_v20, %s11006_s27 }
0x2fe0   :  { %v5797_v39 = vpop.xlane.xlu1 %5796 }
0x2fe1   :  { %v5798_v41 = vsub.f32 %v5794_v26, %v5797_v39 }
0x2fe3   :  { %v5799_v1 = vmul.f32 1.442695, %v5798_v41 }
0x2fe4   :  { %v10659_v40 = vpop.permute.xlu1 %10658 }
0x2fe5   :  { %10853 = vpow2.f32 %v5799_v1  ;;  %v10661_v58 = vunpack.i.h.bf16 %v10659_v40  ;;  %v10660_v59 = vunpack.i.l.bf16 %v10659_v40 }
0x2fe7   :  { %v10342_v15 = vpack.c.bf16 %v10661_v58, %v10660_v59 }
0x2fe8   :  { %v5891_v16 = vpop.permute.xlu1 %5890 }
0x2fef   :  { %v10854_v50 = vpop.eup %10853 }
0x2ff0   :  { %v5801_v44 = vsel %vm446_vm4, %v10854_v50, 0.0 }
0x2ff1   :  { %5802 = vadd.xlane.f32.xlu0 %v5801_v44 }
0x3007   :  { %10653 = vrot.lane.b32.xlu0 %v12090_v5, %s11007_s28 }
0x307e   :  { %v5803_v30 = vpop.xlane.xlu0 %5802 }
0x307f   :  { %10855 = vrcp.f32 %v5803_v30 }
0x3082   :  { %v10654_v51 = vpop.permute.xlu0 %10653 }
0x3083   :  { %v10656_v63 = vunpack.i.h.bf16 %v10654_v51  ;;  %v10655_v52 = vunpack.i.l.bf16 %v10654_v51 }
0x3085   :  { %v10339_v53 = vpack.c.bf16 %v10656_v63, %v10655_v52 }
0x3087   :  { %10340 = vmatpush3.bf16.msra.mxu1 %v10339_v53 }
0x3088   :  { %10341 = vmatprep.subr.bf16.mxu1 %v11000_v27 }
0x3089   :  { %v10856_v20 = vpop.eup %10855 }
0x308a   :  { %v5805_v60 = vmul.f32 %v10856_v20, %v10854_v50 }
0x308c   :  { %9848 = vmatmul.mubr.msk.f32.vlgmr.msra.gmra.mrb[58].mxu1 %vm446_vm4, %v5805_v60 }
0x308d   :  { %9854 = vmatprep.mubr.msk.f32.mxu1 %vm11001_vm1, %v11002_v28 }
0x3090   :  { %10344 = vmatpush3.bf16.xpose.msk.msra.mxu1 %vm11201_vm3, %v10342_v15 }
0x3097   :  { %9855 = vmatmul.mubr.msk.f32.vlgmr.msra.gmra.mrb[60].mxu1 %vm365_vm2, %v5891_v16  ;;  %v8875_v16 = vld [vmem:[%s12832_s4 + $0x40] sm:$0xff] }
0x315f   :  { %v5881_v9 = vpop.f32.mrb[58].mxu1 }
0x3160   :  { %v9849_v11 = vpop.f32.mrb[59].mxu1 }
0x316a   :  { %v5968_v12 = vpop.f32.mrb[60].mxu1 }
0x316b   :  { %v5972_v27 = vmul.f32 0.35355338, %v5968_v12  ;;  %v9856_v6 = vpop.f32.mrb[61].mxu1  ;;  %v8877_v12 = vld [vmem:[%s12832_s4 + $0x50] sm:$0xff] }
0x316d   :  { %v5973_v7 = vsel %vm446_vm4, %v5972_v27, -inf }
0x316e   :  { %5974 = vmax.xlane.f32.xlu0 %v5973_v7  ;;  %v12290_v7 = vld [vmem:[%s12830_s2 + $0x60] sm:$0xff] }
0x3184   :  { %10663 = vrot.lane.b32.xlu0 %v12090_v5, %s11008_s30 }
0x3188   :  { %5181 = vrot.lane.b32.xlu0 %v12147_v14, %s11009_s11 }
0x318c   :  { %10668 = vrot.lane.b32.xlu0 %v12017_v8, %s11010_s12 }
0x3190   :  { %5886 = vrot.lane.b32.xlu0 %v5881_v9, %s11009_s11  ;;  %v8876_v9 = vld [vmem:[%s12832_s4 + $0x48] sm:$0xff] }
0x3191   :  { %v10356_v11 = vpack.c.bf16 %v8876_v9, %v8875_v16 }
0x3193   :  { %10357 = vmatprep.subr.bf16.mxu1 %v10356_v11 }
0x3194   :  { %10673 = vrot.lane.b32.xlu0 %v12011_v33, %s11010_s12  ;;  %10359 = vmatpush3.bf16.msra.mxu1 %v10356_v11 }
0x31fb   :  { %v5975_v28 = vpop.xlane.xlu0 %5974 }
0x31fc   :  { %v5976_v54 = vsub.f32 %v5972_v27, %v5975_v28  ;;  %v8878_v27 = vld [vmem:[%s12832_s4 + $0x58] sm:$0xff]  ;;  %v12295_v28 = vld [vmem:[%s12830_s2 + $0x68] sm:$0xff] }
0x31fd   :  { %v10360_v6 = vpack.c.bf16 %v8878_v27, %v8877_v12 }
0x31fe   :  { %v5977_v19 = vmul.f32 1.442695, %v5976_v54  ;;  %v10396_v54 = vpack.c.bf16 %v12295_v28, %v12290_v7 }
0x31ff   :  { %v10664_v48 = vpop.permute.xlu0 %10663  ;;  %10361 = vmatprep.subr.bf16.mxu1 %v10360_v6 }
0x3200   :  { %10857 = vpow2.f32 %v5977_v19  ;;  %v10666_v21 = vunpack.i.h.bf16 %v10664_v48  ;;  %v10665_v22 = vunpack.i.l.bf16 %v10664_v48  ;;  %10363 = vmatpush3.bf16.msra.mxu1 %v10360_v6  ;;  %v8879_v19 = vld [vmem:[%s12834_s6 + $0x100] sm:$0xff]  ;;  %v8880_v48 = vld [vmem:[%s12834_s6 + $0x108] sm:$0xff] }
0x3201   :  { %10397 = vmatprep.subr.bf16.mxu1 %v10396_v54  ;;  %v8898_v6 = vld [vmem:[%s12835_s7 + $0x2] ss:$0 sm:$0xff] }
0x3202   :  { %v10346_v56 = vpack.c.bf16 %v10666_v21, %v10665_v22  ;;  %v8881_v21 = vld [vmem:[%s12834_s6 + $0x110] sm:$0xff]  ;;  %v10364_v22 = vpack.c.bf16 %v8880_v48, %v8879_v19 }
0x3203   :  { %v5182_v8 = vpop.permute.xlu0 %5181 }
0x3204   :  { %10347 = vmatpush3.bf16.msra.mxu0 %v10346_v56  ;;  %v8882_v56 = vld [vmem:[%s12834_s6 + $0x118] sm:$0xff] }
0x3207   :  { %v10669_v62 = vpop.permute.xlu0 %10668 }
0x3208   :  { %v10671_v29 = vunpack.i.h.bf16 %v10669_v62  ;;  %v10670_v37 = vunpack.i.l.bf16 %v10669_v62  ;;  %v8885_v62 = vld [vmem:[%s12834_s6 + $0x130] sm:$0xff] }
0x320a   :  { %v10858_v24 = vpop.eup %10857  ;;  %v10348_v55 = vpack.c.bf16 %v10671_v29, %v10670_v37  ;;  %v8891_v37 = vld [vmem:[%s12834_s6 + $0x160] sm:$0xff] }
0x320b   :  { %v5979_v5 = vsel %vm446_vm4, %v10858_v24, 0.0  ;;  %v5887_v32 = vpop.permute.xlu0 %5886 }
0x320c   :  { %5980 = vadd.xlane.f32.xlu1 %v5979_v5  ;;  %10349 = vmatprep.subr.bf16.mxu0 %v10348_v55  ;;  %v8883_v5 = vld [vmem:[%s12834_s6 + $0x120] sm:$0xff] }
0x320f   :  { %v10674_v35 = vpop.permute.xlu0 %10673 }
0x3210   :  { %v10675_v10 = vunpack.i.l.bf16 %v10674_v35 }
0x321d   :  { %5003 = vrot.lane.b32.xlu1 %v12145_v0, %s11011_s13 }
0x3221   :  { %5708 = vrot.lane.b32.xlu1 %v5703_v38, %s11011_s13  ;;  %v10676_v38 = vunpack.i.h.bf16 %v10674_v35 }
0x3223   :  { %v10352_v45 = vpack.c.bf16 %v10676_v38, %v10675_v10 }
0x3225   :  { %5359 = vrot.lane.b32.xlu1 %v12175_v25, %s11012_s14 }
0x3299   :  { %v5981_v14 = vpop.xlane.xlu1 %5980 }
0x329a   :  { %10859 = vrcp.f32 %v5981_v14 }
0x329d   :  { %v5004_v43 = vpop.permute.xlu1 %5003 }
0x329e   :  { %5006 = vst.msk [vmem:[#allocation2] sm:$0xff] %vm715_vm5, %v5004_v43  ;;  %v8886_v43 = vld [vmem:[%s12834_s6 + $0x138] sm:$0xff] }
0x329f   :  { %5184 = vst.msk [vmem:[#allocation2] sm:$0xff] %vm894_vm6, %v5182_v8  ;;  %v8884_v8 = vld [vmem:[%s12834_s6 + $0x128] sm:$0xff] }
0x32a0   :  { %v10372_v14 = vpack.c.bf16 %v8884_v8, %v8883_v5 }
0x32a1   :  { %v5709_v31 = vpop.permute.xlu1 %5708 }
0x32a2   :  { %5711 = vst.msk [vmem:[#allocation2 + $0x8] sm:$0xff] %vm715_vm5, %v5709_v31  ;;  %v10376_v31 = vpack.c.bf16 %v8886_v43, %v8885_v62 }
0x32a3   :  { %5889 = vst.msk [vmem:[#allocation2 + $0x8] sm:$0xff] %vm894_vm6, %v5887_v32  ;;  %v8887_v32 = vld [vmem:[%s12834_s6 + $0x140] sm:$0xff] }
0x32a4   :  { %v10860_v0 = vpop.eup %10859 }
0x32a5   :  { %v5360_v36 = vpop.permute.xlu1 %5359  ;;  %v5983_v57 = vmul.f32 %v10860_v0, %v10858_v24  ;;  %v10368_v24 = vpack.c.bf16 %v8882_v56, %v8881_v21  ;;  %v8888_v0 = vld [vmem:[%s12834_s6 + $0x148] sm:$0xff] }
0x32a6   :  { %5362 = vst.msk [vmem:[#allocation2] sm:$0xff] %vm1073_vm7, %v5360_v36  ;;  %v10380_v36 = vpack.c.bf16 %v8888_v0, %v8887_v32 }
0x32a7   :  { %9862 = vmatmul.mubr.msk.f32.vlgmr.msra.gmra.mrb[68].mxu0 %vm446_vm4, %v5983_v57  ;;  %v8889_v57 = vld [vmem:[%s12834_s6 + $0x150] sm:$0xff] }
0x32a8   :  { %10351 = vmatpush3.bf16.msra.mxu0 %v10348_v55  ;;  %v8892_v55 = vld [vmem:[%s12834_s6 + $0x168] sm:$0xff] }
0x32a9   :  { %10353 = vmatprep.subr.bf16.mxu0 %v10352_v45  ;;  %v10388_v35 = vpack.c.bf16 %v8892_v55, %v8891_v37 }
0x32ac   :  { %10355 = vmatpush3.bf16.msra.mxu0 %v10352_v45 }
0x32ad   :  { %v6068_v25 = vld [vmem:[#allocation2] sm:$0xff]  ;;  %10365 = vmatprep.subr.bf16.mxu0 %v10364_v22 }
0x32ae   :  { %9872 = vmatprep.mubr.msk.f32.mxu0 %vm50_vm0, %v6068_v25  ;;  %v8890_v25 = vld [vmem:[%s12834_s6 + $0x158] sm:$0xff] }
0x32af   :  { %v10384_v29 = vpack.c.bf16 %v8890_v25, %v8889_v57  ;;  %v12399_v25 = vpack.i.bf16 %v12295_v28, %v12290_v7 }
0x337a   :  { %v6059_v26 = vpop.f32.mrb[68].mxu0 }
0x337b   :  { %6064 = vrot.lane.b32.xlu1 %v6059_v26, %s11012_s14  ;;  %v9863_v34 = vpop.f32.mrb[69].mxu0 }
0x337f   :  { %6082 = vrot.lane.b32.xlu1 %v12053_v4, %s11010_s12 }
0x33ed   :  { %v6065_v46 = vpop.permute.xlu1 %6064 }
0x33ee   :  { %6067 = vst.msk [vmem:[#allocation2 + $0x8] sm:$0xff] %vm1073_vm7, %v6065_v46 }
0x33f1   :  { %v6083_v39 = vpop.permute.xlu1 %6082 }
0x33f5   :  { %v6069_v33 = vld [vmem:[#allocation2 + $0x8] sm:$0xff] }
0x33f6   :  { %9873 = vmatmul.mubr.msk.f32.vlgmr.msra.gmra.mrb[70].mxu0 %vm50_vm0, %v6069_v33 }
0x33f7   :  { %10367 = vmatpush3.bf16.msra.mxu0 %v10364_v22 }
0x33f8   :  { %10369 = vmatprep.subr.bf16.mxu0 %v10368_v24 }
0x33fb   :  { %10371 = vmatpush3.bf16.msra.mxu0 %v10368_v24 }
0x33fc   :  { %10373 = vmatprep.subr.bf16.mxu0 %v10372_v14 }
0x33ff   :  { %10375 = vmatpush3.bf16.msra.mxu0 %v10372_v14 }
0x3400   :  { %10377 = vmatprep.subr.bf16.mxu0 %v10376_v31 }
0x3403   :  { %10379 = vmatpush3.bf16.msra.mxu0 %v10376_v31 }
0x3404   :  { %10381 = vmatprep.subr.bf16.mxu0 %v10380_v36 }
0x3407   :  { %10383 = vmatpush3.bf16.msra.mxu0 %v10380_v36 }
0x3408   :  { %10385 = vmatprep.subr.bf16.mxu0 %v10384_v29 }
0x340b   :  { %10387 = vmatpush3.bf16.msra.mxu0 %v10384_v29  ;;  %v12404_v29 = vld [vmem:[%s12831_s3 + $0x3] ss:$0 sm:$0xff] }
0x340c   :  { %10389 = vmatprep.subr.bf16.mxu0 %v10388_v35 }
0x340f   :  { %10391 = vmatpush3.bf16.msra.mxu0 %v10388_v35 }
0x34c9   :  { %v9874_v41 = vpop.f32.mrb[70].mxu0 }
0x34ca   :  { %v6163_v1 = vadd.f32 %v9874_v41, %v6083_v39  ;;  %v6157_v50 = vpop.f32.mrb[71].mxu0 }
0x34cb   :  { %v6158_v44 = vadd.f32 %v6157_v50, %v6083_v39  ;;  %v8873_v39 = vld [vmem:[%s12836_s8 + $0xa] ss:$0 sm:$0xff] }
0x34cc   :  { %v12254_v30 = vadd.f32 %v6163_v1, %v11520_v17  ;;  %v8874_v1 = vld [vmem:[%s12836_s8 + $0xb] ss:$0 sm:$0xff] }
0x34cd   :  { %v12257_v51 = vadd.f32 %v6158_v44, %v11523_v18 }
0x34ce   :  { %v6171_v4 = vsel %vm50_vm0, %v12254_v30, 0.0 }
0x34cf   :  { %6172 = vadd.xlane.f32.xlu1 %v6171_v4  ;;  %v6168_v63 = vsel %vm50_vm0, %v12257_v51, 0.0 }
0x34d0   :  { %6169 = vadd.xlane.f32.xlu0 %v6168_v63 }
0x355c   :  { %v6173_v52 = vpop.xlane.xlu1 %6172 }
0x355d   :  { %v6175_v53 = vmul.f32 0.03125, %v6173_v52  ;;  %v6170_v40 = vpop.xlane.xlu0 %6169  ;;  %v8901_v52 = vld [vmem:[%s12830_s2 + $0x70] sm:$0xff] }
0x355e   :  { %v6174_v20 = vmul.f32 0.03125, %v6170_v40 }
0x355f   :  { %v12264_v58 = vsub.f32 %v12254_v30, %v6175_v53  ;;  %v8902_v53 = vld [vmem:[%s12830_s2 + $0x78] sm:$0xff] }
0x3560   :  { %v12267_v17 = vsub.f32 %v12257_v51, %v6174_v20  ;;  %v12393_v57 = vpack.i.bf16 %v8902_v53, %v8901_v52 }
0x3561   :  { %v6179_v60 = vmul.f32 %v12264_v58, %v12264_v58 }
0x3562   :  { %v6178_v18 = vmul.f32 %v12267_v17, %v12267_v17 }
0x3563   :  { %v6183_v15 = vsel %vm50_vm0, %v6179_v60, 0.0 }
0x3564   :  { %v6180_v59 = vsel %vm50_vm0, %v6178_v18, 0.0  ;;  %v8894_v18 = vld [vmem:[%s12834_s6 + $0x178] sm:$0xff] }
0x3565   :  { %6181 = vadd.xlane.f32.xlu0 %v6180_v59 }
0x3569   :  { %6184 = vadd.xlane.f32.xlu0 %v6183_v15 }
0x35f2   :  { %v6182_v38 = vpop.xlane.xlu0 %6181 }
0x35f3   :  { %v6186_v10 = vmul.f32 0.03125, %v6182_v38 }
0x35f5   :  { %v6188_v45 = vadd.f32 1e-05, %v6186_v10 }
0x35f6   :  { %v6185_v26 = vpop.xlane.xlu0 %6184 }
0x35f7   :  { %10861 = vrsqrt.f32 %v6188_v45  ;;  %v6187_v34 = vmul.f32 0.03125, %v6185_v26 }
0x35f9   :  { %v6189_v46 = vadd.f32 1e-05, %v6187_v34 }
0x35fb   :  { %10863 = vrsqrt.f32 %v6189_v46 }
0x3601   :  { %v10862_v33 = vpop.eup %10861 }
0x3602   :  { %v6192_v41 = vmul.f32 %v10862_v33, %v12267_v17  ;;  %v10400_v17 = vpack.c.bf16 %v8902_v53, %v8901_v52 }
0x3604   :  { %v6198_v50 = vmul.f32 %v8873_v39, %v6192_v41 }
0x3605   :  { %v10864_v44 = vpop.eup %10863 }
0x3606   :  { %v6193_v4 = vmul.f32 %v10864_v44, %v12264_v58  ;;  %v6204_v63 = vadd.f32 %v8874_v1, %v6198_v50  ;;  %v8893_v58 = vld [vmem:[%s12834_s6 + $0x170] sm:$0xff] }
0x3608   :  { %v6199_v40 = vmul.f32 %v8873_v39, %v6193_v4  ;;  %9883 = vmatprep.mubr.msk.f32.mxu1 %vm50_vm0, %v6204_v63  ;;  %v10949_v63 = vld [vmem:[%s12836_s8 + $0x8] ss:$0 sm:$0xff] }
0x360a   :  { %v6205_v20 = vadd.f32 %v8874_v1, %v6199_v40  ;;  %v10950_v40 = vld [vmem:[%s12836_s8 + $0x9] ss:$0 sm:$0xff] }
0x360c   :  { %9884 = vmatmul.mubr.msk.f32.vlgmr.msra.gmra.mrb[62].mxu1 %vm50_vm0, %v6205_v20 }
0x360d   :  { %10399 = vmatpush3.bf16.msra.mxu1 %v10396_v54  ;;  %9929 = vmatprep.mubr.msk.f32.mxu1 %vm50_vm0, %v12038_v47  ;;  %v10392_v47 = vpack.c.bf16 %v8894_v18, %v8893_v58 }
0x360e   :  { %10401 = vmatprep.subr.bf16.mxu1 %v10400_v17 }
0x360f   :  { %10393 = vmatprep.subr.bf16.mxu0 %v10392_v47 }
0x3610   :  { %10395 = vmatpush3.bf16.msra.mxu0 %v10392_v47 }
0x3611   :  { %10403 = vmatpush3.bf16.msra.mxu1 %v10400_v17 }
0x3614   :  { %9930 = vmatmul.mubr.msk.f32.vlgmr.msra.gmra.mrb[64].mxu1 %vm50_vm0, %v12040_v49  ;;  %v8895_v49 = vld [vmem:[%s12833_s5 + $0x2] ss:$0 sm:$0xff] }
0x3615   :  { %9932 = vmatprep.mubr.msk.f32.mxu1 %vm50_vm0, %v12057_v2 }
0x3618   :  { %9933 = vmatmul.mubr.msk.f32.gmra.mrb[66].mxu1 %vm50_vm0, %v12059_v23 }
0x36df   :  { %v9885_v59 = vpop.f32.mrb[62].mxu1 }
0x36e0   :  { %v6312_v2 = vadd.f32 %v9885_v59, %v8895_v49  ;;  %v6306_v60 = vpop.f32.mrb[63].mxu1 }
0x36e1   :  { %v6307_v15 = vadd.f32 %v8895_v49, %v6306_v60 }
0x36e2   :  { %v6316_v16 = vmax.f32 %v6312_v2, 0.0 }
0x36e3   :  { %v6315_v23 = vmax.f32 %v6307_v15, 0.0 }
0x36e5   :  { %9918 = vmatprep.mubr.f32.mxu0 %v6315_v23 }
0x36e6   :  { %9919 = vmatmul.mubr.f32.vlgmr.msra.gmra.mrb[72].mxu0 %v6316_v16 }
0x36e7   :  { %v12374_v9 = vpop.f32.mrb[64].mxu1 }
0x36e8   :  { %v12376_v11 = vpop.f32.mrb[65].mxu1  ;;  %v6510_v2 = vadd.f32 %v12374_v9, %v12404_v29 }
0x36e9   :  { %v6505_v58 = vadd.f32 %v12404_v29, %v12376_v11 }
0x36eb   :  { %v12378_v12 = vpop.f32.mrb[66].mxu1 }
0x36ec   :  { %v12380_v27 = vpop.f32.mrb[67].mxu1 }
0x37b9   :  { %v9920_v54 = vpop.f32.mrb[72].mxu0 }
0x37ba   :  { %v6393_v19 = vadd.f32 %v9920_v54, %v8898_v6  ;;  %v6387_v48 = vpop.f32.mrb[73].mxu0  ;;  %v12448_v54 = vadd.f32 %v12378_v12, %v12404_v29 }
0x37bb   :  { %v6388_v21 = vadd.f32 %v8898_v6, %v6387_v48 }
0x37bc   :  { %v6397_v22 = vadd.f32 %v6393_v19, %v12254_v30  ;;  %v6515_v19 = vadd.f32 %v12404_v29, %v12380_v27 }
0x37bd   :  { %v6396_v56 = vadd.f32 %v6388_v21, %v12257_v51 }
0x37be   :  { %8653 = vst.msk [vmem:[#allocation3 + $0x8] sm:$0xff] %vm50_vm0, %v6397_v22  ;;  %v6401_v24 = vsel %vm50_vm0, %v6397_v22, 0.0 }
0x37bf   :  { %8652 = vst.msk [vmem:[#allocation3] sm:$0xff] %vm50_vm0, %v6396_v56  ;;  %6402 = vadd.xlane.f32.xlu1 %v6401_v24  ;;  %v6398_v5 = vsel %vm50_vm0, %v6396_v56, 0.0 }
0x37c0   :  { %6399 = vadd.xlane.f32.xlu0 %v6398_v5 }
0x384c   :  { %v6403_v8 = vpop.xlane.xlu1 %6402 }
0x384d   :  { %v6405_v14 = vmul.f32 0.03125, %v6403_v8  ;;  %v6400_v62 = vpop.xlane.xlu0 %6399 }
0x384e   :  { %v6404_v43 = vmul.f32 0.03125, %v6400_v62 }
0x384f   :  { %v6407_v31 = vsub.f32 %v6397_v22, %v6405_v14 }
0x3850   :  { %v6406_v32 = vsub.f32 %v6396_v56, %v6404_v43 }
0x3851   :  { %v6409_v0 = vmul.f32 %v6407_v31, %v6407_v31 }
0x3852   :  { %v6408_v30 = vmul.f32 %v6406_v32, %v6406_v32 }
0x3853   :  { %v6413_v51 = vsel %vm50_vm0, %v6409_v0, 0.0 }
0x3854   :  { %6414 = vadd.xlane.f32.xlu1 %v6413_v51  ;;  %v6410_v36 = vsel %vm50_vm0, %v6408_v30, 0.0 }
0x3855   :  { %6411 = vadd.xlane.f32.xlu0 %v6410_v36 }
0x3865   :  { %10683 = vrot.lane.b32.xlu1 %v12393_v57, %s10999_s29 }
0x3869   :  { %6540 = vrot.lane.b32.xlu1 %v12404_v29, %s10999_s29 }
0x386b   :  { %10678 = vrot.lane.b32.xlu0 %v12399_v25, %s10999_s29 }
0x38e1   :  { %v6415_v37 = vpop.xlane.xlu1 %6414 }
0x38e2   :  { %v6417_v55 = vmul.f32 0.03125, %v6415_v37  ;;  %v6412_v35 = vpop.xlane.xlu0 %6411 }
0x38e3   :  { %v6416_v38 = vmul.f32 0.03125, %v6412_v35 }
0x38e4   :  { %v6419_v10 = vadd.f32 1e-05, %v6417_v55 }
0x38e5   :  { %v6418_v45 = vadd.f32 1e-05, %v6416_v38  ;;  %v10684_v26 = vpop.permute.xlu1 %10683 }
0x38e6   :  { %10865 = vrsqrt.f32 %v6419_v10  ;;  %v10679_v7 = vpop.permute.xlu0 %10678  ;;  %v10686_v28 = vunpack.i.h.bf16 %v10684_v26  ;;  %v10685_v34 = vunpack.i.l.bf16 %v10684_v26 }
0x38e7   :  { %10867 = vrsqrt.f32 %v6418_v45  ;;  %v10681_v46 = vunpack.i.h.bf16 %v10679_v7  ;;  %v10680_v33 = vunpack.i.l.bf16 %v10679_v7 }
0x38e8   :  { %v10408_v41 = vpack.c.bf16 %v10686_v28, %v10685_v34 }
0x38e9   :  { %v10404_v39 = vpack.c.bf16 %v10681_v46, %v10680_v33  ;;  %v6541_v18 = vpop.permute.xlu1 %6540 }
0x38eb   :  { %10405 = vmatprep.subr.bf16.mxu1 %v10404_v39 }
0x38ec   :  { %10407 = vmatpush3.bf16.msra.mxu1 %v10404_v39 }
0x38ed   :  { %10409 = vmatprep.subr.bf16.mxu1 %v10408_v41 }
0x38f0   :  { %v10866_v1 = vpop.eup %10865  ;;  %10411 = vmatpush3.bf16.msra.mxu1 %v10408_v41 }
0x38f1   :  { %v10868_v50 = vpop.eup %10867  ;;  %v6423_v44 = vmul.f32 %v10866_v1, %v6407_v31 }
0x38f2   :  { %v6422_v4 = vmul.f32 %v10868_v50, %v6406_v32 }
0x38f3   :  { %v6425_v52 = vmul.f32 %v10949_v63, %v6423_v44 }
0x38f4   :  { %v6424_v53 = vmul.f32 %v10949_v63, %v6422_v4 }
0x38f5   :  { %v6427_v17 = vadd.f32 %v10950_v40, %v6425_v52 }
0x38f6   :  { %v6426_v20 = vadd.f32 %v10950_v40, %v6424_v53 }
0x38f8   :  { %9943 = vmatprep.mubr.msk.f32.mxu1 %vm50_vm0, %v6426_v20 }
0x38f9   :  { %9944 = vmatmul.mubr.msk.f32.vlgmr.msra.gmra.mrb[68].mxu1 %vm50_vm0, %v6427_v17 }
0x38fa   :  { %9948 = vmatprep.mubr.msk.f32.mxu1 %vm365_vm2, %v6505_v58 }
0x39cc   :  { %v9945_v47 = vpop.f32.mrb[68].mxu1 }
0x39cd   :  { %v6615_v49 = vpop.f32.mrb[69].mxu1  ;;  %v12442_v9 = vadd.f32 %v9945_v47, %v6541_v18 }
0x39ce   :  { %v12421_v59 = vadd.f32 %v6615_v49, %v6541_v18 }
0x39d0   :  { %9946 = vmatprep.subr.msk.mxu1 %vm365_vm2, %v12421_v59 }
0x39d1   :  { %9947 = vmatpush3.xpose.msk.msra.mxu1 %vm365_vm2, %v12421_v59 }
0x39d4   :  { %9949 = vmatmul.mubr.msk.f32.vlgmr.msra.gmra.mrb[70].mxu1 %vm365_vm2, %v6510_v2 }
0x3aa7   :  { %v9950_v60 = vpop.f32.mrb[70].mxu1 }
0x3aa8   :  { %v6709_v15 = vmul.f32 0.35355338, %v9950_v60  ;;  %v6699_v23 = vpop.f32.mrb[71].mxu1 }
0x3aa9   :  { %v6708_v16 = vmul.f32 0.35355338, %v6699_v23 }
0x3aaa   :  { %v6713_v11 = vsel %vm365_vm2, %v6709_v15, -inf }
0x3aab   :  { %6714 = vmax.xlane.f32.xlu0 %v6713_v11  ;;  %v6710_v6 = vsel %vm365_vm2, %v6708_v16, -inf }
0x3aac   :  { %6711 = vmax.xlane.f32.xlu1 %v6710_v6 }
0x3abd   :  { %6732 = vrot.lane.b32.xlu1 %v12421_v59, %s10999_s29 }
0x3ac1   :  { %6822 = vrot.lane.b32.xlu0 %v12421_v59, %s11003_s24  ;;  %6818 = vrot.lane.b32.xlu1 %v6505_v58, %s11003_s24 }
0x3ac5   :  { %6820 = vrot.lane.b32.xlu1 %v6510_v2, %s11003_s24 }
0x3ac9   :  { %7027 = vrot.lane.b32.xlu1 %v12421_v59, %s11004_s25 }
0x3acd   :  { %7025 = vrot.lane.b32.xlu1 %v6510_v2, %s11004_s25 }
0x3ad1   :  { %7228 = vrot.lane.b32.xlu1 %v6505_v58, %s11006_s27 }
0x3ad5   :  { %7631 = vrot.lane.b32.xlu1 %v12442_v9, %s11003_s24 }
0x3ad9   :  { %7629 = vrot.lane.b32.xlu1 %v12448_v54, %s11003_s24 }
0x3add   :  { %7832 = vrot.lane.b32.xlu1 %v6515_v19, %s11004_s25 }
0x3ae1   :  { %8041 = vrot.lane.b32.xlu1 %v12442_v9, %s11006_s27 }
0x3ae5   :  { %8039 = vrot.lane.b32.xlu1 %v12448_v54, %s11006_s27 }
0x3b38   :  { %v6715_v48 = vpop.xlane.xlu0 %6714 }
0x3b39   :  { %v6717_v21 = vsub.f32 %v6709_v15, %v6715_v48  ;;  %v6712_v22 = vpop.xlane.xlu1 %6711 }
0x3b3a   :  { %v6716_v56 = vsub.f32 %v6708_v16, %v6712_v22 }
0x3b3b   :  { %v6720_v12 = vmul.f32 1.442695, %v6717_v21 }
0x3b3c   :  { %v6718_v24 = vmul.f32 1.442695, %v6716_v56  ;;  %v6823_v8 = vpop.permute.xlu0 %6822 }
0x3b3d   :  { %10869 = vpow2.f32 %v6720_v12  ;;  %v6733_v5 = vpop.permute.xlu1 %6732 }
0x3b3e   :  { %9951 = vmatprep.subr.mxu1 %v6733_v5  ;;  %10871 = vpow2.f32 %v6718_v24 }
0x3b3f   :  { %9952 = vmatpush3.msra.mxu1 %v6733_v5 }
0x3b40   :  { %9956 = vmatprep.subr.msk.mxu1 %vm365_vm2, %v6823_v8 }
0x3b41   :  { %v6819_v27 = vpop.permute.xlu1 %6818 }
0x3b45   :  { %v6821_v14 = vpop.permute.xlu1 %6820 }
0x3b47   :  { %v10870_v62 = vpop.eup %10869 }
0x3b48   :  { %v6725_v43 = vsel %vm365_vm2, %v10870_v62, 0.0  ;;  %v10872_v31 = vpop.eup %10871 }
0x3b49   :  { %6726 = vadd.xlane.f32.xlu0 %v6725_v43  ;;  %v7028_v32 = vpop.permute.xlu1 %7027  ;;  %v6722_v0 = vsel %vm365_vm2, %v10872_v31, 0.0 }
0x3b4a   :  { %9966 = vmatprep.subr.msk.mxu0 %vm365_vm2, %v7028_v32 }
0x3b4b   :  { %9967 = vmatpush3.xpose.msk.msra.mxu0 %vm365_vm2, %v7028_v32 }
0x3b4d   :  { %6723 = vadd.xlane.f32.xlu0 %v6722_v0  ;;  %v7026_v30 = vpop.permute.xlu1 %7025 }
0x3b51   :  { %v7229_v36 = vpop.permute.xlu1 %7228 }
0x3b55   :  { %v7632_v55 = vpop.permute.xlu1 %7631 }
0x3b59   :  { %v7630_v45 = vpop.permute.xlu1 %7629 }
0x3b5d   :  { %v7833_v46 = vpop.permute.xlu1 %7832 }
0x3b61   :  { %v8042_v41 = vpop.permute.xlu1 %8041 }
0x3b63   :  { %7023 = vrot.lane.b32.xlu0 %v6505_v58, %s11004_s25 }
0x3b65   :  { %v8040_v44 = vpop.permute.xlu1 %8039 }
0x3b67   :  { %7232 = vrot.lane.b32.xlu0 %v12421_v59, %s11006_s27 }
0x3b6b   :  { %7230 = vrot.lane.b32.xlu0 %v6510_v2, %s11006_s27 }
0x3b6f   :  { %7627 = vrot.lane.b32.xlu0 %v6515_v19, %s11003_s24 }
0x3b73   :  { %7836 = vrot.lane.b32.xlu0 %v12442_v9, %s11004_s25 }
0x3b77   :  { %7834 = vrot.lane.b32.xlu0 %v12448_v54, %s11004_s25 }
0x3b7b   :  { %8037 = vrot.lane.b32.xlu0 %v6515_v19, %s11006_s27 }
0x3bd6   :  { %v6727_v51 = vpop.xlane.xlu0 %6726 }
0x3bd7   :  { %10873 = vrcp.f32 %v6727_v51 }
0x3bda   :  { %v6724_v37 = vpop.xlane.xlu0 %6723 }
0x3bdb   :  { %10875 = vrcp.f32 %v6724_v37 }
0x3bde   :  { %v7024_v35 = vpop.permute.xlu0 %7023 }
0x3bdf   :  { %9968 = vmatprep.mubr.msk.f32.mxu0 %vm365_vm2, %v7024_v35 }
0x3be0   :  { %9969 = vmatmul.mubr.msk.f32.vlgmr.msra.gmra.mrb[74].mxu0 %vm365_vm2, %v7026_v30 }
0x3be1   :  { %9978 = vmatprep.mubr.msk.f32.mxu0 %vm365_vm2, %v7229_v36  ;;  %v10874_v10 = vpop.eup %10873 }
0x3be2   :  { %v7233_v38 = vpop.permute.xlu0 %7232  ;;  %v6731_v34 = vmul.f32 %v10874_v10, %v10870_v62 }
0x3be3   :  { %9976 = vmatprep.subr.msk.mxu0 %vm365_vm2, %v7233_v38 }
0x3be4   :  { %9977 = vmatpush3.xpose.msk.msra.mxu0 %vm365_vm2, %v7233_v38 }
0x3be5   :  { %v10876_v26 = vpop.eup %10875  ;;  %9986 = vmatprep.subr.msk.mxu0 %vm365_vm2, %v12442_v9 }
0x3be6   :  { %v7231_v7 = vpop.permute.xlu0 %7230  ;;  %v6730_v28 = vmul.f32 %v10876_v26, %v10872_v31 }
0x3be7   :  { %9979 = vmatmul.mubr.msk.f32.vlgmr.msra.gmra.mrb[76].mxu0 %vm365_vm2, %v7231_v7 }
0x3be8   :  { %9953 = vmatprep.mubr.msk.f32.mxu1 %vm365_vm2, %v6730_v28  ;;  %9987 = vmatpush3.xpose.msk.msra.mxu0 %vm365_vm2, %v12442_v9 }
0x3be9   :  { %9988 = vmatprep.mubr.msk.f32.mxu0 %vm365_vm2, %v6515_v19  ;;  %9954 = vmatmul.mubr.msk.f32.vlgmr.msra.gmra.mrb[72].mxu1 %vm365_vm2, %v6731_v34 }
0x3bea   :  { %9957 = vmatpush3.xpose.msk.msra.mxu1 %vm365_vm2, %v6823_v8  ;;  %9996 = vmatprep.subr.msk.mxu0 %vm365_vm2, %v7632_v55  ;;  %v7628_v33 = vpop.permute.xlu0 %7627 }
0x3beb   :  { %9958 = vmatprep.mubr.msk.f32.mxu1 %vm365_vm2, %v6819_v27  ;;  %9989 = vmatmul.mubr.msk.f32.vlgmr.msra.gmra.mrb[78].mxu0 %vm365_vm2, %v12448_v54 }
0x3bec   :  { %9997 = vmatpush3.xpose.msk.msra.mxu0 %vm365_vm2, %v7632_v55  ;;  %9998 = vmatprep.mubr.msk.f32.mxu0 %vm365_vm2, %v7628_v33 }
0x3bed   :  { %9959 = vmatmul.mubr.msk.f32.vlgmr.msra.gmra.mrb[74].mxu1 %vm365_vm2, %v6821_v14 }
0x3bee   :  { %v7837_v39 = vpop.permute.xlu0 %7836 }
0x3bef   :  { %9999 = vmatmul.mubr.msk.f32.vlgmr.msra.gmra.mrb[80].mxu0 %vm365_vm2, %v7630_v45  ;;  %10006 = vmatprep.subr.msk.mxu0 %vm365_vm2, %v7837_v39 }
0x3bf0   :  { %10007 = vmatpush3.xpose.msk.msra.mxu0 %vm365_vm2, %v7837_v39  ;;  %10008 = vmatprep.mubr.msk.f32.mxu0 %vm365_vm2, %v7833_v46 }
0x3bf1   :  { %10016 = vmatprep.subr.msk.mxu0 %vm365_vm2, %v8042_v41 }
0x3bf2   :  { %v7835_v1 = vpop.permute.xlu0 %7834 }
0x3bf3   :  { %10009 = vmatmul.mubr.msk.f32.vlgmr.msra.gmra.mrb[82].mxu0 %vm365_vm2, %v7835_v1 }
0x3bf4   :  { %10017 = vmatpush3.xpose.msk.msra.mxu0 %vm365_vm2, %v8042_v41 }
0x3bf6   :  { %v8038_v50 = vpop.permute.xlu0 %8037 }
0x3bf7   :  { %10018 = vmatprep.mubr.msk.f32.mxu0 %vm365_vm2, %v8038_v50 }
0x3bf8   :  { %10019 = vmatmul.mubr.msk.f32.vlgmr.msra.gmra.mrb[84].mxu0 %vm365_vm2, %v8040_v44 }
0x3cb3   :  { %v9970_v4 = vpop.f32.mrb[74].mxu0 }
0x3cb4   :  { %v7101_v63 = vpop.f32.mrb[75].mxu0  ;;  %v7111_v54 = vmul.f32 0.35355338, %v9970_v4 }
0x3cb5   :  { %v7110_v52 = vmul.f32 0.35355338, %v7101_v63 }
0x3cb6   :  { %v7115_v24 = vsel %vm365_vm2, %v7111_v54, -inf }
0x3cb7   :  { %v7112_v53 = vsel %vm365_vm2, %v7110_v52, -inf }
0x3cb8   :  { %7113 = vmax.xlane.f32.xlu0 %v7112_v53 }
0x3cba   :  { %v9980_v40 = vpop.f32.mrb[76].mxu0 }
0x3cbb   :  { %v7306_v20 = vpop.f32.mrb[77].mxu0  ;;  %v7316_v16 = vmul.f32 0.35355338, %v9980_v40 }
0x3cbc   :  { %v9955_v17 = vpop.f32.mrb[72].mxu1  ;;  %v7315_v12 = vmul.f32 0.35355338, %v7306_v20 }
0x3cbd   :  { %6817 = vst.msk [vmem:[#allocation2 + $0x8] sm:$0xff] %vm365_vm2, %v9955_v17  ;;  %v6807_v58 = vpop.f32.mrb[73].mxu1  ;;  %v7320_v56 = vsel %vm365_vm2, %v7316_v16, -inf }
0x3cbe   :  { %6816 = vst.msk [vmem:[#allocation2] sm:$0xff] %vm365_vm2, %v6807_v58  ;;  %v9990_v18 = vpop.f32.mrb[78].mxu0  ;;  %v7317_v43 = vsel %vm365_vm2, %v7315_v12, -inf }
0x3cbf   :  { %v7508_v47 = vpop.f32.mrb[79].mxu0  ;;  %v7518_v21 = vmul.f32 0.35355338, %v9990_v18 }
0x3cc0   :  { %v9960_v49 = vpop.f32.mrb[74].mxu1  ;;  %v7517_v14 = vmul.f32 0.35355338, %v7508_v47 }
0x3cc1   :  { %v12507_v2 = vmul.f32 0.35355338, %v9960_v49  ;;  %v6896_v60 = vpop.f32.mrb[75].mxu1  ;;  %v7522_v27 = vsel %vm365_vm2, %v7518_v21, -inf }
0x3cc2   :  { %v12509_v15 = vmul.f32 0.35355338, %v6896_v60  ;;  %v10000_v23 = vpop.f32.mrb[80].mxu0  ;;  %v7519_v30 = vsel %vm365_vm2, %v7517_v14, -inf }
0x3cc3   :  { %v7705_v11 = vpop.f32.mrb[81].mxu0  ;;  %v6910_v6 = vsel %vm365_vm2, %v12507_v2, -inf  ;;  %v7715_v5 = vmul.f32 0.35355338, %v10000_v23 }
0x3cc4   :  { %6911 = vmax.xlane.f32.xlu1 %v6910_v6  ;;  %v6907_v19 = vsel %vm365_vm2, %v12509_v15, -inf  ;;  %v7714_v0 = vmul.f32 0.35355338, %v7705_v11 }
0x3cc5   :  { %6908 = vmax.xlane.f32.xlu0 %v6907_v19  ;;  %v7719_v32 = vsel %vm365_vm2, %v7715_v5, -inf }
0x3cc6   :  { %v10010_v48 = vpop.f32.mrb[82].mxu0  ;;  %v7716_v55 = vsel %vm365_vm2, %v7714_v0, -inf }
0x3cc7   :  { %v7910_v22 = vpop.f32.mrb[83].mxu0  ;;  %v7920_v31 = vmul.f32 0.35355338, %v10010_v48 }
0x3cc8   :  { %7321 = vmax.xlane.f32.xlu1 %v7320_v56  ;;  %v12524_v37 = vmul.f32 0.35355338, %v7910_v22 }
0x3cc9   :  { %7116 = vmax.xlane.f32.xlu0 %v7115_v24  ;;  %v7924_v36 = vsel %vm365_vm2, %v7920_v31, -inf }
0x3cca   :  { %v7921_v10 = vsel %vm365_vm2, %v12524_v37, -inf }
0x3ccb   :  { %v10020_v8 = vpop.f32.mrb[84].mxu0 }
0x3ccc   :  { %7523 = vmax.xlane.f32.xlu1 %v7522_v27  ;;  %v8115_v62 = vpop.f32.mrb[85].mxu0  ;;  %v12521_v51 = vmul.f32 0.35355338, %v10020_v8 }
0x3ccd   :  { %7318 = vmax.xlane.f32.xlu0 %v7317_v43  ;;  %v12529_v38 = vmul.f32 0.35355338, %v8115_v62 }
0x3cce   :  { %v8129_v35 = vsel %vm365_vm2, %v12521_v51, -inf }
0x3ccf   :  { %v8126_v45 = vsel %vm365_vm2, %v12529_v38, -inf }
0x3cd0   :  { %7720 = vmax.xlane.f32.xlu1 %v7719_v32 }
0x3cd1   :  { %7520 = vmax.xlane.f32.xlu0 %v7519_v30 }
0x3cd4   :  { %7925 = vmax.xlane.f32.xlu1 %v7924_v36 }
0x3cd5   :  { %7717 = vmax.xlane.f32.xlu0 %v7716_v55 }
0x3cd8   :  { %8130 = vmax.xlane.f32.xlu1 %v8129_v35 }
0x3cd9   :  { %7922 = vmax.xlane.f32.xlu0 %v7921_v10 }
0x3cdd   :  { %8127 = vmax.xlane.f32.xlu0 %v8126_v45 }
0x3d45   :  { %v7114_v26 = vpop.xlane.xlu0 %7113 }
0x3d46   :  { %v7118_v7 = vsub.f32 %v7110_v52, %v7114_v26 }
0x3d48   :  { %v7120_v28 = vmul.f32 1.442695, %v7118_v7 }
0x3d4a   :  { %10877 = vpow2.f32 %v7120_v28 }
0x3d51   :  { %v6912_v34 = vpop.xlane.xlu1 %6911 }
0x3d52   :  { %v6909_v46 = vpop.xlane.xlu0 %6908 }
0x3d53   :  { %v6913_v43 = vsub.f32 %v12509_v15, %v6909_v46 }
0x3d54   :  { %v12535_v33 = vpop.eup %10877 }
0x3d55   :  { %v7322_v39 = vpop.xlane.xlu1 %7321  ;;  %v7124_v41 = vsel %vm365_vm2, %v12535_v33, 0.0  ;;  %v6915_v15 = vmul.f32 1.442695, %v6913_v43 }
0x3d56   :  { %v7324_v1 = vsub.f32 %v7316_v16, %v7322_v39  ;;  %v7117_v50 = vpop.xlane.xlu0 %7116  ;;  %7125 = vadd.xlane.f32.xlu0 %v7124_v41 }
0x3d57   :  { %v7119_v44 = vsub.f32 %v7111_v54, %v7117_v50 }
0x3d58   :  { %v7327_v4 = vmul.f32 1.442695, %v7324_v1 }
0x3d59   :  { %v7122_v63 = vmul.f32 1.442695, %v7119_v44  ;;  %v7524_v53 = vpop.xlane.xlu1 %7523 }
0x3d5a   :  { %v7526_v40 = vsub.f32 %v7518_v21, %v7524_v53  ;;  %v7319_v20 = vpop.xlane.xlu0 %7318 }
0x3d5b   :  { %10879 = vpow2.f32 %v7122_v63  ;;  %v7323_v52 = vsub.f32 %v7315_v12, %v7319_v20 }
0x3d5c   :  { %10881 = vpow2.f32 %v7327_v4  ;;  %v7529_v17 = vmul.f32 1.442695, %v7526_v40 }
0x3d5d   :  { %v7325_v58 = vmul.f32 1.442695, %v7323_v52  ;;  %v7721_v18 = vpop.xlane.xlu1 %7720 }
0x3d5e   :  { %v7723_v47 = vsub.f32 %v7715_v5, %v7721_v18  ;;  %v7521_v49 = vpop.xlane.xlu0 %7520 }
0x3d5f   :  { %10883 = vpow2.f32 %v7325_v58  ;;  %v7525_v60 = vsub.f32 %v7517_v14, %v7521_v49  ;;  %v6914_v14 = vsub.f32 %v12507_v2, %v6912_v34 }
0x3d60   :  { %10885 = vpow2.f32 %v7529_v17  ;;  %v7726_v23 = vmul.f32 1.442695, %v7723_v47 }
0x3d61   :  { %v7527_v16 = vmul.f32 1.442695, %v7525_v60  ;;  %v7926_v11 = vpop.xlane.xlu1 %7925  ;;  %v6917_v2 = vmul.f32 1.442695, %v6914_v14 }
0x3d62   :  { %v7928_v6 = vsub.f32 %v7920_v31, %v7926_v11  ;;  %v7718_v54 = vpop.xlane.xlu0 %7717 }
0x3d63   :  { %10887 = vpow2.f32 %v7527_v16  ;;  %v7722_v19 = vsub.f32 %v7714_v0, %v7718_v54 }
0x3d64   :  { %10889 = vpow2.f32 %v7726_v23  ;;  %v7931_v21 = vmul.f32 1.442695, %v7928_v6 }
0x3d65   :  { %v12539_v48 = vpop.eup %10879  ;;  %v7724_v22 = vmul.f32 1.442695, %v7722_v19  ;;  %v8131_v56 = vpop.xlane.xlu1 %8130 }
0x3d66   :  { %v8133_v12 = vsub.f32 %v12521_v51, %v8131_v56  ;;  %v7923_v24 = vpop.xlane.xlu0 %7922  ;;  %v7127_v5 = vsel %vm365_vm2, %v12539_v48, 0.0  ;;  %v12544_v8 = vpop.eup %10881 }
0x3d67   :  { %10891 = vpow2.f32 %v7724_v22  ;;  %v7927_v27 = vsub.f32 %v12524_v37, %v7923_v24  ;;  %7128 = vadd.xlane.f32.xlu1 %v7127_v5  ;;  %v7332_v51 = vsel %vm365_vm2, %v12544_v8, 0.0 }
0x3d68   :  { %10893 = vpow2.f32 %v7931_v21  ;;  %v8136_v31 = vmul.f32 1.442695, %v8133_v12 }
0x3d69   :  { %v12548_v62 = vpop.eup %10883  ;;  %v7929_v32 = vmul.f32 1.442695, %v7927_v27 }
0x3d6a   :  { %v8128_v0 = vpop.xlane.xlu0 %8127  ;;  %v7329_v30 = vsel %vm365_vm2, %v12548_v62, 0.0  ;;  %v12555_v36 = vpop.eup %10885 }
0x3d6b   :  { %10895 = vpow2.f32 %v7929_v32  ;;  %v8132_v37 = vsub.f32 %v12529_v38, %v8128_v0  ;;  %7330 = vadd.xlane.f32.xlu0 %v7329_v30  ;;  %7333 = vadd.xlane.f32.xlu1 %v7332_v51  ;;  %v7534_v45 = vsel %vm365_vm2, %v12555_v36, 0.0 }
0x3d6c   :  { %10897 = vpow2.f32 %v8136_v31 }
0x3d6d   :  { %v12558_v55 = vpop.eup %10887  ;;  %v8134_v35 = vmul.f32 1.442695, %v8132_v37 }
0x3d6e   :  { %v7531_v10 = vsel %vm365_vm2, %v12558_v55, 0.0  ;;  %v12564_v26 = vpop.eup %10889 }
0x3d6f   :  { %10899 = vpow2.f32 %v8134_v35  ;;  %7532 = vadd.xlane.f32.xlu0 %v7531_v10  ;;  %7535 = vadd.xlane.f32.xlu1 %v7534_v45  ;;  %v7731_v28 = vsel %vm365_vm2, %v12564_v26, 0.0 }
0x3d70   :  { %10901 = vpow2.f32 %v6917_v2 }
0x3d71   :  { %v12566_v38 = vpop.eup %10891  ;;  %10903 = vpow2.f32 %v6915_v15 }
0x3d72   :  { %v7728_v7 = vsel %vm365_vm2, %v12566_v38, 0.0  ;;  %v12572_v34 = vpop.eup %10893 }
0x3d73   :  { %7729 = vadd.xlane.f32.xlu0 %v7728_v7  ;;  %7732 = vadd.xlane.f32.xlu1 %v7731_v28  ;;  %v7936_v41 = vsel %vm365_vm2, %v12572_v34, 0.0 }
0x3d75   :  { %v12574_v46 = vpop.eup %10895 }
0x3d76   :  { %v7933_v39 = vsel %vm365_vm2, %v12574_v46, 0.0  ;;  %v12580_v1 = vpop.eup %10897 }
0x3d77   :  { %7934 = vadd.xlane.f32.xlu0 %v7933_v39  ;;  %7937 = vadd.xlane.f32.xlu1 %v7936_v41  ;;  %v8141_v63 = vsel %vm365_vm2, %v12580_v1, 0.0 }
0x3d79   :  { %v12582_v50 = vpop.eup %10899 }
0x3d7a   :  { %v10902_v44 = vpop.eup %10901  ;;  %v8138_v4 = vsel %vm365_vm2, %v12582_v50, 0.0 }
0x3d7b   :  { %v10904_v53 = vpop.eup %10903  ;;  %8139 = vadd.xlane.f32.xlu0 %v8138_v4  ;;  %8142 = vadd.xlane.f32.xlu1 %v8141_v63  ;;  %v6922_v20 = vsel %vm365_vm2, %v10902_v44, 0.0 }
0x3d7c   :  { %v6919_v40 = vsel %vm365_vm2, %v10904_v53, 0.0 }
0x3d7f   :  { %6920 = vadd.xlane.f32.xlu0 %v6919_v40  ;;  %6923 = vadd.xlane.f32.xlu1 %v6922_v20 }
0x3d90   :  { %7134 = vrot.lane.b32.xlu1 %v12421_v59, %s11007_s28 }
0x3d94   :  { %7339 = vrot.lane.b32.xlu1 %v12421_v59, %s11008_s30 }
0x3d95   :  { %6929 = vrot.lane.b32.xlu0 %v12421_v59, %s11005_s26 }
0x3d98   :  { %7541 = vrot.lane.b32.xlu1 %v12442_v9, %s10999_s29 }
0x3d99   :  { %7738 = vrot.lane.b32.xlu0 %v12442_v9, %s11005_s26 }
0x3d9c   :  { %7943 = vrot.lane.b32.xlu1 %v12442_v9, %s11007_s28 }
0x3d9d   :  { %8148 = vrot.lane.b32.xlu0 %v12442_v9, %s11008_s30 }
0x3da0   :  { %10693 = vrot.lane.b32.xlu1 %v12393_v57, %s11010_s12 }
0x3da1   :  { %10688 = vrot.lane.b32.xlu0 %v12399_v25, %s11010_s12 }
0x3de3   :  { %v7126_v52 = vpop.xlane.xlu0 %7125 }
0x3de4   :  { %10905 = vrcp.f32 %v7126_v52 }
0x3dee   :  { %v10906_v19 = vpop.eup %10905 }
0x3def   :  { %v7132_v27 = vmul.f32 %v10906_v19, %v12535_v33 }
0x3df4   :  { %v7129_v59 = vpop.xlane.xlu1 %7128 }
0x3df8   :  { %v7331_v17 = vpop.xlane.xlu0 %7330  ;;  %v7334_v58 = vpop.xlane.xlu1 %7333 }
0x3dfc   :  { %v7533_v18 = vpop.xlane.xlu0 %7532  ;;  %v7536_v47 = vpop.xlane.xlu1 %7535 }
0x3e00   :  { %v7730_v49 = vpop.xlane.xlu0 %7729  ;;  %v7733_v60 = vpop.xlane.xlu1 %7732 }
0x3e04   :  { %v7935_v23 = vpop.xlane.xlu0 %7934  ;;  %v7938_v16 = vpop.xlane.xlu1 %7937 }
0x3e08   :  { %v8140_v11 = vpop.xlane.xlu0 %8139  ;;  %v8143_v6 = vpop.xlane.xlu1 %8142 }
0x3e0c   :  { %v6921_v9 = vpop.xlane.xlu0 %6920  ;;  %v6924_v54 = vpop.xlane.xlu1 %6923 }
0x3e0d   :  { %10907 = vrcp.f32 %v6921_v9 }
0x3e0e   :  { %10909 = vrcp.f32 %v6924_v54 }
0x3e0f   :  { %10911 = vrcp.f32 %v7129_v59 }
0x3e10   :  { %v6930_v25 = vpop.permute.xlu0 %6929  ;;  %10913 = vrcp.f32 %v7331_v17  ;;  %v7135_v57 = vpop.permute.xlu1 %7134 }
0x3e11   :  { %9961 = vmatprep.subr.mxu1 %v6930_v25  ;;  %10915 = vrcp.f32 %v7334_v58 }
0x3e12   :  { %9962 = vmatpush3.msra.mxu1 %v6930_v25  ;;  %10917 = vrcp.f32 %v7533_v18 }
0x3e13   :  { %9971 = vmatprep.subr.mxu1 %v7135_v57  ;;  %10919 = vrcp.f32 %v7536_v47 }
0x3e14   :  { %10921 = vrcp.f32 %v7730_v49  ;;  %v7340_v5 = vpop.permute.xlu1 %7339 }
0x3e15   :  { %10923 = vrcp.f32 %v7733_v60 }
0x3e16   :  { %10925 = vrcp.f32 %v7935_v23 }
0x3e17   :  { %v10908_v21 = vpop.eup %10907  ;;  %10927 = vrcp.f32 %v7938_v16 }
0x3e18   :  { %v10910_v22 = vpop.eup %10909  ;;  %v6927_v56 = vmul.f32 %v10908_v21, %v10904_v53  ;;  %v7542_v30 = vpop.permute.xlu1 %7541  ;;  %10929 = vrcp.f32 %v8140_v11 }
0x3e19   :  { %v6928_v12 = vmul.f32 %v10910_v22, %v10902_v44  ;;  %v10912_v24 = vpop.eup %10911  ;;  %10931 = vrcp.f32 %v8143_v6 }
0x3e1a   :  { %9963 = vmatprep.mubr.msk.f32.mxu1 %vm365_vm2, %v6927_v56  ;;  %v10914_v14 = vpop.eup %10913  ;;  %v7133_v43 = vmul.f32 %v10912_v24, %v12539_v48 }
0x3e1b   :  { %9964 = vmatmul.mubr.msk.f32.vlgmr.msra.gmra.mrb[76].mxu1 %vm365_vm2, %v6928_v12  ;;  %v10916_v31 = vpop.eup %10915  ;;  %v7337_v32 = vmul.f32 %v10914_v14, %v12548_v62  ;;  %v7739_v62 = vpop.permute.xlu0 %7738 }
0x3e1c   :  { %9972 = vmatpush3.msra.mxu1 %v7135_v57  ;;  %9973 = vmatprep.mubr.msk.f32.mxu1 %vm365_vm2, %v7132_v27  ;;  %v10918_v0 = vpop.eup %10917  ;;  %v7338_v33 = vmul.f32 %v10916_v31, %v12544_v8  ;;  %v7944_v10 = vpop.permute.xlu1 %7943 }
0x3e1d   :  { %9981 = vmatprep.subr.mxu1 %v7340_v5  ;;  %v10920_v51 = vpop.eup %10919  ;;  %v7539_v48 = vmul.f32 %v10918_v0, %v12558_v55 }
0x3e1e   :  { %v10922_v37 = vpop.eup %10921  ;;  %v7540_v2 = vmul.f32 %v10920_v51, %v12555_v36 }
0x3e1f   :  { %9974 = vmatmul.mubr.msk.f32.vlgmr.msra.gmra.mrb[78].mxu1 %vm365_vm2, %v7133_v43  ;;  %v10924_v15 = vpop.eup %10923  ;;  %v7736_v35 = vmul.f32 %v10922_v37, %v12566_v38  ;;  %v8149_v36 = vpop.permute.xlu0 %8148 }
0x3e20   :  { %9982 = vmatpush3.msra.mxu1 %v7340_v5  ;;  %9983 = vmatprep.mubr.msk.f32.mxu1 %vm365_vm2, %v7337_v32  ;;  %v10926_v8 = vpop.eup %10925  ;;  %v7737_v55 = vmul.f32 %v10924_v15, %v12564_v26  ;;  %v10694_v44 = vpop.permute.xlu1 %10693 }
0x3e21   :  { %9991 = vmatprep.subr.mxu1 %v7542_v30  ;;  %v10928_v45 = vpop.eup %10927  ;;  %v7941_v7 = vmul.f32 %v10926_v8, %v12574_v46  ;;  %v10696_v53 = vunpack.i.h.bf16 %v10694_v44  ;;  %v10695_v40 = vunpack.i.l.bf16 %v10694_v44 }
0x3e22   :  { %v10930_v28 = vpop.eup %10929  ;;  %v7942_v38 = vmul.f32 %v10928_v45, %v12572_v34 }
0x3e23   :  { %9984 = vmatmul.mubr.msk.f32.vlgmr.msra.gmra.mrb[80].mxu1 %vm365_vm2, %v7338_v33  ;;  %v10932_v39 = vpop.eup %10931  ;;  %v8146_v41 = vmul.f32 %v10930_v28, %v12582_v50  ;;  %v10689_v46 = vpop.permute.xlu0 %10688  ;;  %v10416_v20 = vpack.c.bf16 %v10696_v53, %v10695_v40 }
0x3e24   :  { %9992 = vmatpush3.msra.mxu1 %v7542_v30  ;;  %9993 = vmatprep.mubr.msk.f32.mxu1 %vm365_vm2, %v7539_v48  ;;  %v8147_v26 = vmul.f32 %v10932_v39, %v12580_v1  ;;  %v10691_v4 = vunpack.i.h.bf16 %v10689_v46  ;;  %v10690_v63 = vunpack.i.l.bf16 %v10689_v46 }
0x3e25   :  { %10001 = vmatprep.subr.mxu1 %v7739_v62 }
0x3e26   :  { %v10412_v34 = vpack.c.bf16 %v10691_v4, %v10690_v63 }
0x3e27   :  { %9994 = vmatmul.mubr.msk.f32.vlgmr.msra.gmra.mrb[82].mxu1 %vm365_vm2, %v7540_v2 }
0x3e28   :  { %10002 = vmatpush3.msra.mxu1 %v7739_v62  ;;  %10003 = vmatprep.mubr.msk.f32.mxu1 %vm365_vm2, %v7736_v35 }
0x3e29   :  { %10011 = vmatprep.subr.mxu1 %v7944_v10  ;;  %10413 = vmatprep.subr.bf16.mxu0 %v10412_v34 }
0x3e2a   :  { %10415 = vmatpush3.bf16.msra.mxu0 %v10412_v34 }
0x3e2b   :  { %10004 = vmatmul.mubr.msk.f32.vlgmr.msra.gmra.mrb[84].mxu1 %vm365_vm2, %v7737_v55  ;;  %10417 = vmatprep.subr.bf16.mxu0 %v10416_v20 }
0x3e2c   :  { %10012 = vmatpush3.msra.mxu1 %v7944_v10  ;;  %10013 = vmatprep.mubr.msk.f32.mxu1 %vm365_vm2, %v7941_v7 }
0x3e2d   :  { %10021 = vmatprep.subr.mxu1 %v8149_v36 }
0x3e2e   :  { %10419 = vmatpush3.bf16.msra.mxu0 %v10416_v20 }
0x3e2f   :  { %10014 = vmatmul.mubr.msk.f32.vlgmr.msra.gmra.mrb[86].mxu1 %vm365_vm2, %v7942_v38 }
0x3e30   :  { %10022 = vmatpush3.msra.mxu1 %v8149_v36  ;;  %10023 = vmatprep.mubr.msk.f32.mxu1 %vm365_vm2, %v8146_v41 }
0x3e33   :  { %10024 = vmatmul.mubr.msk.f32.vlgmr.msra.gmra.mrb[88].mxu1 %vm365_vm2, %v8147_v26 }
0x3eee   :  { %v9965_v50 = vpop.f32.mrb[76].mxu1 }
0x3eef   :  { %7017 = vrot.lane.b32.xlu0 %v9965_v50, %s11011_s13  ;;  %v7004_v52 = vpop.f32.mrb[77].mxu1 }
0x3ef0   :  { %7015 = vrot.lane.b32.xlu1 %v7004_v52, %s11011_s13 }
0x3ef2   :  { %v9975_v1 = vpop.f32.mrb[78].mxu1 }
0x3ef3   :  { %v7209_v59 = vpop.f32.mrb[79].mxu1 }
0x3ef4   :  { %7222 = vrot.lane.b32.xlu1 %v9975_v1, %s11009_s11 }
0x3ef6   :  { %v9985_v17 = vpop.f32.mrb[80].mxu1 }
0x3ef7   :  { %v7414_v58 = vpop.f32.mrb[81].mxu1 }
0x3ef8   :  { %7220 = vrot.lane.b32.xlu1 %v7209_v59, %s11009_s11  ;;  %7425 = vrot.lane.b32.xlu0 %v7414_v58, %s11012_s14  ;;  %v8956_v59 = vld [vmem:[%s12832_s4 + $0x60] sm:$0xff] }
0x3efa   :  { %v9995_v18 = vpop.f32.mrb[82].mxu1 }
0x3efb   :  { %7626 = vst.msk [vmem:[#allocation2 + $0x18] sm:$0xff] %vm365_vm2, %v9995_v18  ;;  %v7616_v47 = vpop.f32.mrb[83].mxu1  ;;  %v8958_v18 = vld [vmem:[%s12832_s4 + $0x70] sm:$0xff] }
0x3efc   :  { %7625 = vst.msk [vmem:[#allocation2 + $0x10] sm:$0xff] %vm365_vm2, %v7616_v47  ;;  %7427 = vrot.lane.b32.xlu1 %v9985_v17, %s11012_s14  ;;  %v8957_v17 = vld [vmem:[%s12832_s4 + $0x68] sm:$0xff]  ;;  %v8959_v47 = vld [vmem:[%s12832_s4 + $0x78] sm:$0xff] }
0x3efd   :  { %v10420_v58 = vpack.c.bf16 %v8957_v17, %v8956_v59  ;;  %v8975_v59 = vld [vmem:[%s12834_s6 + $0x1f8] sm:$0xff] }
0x3efe   :  { %v10005_v49 = vpop.f32.mrb[84].mxu1 }
0x3eff   :  { %v7813_v60 = vpop.f32.mrb[85].mxu1  ;;  %10421 = vmatprep.subr.bf16.mxu1 %v10420_v58 }
0x3f00   :  { %7826 = vrot.lane.b32.xlu1 %v10005_v49, %s11011_s13  ;;  %7824 = vrot.lane.b32.xlu0 %v7813_v60, %s11011_s13  ;;  %v10424_v49 = vpack.c.bf16 %v8959_v47, %v8958_v18  ;;  %v8960_v60 = vld [vmem:[%s12834_s6 + $0x180] sm:$0xff] }
0x3f01   :  { %10423 = vmatpush3.bf16.msra.mxu1 %v10420_v58 }
0x3f02   :  { %v10015_v23 = vpop.f32.mrb[86].mxu1  ;;  %10425 = vmatprep.subr.bf16.mxu1 %v10424_v49 }
0x3f03   :  { %v8018_v16 = vpop.f32.mrb[87].mxu1 }
0x3f04   :  { %8031 = vrot.lane.b32.xlu0 %v10015_v23, %s11009_s11  ;;  %v8961_v23 = vld [vmem:[%s12834_s6 + $0x188] sm:$0xff] }
0x3f05   :  { %10427 = vmatpush3.bf16.msra.mxu1 %v10424_v49 }
0x3f06   :  { %v10025_v11 = vpop.f32.mrb[88].mxu1 }
0x3f07   :  { %v8223_v6 = vpop.f32.mrb[89].mxu1 }
0x3f08   :  { %8029 = vrot.lane.b32.xlu0 %v8018_v16, %s11009_s11  ;;  %8234 = vrot.lane.b32.xlu1 %v8223_v6, %s11012_s14  ;;  %v8962_v16 = vld [vmem:[%s12834_s6 + $0x190] sm:$0xff]  ;;  %v8963_v6 = vld [vmem:[%s12834_s6 + $0x198] sm:$0xff] }
0x3f0c   :  { %8236 = vrot.lane.b32.xlu0 %v10025_v11, %s11012_s14  ;;  %8258 = vrot.lane.b32.xlu1 %v12404_v29, %s11010_s12  ;;  %v10428_v11 = vpack.c.bf16 %v8961_v23, %v8960_v60 }
0x3f0e   :  { %10429 = vmatprep.subr.bf16.mxu0 %v10428_v11 }
0x3f61   :  { %v7018_v9 = vpop.permute.xlu0 %7017 }
0x3f62   :  { %7022 = vst.msk [vmem:[#allocation2 + $0x8] sm:$0xff] %vm715_vm5, %v7018_v9  ;;  %v7016_v54 = vpop.permute.xlu1 %7015  ;;  %v10432_v9 = vpack.c.bf16 %v8963_v6, %v8962_v16 }
0x3f63   :  { %7021 = vst.msk [vmem:[#allocation2] sm:$0xff] %vm715_vm5, %v7016_v54  ;;  %v8964_v54 = vld [vmem:[%s12834_s6 + $0x1a0] sm:$0xff] }
0x3f66   :  { %v7223_v25 = vpop.permute.xlu1 %7222 }
0x3f67   :  { %7227 = vst.msk [vmem:[#allocation2 + $0x8] sm:$0xff] %vm894_vm6, %v7223_v25  ;;  %v8965_v25 = vld [vmem:[%s12834_s6 + $0x1a8] sm:$0xff] }
0x3f6a   :  { %v7426_v57 = vpop.permute.xlu0 %7425  ;;  %v7221_v19 = vpop.permute.xlu1 %7220 }
0x3f6b   :  { %7226 = vst.msk [vmem:[#allocation2] sm:$0xff] %vm894_vm6, %v7221_v19  ;;  %v8966_v19 = vld [vmem:[%s12834_s6 + $0x1b0] sm:$0xff] }
0x3f6c   :  { %7431 = vst.msk [vmem:[#allocation2] sm:$0xff] %vm1073_vm7, %v7426_v57  ;;  %v10436_v57 = vpack.c.bf16 %v8965_v25, %v8964_v54 }
0x3f6e   :  { %v7428_v21 = vpop.permute.xlu1 %7427 }
0x3f6f   :  { %7432 = vst.msk [vmem:[#allocation2 + $0x8] sm:$0xff] %vm1073_vm7, %v7428_v21  ;;  %v8967_v21 = vld [vmem:[%s12834_s6 + $0x1b8] sm:$0xff] }
0x3f72   :  { %v7825_v22 = vpop.permute.xlu0 %7824  ;;  %v7827_v29 = vpop.permute.xlu1 %7826 }
0x3f73   :  { %7830 = vst.msk [vmem:[#allocation2 + $0x10] sm:$0xff] %vm715_vm5, %v7825_v22  ;;  %7831 = vst.msk [vmem:[#allocation2 + $0x18] sm:$0xff] %vm715_vm5, %v7827_v29  ;;  %v8242_v56 = vld [vmem:[#allocation2] sm:$0xff]  ;;  %v10440_v22 = vpack.c.bf16 %v8967_v21, %v8966_v19 }
0x3f74   :  { %10034 = vmatprep.mubr.msk.f32.mxu0 %vm50_vm0, %v8242_v56  ;;  %v8968_v29 = vld [vmem:[%s12834_s6 + $0x1c0] sm:$0xff]  ;;  %v8969_v56 = vld [vmem:[%s12834_s6 + $0x1c8] sm:$0xff] }
0x3f76   :  { %v8032_v12 = vpop.permute.xlu0 %8031  ;;  %v8243_v24 = vld [vmem:[#allocation2 + $0x8] sm:$0xff] }
0x3f77   :  { %8036 = vst.msk [vmem:[#allocation2 + $0x18] sm:$0xff] %vm894_vm6, %v8032_v12  ;;  %10035 = vmatmul.mubr.msk.f32.vlgmr.msra.gmra.mrb[86].mxu0 %vm50_vm0, %v8243_v24  ;;  %v10444_v12 = vpack.c.bf16 %v8969_v56, %v8968_v29  ;;  %v8970_v24 = vld [vmem:[%s12834_s6 + $0x1d0] sm:$0xff] }
0x3f78   :  { %10431 = vmatpush3.bf16.msra.mxu0 %v10428_v11 }
0x3f79   :  { %10433 = vmatprep.subr.bf16.mxu0 %v10432_v9 }
0x3f7a   :  { %v8030_v5 = vpop.permute.xlu0 %8029  ;;  %v8235_v27 = vpop.permute.xlu1 %8234 }
0x3f7b   :  { %8035 = vst.msk [vmem:[#allocation2 + $0x10] sm:$0xff] %vm894_vm6, %v8030_v5  ;;  %v8971_v5 = vld [vmem:[%s12834_s6 + $0x1d8] sm:$0xff] }
0x3f7c   :  { %8240 = vst.msk [vmem:[#allocation2 + $0x10] sm:$0xff] %vm1073_vm7, %v8235_v27  ;;  %10435 = vmatpush3.bf16.msra.mxu0 %v10432_v9  ;;  %v10448_v27 = vpack.c.bf16 %v8971_v5, %v8970_v24 }
0x3f7d   :  { %10437 = vmatprep.subr.bf16.mxu0 %v10436_v57 }
0x3f7e   :  { %v8237_v14 = vpop.permute.xlu0 %8236  ;;  %v8259_v32 = vpop.permute.xlu1 %8258 }
0x3f7f   :  { %8241 = vst.msk [vmem:[#allocation2 + $0x18] sm:$0xff] %vm1073_vm7, %v8237_v14  ;;  %v8972_v14 = vld [vmem:[%s12834_s6 + $0x1e0] sm:$0xff] }
0x3f80   :  { %10439 = vmatpush3.bf16.msra.mxu0 %v10436_v57 }
0x3f81   :  { %10441 = vmatprep.subr.bf16.mxu0 %v10440_v22 }
0x3f83   :  { %v8244_v43 = vld [vmem:[#allocation2 + $0x10] sm:$0xff] }
0x3f84   :  { %10037 = vmatprep.mubr.msk.f32.mxu0 %vm50_vm0, %v8244_v43  ;;  %10443 = vmatpush3.bf16.msra.mxu0 %v10440_v22  ;;  %v8973_v43 = vld [vmem:[%s12834_s6 + $0x1e8] sm:$0xff] }
0x3f85   :  { %10445 = vmatprep.subr.bf16.mxu0 %v10444_v12 }
0x3f86   :  { %v8245_v31 = vld [vmem:[#allocation2 + $0x18] sm:$0xff] }
0x3f87   :  { %10038 = vmatmul.mubr.msk.f32.gmra.mrb[88].mxu0 %vm50_vm0, %v8245_v31  ;;  %v10452_v31 = vpack.c.bf16 %v8973_v43, %v8972_v14 }
0x3f88   :  { %10447 = vmatpush3.bf16.msra.mxu0 %v10444_v12 }
0x3f89   :  { %10449 = vmatprep.subr.bf16.mxu0 %v10448_v27 }
0x3f8c   :  { %10451 = vmatpush3.bf16.msra.mxu0 %v10448_v27 }
0x3f8d   :  { %10453 = vmatprep.subr.bf16.mxu0 %v10452_v31 }
0x3f90   :  { %10455 = vmatpush3.bf16.msra.mxu0 %v10452_v31 }
0x404a   :  { %v10036_v0 = vpop.f32.mrb[86].mxu0 }
0x404b   :  { %v8345_v30 = vadd.f32 %v10036_v0, %v8259_v32  ;;  %v8339_v33 = vpop.f32.mrb[87].mxu0 }
0x404c   :  { %v8340_v51 = vadd.f32 %v8339_v33, %v8259_v32 }
0x404d   :  { %v12667_v48 = vadd.f32 %v8345_v30, %v11994_v42 }
0x404e   :  { %v12670_v37 = vadd.f32 %v8340_v51, %v11997_v61 }
0x404f   :  { %v8365_v62 = vsel %vm50_vm0, %v12667_v48, 0.0 }
0x4050   :  { %8366 = vadd.xlane.f32.xlu1 %v8365_v62  ;;  %v8362_v2 = vsel %vm50_vm0, %v12670_v37, 0.0 }
0x4051   :  { %8363 = vadd.xlane.f32.xlu0 %v8362_v2 }
0x405a   :  { %v10039_v15 = vpop.f32.mrb[88].mxu0 }
0x405b   :  { %v8349_v35 = vpop.f32.mrb[89].mxu0  ;;  %v8355_v8 = vadd.f32 %v10039_v15, %v8259_v32  ;;  %v8954_v15 = vld [vmem:[%s12836_s8 + $0xe] ss:$0 sm:$0xff] }
0x405c   :  { %v8350_v10 = vadd.f32 %v8349_v35, %v8259_v32 }
0x405d   :  { %v12680_v42 = vadd.f32 %v8355_v8, %v12022_v3 }
0x405e   :  { %v12677_v55 = vadd.f32 %v8350_v10, %v12025_v13 }
0x405f   :  { %v8371_v45 = vsel %vm50_vm0, %v12680_v42, 0.0 }
0x4060   :  { %v8368_v61 = vsel %vm50_vm0, %v12677_v55, 0.0 }
0x4061   :  { %8369 = vadd.xlane.f32.xlu0 %v8368_v61 }
0x4065   :  { %8372 = vadd.xlane.f32.xlu0 %v8371_v45 }
0x40dd   :  { %v8367_v7 = vpop.xlane.xlu1 %8366 }
0x40de   :  { %v8375_v28 = vmul.f32 0.03125, %v8367_v7  ;;  %v8364_v36 = vpop.xlane.xlu0 %8363  ;;  %v8955_v7 = vld [vmem:[%s12836_s8 + $0xf] ss:$0 sm:$0xff] }
0x40df   :  { %v8374_v38 = vmul.f32 0.03125, %v8364_v36 }
0x40e0   :  { %v12687_v39 = vsub.f32 %v12667_v48, %v8375_v28 }
0x40e1   :  { %v12690_v13 = vsub.f32 %v12670_v37, %v8374_v38 }
0x40e2   :  { %v8383_v3 = vmul.f32 %v12687_v39, %v12687_v39 }
0x40e3   :  { %v8382_v41 = vmul.f32 %v12690_v13, %v12690_v13 }
0x40e4   :  { %v8389_v26 = vsel %vm50_vm0, %v8383_v3, 0.0 }
0x40e5   :  { %8390 = vadd.xlane.f32.xlu1 %v8389_v26  ;;  %v8386_v46 = vsel %vm50_vm0, %v8382_v41, 0.0 }
0x40e6   :  { %8387 = vadd.xlane.f32.xlu0 %v8386_v46 }
0x40ee   :  { %v8370_v44 = vpop.xlane.xlu0 %8369 }
0x40ef   :  { %v8376_v4 = vmul.f32 0.03125, %v8370_v44 }
0x40f1   :  { %v12699_v63 = vsub.f32 %v12677_v55, %v8376_v4 }
0x40f2   :  { %v8373_v53 = vpop.xlane.xlu0 %8372 }
0x40f3   :  { %v8377_v40 = vmul.f32 0.03125, %v8373_v53  ;;  %v8384_v34 = vmul.f32 %v12699_v63, %v12699_v63 }
0x40f5   :  { %v12704_v20 = vsub.f32 %v12680_v42, %v8377_v40  ;;  %v8392_v50 = vsel %vm50_vm0, %v8384_v34, 0.0 }
0x40f6   :  { %8393 = vadd.xlane.f32.xlu0 %v8392_v50 }
0x40f7   :  { %v8385_v52 = vmul.f32 %v12704_v20, %v12704_v20 }
0x40f9   :  { %v8395_v1 = vsel %vm50_vm0, %v8385_v52, 0.0 }
0x40fa   :  { %8396 = vadd.xlane.f32.xlu1 %v8395_v1  ;;  %v8974_v1 = vld [vmem:[%s12834_s6 + $0x1f0] sm:$0xff]  ;;  %s11013_s6 = smov [#allocation3]  }
0x40fb   :  { %s8663_s1 = sshll.u32 %s11013_s6, 4  ;;  %s8664_s1 = int_to_ptr.vmem [resolvable:$true] %s8663_s1 }
0x40fc   :  { %p10956_p1 = scmp.lt.s32.totalorder %s8664_s1, %s8664_s1 }
0x4172   :  { %v8391_v32 = vpop.xlane.xlu1 %8390 }
0x4173   :  { %v8399_v0 = vmul.f32 0.03125, %v8391_v32  ;;  %v8388_v30 = vpop.xlane.xlu0 %8387 }
0x4174   :  { %v8398_v33 = vmul.f32 0.03125, %v8388_v30 }
0x4175   :  { %v8403_v51 = vadd.f32 1e-05, %v8399_v0 }
0x4176   :  { %v8402_v62 = vadd.f32 1e-05, %v8398_v33 }
0x4177   :  { %10933 = vrsqrt.f32 %v8403_v51 }
0x4178   :  { %10935 = vrsqrt.f32 %v8402_v62 }
0x4181   :  { %v10934_v2 = vpop.eup %10933 }
0x4182   :  { %v10936_v35 = vpop.eup %10935  ;;  %v8411_v8 = vmul.f32 %v10934_v2, %v12687_v39 }
0x4183   :  { %v8394_v10 = vpop.xlane.xlu0 %8393  ;;  %v8410_v61 = vmul.f32 %v10936_v35, %v12690_v13 }
0x4184   :  { %v8400_v45 = vmul.f32 0.03125, %v8394_v10  ;;  %v8419_v28 = vmul.f32 %v8954_v15, %v8411_v8 }
0x4185   :  { %v8418_v36 = vmul.f32 %v8954_v15, %v8410_v61 }
0x4186   :  { %v8404_v38 = vadd.f32 1e-05, %v8400_v45  ;;  %v8427_v46 = vadd.f32 %v8955_v7, %v8419_v28 }
0x4187   :  { %v8397_v3 = vpop.xlane.xlu1 %8396  ;;  %v8426_v41 = vadd.f32 %v8955_v7, %v8418_v36 }
0x4188   :  { %10937 = vrsqrt.f32 %v8404_v38  ;;  %v8401_v26 = vmul.f32 0.03125, %v8397_v3 }
0x4189   :  { %10048 = vmatprep.mubr.msk.f32.mxu1 %vm50_vm0, %v8426_v41 }
0x418a   :  { %v8405_v44 = vadd.f32 1e-05, %v8401_v26  ;;  %10049 = vmatmul.mubr.msk.f32.vlgmr.msra.gmra.mrb[90].mxu1 %vm50_vm0, %v8427_v46 }
0x418c   :  { %10939 = vrsqrt.f32 %v8405_v44 }
0x4192   :  { %v10938_v39 = vpop.eup %10937 }
0x4193   :  { %v8412_v13 = vmul.f32 %v10938_v39, %v12699_v63  ;;  %v10456_v63 = vpack.c.bf16 %v8975_v59, %v8974_v1 }
0x4195   :  { %v8420_v4 = vmul.f32 %v8954_v15, %v8412_v13  ;;  %10457 = vmatprep.subr.bf16.mxu0 %v10456_v63 }
0x4196   :  { %v10940_v53 = vpop.eup %10939  ;;  %10459 = vmatpush3.bf16.msra.mxu0 %v10456_v63 }
0x4197   :  { %v8428_v40 = vadd.f32 %v8955_v7, %v8420_v4  ;;  %v8413_v34 = vmul.f32 %v10940_v53, %v12704_v20  ;;  %v8976_v20 = vld [vmem:[%s12833_s5 + $0x3] ss:$0 sm:$0xff]  ;;  %s10951_s5 = scalar_lea.vmem %s8664_s1, 256 }
0x4198   :  { %p10952_p0 = scmp.ne.s32.totalorder %s8664_s1, %s10951_s5  ;;  %p10957_p2 = scmp.lt.s32.totalorder %s10951_s5, %s10951_s5 }
0x4199   :  { %10051 = vmatprep.mubr.msk.f32.mxu1 %vm50_vm0, %v8428_v40  ;;  %v8421_v50 = vmul.f32 %v8954_v15, %v8413_v34 }
0x419a   :  { %p10958_p3 = por %p10957_p2, %p10956_p1 }
0x419b   :  { %v8429_v52 = vadd.f32 %v8955_v7, %v8421_v50 }
0x419c   :  { %p10959_p4 = pnand %p10958_p3, %p10952_p0 }
0x419d   :  { %10052 = vmatmul.mubr.msk.f32.gmra.mrb[92].mxu1 %vm50_vm0, %v8429_v52 }
0x425d   :  { %v10050_v17 = vpop.f32.mrb[90].mxu1 }
0x425e   :  { %v8542_v58 = vadd.f32 %v10050_v17, %v8976_v20  ;;  %v8536_v18 = vpop.f32.mrb[91].mxu1 }
0x425f   :  { %v8537_v47 = vadd.f32 %v8976_v20, %v8536_v18 }
0x4260   :  { %v8556_v60 = vmax.f32 %v8542_v58, 0.0 }
0x4261   :  { %v8555_v49 = vmax.f32 %v8537_v47, 0.0 }
0x4263   :  { %10086 = vmatprep.mubr.f32.mxu0 %v8555_v49 }
0x4264   :  { %10087 = vmatmul.mubr.f32.vlgmr.msra.gmra.mrb[90].mxu0 %v8556_v60 }
0x4270   :  { %v10053_v23 = vpop.f32.mrb[92].mxu1 }
0x4271   :  { %v8552_v16 = vadd.f32 %v10053_v23, %v8976_v20  ;;  %v8546_v11 = vpop.f32.mrb[93].mxu1 }
0x4272   :  { %v8547_v6 = vadd.f32 %v8976_v20, %v8546_v11 }
0x4273   :  { %v8558_v54 = vmax.f32 %v8552_v16, 0.0 }
0x4274   :  { %v8557_v9 = vmax.f32 %v8547_v6, 0.0 }
0x4276   :  { %10089 = vmatprep.mubr.f32.mxu0 %v8557_v9 }
0x4277   :  { %10090 = vmatmul.mubr.f32.gmra.mrb[92].mxu0 %v8558_v54 }
0x4278   :  { %10962 = shalt.err (!%p10959_p4)
}
0x4279   :  { %s10963_s29 = scalar_lea.hbm %s12837_s9, 256 }
0x427a   :  { %p10964_p5 = scmp.ne.s32.totalorder %s12837_s9, %s10963_s29  ;;  %p10967_p6 = scmp.lt.u32.totalorder %s10963_s29, %s12837_s9 }
0x427c   :  { %p10969_p7 = pnand %p10967_p6, %p10964_p5 }
0x427e   :  { %10972 = shalt.err (!%p10969_p7)
}
0x427f   :  { %s11014_s28 = smov 128   ;;  %v8981_v25 = vld [vmem:[%s12835_s7 + $0x3] ss:$0 sm:$0xff] }
0x4280   :  { %8669 = dma.vmem_to_hbm [thread:$0]  %s8664_s1, 256, %s12837_s9, [#allocation4], %s11014_s28, %s11014_s28, %s11011_s13  }
0x4281   :  { %s11015_s9 = smov [#allocation5]  }
0x4282   :  { %s8675_s22 = sshll.u32 %s11015_s9, 4  ;;  %s8676_s22 = int_to_ptr.vmem [resolvable:$true] %s8675_s22 }
0x4283   :  { %s10973_s7 = scalar_lea.vmem %s8676_s22, 512  ;;  %p10978_p9 = scmp.lt.s32.totalorder %s8676_s22, %s8676_s22 }
0x4284   :  { %p10974_p8 = scmp.ne.s32.totalorder %s8676_s22, %s10973_s7  ;;  %p10979_p10 = scmp.lt.s32.totalorder %s10973_s7, %s10973_s7 }
0x4286   :  { %p10980_p11 = por %p10979_p10, %p10978_p9 }
0x4288   :  { %p10981_p12 = pnand %p10980_p11, %p10974_p8 }
0x4337   :  { %v10088_v57 = vpop.f32.mrb[90].mxu0 }
0x4338   :  { %v8635_v19 = vadd.f32 %v10088_v57, %v8981_v25  ;;  %v8629_v21 = vpop.f32.mrb[91].mxu0 }
0x4339   :  { %v8630_v22 = vadd.f32 %v8981_v25, %v8629_v21 }
0x433a   :  { %v8649_v29 = vadd.f32 %v8635_v19, %v12667_v48 }
0x433b   :  { %v8648_v56 = vadd.f32 %v8630_v22, %v12670_v37 }
0x433c   :  { %8655 = vst.msk [vmem:[#allocation5 + $0x8] sm:$0xff] %vm50_vm0, %v8649_v29 }
0x433d   :  { %8654 = vst.msk [vmem:[#allocation5] sm:$0xff] %vm50_vm0, %v8648_v56 }
0x434a   :  { %v10091_v12 = vpop.f32.mrb[92].mxu0 }
0x434b   :  { %v8645_v24 = vadd.f32 %v10091_v12, %v8981_v25  ;;  %v8639_v5 = vpop.f32.mrb[93].mxu0 }
0x434c   :  { %v8640_v27 = vadd.f32 %v8981_v25, %v8639_v5 }
0x434d   :  { %v8651_v14 = vadd.f32 %v8645_v24, %v12680_v42 }
0x434e   :  { %v8650_v43 = vadd.f32 %v8640_v27, %v12677_v55 }
0x434f   :  { %8657 = vst.msk [vmem:[#allocation5 + $0x18] sm:$0xff] %vm50_vm0, %v8651_v14 }
0x4350   :  { %8656 = vst.msk [vmem:[#allocation5 + $0x10] sm:$0xff] %vm50_vm0, %v8650_v43 }
0x4351   :  { %10984 = shalt.err (!%p10981_p12)
}
0x4352   :  { %s10985_s16 = scalar_lea.hbm %s12838_s10, 512 }
0x4353   :  { %p10986_p13 = scmp.ne.s32.totalorder %s12838_s10, %s10985_s16  ;;  %p10989_p0 = scmp.lt.u32.totalorder %s10985_s16, %s12838_s10 }
0x4355   :  { %p10991_p1 = pnand %p10989_p0, %p10986_p13 }
0x4357   :  { %10994 = shalt.err (!%p10991_p1)
}
0x4358   :  { %8681 = dma.vmem_to_hbm [thread:$0]  %s8676_s22, 512, %s12838_s10, [#allocation6], %s11014_s28, %s11014_s28, %s11011_s13  }
0x4359   :  { %10995 = dma.done.wait [#allocation4], 256  }
0x435a   :  { %10996 = vsyncadd [#allocation4], 4294967040 }
0x435b   :  { %10997 = dma.done.wait [#allocation6], 512  }
0x435c   :  { %10998 = vsyncadd [#allocation6], 4294966784 }
0x435d   :  { %8688 = vsyncpa [#allocation4], 1 }
0x435e   :  { %8689 = vsyncpa [#allocation6], 1 }

</bundles_post_ra>
